<compile_context>
chip_gen: v5e
topology: v5e:2x2
jax: 0.10.0
libtpu: 0.0.40
codegen_flags: <defaults>
</compile_context>

<pallas_src>
import functools

import jax
import jax.numpy as jnp
import numpy as np
from jax import lax
from jax.experimental import pallas as pl
from jax.experimental.pallas import tpu as pltpu

# Sublane-aligned offset (f32 sublane tile = 8) at which the padded interior is stored inside the
# scratch buffers, so the pad-interior store is an aligned (masked-tail) store.  The conv taps
# then read at offset OFF - 1 + k*d (unaligned *loads*, which are cheap and well supported).
OFF = 8


def _downblock_kernel(pool, d, Hh, Wh, Cin, Cout, im2col,
                      x_ref, w1_ref, b1_ref, w2_ref, b2_ref, o_ref,
                      pad1_ref, pad2_ref):
    # Static spatial sizes (PyTorch Conv2d k=3, padding=1, dilation=d: out = in + 2 - 2d).
    Ho1, Wo1 = Hh + 2 - 2 * d, Wh + 2 - 2 * d
    Ho2, Wo2 = Ho1 + 2 - 2 * d, Wo1 + 2 - 2 * d

    # ---------------- fused MaxPool2d(2, 2) ----------------
    if pool:
        v = x_ref[0]                          # (2*Hh, Wh, 2, Cin)
        v = jnp.max(v, axis=2)                # reduce W-pair (sublane) -> (2*Hh, Wh, Cin)
        v = v.reshape(Hh, 2, Wh, Cin)         # split leading dim only
        pooled = jnp.max(v, axis=1)           # reduce H-pair -> (Hh, Wh, Cin)
    else:
        pooled = x_ref[0]                     # (Hh, Wh, Cin)

    def pad_store(pad_ref, val, h, w):
        # Zero-fill the scratch, then store the interior at sublane-aligned column OFF.
        # The logically padded array lives at pad_ref[0:h+2, OFF-1:OFF+w+1, :].
        pad_ref[...] = jnp.zeros(pad_ref.shape, pad_ref.dtype)
        pad_ref[1:h + 1, OFF:OFF + w, :] = val.astype(pad_ref.dtype)

    def conv_relu(pad_ref, w_ref, b_ref, Ho, Wo, Ck):
        if im2col:
            # Pack the 9 taps into the contraction dim: one (Ho*Wo, 9*Ck) x (9*Ck, Cout) matmul.
            cols = []
            for ky in range(3):
                for kx in range(3):
                    patch = pad_ref[ky * d:ky * d + Ho,
                                    OFF - 1 + kx * d:OFF - 1 + kx * d + Wo, :]
                    cols.append(patch.reshape(Ho * Wo, Ck))
            col = jnp.concatenate(cols, axis=1)                 # (Ho*Wo, 9*Ck)
            y = jnp.dot(col, w_ref[...], preferred_element_type=jnp.float32)
        else:
            # Fallback: 9 shifted matmuls accumulated in f32 (always lowers).
            y = jnp.zeros((Ho * Wo, Cout), jnp.float32)
            for ky in range(3):
                for kx in range(3):
                    patch = pad_ref[ky * d:ky * d + Ho,
                                    OFF - 1 + kx * d:OFF - 1 + kx * d + Wo, :]
                    y = y + jnp.dot(patch.reshape(Ho * Wo, Ck), w_ref[ky * 3 + kx],
                                    preferred_element_type=jnp.float32)
        y = y + b_ref[...]                                      # bias
        return jnp.maximum(y, 0.0)                              # fused ReLU

    # conv1 (+ReLU) on the pooled tile, entirely in VMEM.
    pad_store(pad1_ref, pooled, Hh, Wh)
    h1 = conv_relu(pad1_ref, w1_ref, b1_ref, Ho1, Wo1, Cin)     # (Ho1*Wo1, Cout)

    # conv2 (+ReLU) on the conv1 output, entirely in VMEM.
    pad_store(pad2_ref, h1.reshape(Ho1, Wo1, Cout), Ho1, Wo1)
    h2 = conv_relu(pad2_ref, w2_ref, b2_ref, Ho2, Wo2, Cout)    # (Ho2*Wo2, Cout)

    # Single 2D store of the final result (no in-kernel 3D reshape of the output).
    o_ref[0] = h2.astype(o_ref.dtype)


def downblock_forward_nhwc(x, w1, b1, w2, b2, *, dilation, pool, im2col=True):
    """x: (N, H, W, Cin) NHWC; w: (3, 3, Cin, Cout) HWIO; b: (Cout,)."""
    N, H, W, Cin = x.shape
    Cout = w1.shape[-1]
    d = int(dilation)

    if pool:
        Hh, Wh = H // 2, W // 2                       # floor, like nn.MaxPool2d
        x = x[:, :Hh * 2, :Wh * 2, :]
        x_in = x.reshape(N, Hh * 2, Wh, 2, Cin)       # free view reshape (W-pairs explicit)
        in_spec = pl.BlockSpec((1, Hh * 2, Wh, 2, Cin), lambda n: (n, 0, 0, 0, 0))
    else:
        Hh, Wh = H, W
        x_in = x
        in_spec = pl.BlockSpec((1, Hh, Wh, Cin), lambda n: (n, 0, 0, 0))

    Ho1, Wo1 = Hh + 2 - 2 * d, Wh + 2 - 2 * d
    Ho2, Wo2 = Ho1 + 2 - 2 * d, Wo1 + 2 - 2 * d
    assert min(Ho1, Wo1, Ho2, Wo2) > 0, "spatial dims too small for this dilation"

    if im2col:
        w1k = w1.reshape(9 * Cin, Cout)
        w2k = w2.reshape(9 * Cout, Cout)
        w1_spec = pl.BlockSpec((9 * Cin, Cout), lambda n: (0, 0))
        w2_spec = pl.BlockSpec((9 * Cout, Cout), lambda n: (0, 0))
    else:
        w1k = w1.reshape(9, Cin, Cout)
        w2k = w2.reshape(9, Cout, Cout)
        w1_spec = pl.BlockSpec((9, Cin, Cout), lambda n: (0, 0, 0))
        w2_spec = pl.BlockSpec((9, Cout, Cout), lambda n: (0, 0, 0))

    b1k = b1.reshape(1, Cout)
    b2k = b2.reshape(1, Cout)

    kernel = functools.partial(_downblock_kernel, pool, d, Hh, Wh, Cin, Cout, im2col)

    out = pl.pallas_call(
        kernel,
        out_shape=jax.ShapeDtypeStruct((N, Ho2 * Wo2, Cout), x.dtype),
        grid=(N,),
        in_specs=[
            in_spec,
            w1_spec,
            pl.BlockSpec((1, Cout), lambda n: (0, 0)),
            w2_spec,
            pl.BlockSpec((1, Cout), lambda n: (0, 0)),
        ],
        out_specs=pl.BlockSpec((1, Ho2 * Wo2, Cout), lambda n: (n, 0, 0)),
        scratch_shapes=[
            # padded pooled input / padded conv1 output (interior stored at column OFF)
            pltpu.VMEM((Hh + 2, Wh + OFF + 1, Cin), jnp.float32),
            pltpu.VMEM((Ho1 + 2, Wo1 + OFF + 1, Cout), jnp.float32),
        ],
        compiler_params=pltpu.CompilerParams(dimension_semantics=("parallel",)),
    )(x_in, w1k, b1k, w2k, b2k)

    return out.reshape(N, Ho2, Wo2, Cout)


class DownBlockPallas:
    """Pallas-TPU DownBlock: [MaxPool2d(2,2)] -> Conv3x3 -> ReLU -> Conv3x3 -> ReLU."""

    def __init__(self, inchannels, outchannels, dilation, pool=True,
                 key=jax.random.PRNGKey(0)):
        self.pool = pool
        self.dilation = dilation
        self._im2col = True   # preferred path; auto-falls back if the lane concat doesn't lower
        k1, k2, k3, k4 = jax.random.split(key, 4)

        def kaiming_w(k, cin, cout):
            # nn.init.kaiming_normal_ default: fan_in = cin*3*3, gain = sqrt(2)
            std = np.sqrt(2.0 / (cin * 9))
            return std * jax.random.normal(k, (3, 3, cin, cout), jnp.float32)

        def default_bias(k, cin, cout):
            # PyTorch Conv2d default bias init: U(-1/sqrt(fan_in), 1/sqrt(fan_in))
            bound = 1.0 / np.sqrt(cin * 9)
            return jax.random.uniform(k, (cout,), jnp.float32, -bound, bound)

        self.w1 = kaiming_w(k1, inchannels, outchannels)
        self.b1 = default_bias(k2, inchannels, outchannels)
        self.w2 = kaiming_w(k3, outchannels, outchannels)
        self.b2 = default_bias(k4, outchannels, outchannels)

    def forward_nhwc(self, x_nhwc):
        try:
            out = downblock_forward_nhwc(x_nhwc, self.w1, self.b1, self.w2, self.b2,
                                         dilation=self.dilation, pool=self.pool,
                                         im2col=self._im2col)
            return jax.block_until_ready(out)
        except Exception:
            if not self._im2col:
                raise
            # This Mosaic build can't lower the small unaligned lane-dim concat used by the
            # im2col path; fall back to 9 accumulated shifted matmuls (still one fused kernel).
            self._im2col = False
            out = downblock_forward_nhwc(x_nhwc, self.w1, self.b1, self.w2, self.b2,
                                         dilation=self.dilation, pool=self.pool, im2col=False)
            return jax.block_until_ready(out)

    def __call__(self, x_nchw):
        # NCHW API for parity with the PyTorch module.  When chaining blocks, prefer
        # forward_nhwc() so activations stay channels-last end-to-end (no per-block transposes).
        x = jnp.transpose(x_nchw, (0, 2, 3, 1))           # NCHW -> NHWC
        y = self.forward_nhwc(x)
        return jnp.transpose(y, (0, 3, 1, 2))             # NHWC -> NCHW


# ------------------------------ reference (pure JAX) ----------------------------

def _reference(block, x_nchw):
    x = jnp.transpose(x_nchw, (0, 2, 3, 1))
    if block.pool:
        N, H, W, C = x.shape
        x = x.reshape(N, H // 2, 2, W // 2, 2, C).max(axis=(2, 4))
    d = block.dilation
    for w, b in ((block.w1, block.b1), (block.w2, block.b2)):
        y = lax.conv_general_dilated(
            x, w, window_strides=(1, 1), padding=((1, 1), (1, 1)),
            rhs_dilation=(d, d),
            dimension_numbers=("NHWC", "HWIO", "NHWC"))
        x = jnp.maximum(y + b, 0.0)
    return jnp.transpose(x, (0, 3, 1, 2))


if __name__ == "__main__":
    key = jax.random.PRNGKey(0)
    kx1, kp1, kx2, kp2 = jax.random.split(key, 4)

    # Test 1: canonical DownBlock (pool=True, dilation=1).
    N, Cin, H, W, Cout, dil = 2, 4, 16, 16, 8, 1
    x1 = jax.random.normal(kx1, (N, Cin, H, W), jnp.float32)
    blk1 = DownBlockPallas(Cin, Cout, dil, pool=True, key=kp1)
    out1 = jax.block_until_ready(blk1(x1))
    assert out1.shape == (N, Cout, H // 2, W // 2), out1.shape
    ref1 = jax.block_until_ready(_reference(blk1, x1))
    np.testing.assert_allclose(np.asarray(out1), np.asarray(ref1), rtol=1e-4, atol=1e-4)

    # Test 2: no pooling, dilation=2.
    x2 = jax.random.normal(kx2, (1, 3, 12, 12), jnp.float32)
    blk2 = DownBlockPallas(3, 6, 2, pool=False, key=kp2)
    out2 = jax.block_until_ready(blk2(x2))
    ref2 = jax.block_until_ready(_reference(blk2, x2))
    np.testing.assert_allclose(np.asarray(out2), np.asarray(ref2), rtol=1e-4, atol=1e-4)

    print("KERNEL_OK")
</pallas_src>

<mosaic_0001>
module attributes {stable_mosaic.version = 11 : i64} {
  func.func @_downblock_kernel(%arg0: i32, %arg1: memref<1x16x8x2x4xf32, #tpu.memory_space<vmem>>, %arg2: memref<36x8xf32, #tpu.memory_space<vmem>>, %arg3: memref<1x8xf32, #tpu.memory_space<vmem>>, %arg4: memref<72x8xf32, #tpu.memory_space<vmem>>, %arg5: memref<1x8xf32, #tpu.memory_space<vmem>>, %arg6: memref<1x64x8xf32, #tpu.memory_space<vmem>>, %arg7: memref<10x17x4xf32, #tpu.memory_space<vmem>>, %arg8: memref<10x17x8xf32, #tpu.memory_space<vmem>>) attributes {dimension_semantics = [#tpu.dimension_semantics<parallel>], iteration_bounds = array<i64: 2>, scalar_prefetch = 0 : i64, scratch_operands = 2 : i64, tpu.core_type = #tpu.core_type<tc>, window_params = [{transform_indices = @transform_0, window_bounds = array<i64: 1, 16, 8, 2, 4>}, {pipeline_mode = #tpu.pipeline_mode<synchronous>, transform_indices = @transform_1, window_bounds = array<i64: 36, 8>}, {pipeline_mode = #tpu.pipeline_mode<synchronous>, transform_indices = @transform_2, window_bounds = array<i64: 1, 8>}, {pipeline_mode = #tpu.pipeline_mode<synchronous>, transform_indices = @transform_3, window_bounds = array<i64: 72, 8>}, {pipeline_mode = #tpu.pipeline_mode<synchronous>, transform_indices = @transform_4, window_bounds = array<i64: 1, 8>}, {transform_indices = @transform_5, window_bounds = array<i64: 1, 64, 8>}]} {
    %c0 = arith.constant 0 : index
    %c0_0 = arith.constant 0 : index
    %c0_1 = arith.constant 0 : index
    %c0_2 = arith.constant 0 : index
    %c0_3 = arith.constant 0 : index
    %0 = vector.load %arg1[%c0, %c0_0, %c0_1, %c0_2, %c0_3] : memref<1x16x8x2x4xf32, #tpu.memory_space<vmem>>, vector<1x16x8x2x4xf32>
    %1 = vector.shape_cast %0 : vector<1x16x8x2x4xf32> to vector<16x8x2x4xf32>
    %cst = arith.constant dense<0xFF800000> : vector<16x8x4xf32>
    %2 = vector.multi_reduction <maximumf>, %1, %cst [2] : vector<16x8x2x4xf32> to vector<16x8x4xf32>
    %3 = vector.shape_cast %2 : vector<16x8x4xf32> to vector<8x2x8x4xf32>
    %cst_4 = arith.constant dense<0xFF800000> : vector<8x8x4xf32>
    %4 = vector.multi_reduction <maximumf>, %3, %cst_4 [1] : vector<8x2x8x4xf32> to vector<8x8x4xf32>
    %cst_5 = arith.constant 0.000000e+00 : f32
    %5 = vector.broadcast %cst_5 : f32 to vector<10x17x4xf32>
    %c0_6 = arith.constant 0 : index
    %c0_7 = arith.constant 0 : index
    %c0_8 = arith.constant 0 : index
    %6 = vector.load %arg7[%c0_6, %c0_7, %c0_8] : memref<10x17x4xf32, #tpu.memory_space<vmem>>, vector<10x17x4xf32>
    tpu.vector_store %arg7[%c0_6, %c0_7, %c0_8], %5 {strides = array<i32>} : memref<10x17x4xf32, #tpu.memory_space<vmem>>, vector<10x17x4xf32>,
    %c1 = arith.constant 1 : index
    %c8 = arith.constant 8 : index
    %c0_9 = arith.constant 0 : index
    %7 = vector.load %arg7[%c1, %c8, %c0_9] : memref<10x17x4xf32, #tpu.memory_space<vmem>>, vector<8x8x4xf32>
    tpu.vector_store %arg7[%c1, %c8, %c0_9], %4 {strides = array<i32>} : memref<10x17x4xf32, #tpu.memory_space<vmem>>, vector<8x8x4xf32>,
    %c0_10 = arith.constant 0 : index
    %c7 = arith.constant 7 : index
    %c0_11 = arith.constant 0 : index
    %8 = vector.load %arg7[%c0_10, %c7, %c0_11] : memref<10x17x4xf32, #tpu.memory_space<vmem>>, vector<8x8x4xf32>
    %9 = vector.shape_cast %8 : vector<8x8x4xf32> to vector<64x4xf32>
    %c0_12 = arith.constant 0 : index
    %c8_13 = arith.constant 8 : index
    %c0_14 = arith.constant 0 : index
    %10 = vector.load %arg7[%c0_12, %c8_13, %c0_14] : memref<10x17x4xf32, #tpu.memory_space<vmem>>, vector<8x8x4xf32>
    %11 = vector.shape_cast %10 : vector<8x8x4xf32> to vector<64x4xf32>
    %c0_15 = arith.constant 0 : index
    %c9 = arith.constant 9 : index
    %c0_16 = arith.constant 0 : index
    %12 = vector.load %arg7[%c0_15, %c9, %c0_16] : memref<10x17x4xf32, #tpu.memory_space<vmem>>, vector<8x8x4xf32>
    %13 = vector.shape_cast %12 : vector<8x8x4xf32> to vector<64x4xf32>
    %c1_17 = arith.constant 1 : index
    %c7_18 = arith.constant 7 : index
    %c0_19 = arith.constant 0 : index
    %14 = vector.load %arg7[%c1_17, %c7_18, %c0_19] : memref<10x17x4xf32, #tpu.memory_space<vmem>>, vector<8x8x4xf32>
    %15 = vector.shape_cast %14 : vector<8x8x4xf32> to vector<64x4xf32>
    %c1_20 = arith.constant 1 : index
    %c8_21 = arith.constant 8 : index
    %c0_22 = arith.constant 0 : index
    %16 = vector.load %arg7[%c1_20, %c8_21, %c0_22] : memref<10x17x4xf32, #tpu.memory_space<vmem>>, vector<8x8x4xf32>
    %17 = vector.shape_cast %16 : vector<8x8x4xf32> to vector<64x4xf32>
    %c1_23 = arith.constant 1 : index
    %c9_24 = arith.constant 9 : index
    %c0_25 = arith.constant 0 : index
    %18 = vector.load %arg7[%c1_23, %c9_24, %c0_25] : memref<10x17x4xf32, #tpu.memory_space<vmem>>, vector<8x8x4xf32>
    %19 = vector.shape_cast %18 : vector<8x8x4xf32> to vector<64x4xf32>
    %c2 = arith.constant 2 : index
    %c7_26 = arith.constant 7 : index
    %c0_27 = arith.constant 0 : index
    %20 = vector.load %arg7[%c2, %c7_26, %c0_27] : memref<10x17x4xf32, #tpu.memory_space<vmem>>, vector<8x8x4xf32>
    %21 = vector.shape_cast %20 : vector<8x8x4xf32> to vector<64x4xf32>
    %c2_28 = arith.constant 2 : index
    %c8_29 = arith.constant 8 : index
    %c0_30 = arith.constant 0 : index
    %22 = vector.load %arg7[%c2_28, %c8_29, %c0_30] : memref<10x17x4xf32, #tpu.memory_space<vmem>>, vector<8x8x4xf32>
    %23 = vector.shape_cast %22 : vector<8x8x4xf32> to vector<64x4xf32>
    %c2_31 = arith.constant 2 : index
    %c9_32 = arith.constant 9 : index
    %c0_33 = arith.constant 0 : index
    %24 = vector.load %arg7[%c2_31, %c9_32, %c0_33] : memref<10x17x4xf32, #tpu.memory_space<vmem>>, vector<8x8x4xf32>
    %25 = vector.shape_cast %24 : vector<8x8x4xf32> to vector<64x4xf32>
    %26 = tpu.concatenate %9, %11, %13, %15, %17, %19, %21, %23, %25 in 1 : vector<64x4xf32>, vector<64x4xf32>, vector<64x4xf32>, vector<64x4xf32>, vector<64x4xf32>, vector<64x4xf32>, vector<64x4xf32>, vector<64x4xf32>, vector<64x4xf32> -> vector<64x36xf32>
    %c0_34 = arith.constant 0 : index
    %c0_35 = arith.constant 0 : index
    %27 = vector.load %arg2[%c0_34, %c0_35] : memref<36x8xf32, #tpu.memory_space<vmem>>, vector<36x8xf32>
    %cst_36 = arith.constant dense<0.000000e+00> : vector<64x8xf32>
    %28 = tpu.matmul %26, %27, %cst_36 {dimension_numbers = #tpu.dot_dimension_numbers<[1], [0], [0], [1], [0, 0, 1, 1], [], []>} : vector<64x36xf32>, vector<36x8xf32>, vector<64x8xf32> -> vector<64x8xf32>
    %c0_37 = arith.constant 0 : index
    %c0_38 = arith.constant 0 : index
    %29 = vector.load %arg3[%c0_37, %c0_38] : memref<1x8xf32, #tpu.memory_space<vmem>>, vector<1x8xf32>
    %30 = vector.broadcast %29 : vector<1x8xf32> to vector<64x8xf32>
    %31 = arith.addf %28, %30 : vector<64x8xf32>
    %cst_39 = arith.constant 0.000000e+00 : f32
    %32 = vector.broadcast %cst_39 : f32 to vector<64x8xf32>
    %33 = arith.maximumf %31, %32 : vector<64x8xf32>
    %34 = vector.shape_cast %33 : vector<64x8xf32> to vector<8x8x8xf32>
    %cst_40 = arith.constant 0.000000e+00 : f32
    %35 = vector.broadcast %cst_40 : f32 to vector<10x17x8xf32>
    %c0_41 = arith.constant 0 : index
    %c0_42 = arith.constant 0 : index
    %c0_43 = arith.constant 0 : index
    %36 = vector.load %arg8[%c0_41, %c0_42, %c0_43] : memref<10x17x8xf32, #tpu.memory_space<vmem>>, vector<10x17x8xf32>
    tpu.vector_store %arg8[%c0_41, %c0_42, %c0_43], %35 {strides = array<i32>} : memref<10x17x8xf32, #tpu.memory_space<vmem>>, vector<10x17x8xf32>,
    %c1_44 = arith.constant 1 : index
    %c8_45 = arith.constant 8 : index
    %c0_46 = arith.constant 0 : index
    %37 = vector.load %arg8[%c1_44, %c8_45, %c0_46] : memref<10x17x8xf32, #tpu.memory_space<vmem>>, vector<8x8x8xf32>
    tpu.vector_store %arg8[%c1_44, %c8_45, %c0_46], %34 {strides = array<i32>} : memref<10x17x8xf32, #tpu.memory_space<vmem>>, vector<8x8x8xf32>,
    %c0_47 = arith.constant 0 : index
    %c7_48 = arith.constant 7 : index
    %c0_49 = arith.constant 0 : index
    %38 = vector.load %arg8[%c0_47, %c7_48, %c0_49] : memref<10x17x8xf32, #tpu.memory_space<vmem>>, vector<8x8x8xf32>
    %39 = vector.shape_cast %38 : vector<8x8x8xf32> to vector<64x8xf32>
    %c0_50 = arith.constant 0 : index
    %c8_51 = arith.constant 8 : index
    %c0_52 = arith.constant 0 : index
    %40 = vector.load %arg8[%c0_50, %c8_51, %c0_52] : memref<10x17x8xf32, #tpu.memory_space<vmem>>, vector<8x8x8xf32>
    %41 = vector.shape_cast %40 : vector<8x8x8xf32> to vector<64x8xf32>
    %c0_53 = arith.constant 0 : index
    %c9_54 = arith.constant 9 : index
    %c0_55 = arith.constant 0 : index
    %42 = vector.load %arg8[%c0_53, %c9_54, %c0_55] : memref<10x17x8xf32, #tpu.memory_space<vmem>>, vector<8x8x8xf32>
    %43 = vector.shape_cast %42 : vector<8x8x8xf32> to vector<64x8xf32>
    %c1_56 = arith.constant 1 : index
    %c7_57 = arith.constant 7 : index
    %c0_58 = arith.constant 0 : index
    %44 = vector.load %arg8[%c1_56, %c7_57, %c0_58] : memref<10x17x8xf32, #tpu.memory_space<vmem>>, vector<8x8x8xf32>
    %45 = vector.shape_cast %44 : vector<8x8x8xf32> to vector<64x8xf32>
    %c1_59 = arith.constant 1 : index
    %c8_60 = arith.constant 8 : index
    %c0_61 = arith.constant 0 : index
    %46 = vector.load %arg8[%c1_59, %c8_60, %c0_61] : memref<10x17x8xf32, #tpu.memory_space<vmem>>, vector<8x8x8xf32>
    %47 = vector.shape_cast %46 : vector<8x8x8xf32> to vector<64x8xf32>
    %c1_62 = arith.constant 1 : index
    %c9_63 = arith.constant 9 : index
    %c0_64 = arith.constant 0 : index
    %48 = vector.load %arg8[%c1_62, %c9_63, %c0_64] : memref<10x17x8xf32, #tpu.memory_space<vmem>>, vector<8x8x8xf32>
    %49 = vector.shape_cast %48 : vector<8x8x8xf32> to vector<64x8xf32>
    %c2_65 = arith.constant 2 : index
    %c7_66 = arith.constant 7 : index
    %c0_67 = arith.constant 0 : index
    %50 = vector.load %arg8[%c2_65, %c7_66, %c0_67] : memref<10x17x8xf32, #tpu.memory_space<vmem>>, vector<8x8x8xf32>
    %51 = vector.shape_cast %50 : vector<8x8x8xf32> to vector<64x8xf32>
    %c2_68 = arith.constant 2 : index
    %c8_69 = arith.constant 8 : index
    %c0_70 = arith.constant 0 : index
    %52 = vector.load %arg8[%c2_68, %c8_69, %c0_70] : memref<10x17x8xf32, #tpu.memory_space<vmem>>, vector<8x8x8xf32>
    %53 = vector.shape_cast %52 : vector<8x8x8xf32> to vector<64x8xf32>
    %c2_71 = arith.constant 2 : index
    %c9_72 = arith.constant 9 : index
    %c0_73 = arith.constant 0 : index
    %54 = vector.load %arg8[%c2_71, %c9_72, %c0_73] : memref<10x17x8xf32, #tpu.memory_space<vmem>>, vector<8x8x8xf32>
    %55 = vector.shape_cast %54 : vector<8x8x8xf32> to vector<64x8xf32>
    %56 = tpu.concatenate %39, %41, %43, %45, %47, %49, %51, %53, %55 in 1 : vector<64x8xf32>, vector<64x8xf32>, vector<64x8xf32>, vector<64x8xf32>, vector<64x8xf32>, vector<64x8xf32>, vector<64x8xf32>, vector<64x8xf32>, vector<64x8xf32> -> vector<64x72xf32>
    %c0_74 = arith.constant 0 : index
    %c0_75 = arith.constant 0 : index
    %57 = vector.load %arg4[%c0_74, %c0_75] : memref<72x8xf32, #tpu.memory_space<vmem>>, vector<72x8xf32>
    %cst_76 = arith.constant dense<0.000000e+00> : vector<64x8xf32>
    %58 = tpu.matmul %56, %57, %cst_76 {dimension_numbers = #tpu.dot_dimension_numbers<[1], [0], [0], [1], [0, 0, 1, 1], [], []>} : vector<64x72xf32>, vector<72x8xf32>, vector<64x8xf32> -> vector<64x8xf32>
    %c0_77 = arith.constant 0 : index
    %c0_78 = arith.constant 0 : index
    %59 = vector.load %arg5[%c0_77, %c0_78] : memref<1x8xf32, #tpu.memory_space<vmem>>, vector<1x8xf32>
    %60 = vector.broadcast %59 : vector<1x8xf32> to vector<64x8xf32>
    %61 = arith.addf %58, %60 : vector<64x8xf32>
    %cst_79 = arith.constant 0.000000e+00 : f32
    %62 = vector.broadcast %cst_79 : f32 to vector<64x8xf32>
    %63 = arith.maximumf %61, %62 : vector<64x8xf32>
    %c0_80 = arith.constant 0 : index
    %c0_81 = arith.constant 0 : index
    %c0_82 = arith.constant 0 : index
    %64 = vector.load %arg6[%c0_80, %c0_81, %c0_82] : memref<1x64x8xf32, #tpu.memory_space<vmem>>, vector<1x64x8xf32>
    %65 = vector.shape_cast %64 : vector<1x64x8xf32> to vector<64x8xf32>
    %66 = vector.shape_cast %63 : vector<64x8xf32> to vector<1x64x8xf32>
    tpu.vector_store %arg6[%c0_80, %c0_81, %c0_82], %66 {strides = array<i32>} : memref<1x64x8xf32, #tpu.memory_space<vmem>>, vector<1x64x8xf32>,
    return
  }
  func.func @transform_0(%arg0: i32) -> (i32, i32, i32, i32, i32) {
    %c0_i32 = arith.constant 0 : i32
    %c0_i32_0 = arith.constant 0 : i32
    %c0_i32_1 = arith.constant 0 : i32
    %c0_i32_2 = arith.constant 0 : i32
    %c0_i32_3 = arith.constant 0 : i32
    return %arg0, %c0_i32, %c0_i32_0, %c0_i32_1, %c0_i32_2 : i32, i32, i32, i32, i32
  }
  func.func @transform_1(%arg0: i32) -> (i32, i32) {
    %c0_i32 = arith.constant 0 : i32
    %c0_i32_0 = arith.constant 0 : i32
    %c0_i32_1 = arith.constant 0 : i32
    return %c0_i32, %c0_i32_0 : i32, i32
  }
  func.func @transform_2(%arg0: i32) -> (i32, i32) {
    %c0_i32 = arith.constant 0 : i32
    %c0_i32_0 = arith.constant 0 : i32
    %c0_i32_1 = arith.constant 0 : i32
    return %c0_i32, %c0_i32_0 : i32, i32
  }
  func.func @transform_3(%arg0: i32) -> (i32, i32) {
    %c0_i32 = arith.constant 0 : i32
    %c0_i32_0 = arith.constant 0 : i32
    %c0_i32_1 = arith.constant 0 : i32
    return %c0_i32, %c0_i32_0 : i32, i32
  }
  func.func @transform_4(%arg0: i32) -> (i32, i32) {
    %c0_i32 = arith.constant 0 : i32
    %c0_i32_0 = arith.constant 0 : i32
    %c0_i32_1 = arith.constant 0 : i32
    return %c0_i32, %c0_i32_0 : i32, i32
  }
  func.func @transform_5(%arg0: i32) -> (i32, i32, i32) {
    %c0_i32 = arith.constant 0 : i32
    %c0_i32_0 = arith.constant 0 : i32
    %c0_i32_1 = arith.constant 0 : i32
    return %arg0, %c0_i32, %c0_i32_0 : i32, i32, i32
  }
}

module attributes {stable_mosaic.version = 11 : i64} {
  func.func @_downblock_kernel(%arg0: i32, %arg1: memref<1x16x8x2x4xf32, #tpu.memory_space<vmem>>, %arg2: memref<9x4x8xf32, #tpu.memory_space<vmem>>, %arg3: memref<1x8xf32, #tpu.memory_space<vmem>>, %arg4: memref<9x8x8xf32, #tpu.memory_space<vmem>>, %arg5: memref<1x8xf32, #tpu.memory_space<vmem>>, %arg6: memref<1x64x8xf32, #tpu.memory_space<vmem>>, %arg7: memref<10x17x4xf32, #tpu.memory_space<vmem>>, %arg8: memref<10x17x8xf32, #tpu.memory_space<vmem>>) attributes {dimension_semantics = [#tpu.dimension_semantics<parallel>], iteration_bounds = array<i64: 2>, scalar_prefetch = 0 : i64, scratch_operands = 2 : i64, tpu.core_type = #tpu.core_type<tc>, window_params = [{transform_indices = @transform_0, window_bounds = array<i64: 1, 16, 8, 2, 4>}, {pipeline_mode = #tpu.pipeline_mode<synchronous>, transform_indices = @transform_1, window_bounds = array<i64: 9, 4, 8>}, {pipeline_mode = #tpu.pipeline_mode<synchronous>, transform_indices = @transform_2, window_bounds = array<i64: 1, 8>}, {pipeline_mode = #tpu.pipeline_mode<synchronous>, transform_indices = @transform_3, window_bounds = array<i64: 9, 8, 8>}, {pipeline_mode = #tpu.pipeline_mode<synchronous>, transform_indices = @transform_4, window_bounds = array<i64: 1, 8>}, {transform_indices = @transform_5, window_bounds = array<i64: 1, 64, 8>}]} {
    %c0 = arith.constant 0 : index
    %c0_0 = arith.constant 0 : index
    %c0_1 = arith.constant 0 : index
    %c0_2 = arith.constant 0 : index
    %c0_3 = arith.constant 0 : index
    %0 = vector.load %arg1[%c0, %c0_0, %c0_1, %c0_2, %c0_3] : memref<1x16x8x2x4xf32, #tpu.memory_space<vmem>>, vector<1x16x8x2x4xf32>
    %1 = vector.shape_cast %0 : vector<1x16x8x2x4xf32> to vector<16x8x2x4xf32>
    %cst = arith.constant dense<0xFF800000> : vector<16x8x4xf32>
    %2 = vector.multi_reduction <maximumf>, %1, %cst [2] : vector<16x8x2x4xf32> to vector<16x8x4xf32>
    %3 = vector.shape_cast %2 : vector<16x8x4xf32> to vector<8x2x8x4xf32>
    %cst_4 = arith.constant dense<0xFF800000> : vector<8x8x4xf32>
    %4 = vector.multi_reduction <maximumf>, %3, %cst_4 [1] : vector<8x2x8x4xf32> to vector<8x8x4xf32>
    %cst_5 = arith.constant 0.000000e+00 : f32
    %5 = vector.broadcast %cst_5 : f32 to vector<10x17x4xf32>
    %c0_6 = arith.constant 0 : index
    %c0_7 = arith.constant 0 : index
    %c0_8 = arith.constant 0 : index
    %6 = vector.load %arg7[%c0_6, %c0_7, %c0_8] : memref<10x17x4xf32, #tpu.memory_space<vmem>>, vector<10x17x4xf32>
    tpu.vector_store %arg7[%c0_6, %c0_7, %c0_8], %5 {strides = array<i32>} : memref<10x17x4xf32, #tpu.memory_space<vmem>>, vector<10x17x4xf32>,
    %c1 = arith.constant 1 : index
    %c8 = arith.constant 8 : index
    %c0_9 = arith.constant 0 : index
    %7 = vector.load %arg7[%c1, %c8, %c0_9] : memref<10x17x4xf32, #tpu.memory_space<vmem>>, vector<8x8x4xf32>
    tpu.vector_store %arg7[%c1, %c8, %c0_9], %4 {strides = array<i32>} : memref<10x17x4xf32, #tpu.memory_space<vmem>>, vector<8x8x4xf32>,
    %cst_10 = arith.constant 0.000000e+00 : f32
    %8 = vector.broadcast %cst_10 : f32 to vector<64x8xf32>
    %c0_11 = arith.constant 0 : index
    %c7 = arith.constant 7 : index
    %c0_12 = arith.constant 0 : index
    %9 = vector.load %arg7[%c0_11, %c7, %c0_12] : memref<10x17x4xf32, #tpu.memory_space<vmem>>, vector<8x8x4xf32>
    %10 = vector.shape_cast %9 : vector<8x8x4xf32> to vector<64x4xf32>
    %c0_13 = arith.constant 0 : index
    %c0_14 = arith.constant 0 : index
    %c0_15 = arith.constant 0 : index
    %11 = vector.load %arg2[%c0_13, %c0_14, %c0_15] : memref<9x4x8xf32, #tpu.memory_space<vmem>>, vector<1x4x8xf32>
    %12 = vector.shape_cast %11 : vector<1x4x8xf32> to vector<4x8xf32>
    %cst_16 = arith.constant dense<0.000000e+00> : vector<64x8xf32>
    %13 = tpu.matmul %10, %12, %cst_16 {dimension_numbers = #tpu.dot_dimension_numbers<[1], [0], [0], [1], [0, 0, 1, 1], [], []>} : vector<64x4xf32>, vector<4x8xf32>, vector<64x8xf32> -> vector<64x8xf32>
    %14 = arith.addf %8, %13 : vector<64x8xf32>
    %c0_17 = arith.constant 0 : index
    %c8_18 = arith.constant 8 : index
    %c0_19 = arith.constant 0 : index
    %15 = vector.load %arg7[%c0_17, %c8_18, %c0_19] : memref<10x17x4xf32, #tpu.memory_space<vmem>>, vector<8x8x4xf32>
    %16 = vector.shape_cast %15 : vector<8x8x4xf32> to vector<64x4xf32>
    %c1_20 = arith.constant 1 : index
    %c0_21 = arith.constant 0 : index
    %c0_22 = arith.constant 0 : index
    %17 = vector.load %arg2[%c1_20, %c0_21, %c0_22] : memref<9x4x8xf32, #tpu.memory_space<vmem>>, vector<1x4x8xf32>
    %18 = vector.shape_cast %17 : vector<1x4x8xf32> to vector<4x8xf32>
    %cst_23 = arith.constant dense<0.000000e+00> : vector<64x8xf32>
    %19 = tpu.matmul %16, %18, %cst_23 {dimension_numbers = #tpu.dot_dimension_numbers<[1], [0], [0], [1], [0, 0, 1, 1], [], []>} : vector<64x4xf32>, vector<4x8xf32>, vector<64x8xf32> -> vector<64x8xf32>
    %20 = arith.addf %14, %19 : vector<64x8xf32>
    %c0_24 = arith.constant 0 : index
    %c9 = arith.constant 9 : index
    %c0_25 = arith.constant 0 : index
    %21 = vector.load %arg7[%c0_24, %c9, %c0_25] : memref<10x17x4xf32, #tpu.memory_space<vmem>>, vector<8x8x4xf32>
    %22 = vector.shape_cast %21 : vector<8x8x4xf32> to vector<64x4xf32>
    %c2 = arith.constant 2 : index
    %c0_26 = arith.constant 0 : index
    %c0_27 = arith.constant 0 : index
    %23 = vector.load %arg2[%c2, %c0_26, %c0_27] : memref<9x4x8xf32, #tpu.memory_space<vmem>>, vector<1x4x8xf32>
    %24 = vector.shape_cast %23 : vector<1x4x8xf32> to vector<4x8xf32>
    %cst_28 = arith.constant dense<0.000000e+00> : vector<64x8xf32>
    %25 = tpu.matmul %22, %24, %cst_28 {dimension_numbers = #tpu.dot_dimension_numbers<[1], [0], [0], [1], [0, 0, 1, 1], [], []>} : vector<64x4xf32>, vector<4x8xf32>, vector<64x8xf32> -> vector<64x8xf32>
    %26 = arith.addf %20, %25 : vector<64x8xf32>
    %c1_29 = arith.constant 1 : index
    %c7_30 = arith.constant 7 : index
    %c0_31 = arith.constant 0 : index
    %27 = vector.load %arg7[%c1_29, %c7_30, %c0_31] : memref<10x17x4xf32, #tpu.memory_space<vmem>>, vector<8x8x4xf32>
    %28 = vector.shape_cast %27 : vector<8x8x4xf32> to vector<64x4xf32>
    %c3 = arith.constant 3 : index
    %c0_32 = arith.constant 0 : index
    %c0_33 = arith.constant 0 : index
    %29 = vector.load %arg2[%c3, %c0_32, %c0_33] : memref<9x4x8xf32, #tpu.memory_space<vmem>>, vector<1x4x8xf32>
    %30 = vector.shape_cast %29 : vector<1x4x8xf32> to vector<4x8xf32>
    %cst_34 = arith.constant dense<0.000000e+00> : vector<64x8xf32>
    %31 = tpu.matmul %28, %30, %cst_34 {dimension_numbers = #tpu.dot_dimension_numbers<[1], [0], [0], [1], [0, 0, 1, 1], [], []>} : vector<64x4xf32>, vector<4x8xf32>, vector<64x8xf32> -> vector<64x8xf32>
    %32 = arith.addf %26, %31 : vector<64x8xf32>
    %c1_35 = arith.constant 1 : index
    %c8_36 = arith.constant 8 : index
    %c0_37 = arith.constant 0 : index
    %33 = vector.load %arg7[%c1_35, %c8_36, %c0_37] : memref<10x17x4xf32, #tpu.memory_space<vmem>>, vector<8x8x4xf32>
    %34 = vector.shape_cast %33 : vector<8x8x4xf32> to vector<64x4xf32>
    %c4 = arith.constant 4 : index
    %c0_38 = arith.constant 0 : index
    %c0_39 = arith.constant 0 : index
    %35 = vector.load %arg2[%c4, %c0_38, %c0_39] : memref<9x4x8xf32, #tpu.memory_space<vmem>>, vector<1x4x8xf32>
    %36 = vector.shape_cast %35 : vector<1x4x8xf32> to vector<4x8xf32>
    %cst_40 = arith.constant dense<0.000000e+00> : vector<64x8xf32>
    %37 = tpu.matmul %34, %36, %cst_40 {dimension_numbers = #tpu.dot_dimension_numbers<[1], [0], [0], [1], [0, 0, 1, 1], [], []>} : vector<64x4xf32>, vector<4x8xf32>, vector<64x8xf32> -> vector<64x8xf32>
    %38 = arith.addf %32, %37 : vector<64x8xf32>
    %c1_41 = arith.constant 1 : index
    %c9_42 = arith.constant 9 : index
    %c0_43 = arith.constant 0 : index
    %39 = vector.load %arg7[%c1_41, %c9_42, %c0_43] : memref<10x17x4xf32, #tpu.memory_space<vmem>>, vector<8x8x4xf32>
    %40 = vector.shape_cast %39 : vector<8x8x4xf32> to vector<64x4xf32>
    %c5 = arith.constant 5 : index
    %c0_44 = arith.constant 0 : index
    %c0_45 = arith.constant 0 : index
    %41 = vector.load %arg2[%c5, %c0_44, %c0_45] : memref<9x4x8xf32, #tpu.memory_space<vmem>>, vector<1x4x8xf32>
    %42 = vector.shape_cast %41 : vector<1x4x8xf32> to vector<4x8xf32>
    %cst_46 = arith.constant dense<0.000000e+00> : vector<64x8xf32>
    %43 = tpu.matmul %40, %42, %cst_46 {dimension_numbers = #tpu.dot_dimension_numbers<[1], [0], [0], [1], [0, 0, 1, 1], [], []>} : vector<64x4xf32>, vector<4x8xf32>, vector<64x8xf32> -> vector<64x8xf32>
    %44 = arith.addf %38, %43 : vector<64x8xf32>
    %c2_47 = arith.constant 2 : index
    %c7_48 = arith.constant 7 : index
    %c0_49 = arith.constant 0 : index
    %45 = vector.load %arg7[%c2_47, %c7_48, %c0_49] : memref<10x17x4xf32, #tpu.memory_space<vmem>>, vector<8x8x4xf32>
    %46 = vector.shape_cast %45 : vector<8x8x4xf32> to vector<64x4xf32>
    %c6 = arith.constant 6 : index
    %c0_50 = arith.constant 0 : index
    %c0_51 = arith.constant 0 : index
    %47 = vector.load %arg2[%c6, %c0_50, %c0_51] : memref<9x4x8xf32, #tpu.memory_space<vmem>>, vector<1x4x8xf32>
    %48 = vector.shape_cast %47 : vector<1x4x8xf32> to vector<4x8xf32>
    %cst_52 = arith.constant dense<0.000000e+00> : vector<64x8xf32>
    %49 = tpu.matmul %46, %48, %cst_52 {dimension_numbers = #tpu.dot_dimension_numbers<[1], [0], [0], [1], [0, 0, 1, 1], [], []>} : vector<64x4xf32>, vector<4x8xf32>, vector<64x8xf32> -> vector<64x8xf32>
    %50 = arith.addf %44, %49 : vector<64x8xf32>
    %c2_53 = arith.constant 2 : index
    %c8_54 = arith.constant 8 : index
    %c0_55 = arith.constant 0 : index
    %51 = vector.load %arg7[%c2_53, %c8_54, %c0_55] : memref<10x17x4xf32, #tpu.memory_space<vmem>>, vector<8x8x4xf32>
    %52 = vector.shape_cast %51 : vector<8x8x4xf32> to vector<64x4xf32>
    %c7_56 = arith.constant 7 : index
    %c0_57 = arith.constant 0 : index
    %c0_58 = arith.constant 0 : index
    %53 = vector.load %arg2[%c7_56, %c0_57, %c0_58] : memref<9x4x8xf32, #tpu.memory_space<vmem>>, vector<1x4x8xf32>
    %54 = vector.shape_cast %53 : vector<1x4x8xf32> to vector<4x8xf32>
    %cst_59 = arith.constant dense<0.000000e+00> : vector<64x8xf32>
    %55 = tpu.matmul %52, %54, %cst_59 {dimension_numbers = #tpu.dot_dimension_numbers<[1], [0], [0], [1], [0, 0, 1, 1], [], []>} : vector<64x4xf32>, vector<4x8xf32>, vector<64x8xf32> -> vector<64x8xf32>
    %56 = arith.addf %50, %55 : vector<64x8xf32>
    %c2_60 = arith.constant 2 : index
    %c9_61 = arith.constant 9 : index
    %c0_62 = arith.constant 0 : index
    %57 = vector.load %arg7[%c2_60, %c9_61, %c0_62] : memref<10x17x4xf32, #tpu.memory_space<vmem>>, vector<8x8x4xf32>
    %58 = vector.shape_cast %57 : vector<8x8x4xf32> to vector<64x4xf32>
    %c8_63 = arith.constant 8 : index
    %c0_64 = arith.constant 0 : index
    %c0_65 = arith.constant 0 : index
    %59 = vector.load %arg2[%c8_63, %c0_64, %c0_65] : memref<9x4x8xf32, #tpu.memory_space<vmem>>, vector<1x4x8xf32>
    %60 = vector.shape_cast %59 : vector<1x4x8xf32> to vector<4x8xf32>
    %cst_66 = arith.constant dense<0.000000e+00> : vector<64x8xf32>
    %61 = tpu.matmul %58, %60, %cst_66 {dimension_numbers = #tpu.dot_dimension_numbers<[1], [0], [0], [1], [0, 0, 1, 1], [], []>} : vector<64x4xf32>, vector<4x8xf32>, vector<64x8xf32> -> vector<64x8xf32>
    %62 = arith.addf %56, %61 : vector<64x8xf32>
    %c0_67 = arith.constant 0 : index
    %c0_68 = arith.constant 0 : index
    %63 = vector.load %arg3[%c0_67, %c0_68] : memref<1x8xf32, #tpu.memory_space<vmem>>, vector<1x8xf32>
    %64 = vector.broadcast %63 : vector<1x8xf32> to vector<64x8xf32>
    %65 = arith.addf %62, %64 : vector<64x8xf32>
    %cst_69 = arith.constant 0.000000e+00 : f32
    %66 = vector.broadcast %cst_69 : f32 to vector<64x8xf32>
    %67 = arith.maximumf %65, %66 : vector<64x8xf32>
    %68 = vector.shape_cast %67 : vector<64x8xf32> to vector<8x8x8xf32>
    %cst_70 = arith.constant 0.000000e+00 : f32
    %69 = vector.broadcast %cst_70 : f32 to vector<10x17x8xf32>
    %c0_71 = arith.constant 0 : index
    %c0_72 = arith.constant 0 : index
    %c0_73 = arith.constant 0 : index
    %70 = vector.load %arg8[%c0_71, %c0_72, %c0_73] : memref<10x17x8xf32, #tpu.memory_space<vmem>>, vector<10x17x8xf32>
    tpu.vector_store %arg8[%c0_71, %c0_72, %c0_73], %69 {strides = array<i32>} : memref<10x17x8xf32, #tpu.memory_space<vmem>>, vector<10x17x8xf32>,
    %c1_74 = arith.constant 1 : index
    %c8_75 = arith.constant 8 : index
    %c0_76 = arith.constant 0 : index
    %71 = vector.load %arg8[%c1_74, %c8_75, %c0_76] : memref<10x17x8xf32, #tpu.memory_space<vmem>>, vector<8x8x8xf32>
    tpu.vector_store %arg8[%c1_74, %c8_75, %c0_76], %68 {strides = array<i32>} : memref<10x17x8xf32, #tpu.memory_space<vmem>>, vector<8x8x8xf32>,
    %cst_77 = arith.constant 0.000000e+00 : f32
    %72 = vector.broadcast %cst_77 : f32 to vector<64x8xf32>
    %c0_78 = arith.constant 0 : index
    %c7_79 = arith.constant 7 : index
    %c0_80 = arith.constant 0 : index
    %73 = vector.load %arg8[%c0_78, %c7_79, %c0_80] : memref<10x17x8xf32, #tpu.memory_space<vmem>>, vector<8x8x8xf32>
    %74 = vector.shape_cast %73 : vector<8x8x8xf32> to vector<64x8xf32>
    %c0_81 = arith.constant 0 : index
    %c0_82 = arith.constant 0 : index
    %c0_83 = arith.constant 0 : index
    %75 = vector.load %arg4[%c0_81, %c0_82, %c0_83] : memref<9x8x8xf32, #tpu.memory_space<vmem>>, vector<1x8x8xf32>
    %76 = vector.shape_cast %75 : vector<1x8x8xf32> to vector<8x8xf32>
    %cst_84 = arith.constant dense<0.000000e+00> : vector<64x8xf32>
    %77 = tpu.matmul %74, %76, %cst_84 {dimension_numbers = #tpu.dot_dimension_numbers<[1], [0], [0], [1], [0, 0, 1, 1], [], []>} : vector<64x8xf32>, vector<8x8xf32>, vector<64x8xf32> -> vector<64x8xf32>
    %78 = arith.addf %72, %77 : vector<64x8xf32>
    %c0_85 = arith.constant 0 : index
    %c8_86 = arith.constant 8 : index
    %c0_87 = arith.constant 0 : index
    %79 = vector.load %arg8[%c0_85, %c8_86, %c0_87] : memref<10x17x8xf32, #tpu.memory_space<vmem>>, vector<8x8x8xf32>
    %80 = vector.shape_cast %79 : vector<8x8x8xf32> to vector<64x8xf32>
    %c1_88 = arith.constant 1 : index
    %c0_89 = arith.constant 0 : index
    %c0_90 = arith.constant 0 : index
    %81 = vector.load %arg4[%c1_88, %c0_89, %c0_90] : memref<9x8x8xf32, #tpu.memory_space<vmem>>, vector<1x8x8xf32>
    %82 = vector.shape_cast %81 : vector<1x8x8xf32> to vector<8x8xf32>
    %cst_91 = arith.constant dense<0.000000e+00> : vector<64x8xf32>
    %83 = tpu.matmul %80, %82, %cst_91 {dimension_numbers = #tpu.dot_dimension_numbers<[1], [0], [0], [1], [0, 0, 1, 1], [], []>} : vector<64x8xf32>, vector<8x8xf32>, vector<64x8xf32> -> vector<64x8xf32>
    %84 = arith.addf %78, %83 : vector<64x8xf32>
    %c0_92 = arith.constant 0 : index
    %c9_93 = arith.constant 9 : index
    %c0_94 = arith.constant 0 : index
    %85 = vector.load %arg8[%c0_92, %c9_93, %c0_94] : memref<10x17x8xf32, #tpu.memory_space<vmem>>, vector<8x8x8xf32>
    %86 = vector.shape_cast %85 : vector<8x8x8xf32> to vector<64x8xf32>
    %c2_95 = arith.constant 2 : index
    %c0_96 = arith.constant 0 : index
    %c0_97 = arith.constant 0 : index
    %87 = vector.load %arg4[%c2_95, %c0_96, %c0_97] : memref<9x8x8xf32, #tpu.memory_space<vmem>>, vector<1x8x8xf32>
    %88 = vector.shape_cast %87 : vector<1x8x8xf32> to vector<8x8xf32>
    %cst_98 = arith.constant dense<0.000000e+00> : vector<64x8xf32>
    %89 = tpu.matmul %86, %88, %cst_98 {dimension_numbers = #tpu.dot_dimension_numbers<[1], [0], [0], [1], [0, 0, 1, 1], [], []>} : vector<64x8xf32>, vector<8x8xf32>, vector<64x8xf32> -> vector<64x8xf32>
    %90 = arith.addf %84, %89 : vector<64x8xf32>
    %c1_99 = arith.constant 1 : index
    %c7_100 = arith.constant 7 : index
    %c0_101 = arith.constant 0 : index
    %91 = vector.load %arg8[%c1_99, %c7_100, %c0_101] : memref<10x17x8xf32, #tpu.memory_space<vmem>>, vector<8x8x8xf32>
    %92 = vector.shape_cast %91 : vector<8x8x8xf32> to vector<64x8xf32>
    %c3_102 = arith.constant 3 : index
    %c0_103 = arith.constant 0 : index
    %c0_104 = arith.constant 0 : index
    %93 = vector.load %arg4[%c3_102, %c0_103, %c0_104] : memref<9x8x8xf32, #tpu.memory_space<vmem>>, vector<1x8x8xf32>
    %94 = vector.shape_cast %93 : vector<1x8x8xf32> to vector<8x8xf32>
    %cst_105 = arith.constant dense<0.000000e+00> : vector<64x8xf32>
    %95 = tpu.matmul %92, %94, %cst_105 {dimension_numbers = #tpu.dot_dimension_numbers<[1], [0], [0], [1], [0, 0, 1, 1], [], []>} : vector<64x8xf32>, vector<8x8xf32>, vector<64x8xf32> -> vector<64x8xf32>
    %96 = arith.addf %90, %95 : vector<64x8xf32>
    %c1_106 = arith.constant 1 : index
    %c8_107 = arith.constant 8 : index
    %c0_108 = arith.constant 0 : index
    %97 = vector.load %arg8[%c1_106, %c8_107, %c0_108] : memref<10x17x8xf32, #tpu.memory_space<vmem>>, vector<8x8x8xf32>
    %98 = vector.shape_cast %97 : vector<8x8x8xf32> to vector<64x8xf32>
    %c4_109 = arith.constant 4 : index
    %c0_110 = arith.constant 0 : index
    %c0_111 = arith.constant 0 : index
    %99 = vector.load %arg4[%c4_109, %c0_110, %c0_111] : memref<9x8x8xf32, #tpu.memory_space<vmem>>, vector<1x8x8xf32>
    %100 = vector.shape_cast %99 : vector<1x8x8xf32> to vector<8x8xf32>
    %cst_112 = arith.constant dense<0.000000e+00> : vector<64x8xf32>
    %101 = tpu.matmul %98, %100, %cst_112 {dimension_numbers = #tpu.dot_dimension_numbers<[1], [0], [0], [1], [0, 0, 1, 1], [], []>} : vector<64x8xf32>, vector<8x8xf32>, vector<64x8xf32> -> vector<64x8xf32>
    %102 = arith.addf %96, %101 : vector<64x8xf32>
    %c1_113 = arith.constant 1 : index
    %c9_114 = arith.constant 9 : index
    %c0_115 = arith.constant 0 : index
    %103 = vector.load %arg8[%c1_113, %c9_114, %c0_115] : memref<10x17x8xf32, #tpu.memory_space<vmem>>, vector<8x8x8xf32>
    %104 = vector.shape_cast %103 : vector<8x8x8xf32> to vector<64x8xf32>
    %c5_116 = arith.constant 5 : index
    %c0_117 = arith.constant 0 : index
    %c0_118 = arith.constant 0 : index
    %105 = vector.load %arg4[%c5_116, %c0_117, %c0_118] : memref<9x8x8xf32, #tpu.memory_space<vmem>>, vector<1x8x8xf32>
    %106 = vector.shape_cast %105 : vector<1x8x8xf32> to vector<8x8xf32>
    %cst_119 = arith.constant dense<0.000000e+00> : vector<64x8xf32>
    %107 = tpu.matmul %104, %106, %cst_119 {dimension_numbers = #tpu.dot_dimension_numbers<[1], [0], [0], [1], [0, 0, 1, 1], [], []>} : vector<64x8xf32>, vector<8x8xf32>, vector<64x8xf32> -> vector<64x8xf32>
    %108 = arith.addf %102, %107 : vector<64x8xf32>
    %c2_120 = arith.constant 2 : index
    %c7_121 = arith.constant 7 : index
    %c0_122 = arith.constant 0 : index
    %109 = vector.load %arg8[%c2_120, %c7_121, %c0_122] : memref<10x17x8xf32, #tpu.memory_space<vmem>>, vector<8x8x8xf32>
    %110 = vector.shape_cast %109 : vector<8x8x8xf32> to vector<64x8xf32>
    %c6_123 = arith.constant 6 : index
    %c0_124 = arith.constant 0 : index
    %c0_125 = arith.constant 0 : index
    %111 = vector.load %arg4[%c6_123, %c0_124, %c0_125] : memref<9x8x8xf32, #tpu.memory_space<vmem>>, vector<1x8x8xf32>
    %112 = vector.shape_cast %111 : vector<1x8x8xf32> to vector<8x8xf32>
    %cst_126 = arith.constant dense<0.000000e+00> : vector<64x8xf32>
    %113 = tpu.matmul %110, %112, %cst_126 {dimension_numbers = #tpu.dot_dimension_numbers<[1], [0], [0], [1], [0, 0, 1, 1], [], []>} : vector<64x8xf32>, vector<8x8xf32>, vector<64x8xf32> -> vector<64x8xf32>
    %114 = arith.addf %108, %113 : vector<64x8xf32>
    %c2_127 = arith.constant 2 : index
    %c8_128 = arith.constant 8 : index
    %c0_129 = arith.constant 0 : index
    %115 = vector.load %arg8[%c2_127, %c8_128, %c0_129] : memref<10x17x8xf32, #tpu.memory_space<vmem>>, vector<8x8x8xf32>
    %116 = vector.shape_cast %115 : vector<8x8x8xf32> to vector<64x8xf32>
    %c7_130 = arith.constant 7 : index
    %c0_131 = arith.constant 0 : index
    %c0_132 = arith.constant 0 : index
    %117 = vector.load %arg4[%c7_130, %c0_131, %c0_132] : memref<9x8x8xf32, #tpu.memory_space<vmem>>, vector<1x8x8xf32>
    %118 = vector.shape_cast %117 : vector<1x8x8xf32> to vector<8x8xf32>
    %cst_133 = arith.constant dense<0.000000e+00> : vector<64x8xf32>
    %119 = tpu.matmul %116, %118, %cst_133 {dimension_numbers = #tpu.dot_dimension_numbers<[1], [0], [0], [1], [0, 0, 1, 1], [], []>} : vector<64x8xf32>, vector<8x8xf32>, vector<64x8xf32> -> vector<64x8xf32>
    %120 = arith.addf %114, %119 : vector<64x8xf32>
    %c2_134 = arith.constant 2 : index
    %c9_135 = arith.constant 9 : index
    %c0_136 = arith.constant 0 : index
    %121 = vector.load %arg8[%c2_134, %c9_135, %c0_136] : memref<10x17x8xf32, #tpu.memory_space<vmem>>, vector<8x8x8xf32>
    %122 = vector.shape_cast %121 : vector<8x8x8xf32> to vector<64x8xf32>
    %c8_137 = arith.constant 8 : index
    %c0_138 = arith.constant 0 : index
    %c0_139 = arith.constant 0 : index
    %123 = vector.load %arg4[%c8_137, %c0_138, %c0_139] : memref<9x8x8xf32, #tpu.memory_space<vmem>>, vector<1x8x8xf32>
    %124 = vector.shape_cast %123 : vector<1x8x8xf32> to vector<8x8xf32>
    %cst_140 = arith.constant dense<0.000000e+00> : vector<64x8xf32>
    %125 = tpu.matmul %122, %124, %cst_140 {dimension_numbers = #tpu.dot_dimension_numbers<[1], [0], [0], [1], [0, 0, 1, 1], [], []>} : vector<64x8xf32>, vector<8x8xf32>, vector<64x8xf32> -> vector<64x8xf32>
    %126 = arith.addf %120, %125 : vector<64x8xf32>
    %c0_141 = arith.constant 0 : index
    %c0_142 = arith.constant 0 : index
    %127 = vector.load %arg5[%c0_141, %c0_142] : memref<1x8xf32, #tpu.memory_space<vmem>>, vector<1x8xf32>
    %128 = vector.broadcast %127 : vector<1x8xf32> to vector<64x8xf32>
    %129 = arith.addf %126, %128 : vector<64x8xf32>
    %cst_143 = arith.constant 0.000000e+00 : f32
    %130 = vector.broadcast %cst_143 : f32 to vector<64x8xf32>
    %131 = arith.maximumf %129, %130 : vector<64x8xf32>
    %c0_144 = arith.constant 0 : index
    %c0_145 = arith.constant 0 : index
    %c0_146 = arith.constant 0 : index
    %132 = vector.load %arg6[%c0_144, %c0_145, %c0_146] : memref<1x64x8xf32, #tpu.memory_space<vmem>>, vector<1x64x8xf32>
    %133 = vector.shape_cast %132 : vector<1x64x8xf32> to vector<64x8xf32>
    %134 = vector.shape_cast %131 : vector<64x8xf32> to vector<1x64x8xf32>
    tpu.vector_store %arg6[%c0_144, %c0_145, %c0_146], %134 {strides = array<i32>} : memref<1x64x8xf32, #tpu.memory_space<vmem>>, vector<1x64x8xf32>,
    return
  }
  func.func @transform_0(%arg0: i32) -> (i32, i32, i32, i32, i32) {
    %c0_i32 = arith.constant 0 : i32
    %c0_i32_0 = arith.constant 0 : i32
    %c0_i32_1 = arith.constant 0 : i32
    %c0_i32_2 = arith.constant 0 : i32
    %c0_i32_3 = arith.constant 0 : i32
    return %arg0, %c0_i32, %c0_i32_0, %c0_i32_1, %c0_i32_2 : i32, i32, i32, i32, i32
  }
  func.func @transform_1(%arg0: i32) -> (i32, i32, i32) {
    %c0_i32 = arith.constant 0 : i32
    %c0_i32_0 = arith.constant 0 : i32
    %c0_i32_1 = arith.constant 0 : i32
    %c0_i32_2 = arith.constant 0 : i32
    return %c0_i32, %c0_i32_0, %c0_i32_1 : i32, i32, i32
  }
  func.func @transform_2(%arg0: i32) -> (i32, i32) {
    %c0_i32 = arith.constant 0 : i32
    %c0_i32_0 = arith.constant 0 : i32
    %c0_i32_1 = arith.constant 0 : i32
    return %c0_i32, %c0_i32_0 : i32, i32
  }
  func.func @transform_3(%arg0: i32) -> (i32, i32, i32) {
    %c0_i32 = arith.constant 0 : i32
    %c0_i32_0 = arith.constant 0 : i32
    %c0_i32_1 = arith.constant 0 : i32
    %c0_i32_2 = arith.constant 0 : i32
    return %c0_i32, %c0_i32_0, %c0_i32_1 : i32, i32, i32
  }
  func.func @transform_4(%arg0: i32) -> (i32, i32) {
    %c0_i32 = arith.constant 0 : i32
    %c0_i32_0 = arith.constant 0 : i32
    %c0_i32_1 = arith.constant 0 : i32
    return %c0_i32, %c0_i32_0 : i32, i32
  }
  func.func @transform_5(%arg0: i32) -> (i32, i32, i32) {
    %c0_i32 = arith.constant 0 : i32
    %c0_i32_0 = arith.constant 0 : i32
    %c0_i32_1 = arith.constant 0 : i32
    return %arg0, %c0_i32, %c0_i32_0 : i32, i32, i32
  }
}

</mosaic_0001>

<bundles_post_ra>
// kernel: tpu_custom_call.1
= control target key start
LH: loop header
LB: loop body
LE: loop exit
PB: predicated region body
PF: predicated region fallthrough
CT: control target
= control target key end

     0   :  { %s2810_s18 = smov 0   ;;  %s4145_s0 = inlined_call_operand.vmem [shape: f32[2,16,8,2,4], index: 0, kind: input, shape index: {}]   ;;  %s4146_s1 = inlined_call_operand.vmem [shape: f32[36,8], index: 1, kind: input, shape index: {}]   ;;  %s4147_s2 = inlined_call_operand.vmem [shape: f32[1,8], index: 2, kind: input, shape index: {}]   ;;  %s4148_s3 = inlined_call_operand.vmem [shape: f32[72,8], index: 3, kind: input, shape index: {}]   ;;  %s4149_s4 = inlined_call_operand.vmem [shape: f32[1,8], index: 4, kind: input, shape index: {}]   ;;  %s4150_s5 = inlined_call_operand.vmem [shape: f32[2,64,8], index: 5, kind: output, shape index: {}]  }
   0x1 LB: > { %s2692_s19 = sadd.s32 4294967295, %s2765_s18   ;;  %p2696_p0 = scmp.ge.s32.totalorder %s2765_s18, 1  ;;  %s2765_s18 = sphi %s2810_s18, %s15_s18  }
   0x2   : > { %p187_p1 = scmp.lt.s32.totalorder %s2765_s18, 3 }
   0x4   : > { %p188_p2 = pnand %p2696_p0, %p187_p1 }
   0x5   : > { %p215_p3 = scmp.lt.s32.totalorder (!%p188_p2), %s2692_s19, 1  ;;  %s2768_s24 = smov (!%p188_p2), 4  }
   0x6   : > { %191 = sbr.rel (%p188_p2) target bundleno = 940 (0x3ac), region = 40  ;;  %s2769_s25 = smov (!%p188_p2), 8  }
   0x7   : > { %s2770_s26 = smov (!%p188_p2), 12   ;;  %s2771_s27 = smov (!%p188_p2), 20  }
   0x8   : > { %s2772_s28 = smov (!%p188_p2), 16   ;;  %s2773_s29 = smov (!%p188_p2), 28  }
   0x9   : > { %s2774_s30 = smov (!%p188_p2), 32   ;;  %s2775_s6 = smov (!%p188_p2), 24  }
   0xa   : > { %s2776_s21 = smov (!%p188_p2), 40   ;;  %s2777_s22 = smov (!%p188_p2), 64  }
   0xb   : > { %vm1250_vm0 = vcmask 31744   ;;  %v2767_v0 = vmov 0.0   ;;  %s4154_s19 = smov (!%p215_p3, %s2692_s19), 1  ;;  %vm353_vm1 = vcmask 25600   ;;  %vm1445_vm2 = vcmask 24576  }
   0xc   : > { %1444 = vst.msk [vmem:[#allocation2 + $0x8] sm:$0xff] %vm1250_vm0, %v2767_v0  ;;  %s2720_s20 = sshll.u32 %s4154_s19, 8  ;;  %vm1538_vm3 = vcmask 1041409   ;;  %vm1540_vm4 = vcmask 1042434   ;;  %vm1542_vm5 = vcmask 1043459   ;;  %vm1544_vm6 = vcmask 1044484  }
   0xd   : > { %1443 = vst.msk [vmem:[#allocation2] sm:$0xff] %vm1250_vm0, %v2767_v0  ;;  %s2836_s23 = scalar_lea.vmem %s4145_s0, %s2720_s20  ;;  %vm1546_vm7 = vcmask 1045509   ;;  %vm1548_vm8 = vcmask 1046534   ;;  %vm4151_vm9 = vcmask 1047559   ;;  %vm1955_vm10 = vcmask 64512  }
   0xe   : > { %1447 = vst.msk [vmem:[#allocation2 + $0x18] sm:$0xff] %vm1250_vm0, %v2767_v0  ;;  %v225_v1 = vld [vmem:[%s2836_s23] sm:$0x3]  ;;  %v226_v3 = vld [vmem:[%s2836_s23 + $0x2] sm:$0x3]  ;;  %vm1964_vm11 = vcmask 97280  }
   0xf   : > { %1448 = vst.msk [vmem:[#allocation2 + $0x20] sm:$0xff] %vm1250_vm0, %v2767_v0  ;;  %v354_v4 = vsel %vm353_vm1, %v225_v1, -inf  ;;  %v227_v5 = vld [vmem:[%s2836_s23 + $0x4] sm:$0x3]  ;;  %v228_v7 = vld [vmem:[%s2836_s23 + $0x6] sm:$0x3] }
  0x10   : > { %1450 = vst.msk [vmem:[#allocation2 + $0x30] sm:$0xff] %vm1250_vm0, %v2767_v0  ;;  %v355_v6 = vrot.slane %v354_v4, 4  ;;  %v361_v8 = vsel %vm353_vm1, %v226_v3, -inf  ;;  %v229_v9 = vld [vmem:[%s2836_s23 + $0x8] sm:$0x3]  ;;  %v368_v13 = vsel %vm353_vm1, %v227_v5, -inf }
  0x11   : > { %1451 = vst.msk [vmem:[#allocation2 + $0x38] sm:$0xff] %vm1250_vm0, %v2767_v0  ;;  %v230_v10 = vld [vmem:[%s2836_s23 + $0xa] sm:$0x3]  ;;  %v362_v12 = vrot.slane %v361_v8, 4  ;;  %v231_v14 = vld [vmem:[%s2836_s23 + $0xc] sm:$0x3] }
  0x12   : > { %1453 = vst.msk [vmem:[#allocation2 + $0x48] sm:$0xff] %vm1250_vm0, %v2767_v0  ;;  %v356_v11 = vmax.f32 %v354_v4, %v355_v6  ;;  %v232_v15 = vld [vmem:[%s2836_s23 + $0xe] sm:$0x3]  ;;  %v369_v18 = vrot.slane %v368_v13, 4  ;;  %v375_v19 = vsel %vm353_vm1, %v228_v7, -inf  ;;  %v382_v20 = vsel %vm353_vm1, %v229_v9, -inf }
  0x13   : > { %v1626_v2 = vld [vmem:[#allocation2 + $0x8] sm:$0xff]  ;;  %1454 = vst.msk [vmem:[#allocation2 + $0x50] sm:$0xff] %vm1250_vm0, %v2767_v0  ;;  %v363_v17 = vmax.f32 %v361_v8, %v362_v12  ;;  %v389_v21 = vsel %vm353_vm1, %v230_v10, -inf  ;;  %v376_v24 = vrot.slane %v375_v19, 4  ;;  %v383_v25 = vrot.slane %v382_v20, 4 }
  0x14   : > { %1699 = vrot.lane.b32.xlu0 %v1626_v2, %s2768_s24  ;;  %1456 = vst.msk [vmem:[#allocation2 + $0x60] sm:$0xff] %vm1250_vm0, %v2767_v0  ;;  %v357_v16 = vrot.slane %v356_v11, 2  ;;  %v370_v26 = vmax.f32 %v368_v13, %v369_v18  ;;  %v390_v27 = vrot.slane %v389_v21, 4  ;;  %v396_v28 = vsel %vm353_vm1, %v231_v14, -inf  ;;  %v233_v34 = vld [vmem:[%s2836_s23 + $0x10] sm:$0x3] }
  0x15   : > { %1457 = vst.msk [vmem:[#allocation2 + $0x68] sm:$0xff] %vm1250_vm0, %v2767_v0  ;;  %v364_v23 = vrot.slane %v363_v17, 2  ;;  %v403_v29 = vsel %vm353_vm1, %v232_v15, -inf  ;;  %v377_v32 = vmax.f32 %v375_v19, %v376_v24  ;;  %v384_v33 = vmax.f32 %v382_v20, %v383_v25  ;;  %v234_v43 = vld [vmem:[%s2836_s23 + $0x12] sm:$0x3] }
  0x16   : > { %1459 = vst.msk [vmem:[#allocation2 + $0x78] sm:$0xff] %vm1250_vm0, %v2767_v0  ;;  %v358_v22 = vmax.f32 %v356_v11, %v357_v16  ;;  %v371_v35 = vrot.slane %v370_v26, 2  ;;  %v391_v36 = vmax.f32 %v389_v21, %v390_v27  ;;  %v397_v37 = vrot.slane %v396_v28, 4  ;;  %v235_v48 = vld [vmem:[%s2836_s23 + $0x14] sm:$0x3] }
  0x17   : > { %1460 = vst.msk [vmem:[#allocation2 + $0x80] sm:$0xff] %vm1250_vm0, %v2767_v0  ;;  %v365_v31 = vmax.f32 %v363_v17, %v364_v23  ;;  %v404_v38 = vrot.slane %v403_v29, 4  ;;  %v378_v41 = vrot.slane %v377_v32, 2  ;;  %v385_v42 = vrot.slane %v384_v33, 2  ;;  %v236_v53 = vld [vmem:[%s2836_s23 + $0x16] sm:$0x3] }
  0x18   : > { %1462 = vst.msk [vmem:[#allocation2 + $0x90] sm:$0xff] %vm1250_vm0, %v2767_v0  ;;  %v359_v30 = vrot.slane %v358_v22, 1  ;;  %v372_v44 = vmax.f32 %v370_v26, %v371_v35  ;;  %v392_v45 = vrot.slane %v391_v36, 2  ;;  %v398_v46 = vmax.f32 %v396_v28, %v397_v37  ;;  %v237_v62 = vld [vmem:[%s2836_s23 + $0x18] sm:$0x3] }
  0x19   : > { %1463 = vst.msk [vmem:[#allocation2 + $0x98] sm:$0xff] %vm1250_vm0, %v2767_v0  ;;  %v366_v40 = vrot.slane %v365_v31, 1  ;;  %v405_v47 = vmax.f32 %v403_v29, %v404_v38  ;;  %v379_v50 = vmax.f32 %v377_v32, %v378_v41  ;;  %v386_v51 = vmax.f32 %v384_v33, %v385_v42  ;;  %v238_v4 = vld [vmem:[%s2836_s23 + $0x1a] sm:$0x3]  ;;  %v239_v5 = vld [vmem:[%s2836_s23 + $0x1c] sm:$0x3] }
  0x1a   : > { %1465 = vst.msk [vmem:[#allocation2 + $0xa8] sm:$0xff] %vm1250_vm0, %v2767_v0  ;;  %v2884_v39 = vmax.f32 %v358_v22, %v359_v30  ;;  %v410_v52 = vsel %vm353_vm1, %v233_v34, -inf  ;;  %v373_v54 = vrot.slane %v372_v44, 1  ;;  %v393_v55 = vmax.f32 %v391_v36, %v392_v45  ;;  %v240_v6 = vld [vmem:[%s2836_s23 + $0x1e] sm:$0x3] }
  0x1b   : > { %1466 = vst.msk [vmem:[#allocation2 + $0xb0] sm:$0xff] %vm1250_vm0, %v2767_v0  ;;  %v2892_v49 = vmax.f32 %v365_v31, %v366_v40  ;;  %v399_v56 = vrot.slane %v398_v46, 2  ;;  %v406_v57 = vrot.slane %v405_v47, 2  ;;  %v380_v58 = vrot.slane %v379_v50, 1 }
  0x1c   : > { %1468 = vst.msk [vmem:[#allocation2 + $0xc0] sm:$0xff] %vm1250_vm0, %v2767_v0  ;;  %v387_v59 = vrot.slane %v386_v51, 1  ;;  %v411_v60 = vrot.slane %v410_v52, 4  ;;  %v417_v61 = vsel %vm353_vm1, %v234_v43, -inf  ;;  %v2904_v63 = vmax.f32 %v372_v44, %v373_v54 }
  0x1d   : > { %1469 = vst.msk [vmem:[#allocation2 + $0xc8] sm:$0xff] %vm1250_vm0, %v2767_v0  ;;  %v394_v1 = vrot.slane %v393_v55, 1  ;;  %v400_v2 = vmax.f32 %v398_v46, %v399_v56  ;;  %v407_v3 = vmax.f32 %v405_v47, %v406_v57  ;;  %v2911_v7 = vmax.f32 %v379_v50, %v380_v58 }
  0x1e   : > { %1471 = vst.msk [vmem:[#allocation2 + $0xd8] sm:$0xff] %vm1250_vm0, %v2767_v0  ;;  %v2913_v8 = vmax.f32 %v386_v51, %v387_v59  ;;  %v412_v9 = vmax.f32 %v410_v52, %v411_v60  ;;  %v418_v10 = vrot.slane %v417_v61, 4  ;;  %v424_v14 = vsel %vm353_vm1, %v235_v48, -inf }
  0x1f   : > { %1472 = vst.msk [vmem:[#allocation2 + $0xe0] sm:$0xff] %vm1250_vm0, %v2767_v0  ;;  %v2917_v11 = vmax.f32 %v393_v55, %v394_v1  ;;  %v401_v12 = vrot.slane %v400_v2, 1  ;;  %v408_v13 = vrot.slane %v407_v3, 1  ;;  %v425_v18 = vrot.slane %v424_v14, 4 }
  0x20   : > { %1446 = vst.msk [vmem:[#allocation2 + $0x10] sm:$0x1] %vm1445_vm2, %v2767_v0  ;;  %v413_v16 = vrot.slane %v412_v9, 2  ;;  %v419_v17 = vmax.f32 %v417_v61, %v418_v10  ;;  %v431_v19 = vsel %vm353_vm1, %v236_v53, -inf  ;;  %v438_v23 = vsel %vm353_vm1, %v237_v62, -inf }
  0x21   : > { %1449 = vst.msk [vmem:[#allocation2 + $0x28] sm:$0x1] %vm1445_vm2, %v2767_v0  ;;  %v2926_v20 = vmax.f32 %v400_v2, %v401_v12  ;;  %v2928_v21 = vmax.f32 %v407_v3, %v408_v13  ;;  %v432_v22 = vrot.slane %v431_v19, 4  ;;  %v426_v26 = vmax.f32 %v424_v14, %v425_v18 }
  0x22   : > { %1452 = vst.msk [vmem:[#allocation2 + $0x40] sm:$0x1] %vm1445_vm2, %v2767_v0  ;;  %v414_v24 = vmax.f32 %v412_v9, %v413_v16  ;;  %v420_v25 = vrot.slane %v419_v17, 2  ;;  %v439_v27 = vrot.slane %v438_v23, 4  ;;  %v445_v29 = vsel %vm353_vm1, %v238_v4, -inf }
  0x23   : > { %1455 = vst.msk [vmem:[#allocation2 + $0x58] sm:$0x1] %vm1445_vm2, %v2767_v0  ;;  %v433_v28 = vmax.f32 %v431_v19, %v432_v22  ;;  %v452_v30 = vsel %vm353_vm1, %v239_v5, -inf  ;;  %v459_v31 = vsel %vm353_vm1, %v240_v6, -inf  ;;  %v427_v34 = vrot.slane %v426_v26, 2 }
  0x24   : > { %1458 = vst.msk [vmem:[#allocation2 + $0x70] sm:$0x1] %vm1445_vm2, %v2767_v0  ;;  %v415_v32 = vrot.slane %v414_v24, 1  ;;  %v421_v33 = vmax.f32 %v419_v17, %v420_v25  ;;  %v440_v35 = vmax.f32 %v438_v23, %v439_v27  ;;  %v446_v37 = vrot.slane %v445_v29, 4 }
  0x25   : > { %1461 = vst.msk [vmem:[#allocation2 + $0x88] sm:$0x1] %vm1445_vm2, %v2767_v0  ;;  %v434_v36 = vrot.slane %v433_v28, 2  ;;  %v453_v38 = vrot.slane %v452_v30, 4  ;;  %v460_v40 = vrot.slane %v459_v31, 4  ;;  %v428_v43 = vmax.f32 %v426_v26, %v427_v34 }
  0x26   : > { %1464 = vst.msk [vmem:[#allocation2 + $0xa0] sm:$0x1] %vm1445_vm2, %v2767_v0  ;;  %v416_v41 = vmax.f32 %v414_v24, %v415_v32  ;;  %v422_v42 = vrot.slane %v421_v33, 1  ;;  %v441_v44 = vrot.slane %v440_v35, 2  ;;  %v447_v46 = vmax.f32 %v445_v29, %v446_v37  ;;  %v244_v34 = vld [vmem:[%s2836_s23 + $0x26] sm:$0x3] }
  0x27   : > { %v1634_v15 = vld [vmem:[#allocation2 + $0x9] sm:$0xff]  ;;  %1467 = vst.msk [vmem:[#allocation2 + $0xb8] sm:$0x1] %vm1445_vm2, %v2767_v0  ;;  %v435_v45 = vmax.f32 %v433_v28, %v434_v36  ;;  %v454_v47 = vmax.f32 %v452_v30, %v453_v38  ;;  %v461_v48 = vmax.f32 %v459_v31, %v460_v40  ;;  %v429_v51 = vrot.slane %v428_v43, 1  ;;  %v242_v31 = vld [vmem:[%s2836_s23 + $0x22] sm:$0x3] }
  0x28   : > { %1731 = vrot.lane.b32.xlu0 %v1634_v15, %s2769_s25  ;;  %1470 = vst.msk [vmem:[#allocation2 + $0xd0] sm:$0x1] %vm1445_vm2, %v2767_v0  ;;  %v423_v50 = vmax.f32 %v421_v33, %v422_v42  ;;  %v442_v52 = vmax.f32 %v440_v35, %v441_v44  ;;  %v1251_v53 = vsel %vm1250_vm0, %v2884_v39, -inf  ;;  %v448_v55 = vrot.slane %v447_v46, 2  ;;  %v243_v33 = vld [vmem:[%s2836_s23 + $0x24] sm:$0x3] }
  0x29   : > { %1473 = vst.msk [vmem:[#allocation2 + $0xe8] sm:$0x1] %vm1445_vm2, %v2767_v0  ;;  %v436_v54 = vrot.slane %v435_v45, 1  ;;  %v455_v56 = vrot.slane %v454_v47, 2  ;;  %v462_v57 = vrot.slane %v461_v48, 2  ;;  %v430_v58 = vmax.f32 %v428_v43, %v429_v51 }
  0x2a   : > { %v443_v59 = vrot.slane %v442_v52, 1  ;;  %v1252_v60 = vsel %vm1250_vm0, %v416_v41, -inf  ;;  %v1254_v61 = vsel %vm1250_vm0, %v2892_v49, -inf  ;;  %v449_v1 = vmax.f32 %v447_v46, %v448_v55  ;;  %v246_v41 = vld [vmem:[%s2836_s23 + $0x2a] sm:$0x3]  ;;  %2105 = vst.msk [vmem:[#allocation3] sm:$0xff] %vm1955_vm10, %v2767_v0 }
  0x2b   : > { %v437_v62 = vmax.f32 %v435_v45, %v436_v54  ;;  %v456_v2 = vmax.f32 %v454_v47, %v455_v56  ;;  %v463_v3 = vmax.f32 %v461_v48, %v462_v57  ;;  %v1253_v5 = vmax.f32 %v1251_v53, %v1252_v60  ;;  %v247_v51 = vld [vmem:[%s2836_s23 + $0x2c] sm:$0x3]  ;;  %2106 = vst.msk [vmem:[#allocation3 + $0x8] sm:$0xff] %vm1955_vm10, %v2767_v0 }
  0x2c   : > { %v444_v4 = vmax.f32 %v442_v52, %v443_v59  ;;  %v1255_v6 = vsel %vm1250_vm0, %v423_v50, -inf  ;;  %v1257_v39 = vsel %vm1250_vm0, %v2904_v63, -inf  ;;  %v450_v9 = vrot.slane %v449_v1, 1  ;;  %v248_v52 = vld [vmem:[%s2836_s23 + $0x2e] sm:$0x3]  ;;  %2109 = vst.msk [vmem:[#allocation3 + $0x18] sm:$0xff] %vm1955_vm10, %v2767_v0 }
  0x2d   : > { %v457_v10 = vrot.slane %v456_v2, 1  ;;  %v464_v12 = vrot.slane %v463_v3, 1  ;;  %v1256_v13 = vmax.f32 %v1254_v61, %v1255_v6  ;;  %v1258_v14 = vsel %vm1250_vm0, %v430_v58, -inf  ;;  %2110 = vst.msk [vmem:[#allocation3 + $0x20] sm:$0xff] %vm1955_vm10, %v2767_v0 }
  0x2e   : > { %v1260_v49 = vsel %vm1250_vm0, %v2911_v7, -inf  ;;  %v1261_v15 = vsel %vm1250_vm0, %v437_v62, -inf  ;;  %v1263_v16 = vsel %vm1250_vm0, %v2913_v8, -inf  ;;  %v451_v17 = vmax.f32 %v449_v1, %v450_v9  ;;  %2112 = vst.msk [vmem:[#allocation3 + $0x30] sm:$0xff] %vm1955_vm10, %v2767_v0 }
  0x2f   : > { %v458_v18 = vmax.f32 %v456_v2, %v457_v10  ;;  %v465_v19 = vmax.f32 %v463_v3, %v464_v12  ;;  %v1259_v63 = vmax.f32 %v1257_v39, %v1258_v14  ;;  %v1262_v22 = vmax.f32 %v1260_v49, %v1261_v15  ;;  %2113 = vst.msk [vmem:[#allocation3 + $0x38] sm:$0xff] %vm1955_vm10, %v2767_v0 }
  0x30   : > { %v1264_v23 = vsel %vm1250_vm0, %v444_v4, -inf  ;;  %v1266_v24 = vsel %vm1250_vm0, %v2917_v11, -inf  ;;  %v1269_v7 = vsel %vm1250_vm0, %v2926_v20, -inf  ;;  %v1267_v8 = vsel %vm1250_vm0, %v451_v17, -inf  ;;  %v241_v11 = vld [vmem:[%s2836_s23 + $0x20] sm:$0x3] }
  0x31   : > { %v1265_v25 = vmax.f32 %v1263_v16, %v1264_v23  ;;  %v1270_v26 = vsel %vm1250_vm0, %v458_v18, -inf  ;;  %v1272_v27 = vsel %vm1250_vm0, %v2928_v21, -inf  ;;  %v1268_v28 = vmax.f32 %v1266_v24, %v1267_v8  ;;  %v245_v21 = vld [vmem:[%s2836_s23 + $0x28] sm:$0x3]  ;;  %2115 = vst.msk [vmem:[#allocation3 + $0x48] sm:$0xff] %vm1955_vm10, %v2767_v0 }
  0x32   : > { %v1271_v29 = vmax.f32 %v1269_v7, %v1270_v26  ;;  %v1273_v30 = vsel %vm1250_vm0, %v465_v19, -inf  ;;  %v1539_v20 = vsel %vm1538_vm3, %v1256_v13, %v1253_v5  ;;  %v466_v37 = vsel %vm353_vm1, %v241_v11, -inf  ;;  %v249_v19 = vld [vmem:[%s2836_s23 + $0x30] sm:$0x3]  ;;  %2116 = vst.msk [vmem:[#allocation3 + $0x50] sm:$0xff] %vm1955_vm10, %v2767_v0 }
  0x33   : > { %v1274_v32 = vmax.f32 %v1272_v27, %v1273_v30  ;;  %v1541_v35 = vsel %vm1540_vm4, %v1259_v63, %v1539_v20  ;;  %v473_v38 = vsel %vm353_vm1, %v242_v31, -inf  ;;  %v467_v42 = vrot.slane %v466_v37, 4  ;;  %v250_v63 = vld [vmem:[%s2836_s23 + $0x32] sm:$0x3]  ;;  %v252_v30 = vld [vmem:[%s2836_s23 + $0x36] sm:$0x3] }
  0x34   : > { %v1543_v36 = vsel %vm1542_vm5, %v1262_v22, %v1541_v35  ;;  %v474_v43 = vrot.slane %v473_v38, 4  ;;  %v480_v44 = vsel %vm353_vm1, %v243_v33, -inf  ;;  %v487_v47 = vsel %vm353_vm1, %v244_v34, -inf  ;;  %2118 = vst.msk [vmem:[#allocation3 + $0x60] sm:$0xff] %vm1955_vm10, %v2767_v0 }
  0x35   : > { %v1545_v40 = vsel %vm1544_vm6, %v1265_v25, %v1543_v36  ;;  %v481_v46 = vrot.slane %v480_v44, 4  ;;  %v494_v48 = vsel %vm353_vm1, %v245_v21, -inf  ;;  %v468_v53 = vmax.f32 %v466_v37, %v467_v42  ;;  %v251_v25 = vld [vmem:[%s2836_s23 + $0x34] sm:$0x3]  ;;  %v253_v36 = vld [vmem:[%s2836_s23 + $0x38] sm:$0x3] }
  0x36   : > { %v1547_v45 = vsel %vm1546_vm7, %v1268_v28, %v1545_v40  ;;  %v475_v54 = vmax.f32 %v473_v38, %v474_v43  ;;  %v488_v55 = vrot.slane %v487_v47, 4  ;;  %v495_v58 = vrot.slane %v494_v48, 4  ;;  %v254_v37 = vld [vmem:[%s2836_s23 + $0x3a] sm:$0x3]  ;;  %2119 = vst.msk [vmem:[#allocation3 + $0x68] sm:$0xff] %vm1955_vm10, %v2767_v0 }
  0x37   : > { %v1549_v50 = vsel %vm1548_vm8, %v1271_v29, %v1547_v45  ;;  %v482_v57 = vmax.f32 %v480_v44, %v481_v46  ;;  %v501_v59 = vsel %vm353_vm1, %v246_v41, -inf  ;;  %v469_v60 = vrot.slane %v468_v53, 2  ;;  %2121 = vst.msk [vmem:[#allocation3 + $0x78] sm:$0xff] %vm1955_vm10, %v2767_v0 }
  0x38   : > { %v1551_v56 = vsel %vm4151_vm9, %v1274_v32, %v1549_v50  ;;  %v476_v61 = vrot.slane %v475_v54, 2  ;;  %v489_v62 = vmax.f32 %v487_v47, %v488_v55  ;;  %v502_v1 = vrot.slane %v501_v59, 4  ;;  %v255_v47 = vld [vmem:[%s2836_s23 + $0x3c] sm:$0x3]  ;;  %2122 = vst.msk [vmem:[#allocation3 + $0x80] sm:$0xff] %vm1955_vm10, %v2767_v0 }
  0x39   : > { %1610 = vst.msk [vmem:[#allocation2 + $0x20] sm:$0xff] %vm1250_vm0, %v1551_v56  ;;  %v483_v2 = vrot.slane %v482_v57, 2  ;;  %v496_v3 = vmax.f32 %v494_v48, %v495_v58  ;;  %v508_v4 = vsel %vm353_vm1, %v247_v51, -inf  ;;  %v515_v5 = vsel %vm353_vm1, %v248_v52, -inf }
  0x3a   : > { %v470_v6 = vmax.f32 %v468_v53, %v469_v60  ;;  %v477_v39 = vmax.f32 %v475_v54, %v476_v61  ;;  %v490_v9 = vrot.slane %v489_v62, 2  ;;  %v503_v10 = vmax.f32 %v501_v59, %v502_v1  ;;  %v256_v53 = vld [vmem:[%s2836_s23 + $0x3e] sm:$0x3]  ;;  %2124 = vst.msk [vmem:[#allocation3 + $0x90] sm:$0xff] %vm1955_vm10, %v2767_v0 }
  0x3b   : > { %v484_v12 = vmax.f32 %v482_v57, %v483_v2  ;;  %v497_v13 = vrot.slane %v496_v3, 2  ;;  %v509_v14 = vrot.slane %v508_v4, 4  ;;  %v516_v49 = vrot.slane %v515_v5, 4  ;;  %2125 = vst.msk [vmem:[#allocation3 + $0x98] sm:$0xff] %vm1955_vm10, %v2767_v0 }
  0x3c   : > { %v471_v15 = vrot.slane %v470_v6, 1  ;;  %v478_v16 = vrot.slane %v477_v39, 1  ;;  %v491_v17 = vmax.f32 %v489_v62, %v490_v9  ;;  %v504_v18 = vrot.slane %v503_v10, 2  ;;  %2127 = vst.msk [vmem:[#allocation3 + $0xa8] sm:$0xff] %vm1955_vm10, %v2767_v0 }
  0x3d   : > { %v485_v22 = vrot.slane %v484_v12, 1  ;;  %v498_v23 = vmax.f32 %v496_v3, %v497_v13  ;;  %v510_v24 = vmax.f32 %v508_v4, %v509_v14  ;;  %v517_v7 = vmax.f32 %v515_v5, %v516_v49  ;;  %2128 = vst.msk [vmem:[#allocation3 + $0xb0] sm:$0xff] %vm1955_vm10, %v2767_v0 }
  0x3e   : > { %v2987_v8 = vmax.f32 %v470_v6, %v471_v15  ;;  %v2989_v26 = vmax.f32 %v477_v39, %v478_v16  ;;  %v492_v27 = vrot.slane %v491_v17, 1  ;;  %v505_v28 = vmax.f32 %v503_v10, %v504_v18  ;;  %2130 = vst.msk [vmem:[#allocation3 + $0xc0] sm:$0xff] %vm1955_vm10, %v2767_v0 }
  0x3f   : > { %v2992_v11 = vmax.f32 %v484_v12, %v485_v22  ;;  %v499_v31 = vrot.slane %v498_v23, 1  ;;  %v511_v32 = vrot.slane %v510_v24, 2  ;;  %v518_v20 = vrot.slane %v517_v7, 2  ;;  %2131 = vst.msk [vmem:[#allocation3 + $0xc8] sm:$0xff] %vm1955_vm10, %v2767_v0 }
  0x40   : > { %v1642_v29 = vld [vmem:[#allocation2 + $0x1f] sm:$0xff]  ;;  %v2995_v33 = vmax.f32 %v491_v17, %v492_v27  ;;  %v506_v34 = vrot.slane %v505_v28, 1  ;;  %v522_v35 = vsel %vm353_vm1, %v249_v19, -inf  ;;  %v529_v21 = vsel %vm353_vm1, %v250_v63, -inf  ;;  %2133 = vst.msk [vmem:[#allocation3 + $0xd8] sm:$0xff] %vm1955_vm10, %v2767_v0 }
  0x41   : > { %1763 = vrot.lane.b32.xlu1 %v1642_v29, %s2770_s26  ;;  %v3001_v38 = vmax.f32 %v498_v23, %v499_v31  ;;  %v512_v40 = vmax.f32 %v510_v24, %v511_v32  ;;  %v519_v41 = vmax.f32 %v517_v7, %v518_v20  ;;  %v523_v42 = vrot.slane %v522_v35, 4  ;;  %v3015_v62 = vld [vmem:[#allocation2 + $0x20] sm:$0xff]  ;;  %2134 = vst.msk [vmem:[#allocation3 + $0xe0] sm:$0xff] %vm1955_vm10, %v2767_v0 }
  0x42   : > { %v3003_v43 = vmax.f32 %v505_v28, %v506_v34  ;;  %v530_v44 = vrot.slane %v529_v21, 4  ;;  %v536_v45 = vsel %vm353_vm1, %v251_v25, -inf  ;;  %v543_v46 = vsel %vm353_vm1, %v252_v30, -inf  ;;  %v3017_v1 = vld [vmem:[#allocation2 + $0x21] sm:$0xff] }
  0x43   : > { %v513_v48 = vrot.slane %v512_v40, 1  ;;  %v520_v50 = vrot.slane %v519_v41, 1  ;;  %v524_v51 = vmax.f32 %v522_v35, %v523_v42  ;;  %v537_v52 = vrot.slane %v536_v45, 4  ;;  %1827 = vrot.lane.b32.xlu2 %v3017_v1, %s2771_s27 }
  0x44   : > { %v531_v54 = vmax.f32 %v529_v21, %v530_v44  ;;  %v544_v55 = vrot.slane %v543_v46, 4  ;;  %v550_v56 = vsel %vm353_vm1, %v253_v36, -inf  ;;  %v557_v57 = vsel %vm353_vm1, %v254_v37, -inf }
  0x45   : > { %v3011_v58 = vmax.f32 %v512_v40, %v513_v48  ;;  %v3013_v59 = vmax.f32 %v519_v41, %v520_v50  ;;  %v525_v60 = vrot.slane %v524_v51, 2  ;;  %v538_v61 = vmax.f32 %v536_v45, %v537_v52 }
  0x46   : > { %v532_v2 = vrot.slane %v531_v54, 2  ;;  %v545_v3 = vmax.f32 %v543_v46, %v544_v55  ;;  %v551_v4 = vrot.slane %v550_v56, 4  ;;  %v558_v5 = vrot.slane %v557_v57, 4 }
  0x47   : > { %v526_v6 = vmax.f32 %v524_v51, %v525_v60  ;;  %v539_v39 = vrot.slane %v538_v61, 2  ;;  %v564_v9 = vsel %vm353_vm1, %v255_v47, -inf  ;;  %v571_v10 = vsel %vm353_vm1, %v256_v53, -inf }
  0x48   : > { %v533_v12 = vmax.f32 %v531_v54, %v532_v2  ;;  %v546_v13 = vrot.slane %v545_v3, 2  ;;  %v552_v14 = vmax.f32 %v550_v56, %v551_v4  ;;  %v559_v49 = vmax.f32 %v557_v57, %v558_v5  ;;  %v257_v2 = vld [vmem:[%s2836_s23 + $0x40] sm:$0x3] }
  0x49   : > { %1795 = vrot.lane.b32.xlu1 %v3015_v62, %s2772_s28  ;;  %v527_v15 = vrot.slane %v526_v6, 1  ;;  %v540_v16 = vmax.f32 %v538_v61, %v539_v39  ;;  %v565_v17 = vrot.slane %v564_v9, 4  ;;  %v572_v18 = vrot.slane %v571_v10, 4  ;;  %v259_v39 = vld [vmem:[%s2836_s23 + $0x44] sm:$0x3] }
  0x4a   : > { %v534_v19 = vrot.slane %v533_v12, 1  ;;  %v547_v63 = vmax.f32 %v545_v3, %v546_v13  ;;  %v553_v22 = vrot.slane %v552_v14, 2  ;;  %v560_v23 = vrot.slane %v559_v49, 2  ;;  %v258_v3 = vld [vmem:[%s2836_s23 + $0x42] sm:$0x3] }
  0x4b   : > { %v528_v24 = vmax.f32 %v526_v6, %v527_v15  ;;  %v541_v7 = vrot.slane %v540_v16, 1  ;;  %v566_v25 = vmax.f32 %v564_v9, %v565_v17  ;;  %v573_v27 = vmax.f32 %v571_v10, %v572_v18  ;;  %v260_v13 = vld [vmem:[%s2836_s23 + $0x46] sm:$0x3]  ;;  %v261_v15 = vld [vmem:[%s2836_s23 + $0x48] sm:$0x3] }
  0x4c   : > { %v535_v28 = vmax.f32 %v533_v12, %v534_v19  ;;  %v548_v29 = vrot.slane %v547_v63, 1  ;;  %v554_v30 = vmax.f32 %v552_v14, %v553_v22  ;;  %v561_v31 = vmax.f32 %v559_v49, %v560_v23 }
  0x4d   : > { %v542_v32 = vmax.f32 %v540_v16, %v541_v7  ;;  %v567_v20 = vrot.slane %v566_v25, 2  ;;  %v574_v34 = vrot.slane %v573_v27, 2  ;;  %v1275_v35 = vsel %vm1250_vm0, %v2987_v8, -inf }
  0x4e   : > { %v549_v21 = vmax.f32 %v547_v63, %v548_v29  ;;  %v555_v36 = vrot.slane %v554_v30, 1  ;;  %v562_v37 = vrot.slane %v561_v31, 1  ;;  %v1276_v40 = vsel %vm1250_vm0, %v528_v24, -inf  ;;  %v262_v63 = vld [vmem:[%s2836_s23 + $0x4a] sm:$0x3] }
  0x4f   : > { %v568_v41 = vmax.f32 %v566_v25, %v567_v20  ;;  %v575_v42 = vmax.f32 %v573_v27, %v574_v34  ;;  %v1277_v44 = vmax.f32 %v1275_v35, %v1276_v40  ;;  %v1278_v45 = vsel %vm1250_vm0, %v2989_v26, -inf  ;;  %v264_v40 = vld [vmem:[%s2836_s23 + $0x4e] sm:$0x3] }
  0x50   : > { %v556_v46 = vmax.f32 %v554_v30, %v555_v36  ;;  %v563_v47 = vmax.f32 %v561_v31, %v562_v37  ;;  %v1279_v48 = vsel %vm1250_vm0, %v535_v28, -inf  ;;  %v1281_v8 = vsel %vm1250_vm0, %v2992_v11, -inf  ;;  %v263_v30 = vld [vmem:[%s2836_s23 + $0x4c] sm:$0x3] }
  0x51   : > { %v569_v50 = vrot.slane %v568_v41, 1  ;;  %v576_v51 = vrot.slane %v575_v42, 1  ;;  %v1280_v52 = vmax.f32 %v1278_v45, %v1279_v48  ;;  %v1282_v53 = vsel %vm1250_vm0, %v542_v32, -inf }
  0x52   : > { %v1283_v54 = vmax.f32 %v1281_v8, %v1282_v53  ;;  %v1284_v55 = vsel %vm1250_vm0, %v2995_v33, -inf  ;;  %v1285_v26 = vsel %vm1250_vm0, %v549_v21, -inf  ;;  %v1287_v56 = vsel %vm1250_vm0, %v3001_v38, -inf }
  0x53   : > { %v570_v57 = vmax.f32 %v568_v41, %v569_v50  ;;  %v577_v60 = vmax.f32 %v575_v42, %v576_v51  ;;  %v1286_v61 = vmax.f32 %v1284_v55, %v1285_v26  ;;  %v1288_v11 = vsel %vm1250_vm0, %v556_v46, -inf }
  0x54   : > { %v1289_v4 = vmax.f32 %v1287_v56, %v1288_v11  ;;  %v1290_v5 = vsel %vm1250_vm0, %v3003_v43, -inf  ;;  %v1291_v33 = vsel %vm1250_vm0, %v563_v47, -inf  ;;  %v1293_v6 = vsel %vm1250_vm0, %v3011_v58, -inf  ;;  %v265_v56 = vld [vmem:[%s2836_s23 + $0x50] sm:$0x3] }
  0x55   : > { %v1292_v38 = vmax.f32 %v1290_v5, %v1291_v33  ;;  %v1294_v9 = vsel %vm1250_vm0, %v570_v57, -inf  ;;  %v1296_v10 = vsel %vm1250_vm0, %v3013_v59, -inf  ;;  %v1297_v12 = vsel %vm1250_vm0, %v577_v60, -inf }
  0x56   : > { %v1295_v14 = vmax.f32 %v1293_v6, %v1294_v9  ;;  %v1298_v49 = vmax.f32 %v1296_v10, %v1297_v12  ;;  %v1552_v43 = vsel %vm1538_vm3, %v1280_v52, %v1277_v44  ;;  %v578_v16 = vsel %vm353_vm1, %v257_v2, -inf  ;;  %v266_v2 = vld [vmem:[%s2836_s23 + $0x52] sm:$0x3]  ;;  %v267_v6 = vld [vmem:[%s2836_s23 + $0x54] sm:$0x3] }
  0x57   : > { %v1553_v58 = vsel %vm1540_vm4, %v1283_v54, %v1552_v43  ;;  %v579_v17 = vrot.slane %v578_v16, 4  ;;  %v585_v18 = vsel %vm353_vm1, %v258_v3, -inf  ;;  %v592_v19 = vsel %vm353_vm1, %v259_v39, -inf  ;;  %v268_v12 = vld [vmem:[%s2836_s23 + $0x56] sm:$0x3] }
  0x58   : > { %v1554_v59 = vsel %vm1542_vm5, %v1286_v61, %v1553_v58  ;;  %v586_v22 = vrot.slane %v585_v18, 4  ;;  %v593_v23 = vrot.slane %v592_v19, 4  ;;  %v599_v24 = vsel %vm353_vm1, %v260_v13, -inf }
  0x59   : > { %v1555_v7 = vsel %vm1544_vm6, %v1289_v4, %v1554_v59  ;;  %v580_v25 = vmax.f32 %v578_v16, %v579_v17  ;;  %v600_v27 = vrot.slane %v599_v24, 4  ;;  %v606_v28 = vsel %vm353_vm1, %v261_v15, -inf }
  0x5a   : > { %v1556_v29 = vsel %vm1546_vm7, %v1292_v38, %v1555_v7  ;;  %v587_v31 = vmax.f32 %v585_v18, %v586_v22  ;;  %v594_v32 = vmax.f32 %v592_v19, %v593_v23  ;;  %v607_v20 = vrot.slane %v606_v28, 4 }
  0x5b   : > { %v1557_v34 = vsel %vm1548_vm8, %v1295_v14, %v1556_v29  ;;  %v581_v35 = vrot.slane %v580_v25, 2  ;;  %v601_v21 = vmax.f32 %v599_v24, %v600_v27  ;;  %v613_v36 = vsel %vm353_vm1, %v262_v63, -inf  ;;  %v269_v63 = vld [vmem:[%s2836_s23 + $0x58] sm:$0x3] }
  0x5c   : > { %v1558_v37 = vsel %vm4151_vm9, %v1298_v49, %v1557_v34  ;;  %v588_v41 = vrot.slane %v587_v31, 2  ;;  %v595_v42 = vrot.slane %v594_v32, 2  ;;  %v608_v44 = vmax.f32 %v606_v28, %v607_v20 }
  0x5d   : > { %1611 = vst.msk [vmem:[#allocation2 + $0x38] sm:$0xff] %vm1250_vm0, %v1558_v37  ;;  %v582_v45 = vmax.f32 %v580_v25, %v581_v35  ;;  %v602_v46 = vrot.slane %v601_v21, 2  ;;  %v614_v47 = vrot.slane %v613_v36, 4  ;;  %v620_v48 = vsel %vm353_vm1, %v263_v30, -inf  ;;  %v270_v30 = vld [vmem:[%s2836_s23 + $0x5a] sm:$0x3] }
  0x5e   : > { %v589_v8 = vmax.f32 %v587_v31, %v588_v41  ;;  %v596_v50 = vmax.f32 %v594_v32, %v595_v42  ;;  %v609_v51 = vrot.slane %v608_v44, 2  ;;  %v621_v52 = vrot.slane %v620_v48, 4  ;;  %v271_v31 = vld [vmem:[%s2836_s23 + $0x5c] sm:$0x3] }
  0x5f   : > { %v583_v53 = vrot.slane %v582_v45, 1  ;;  %v603_v54 = vmax.f32 %v601_v21, %v602_v46  ;;  %v615_v55 = vmax.f32 %v613_v36, %v614_v47  ;;  %v627_v26 = vsel %vm353_vm1, %v264_v40, -inf  ;;  %v272_v46 = vld [vmem:[%s2836_s23 + $0x5e] sm:$0x3] }
  0x60   : > { %v590_v57 = vrot.slane %v589_v8, 1  ;;  %v597_v60 = vrot.slane %v596_v50, 1  ;;  %v610_v61 = vmax.f32 %v608_v44, %v609_v51  ;;  %v622_v11 = vmax.f32 %v620_v48, %v621_v52 }
  0x61   : > { %v3075_v3 = vmax.f32 %v582_v45, %v583_v53  ;;  %v604_v4 = vrot.slane %v603_v54, 1  ;;  %v616_v5 = vrot.slane %v615_v55, 2  ;;  %v628_v33 = vrot.slane %v627_v26, 4 }
  0x62   : > { %v3078_v39 = vmax.f32 %v589_v8, %v590_v57  ;;  %v3080_v38 = vmax.f32 %v596_v50, %v597_v60  ;;  %v611_v9 = vrot.slane %v610_v61, 1  ;;  %v623_v10 = vrot.slane %v622_v11, 2 }
  0x63   : > { %v3083_v13 = vmax.f32 %v603_v54, %v604_v4  ;;  %v617_v14 = vmax.f32 %v615_v55, %v616_v5  ;;  %v629_v49 = vmax.f32 %v627_v26, %v628_v33  ;;  %v634_v43 = vsel %vm353_vm1, %v265_v56, -inf }
  0x64   : > { %v3086_v15 = vld [vmem:[#allocation2 + $0x38] sm:$0xff]  ;;  %v3090_v17 = vmax.f32 %v610_v61, %v611_v9  ;;  %v624_v18 = vmax.f32 %v622_v11, %v623_v10  ;;  %v635_v19 = vrot.slane %v634_v43, 4  ;;  %v641_v59 = vsel %vm353_vm1, %v266_v2, -inf }
  0x65   : > { %v3088_v16 = vld [vmem:[#allocation2 + $0x39] sm:$0xff]  ;;  %1891 = vrot.lane.b32.xlu0 %v3086_v15, %s2773_s29  ;;  %v618_v22 = vrot.slane %v617_v14, 1  ;;  %v630_v23 = vrot.slane %v629_v49, 2  ;;  %v642_v24 = vrot.slane %v641_v59, 4  ;;  %v648_v7 = vsel %vm353_vm1, %v267_v6, -inf }
  0x66   : > { %v1667_v58 = vld [vmem:[#allocation2 + $0x37] sm:$0xff]  ;;  %1923 = vrot.lane.b32.xlu1 %v3088_v16, %s2774_s30  ;;  %v625_v25 = vrot.slane %v624_v18, 1  ;;  %v636_v27 = vmax.f32 %v634_v43, %v635_v19  ;;  %v649_v28 = vrot.slane %v648_v7, 4  ;;  %v655_v29 = vsel %vm353_vm1, %v268_v12, -inf }
  0x67   : > { %1859 = vrot.lane.b32.xlu2 %v1667_v58, %s2775_s6  ;;  %v3103_v32 = vmax.f32 %v617_v14, %v618_v22  ;;  %v631_v20 = vmax.f32 %v629_v49, %v630_v23  ;;  %v643_v34 = vmax.f32 %v641_v59, %v642_v24  ;;  %v656_v35 = vrot.slane %v655_v29, 4 }
  0x68   : > { %v3105_v21 = vmax.f32 %v624_v18, %v625_v25  ;;  %v637_v36 = vrot.slane %v636_v27, 2  ;;  %v650_v37 = vmax.f32 %v648_v7, %v649_v28  ;;  %v662_v40 = vsel %vm353_vm1, %v269_v63, -inf }
  0x69   : > { %v632_v41 = vrot.slane %v631_v20, 1  ;;  %v644_v42 = vrot.slane %v643_v34, 2  ;;  %v657_v44 = vmax.f32 %v655_v29, %v656_v35  ;;  %v663_v45 = vrot.slane %v662_v40, 4 }
  0x6a   : > { %v638_v47 = vmax.f32 %v636_v27, %v637_v36  ;;  %v651_v48 = vrot.slane %v650_v37, 2  ;;  %v669_v8 = vsel %vm353_vm1, %v270_v30, -inf  ;;  %v676_v50 = vsel %vm353_vm1, %v271_v31, -inf }
  0x6b   : > { %v3111_v51 = vmax.f32 %v631_v20, %v632_v41  ;;  %v645_v52 = vmax.f32 %v643_v34, %v644_v42  ;;  %v658_v53 = vrot.slane %v657_v44, 2  ;;  %v664_v54 = vmax.f32 %v662_v40, %v663_v45  ;;  %v273_v41 = vld [vmem:[%s2836_s23 + $0x60] sm:$0x3]  ;;  %v274_v42 = vld [vmem:[%s2836_s23 + $0x62] sm:$0x3] }
  0x6c   : > { %v639_v55 = vrot.slane %v638_v47, 1  ;;  %v652_v26 = vmax.f32 %v650_v37, %v651_v48  ;;  %v670_v56 = vrot.slane %v669_v8, 4  ;;  %v677_v57 = vrot.slane %v676_v50, 4 }
  0x6d   : > { %1733 = vrot.lane.b32.xlu0 %v3017_v1, %s2769_s25  ;;  %v646_v60 = vrot.slane %v645_v52, 1  ;;  %v659_v61 = vmax.f32 %v657_v44, %v658_v53  ;;  %v665_v11 = vrot.slane %v664_v54, 2  ;;  %v683_v2 = vsel %vm353_vm1, %v272_v46, -inf }
  0x6e   : > { %1765 = vrot.lane.b32.xlu1 %v1667_v58, %s2770_s26  ;;  %v640_v4 = vmax.f32 %v638_v47, %v639_v55  ;;  %v653_v5 = vrot.slane %v652_v26, 1  ;;  %v671_v33 = vmax.f32 %v669_v8, %v670_v56  ;;  %v678_v6 = vmax.f32 %v676_v50, %v677_v57  ;;  %v275_v47 = vld [vmem:[%s2836_s23 + $0x64] sm:$0x3] }
  0x6f   : > { %1701 = vrot.lane.b32.xlu2 %v3015_v62, %s2768_s24  ;;  %v647_v9 = vmax.f32 %v645_v52, %v646_v60  ;;  %v660_v10 = vrot.slane %v659_v61, 1  ;;  %v666_v12 = vmax.f32 %v664_v54, %v665_v11  ;;  %v684_v14 = vrot.slane %v683_v2, 4  ;;  %v278_v11 = vld [vmem:[%s2836_s23 + $0x6a] sm:$0x3] }
  0x70   : > { %v654_v49 = vmax.f32 %v652_v26, %v653_v5  ;;  %v672_v1 = vrot.slane %v671_v33, 2  ;;  %v679_v43 = vrot.slane %v678_v6, 2  ;;  %v1299_v58 = vsel %vm1250_vm0, %v3075_v3, -inf  ;;  %v276_v26 = vld [vmem:[%s2836_s23 + $0x66] sm:$0x3] }
  0x71   : > { %v661_v18 = vmax.f32 %v659_v61, %v660_v10  ;;  %v667_v19 = vrot.slane %v666_v12, 1  ;;  %v685_v59 = vmax.f32 %v683_v2, %v684_v14  ;;  %v1300_v63 = vsel %vm1250_vm0, %v640_v4, -inf }
  0x72   : > { %v673_v22 = vmax.f32 %v671_v33, %v672_v1  ;;  %v680_v23 = vmax.f32 %v678_v6, %v679_v43  ;;  %v1301_v24 = vmax.f32 %v1299_v58, %v1300_v63  ;;  %v1302_v62 = vsel %vm1250_vm0, %v3078_v39, -inf  ;;  %v280_v63 = vld [vmem:[%s2836_s23 + $0x6e] sm:$0x3] }
  0x73   : > { %v668_v7 = vmax.f32 %v666_v12, %v667_v19  ;;  %v686_v25 = vrot.slane %v685_v59, 2  ;;  %v1303_v27 = vsel %vm1250_vm0, %v647_v9, -inf  ;;  %v1305_v28 = vsel %vm1250_vm0, %v3080_v38, -inf  ;;  %v279_v12 = vld [vmem:[%s2836_s23 + $0x6c] sm:$0x3] }
  0x74   : > { %v674_v3 = vrot.slane %v673_v22, 1  ;;  %v681_v29 = vrot.slane %v680_v23, 1  ;;  %v1304_v30 = vmax.f32 %v1302_v62, %v1303_v27  ;;  %v1306_v31 = vsel %vm1250_vm0, %v654_v49, -inf }
  0x75   : > { %1829 = vrot.lane.b32.xlu0 %v3088_v16, %s2771_s27  ;;  %v687_v20 = vmax.f32 %v685_v59, %v686_v25  ;;  %v1307_v39 = vmax.f32 %v1305_v28, %v1306_v31  ;;  %v1308_v34 = vsel %vm1250_vm0, %v3083_v13, -inf  ;;  %v1309_v35 = vsel %vm1250_vm0, %v661_v18, -inf }
  0x76   : > { %v675_v36 = vmax.f32 %v673_v22, %v674_v3  ;;  %v682_v37 = vmax.f32 %v680_v23, %v681_v29  ;;  %v1310_v38 = vmax.f32 %v1308_v34, %v1309_v35  ;;  %v1311_v40 = vsel %vm1250_vm0, %v3090_v17, -inf  ;;  %v281_v35 = vld [vmem:[%s2836_s23 + $0x70] sm:$0x3] }
  0x77   : > { %1797 = vrot.lane.b32.xlu2 %v3086_v15, %s2772_s28  ;;  %v688_v44 = vrot.slane %v687_v20, 1  ;;  %v1312_v45 = vsel %vm1250_vm0, %v668_v7, -inf  ;;  %v1314_v13 = vsel %vm1250_vm0, %v3103_v32, -inf  ;;  %v1317_v46 = vsel %vm1250_vm0, %v3105_v21, -inf  ;;  %v277_v21 = vld [vmem:[%s2836_s23 + $0x68] sm:$0x3] }
  0x78   : > { %v1313_v48 = vmax.f32 %v1311_v40, %v1312_v45  ;;  %v1315_v17 = vsel %vm1250_vm0, %v675_v36, -inf  ;;  %v1318_v8 = vsel %vm1250_vm0, %v682_v37, -inf  ;;  %v1320_v50 = vsel %vm1250_vm0, %v3111_v51, -inf }
  0x79   : > { %v689_v52 = vmax.f32 %v687_v20, %v688_v44  ;;  %v1316_v53 = vmax.f32 %v1314_v13, %v1315_v17  ;;  %v1319_v54 = vmax.f32 %v1317_v46, %v1318_v8  ;;  %v1559_v55 = vsel %vm1538_vm3, %v1304_v30, %v1301_v24  ;;  %v283_v8 = vld [vmem:[%s2836_s23 + $0x74] sm:$0x3] }
  0x7a   : > { %v1560_v32 = vsel %vm1540_vm4, %v1307_v39, %v1559_v55  ;;  %v690_v56 = vsel %vm353_vm1, %v273_v41, -inf  ;;  %v697_v57 = vsel %vm353_vm1, %v274_v42, -inf  ;;  %v704_v60 = vsel %vm353_vm1, %v275_v47, -inf  ;;  %v282_v41 = vld [vmem:[%s2836_s23 + $0x72] sm:$0x3] }
  0x7b   : > { %v1321_v61 = vsel %vm1250_vm0, %v689_v52, -inf  ;;  %v1561_v51 = vsel %vm1542_vm5, %v1310_v38, %v1560_v32  ;;  %v691_v2 = vrot.slane %v690_v56, 4  ;;  %v698_v4 = vrot.slane %v697_v57, 4 }
  0x7c   : > { %v1322_v5 = vmax.f32 %v1320_v50, %v1321_v61  ;;  %v1562_v33 = vsel %vm1544_vm6, %v1313_v48, %v1561_v51  ;;  %v705_v6 = vrot.slane %v704_v60, 4  ;;  %v711_v9 = vsel %vm353_vm1, %v276_v26, -inf  ;;  %v284_v50 = vld [vmem:[%s2836_s23 + $0x76] sm:$0x3]  ;;  %v285_v61 = vld [vmem:[%s2836_s23 + $0x78] sm:$0x3] }
  0x7d   : > { %v1563_v10 = vsel %vm1546_vm7, %v1316_v53, %v1562_v33  ;;  %v692_v14 = vmax.f32 %v690_v56, %v691_v2  ;;  %v699_v49 = vmax.f32 %v697_v57, %v698_v4  ;;  %v712_v1 = vrot.slane %v711_v9, 4 }
  0x7e   : > { %v1564_v43 = vsel %vm1548_vm8, %v1319_v54, %v1563_v10  ;;  %v706_v58 = vmax.f32 %v704_v60, %v705_v6  ;;  %v718_v18 = vsel %vm353_vm1, %v277_v21, -inf  ;;  %v725_v19 = vsel %vm353_vm1, %v278_v11, -inf }
  0x7f   : > { %v1565_v59 = vsel %vm4151_vm9, %v1322_v5, %v1564_v43  ;;  %v693_v22 = vrot.slane %v692_v14, 2  ;;  %v700_v23 = vrot.slane %v699_v49, 2  ;;  %v713_v24 = vmax.f32 %v711_v9, %v712_v1  ;;  %v286_v5 = vld [vmem:[%s2836_s23 + $0x7a] sm:$0x3]  ;;  %v287_v43 = vld [vmem:[%s2836_s23 + $0x7c] sm:$0x3] }
  0x80   : > { %1612 = vst.msk [vmem:[#allocation2 + $0x50] sm:$0xff] %vm1250_vm0, %v1565_v59  ;;  %v707_v62 = vrot.slane %v706_v58, 2  ;;  %v719_v7 = vrot.slane %v718_v18, 4  ;;  %v726_v25 = vrot.slane %v725_v19, 4  ;;  %v732_v27 = vsel %vm353_vm1, %v279_v12, -inf }
  0x81   : > { %v694_v28 = vmax.f32 %v692_v14, %v693_v22  ;;  %v701_v3 = vmax.f32 %v699_v49, %v700_v23  ;;  %v714_v29 = vrot.slane %v713_v24, 2  ;;  %v733_v30 = vrot.slane %v732_v27, 4 }
  0x82   : > { %v708_v31 = vmax.f32 %v706_v58, %v707_v62  ;;  %v720_v20 = vmax.f32 %v718_v18, %v719_v7  ;;  %v727_v39 = vmax.f32 %v725_v19, %v726_v25  ;;  %v739_v34 = vsel %vm353_vm1, %v280_v63, -inf  ;;  %v288_v7 = vld [vmem:[%s2836_s23 + $0x7e] sm:$0x3] }
  0x83   : > { %v695_v36 = vrot.slane %v694_v28, 1  ;;  %v702_v37 = vrot.slane %v701_v3, 1  ;;  %v715_v38 = vmax.f32 %v713_v24, %v714_v29  ;;  %v734_v40 = vmax.f32 %v732_v27, %v733_v30 }
  0x84   : > { %v709_v42 = vrot.slane %v708_v31, 1  ;;  %v721_v44 = vrot.slane %v720_v20, 2  ;;  %v728_v45 = vrot.slane %v727_v39, 2  ;;  %v740_v13 = vrot.slane %v739_v34, 4 }
  0x85   : > { %v3173_v46 = vmax.f32 %v694_v28, %v695_v36  ;;  %v3175_v47 = vmax.f32 %v701_v3, %v702_v37  ;;  %v716_v48 = vrot.slane %v715_v38, 1  ;;  %v735_v17 = vrot.slane %v734_v40, 2 }
  0x86   : > { %v3179_v52 = vmax.f32 %v708_v31, %v709_v42  ;;  %v722_v53 = vmax.f32 %v720_v20, %v721_v44  ;;  %v729_v54 = vmax.f32 %v727_v39, %v728_v45  ;;  %v741_v55 = vmax.f32 %v739_v34, %v740_v13 }
  0x87   : > { %v3181_v26 = vld [vmem:[#allocation2 + $0x51] sm:$0xff]  ;;  %v3183_v21 = vmax.f32 %v715_v38, %v716_v48  ;;  %v736_v56 = vmax.f32 %v734_v40, %v735_v17  ;;  %v746_v57 = vsel %vm353_vm1, %v281_v35, -inf  ;;  %v753_v60 = vsel %vm353_vm1, %v282_v41, -inf }
  0x88   : > { %v1668_v32 = vld [vmem:[#allocation2 + $0x4f] sm:$0xff]  ;;  %1925 = vrot.lane.b32.xlu0 %v3181_v26, %s2774_s30  ;;  %v723_v51 = vrot.slane %v722_v53, 1  ;;  %v730_v11 = vrot.slane %v729_v54, 1  ;;  %v742_v2 = vrot.slane %v741_v55, 2  ;;  %v747_v4 = vrot.slane %v746_v57, 4 }
  0x89   : > { %1861 = vrot.lane.b32.xlu1 %v1668_v32, %s2775_s6  ;;  %v737_v33 = vrot.slane %v736_v56, 1  ;;  %v754_v6 = vrot.slane %v753_v60, 4  ;;  %v760_v9 = vsel %vm353_vm1, %v283_v8, -inf  ;;  %v767_v10 = vsel %vm353_vm1, %v284_v50, -inf  ;;  %v3203_v62 = vld [vmem:[#allocation2 + $0x50] sm:$0xff] }
  0x8a   : > { %v3194_v12 = vmax.f32 %v722_v53, %v723_v51  ;;  %v3196_v14 = vmax.f32 %v729_v54, %v730_v11  ;;  %v743_v49 = vmax.f32 %v741_v55, %v742_v2  ;;  %v748_v1 = vmax.f32 %v746_v57, %v747_v4  ;;  %1893 = vrot.lane.b32.xlu2 %v3203_v62, %s2773_s29 }
  0x8b   : > { %v3199_v58 = vmax.f32 %v736_v56, %v737_v33  ;;  %v755_v18 = vmax.f32 %v753_v60, %v754_v6  ;;  %v761_v19 = vrot.slane %v760_v9, 4  ;;  %v768_v59 = vrot.slane %v767_v10, 4 }
  0x8c   : > { %v744_v63 = vrot.slane %v743_v49, 1  ;;  %v749_v22 = vrot.slane %v748_v1, 2  ;;  %v774_v23 = vsel %vm353_vm1, %v285_v61, -inf  ;;  %v781_v24 = vsel %vm353_vm1, %v286_v5, -inf }
  0x8d   : > { %v756_v25 = vrot.slane %v755_v18, 2  ;;  %v762_v27 = vmax.f32 %v760_v9, %v761_v19  ;;  %v769_v28 = vmax.f32 %v767_v10, %v768_v59  ;;  %v775_v3 = vrot.slane %v774_v23, 4 }
  0x8e   : > { %v3208_v29 = vmax.f32 %v743_v49, %v744_v63  ;;  %v750_v30 = vmax.f32 %v748_v1, %v749_v22  ;;  %v782_v31 = vrot.slane %v781_v24, 4  ;;  %v788_v20 = vsel %vm353_vm1, %v287_v43, -inf }
  0x8f   : > { %v757_v39 = vmax.f32 %v755_v18, %v756_v25  ;;  %v763_v34 = vrot.slane %v762_v27, 2  ;;  %v770_v35 = vrot.slane %v769_v28, 2  ;;  %v776_v36 = vmax.f32 %v774_v23, %v775_v3  ;;  %v290_v3 = vld [vmem:[%s2836_s23 + $0x82] sm:$0x3] }
  0x90   : > { %1767 = vrot.lane.b32.xlu0 %v1668_v32, %s2770_s26  ;;  %v751_v37 = vrot.slane %v750_v30, 1  ;;  %v783_v38 = vmax.f32 %v781_v24, %v782_v31  ;;  %v789_v40 = vrot.slane %v788_v20, 4  ;;  %v795_v41 = vsel %vm353_vm1, %v288_v7, -inf  ;;  %v289_v7 = vld [vmem:[%s2836_s23 + $0x80] sm:$0x3] }
  0x91   : > { %1703 = vrot.lane.b32.xlu1 %v3086_v15, %s2768_s24  ;;  %v758_v42 = vrot.slane %v757_v39, 1  ;;  %v764_v44 = vmax.f32 %v762_v27, %v763_v34  ;;  %v771_v45 = vmax.f32 %v769_v28, %v770_v35  ;;  %v777_v13 = vrot.slane %v776_v36, 2 }
  0x92   : > { %v752_v48 = vmax.f32 %v750_v30, %v751_v37  ;;  %v784_v17 = vrot.slane %v783_v38, 2  ;;  %v790_v8 = vmax.f32 %v788_v20, %v789_v40  ;;  %v796_v50 = vrot.slane %v795_v41, 4  ;;  %1735 = vrot.lane.b32.xlu2 %v3088_v16, %s2769_s25  ;;  %v293_v40 = vld [vmem:[%s2836_s23 + $0x88] sm:$0x3] }
  0x93   : > { %v759_v53 = vmax.f32 %v757_v39, %v758_v42  ;;  %v765_v54 = vrot.slane %v764_v44, 1  ;;  %v772_v55 = vrot.slane %v771_v45, 1  ;;  %v778_v32 = vmax.f32 %v776_v36, %v777_v13  ;;  %v291_v39 = vld [vmem:[%s2836_s23 + $0x84] sm:$0x3]  ;;  %v292_v36 = vld [vmem:[%s2836_s23 + $0x86] sm:$0x3] }
  0x94   : > { %v785_v56 = vmax.f32 %v783_v38, %v784_v17  ;;  %v791_v57 = vrot.slane %v790_v8, 2  ;;  %v797_v15 = vmax.f32 %v795_v41, %v796_v50  ;;  %v1323_v60 = vsel %vm1250_vm0, %v3173_v46, -inf  ;;  %v294_v17 = vld [vmem:[%s2836_s23 + $0x8a] sm:$0x3] }
  0x95   : > { %v766_v61 = vmax.f32 %v764_v44, %v765_v54  ;;  %v773_v51 = vmax.f32 %v771_v45, %v772_v55  ;;  %v779_v11 = vrot.slane %v778_v32, 1  ;;  %v1324_v2 = vsel %vm1250_vm0, %v752_v48, -inf }
  0x96   : > { %v786_v4 = vrot.slane %v785_v56, 1  ;;  %v792_v5 = vmax.f32 %v790_v8, %v791_v57  ;;  %v798_v33 = vrot.slane %v797_v15, 2  ;;  %v1325_v6 = vmax.f32 %v1323_v60, %v1324_v2  ;;  %v296_v60 = vld [vmem:[%s2836_s23 + $0x8e] sm:$0x3] }
  0x97   : > { %v780_v9 = vmax.f32 %v778_v32, %v779_v11  ;;  %v1326_v10 = vsel %vm1250_vm0, %v3175_v47, -inf  ;;  %v1327_v49 = vsel %vm1250_vm0, %v759_v53, -inf  ;;  %v1329_v46 = vsel %vm1250_vm0, %v3179_v52, -inf }
  0x98   : > { %v787_v1 = vmax.f32 %v785_v56, %v786_v4  ;;  %v793_v43 = vrot.slane %v792_v5, 1  ;;  %v799_v18 = vmax.f32 %v797_v15, %v798_v33  ;;  %v1328_v19 = vmax.f32 %v1326_v10, %v1327_v49  ;;  %v295_v15 = vld [vmem:[%s2836_s23 + $0x8c] sm:$0x3] }
  0x99   : > { %1799 = vrot.lane.b32.xlu1 %v3203_v62, %s2772_s28  ;;  %v1330_v16 = vsel %vm1250_vm0, %v766_v61, -inf  ;;  %v1332_v59 = vsel %vm1250_vm0, %v3183_v21, -inf  ;;  %v1333_v47 = vsel %vm1250_vm0, %v773_v51, -inf  ;;  %v1335_v63 = vsel %vm1250_vm0, %v3194_v12, -inf }
  0x9a   : > { %v794_v52 = vmax.f32 %v792_v5, %v793_v43  ;;  %v800_v22 = vrot.slane %v799_v18, 1  ;;  %v1331_v23 = vmax.f32 %v1329_v46, %v1330_v16  ;;  %v1334_v24 = vmax.f32 %v1332_v59, %v1333_v47  ;;  %1831 = vrot.lane.b32.xlu2 %v3181_v26, %s2771_s27 }
  0x9b   : > { %v1336_v25 = vsel %vm1250_vm0, %v780_v9, -inf  ;;  %v1338_v27 = vsel %vm1250_vm0, %v3196_v14, -inf  ;;  %v1339_v28 = vsel %vm1250_vm0, %v787_v1, -inf  ;;  %v1341_v21 = vsel %vm1250_vm0, %v3199_v58, -inf }
  0x9c   : > { %v801_v30 = vmax.f32 %v799_v18, %v800_v22  ;;  %v1337_v12 = vmax.f32 %v1335_v63, %v1336_v25  ;;  %v1340_v31 = vmax.f32 %v1338_v27, %v1339_v28  ;;  %v1342_v20 = vsel %vm1250_vm0, %v794_v52, -inf  ;;  %v297_v63 = vld [vmem:[%s2836_s23 + $0x90] sm:$0x3] }
  0x9d   : > { %v1343_v34 = vmax.f32 %v1341_v21, %v1342_v20  ;;  %v1344_v35 = vsel %vm1250_vm0, %v3208_v29, -inf  ;;  %v1566_v14 = vsel %vm1538_vm3, %v1328_v19, %v1325_v6  ;;  %v802_v58 = vsel %vm353_vm1, %v289_v7, -inf  ;;  %v298_v21 = vld [vmem:[%s2836_s23 + $0x92] sm:$0x3] }
  0x9e   : > { %v1345_v37 = vsel %vm1250_vm0, %v801_v30, -inf  ;;  %v1567_v38 = vsel %vm1540_vm4, %v1331_v23, %v1566_v14  ;;  %v803_v41 = vrot.slane %v802_v58, 4  ;;  %v809_v42 = vsel %vm353_vm1, %v290_v3, -inf  ;;  %v299_v3 = vld [vmem:[%s2836_s23 + $0x94] sm:$0x3] }
  0x9f   : > { %v1346_v44 = vmax.f32 %v1344_v35, %v1345_v37  ;;  %v1568_v29 = vsel %vm1542_vm5, %v1334_v24, %v1567_v38  ;;  %v810_v45 = vrot.slane %v809_v42, 4  ;;  %v816_v13 = vsel %vm353_vm1, %v291_v39, -inf  ;;  %v300_v39 = vld [vmem:[%s2836_s23 + $0x96] sm:$0x3] }
  0xa0   : > { %v1569_v48 = vsel %vm1544_vm6, %v1337_v12, %v1568_v29  ;;  %v804_v8 = vmax.f32 %v802_v58, %v803_v41  ;;  %v817_v50 = vrot.slane %v816_v13, 4  ;;  %v823_v53 = vsel %vm353_vm1, %v292_v36, -inf }
  0xa1   : > { %v1570_v54 = vsel %vm1546_vm7, %v1340_v31, %v1569_v48  ;;  %v811_v55 = vmax.f32 %v809_v42, %v810_v45  ;;  %v824_v32 = vrot.slane %v823_v53, 4  ;;  %v830_v56 = vsel %vm353_vm1, %v293_v40, -inf }
  0xa2   : > { %v1571_v57 = vsel %vm1548_vm8, %v1343_v34, %v1570_v54  ;;  %v805_v61 = vrot.slane %v804_v8, 2  ;;  %v818_v51 = vmax.f32 %v816_v13, %v817_v50  ;;  %v831_v11 = vrot.slane %v830_v56, 4  ;;  %v301_v34 = vld [vmem:[%s2836_s23 + $0x98] sm:$0x3] }
  0xa3   : > { %v1572_v2 = vsel %vm4151_vm9, %v1346_v44, %v1571_v57  ;;  %v812_v4 = vrot.slane %v811_v55, 2  ;;  %v825_v5 = vmax.f32 %v823_v53, %v824_v32  ;;  %v837_v33 = vsel %vm353_vm1, %v294_v17, -inf  ;;  %v302_v17 = vld [vmem:[%s2836_s23 + $0x9a] sm:$0x3] }
  0xa4   : > { %1613 = vst.msk [vmem:[#allocation2 + $0x68] sm:$0xff] %vm1250_vm0, %v1572_v2  ;;  %v806_v6 = vmax.f32 %v804_v8, %v805_v61  ;;  %v819_v9 = vrot.slane %v818_v51, 2  ;;  %v832_v10 = vmax.f32 %v830_v56, %v831_v11  ;;  %v838_v49 = vrot.slane %v837_v33, 4 }
  0xa5   : > { %v813_v46 = vmax.f32 %v811_v55, %v812_v4  ;;  %v826_v1 = vrot.slane %v825_v5, 2  ;;  %v844_v43 = vsel %vm353_vm1, %v295_v15, -inf  ;;  %v851_v18 = vsel %vm353_vm1, %v296_v60, -inf  ;;  %v303_v15 = vld [vmem:[%s2836_s23 + $0x9c] sm:$0x3] }
  0xa6   : > { %v807_v19 = vrot.slane %v806_v6, 1  ;;  %v820_v16 = vmax.f32 %v818_v51, %v819_v9  ;;  %v833_v59 = vrot.slane %v832_v10, 2  ;;  %v839_v47 = vmax.f32 %v837_v33, %v838_v49  ;;  %v304_v4 = vld [vmem:[%s2836_s23 + $0x9e] sm:$0x3] }
  0xa7   : > { %v814_v52 = vrot.slane %v813_v46, 1  ;;  %v827_v22 = vmax.f32 %v825_v5, %v826_v1  ;;  %v845_v23 = vrot.slane %v844_v43, 4  ;;  %v852_v24 = vrot.slane %v851_v18, 4 }
  0xa8   : > { %v3270_v7 = vmax.f32 %v806_v6, %v807_v19  ;;  %v821_v25 = vrot.slane %v820_v16, 1  ;;  %v834_v27 = vmax.f32 %v832_v10, %v833_v59  ;;  %v840_v28 = vrot.slane %v839_v47, 2 }
  0xa9   : > { %v3274_v30 = vmax.f32 %v813_v46, %v814_v52  ;;  %v828_v12 = vrot.slane %v827_v22, 1  ;;  %v846_v31 = vmax.f32 %v844_v43, %v845_v23  ;;  %v853_v20 = vmax.f32 %v851_v18, %v852_v24 }
  0xaa   : > { %v3278_v35 = vmax.f32 %v820_v16, %v821_v25  ;;  %v835_v14 = vrot.slane %v834_v27, 1  ;;  %v841_v36 = vmax.f32 %v839_v47, %v840_v28  ;;  %v858_v58 = vsel %vm353_vm1, %v297_v63, -inf }
  0xab   : > { %v3281_v37 = vld [vmem:[#allocation2 + $0x67] sm:$0xff]  ;;  %v3285_v40 = vmax.f32 %v827_v22, %v828_v12  ;;  %v847_v41 = vrot.slane %v846_v31, 2  ;;  %v854_v42 = vrot.slane %v853_v20, 2  ;;  %v859_v44 = vrot.slane %v858_v58, 4 }
  0xac   : > { %v3283_v38 = vld [vmem:[#allocation2 + $0x68] sm:$0xff]  ;;  %1863 = vrot.lane.b32.xlu0 %v3281_v37, %s2775_s6  ;;  %v3291_v29 = vmax.f32 %v834_v27, %v835_v14  ;;  %v842_v45 = vrot.slane %v841_v36, 1  ;;  %v865_v13 = vsel %vm353_vm1, %v298_v21, -inf  ;;  %v872_v48 = vsel %vm353_vm1, %v299_v3, -inf }
  0xad   : > { %1895 = vrot.lane.b32.xlu1 %v3283_v38, %s2773_s29  ;;  %v848_v8 = vmax.f32 %v846_v31, %v847_v41  ;;  %v855_v50 = vmax.f32 %v853_v20, %v854_v42  ;;  %v860_v53 = vmax.f32 %v858_v58, %v859_v44  ;;  %v866_v54 = vrot.slane %v865_v13, 4  ;;  %v3301_v2 = vld [vmem:[#allocation2 + $0x69] sm:$0xff] }
  0xae   : > { %v3296_v55 = vmax.f32 %v841_v36, %v842_v45  ;;  %v873_v32 = vrot.slane %v872_v48, 4  ;;  %v879_v56 = vsel %vm353_vm1, %v300_v39, -inf  ;;  %v886_v57 = vsel %vm353_vm1, %v301_v34, -inf  ;;  %1927 = vrot.lane.b32.xlu2 %v3301_v2, %s2774_s30 }
  0xaf   : > { %v849_v60 = vrot.slane %v848_v8, 1  ;;  %v856_v61 = vrot.slane %v855_v50, 1  ;;  %v861_v51 = vrot.slane %v860_v53, 2  ;;  %v867_v11 = vmax.f32 %v865_v13, %v866_v54 }
  0xb0   : > { %v874_v5 = vmax.f32 %v872_v48, %v873_v32  ;;  %v880_v33 = vrot.slane %v879_v56, 4  ;;  %v887_v6 = vrot.slane %v886_v57, 4  ;;  %v893_v9 = vsel %vm353_vm1, %v302_v17, -inf }
  0xb1   : > { %v3307_v10 = vmax.f32 %v848_v8, %v849_v60  ;;  %v3309_v49 = vmax.f32 %v855_v50, %v856_v61  ;;  %v862_v46 = vmax.f32 %v860_v53, %v861_v51  ;;  %v868_v1 = vrot.slane %v867_v11, 2 }
  0xb2   : > { %v875_v43 = vrot.slane %v874_v5, 2  ;;  %v881_v18 = vmax.f32 %v879_v56, %v880_v33  ;;  %v888_v19 = vmax.f32 %v886_v57, %v887_v6  ;;  %v894_v16 = vrot.slane %v893_v9, 4 }
  0xb3   : > { %v863_v59 = vrot.slane %v862_v46, 1  ;;  %v869_v47 = vmax.f32 %v867_v11, %v868_v1  ;;  %v900_v63 = vsel %vm353_vm1, %v303_v15, -inf  ;;  %v907_v52 = vsel %vm353_vm1, %v304_v4, -inf }
  0xb4   : > { %1705 = vrot.lane.b32.xlu0 %v3203_v62, %s2768_s24  ;;  %v876_v22 = vmax.f32 %v874_v5, %v875_v43  ;;  %v882_v23 = vrot.slane %v881_v18, 2  ;;  %v889_v24 = vrot.slane %v888_v19, 2  ;;  %v895_v25 = vmax.f32 %v893_v9, %v894_v16  ;;  %v306_v43 = vld [vmem:[%s2836_s23 + $0xa2] sm:$0x3] }
  0xb5   : > { %1737 = vrot.lane.b32.xlu1 %v3181_v26, %s2769_s25  ;;  %v864_v27 = vmax.f32 %v862_v46, %v863_v59  ;;  %v870_v28 = vrot.slane %v869_v47, 1  ;;  %v901_v21 = vrot.slane %v900_v63, 4  ;;  %v908_v3 = vrot.slane %v907_v52, 4  ;;  %v307_v59 = vld [vmem:[%s2836_s23 + $0xa4] sm:$0x3] }
  0xb6   : > { %v877_v12 = vrot.slane %v876_v22, 1  ;;  %v883_v31 = vmax.f32 %v881_v18, %v882_v23  ;;  %v890_v20 = vmax.f32 %v888_v19, %v889_v24  ;;  %v896_v39 = vrot.slane %v895_v25, 2  ;;  %1769 = vrot.lane.b32.xlu2 %v3281_v37, %s2770_s26 }
  0xb7   : > { %v871_v34 = vmax.f32 %v869_v47, %v870_v28  ;;  %v902_v14 = vmax.f32 %v900_v63, %v901_v21  ;;  %v909_v36 = vmax.f32 %v907_v52, %v908_v3  ;;  %v1347_v62 = vsel %vm1250_vm0, %v3270_v7, -inf }
  0xb8   : > { %v878_v58 = vmax.f32 %v876_v22, %v877_v12  ;;  %v884_v26 = vrot.slane %v883_v31, 1  ;;  %v891_v41 = vrot.slane %v890_v20, 1  ;;  %v897_v42 = vmax.f32 %v895_v25, %v896_v39  ;;  %v309_v25 = vld [vmem:[%s2836_s23 + $0xa8] sm:$0x3] }
  0xb9   : > { %v903_v44 = vrot.slane %v902_v14, 2  ;;  %v910_v45 = vrot.slane %v909_v36, 2  ;;  %v1348_v13 = vsel %vm1250_vm0, %v864_v27, -inf  ;;  %v1350_v48 = vsel %vm1250_vm0, %v3274_v30, -inf  ;;  %v310_v27 = vld [vmem:[%s2836_s23 + $0xaa] sm:$0x3] }
  0xba   : > { %v885_v17 = vmax.f32 %v883_v31, %v884_v26  ;;  %v892_v8 = vmax.f32 %v890_v20, %v891_v41  ;;  %v898_v50 = vrot.slane %v897_v42, 1  ;;  %v1349_v53 = vmax.f32 %v1347_v62, %v1348_v13  ;;  %v311_v20 = vld [vmem:[%s2836_s23 + $0xac] sm:$0x3] }
  0xbb   : > { %v904_v54 = vmax.f32 %v902_v14, %v903_v44  ;;  %v911_v7 = vmax.f32 %v909_v36, %v910_v45  ;;  %v1351_v32 = vsel %vm1250_vm0, %v871_v34, -inf  ;;  %v1353_v56 = vsel %vm1250_vm0, %v3278_v35, -inf }
  0xbc   : > { %1801 = vrot.lane.b32.xlu0 %v3283_v38, %s2772_s28  ;;  %v899_v37 = vmax.f32 %v897_v42, %v898_v50  ;;  %v1352_v57 = vmax.f32 %v1350_v48, %v1351_v32  ;;  %v1354_v15 = vsel %vm1250_vm0, %v878_v58, -inf  ;;  %v1356_v30 = vsel %vm1250_vm0, %v3285_v40, -inf  ;;  %v305_v40 = vld [vmem:[%s2836_s23 + $0xa0] sm:$0x3]  ;;  %v312_v42 = vld [vmem:[%s2836_s23 + $0xae] sm:$0x3] }
  0xbd   : > { %1833 = vrot.lane.b32.xlu1 %v3301_v2, %s2771_s27  ;;  %v905_v60 = vrot.slane %v904_v54, 1  ;;  %v912_v61 = vrot.slane %v911_v7, 1  ;;  %v1355_v51 = vmax.f32 %v1353_v56, %v1354_v15  ;;  %v1357_v35 = vsel %vm1250_vm0, %v885_v17, -inf }
  0xbe   : > { %v1358_v11 = vmax.f32 %v1356_v30, %v1357_v35  ;;  %v1359_v4 = vsel %vm1250_vm0, %v3291_v29, -inf  ;;  %v1360_v5 = vsel %vm1250_vm0, %v892_v8, -inf  ;;  %v1362_v33 = vsel %vm1250_vm0, %v3296_v55, -inf  ;;  %v308_v55 = vld [vmem:[%s2836_s23 + $0xa6] sm:$0x3] }
  0xbf   : > { %v906_v6 = vmax.f32 %v904_v54, %v905_v60  ;;  %v913_v9 = vmax.f32 %v911_v7, %v912_v61  ;;  %v1361_v46 = vmax.f32 %v1359_v4, %v1360_v5  ;;  %v1363_v1 = vsel %vm1250_vm0, %v899_v37, -inf  ;;  %v313_v35 = vld [vmem:[%s2836_s23 + $0xb0] sm:$0x3] }
  0xc0   : > { %v1364_v18 = vmax.f32 %v1362_v33, %v1363_v1  ;;  %v1365_v19 = vsel %vm1250_vm0, %v3307_v10, -inf  ;;  %v1368_v29 = vsel %vm1250_vm0, %v3309_v49, -inf  ;;  %v1573_v16 = vsel %vm1538_vm3, %v1352_v57, %v1349_v53  ;;  %v315_v1 = vld [vmem:[%s2836_s23 + $0xb4] sm:$0x3] }
  0xc1   : > { %v1366_v47 = vsel %vm1250_vm0, %v906_v6, -inf  ;;  %v1369_v63 = vsel %vm1250_vm0, %v913_v9, -inf  ;;  %v1574_v52 = vsel %vm1540_vm4, %v1355_v51, %v1573_v16  ;;  %v914_v22 = vsel %vm353_vm1, %v305_v40, -inf }
  0xc2   : > { %v1367_v23 = vmax.f32 %v1365_v19, %v1366_v47  ;;  %v1370_v24 = vmax.f32 %v1368_v29, %v1369_v63  ;;  %v1575_v10 = vsel %vm1542_vm5, %v1358_v11, %v1574_v52  ;;  %v915_v49 = vrot.slane %v914_v22, 4  ;;  %v316_v52 = vld [vmem:[%s2836_s23 + $0xb6] sm:$0x3] }
  0xc3   : > { %v1576_v28 = vsel %vm1544_vm6, %v1361_v46, %v1575_v10  ;;  %v921_v21 = vsel %vm353_vm1, %v306_v43, -inf  ;;  %v928_v3 = vsel %vm353_vm1, %v307_v59, -inf  ;;  %v935_v12 = vsel %vm353_vm1, %v308_v55, -inf  ;;  %v314_v46 = vld [vmem:[%s2836_s23 + $0xb2] sm:$0x3] }
  0xc4   : > { %v1577_v31 = vsel %vm1546_vm7, %v1364_v18, %v1576_v28  ;;  %v916_v39 = vmax.f32 %v914_v22, %v915_v49  ;;  %v922_v34 = vrot.slane %v921_v21, 4  ;;  %v929_v14 = vrot.slane %v928_v3, 4 }
  0xc5   : > { %v1578_v36 = vsel %vm1548_vm8, %v1367_v23, %v1577_v31  ;;  %v936_v62 = vrot.slane %v935_v12, 4  ;;  %v942_v58 = vsel %vm353_vm1, %v309_v25, -inf  ;;  %v949_v26 = vsel %vm353_vm1, %v310_v27, -inf  ;;  %v317_v25 = vld [vmem:[%s2836_s23 + $0xb8] sm:$0x3] }
  0xc6   : > { %v1579_v41 = vsel %vm4151_vm9, %v1370_v24, %v1578_v36  ;;  %v917_v44 = vrot.slane %v916_v39, 2  ;;  %v923_v45 = vmax.f32 %v921_v21, %v922_v34  ;;  %v930_v13 = vmax.f32 %v928_v3, %v929_v14  ;;  %v318_v3 = vld [vmem:[%s2836_s23 + $0xba] sm:$0x3] }
  0xc7   : > { %1614 = vst.msk [vmem:[#allocation2 + $0x80] sm:$0xff] %vm1250_vm0, %v1579_v41  ;;  %v937_v48 = vmax.f32 %v935_v12, %v936_v62  ;;  %v943_v17 = vrot.slane %v942_v58, 4  ;;  %v950_v8 = vrot.slane %v949_v26, 4  ;;  %v956_v50 = vsel %vm353_vm1, %v311_v20, -inf }
  0xc8   : > { %v918_v53 = vmax.f32 %v916_v39, %v917_v44  ;;  %v924_v54 = vrot.slane %v923_v45, 2  ;;  %v931_v7 = vrot.slane %v930_v13, 2  ;;  %v957_v32 = vrot.slane %v956_v50, 4 }
  0xc9   : > { %v938_v56 = vrot.slane %v937_v48, 2  ;;  %v944_v37 = vmax.f32 %v942_v58, %v943_v17  ;;  %v951_v57 = vmax.f32 %v949_v26, %v950_v8  ;;  %v963_v15 = vsel %vm353_vm1, %v312_v42, -inf  ;;  %v319_v58 = vld [vmem:[%s2836_s23 + $0xbc] sm:$0x3] }
  0xca   : > { %v919_v30 = vrot.slane %v918_v53, 1  ;;  %v925_v60 = vmax.f32 %v923_v45, %v924_v54  ;;  %v932_v61 = vmax.f32 %v930_v13, %v931_v7  ;;  %v958_v51 = vmax.f32 %v956_v50, %v957_v32  ;;  %v320_v50 = vld [vmem:[%s2836_s23 + $0xbe] sm:$0x3] }
  0xcb   : > { %v939_v11 = vmax.f32 %v937_v48, %v938_v56  ;;  %v945_v4 = vrot.slane %v944_v37, 2  ;;  %v952_v5 = vrot.slane %v951_v57, 2  ;;  %v964_v33 = vrot.slane %v963_v15, 4 }
  0xcc   : > { %v926_v40 = vrot.slane %v925_v60, 1  ;;  %v933_v6 = vrot.slane %v932_v61, 1  ;;  %v959_v9 = vrot.slane %v958_v51, 2  ;;  %v3376_v59 = vmax.f32 %v918_v53, %v919_v30 }
  0xcd   : > { %v940_v43 = vrot.slane %v939_v11, 1  ;;  %v946_v18 = vmax.f32 %v944_v37, %v945_v4  ;;  %v953_v19 = vmax.f32 %v951_v57, %v952_v5  ;;  %v965_v29 = vmax.f32 %v963_v15, %v964_v33 }
  0xce   : > { %v3374_v16 = vld [vmem:[#allocation2 + $0x7f] sm:$0xff]  ;;  %v3378_v55 = vmax.f32 %v925_v60, %v926_v40  ;;  %v960_v47 = vmax.f32 %v958_v51, %v959_v9  ;;  %v970_v63 = vsel %vm353_vm1, %v313_v35, -inf  ;;  %v3384_v22 = vmax.f32 %v932_v61, %v933_v6 }
  0xcf   : > { %1865 = vrot.lane.b32.xlu0 %v3374_v16, %s2775_s6  ;;  %v947_v23 = vrot.slane %v946_v18, 1  ;;  %v954_v24 = vrot.slane %v953_v19, 1  ;;  %v966_v10 = vrot.slane %v965_v29, 2  ;;  %v971_v49 = vrot.slane %v970_v63, 4  ;;  %v3402_v8 = vld [vmem:[#allocation2 + $0x81] sm:$0xff] }
  0xd0   : > { %v961_v27 = vrot.slane %v960_v47, 1  ;;  %v977_v28 = vsel %vm353_vm1, %v314_v46, -inf  ;;  %v984_v21 = vsel %vm353_vm1, %v315_v1, -inf  ;;  %v3390_v12 = vmax.f32 %v939_v11, %v940_v43  ;;  %1741 = vrot.lane.b32.xlu1 %v3402_v8, %s2769_s25 }
  0xd1   : > { %v3392_v31 = vmax.f32 %v946_v18, %v947_v23  ;;  %v967_v20 = vmax.f32 %v965_v29, %v966_v10  ;;  %v978_v39 = vrot.slane %v977_v28, 4  ;;  %v3394_v34 = vmax.f32 %v953_v19, %v954_v24 }
  0xd2   : > { %v972_v14 = vmax.f32 %v970_v63, %v971_v49  ;;  %v985_v36 = vrot.slane %v984_v21, 4  ;;  %v991_v62 = vsel %vm353_vm1, %v316_v52, -inf  ;;  %v3398_v26 = vmax.f32 %v960_v47, %v961_v27 }
  0xd3   : > { %v979_v41 = vmax.f32 %v977_v28, %v978_v39  ;;  %v992_v42 = vrot.slane %v991_v62, 4  ;;  %v998_v44 = vsel %vm353_vm1, %v317_v25, -inf  ;;  %v1005_v17 = vsel %vm353_vm1, %v318_v3, -inf  ;;  %v3411_v25 = vld [vmem:[#allocation2 + $0x80] sm:$0xff] }
  0xd4   : > { %v973_v45 = vrot.slane %v972_v14, 2  ;;  %v986_v13 = vmax.f32 %v984_v21, %v985_v36  ;;  %v999_v48 = vrot.slane %v998_v44, 4  ;;  %v968_v53 = vrot.slane %v967_v20, 1  ;;  %1709 = vrot.lane.b32.xlu2 %v3411_v25, %s2768_s24 }
  0xd5   : > { %v980_v54 = vrot.slane %v979_v41, 2  ;;  %v993_v7 = vmax.f32 %v991_v62, %v992_v42  ;;  %v1006_v32 = vrot.slane %v1005_v17, 4  ;;  %v1012_v15 = vsel %vm353_vm1, %v319_v58, -inf }
  0xd6   : > { %v974_v56 = vmax.f32 %v972_v14, %v973_v45  ;;  %v987_v37 = vrot.slane %v986_v13, 2  ;;  %v1000_v57 = vmax.f32 %v998_v44, %v999_v48  ;;  %v1013_v51 = vrot.slane %v1012_v15, 4 }
  0xd7   : > { %v981_v30 = vmax.f32 %v979_v41, %v980_v54  ;;  %v994_v60 = vrot.slane %v993_v7, 2  ;;  %v1007_v61 = vmax.f32 %v1005_v17, %v1006_v32  ;;  %v1019_v5 = vsel %vm353_vm1, %v320_v50, -inf  ;;  %v321_v50 = vld [vmem:[%s2836_s23 + $0xc0] sm:$0x3]  ;;  %v322_v32 = vld [vmem:[%s2836_s23 + $0xc2] sm:$0x3] }
  0xd8   : > { %v975_v35 = vrot.slane %v974_v56, 1  ;;  %v988_v11 = vmax.f32 %v986_v13, %v987_v37  ;;  %v1001_v4 = vrot.slane %v1000_v57, 2  ;;  %v1014_v9 = vmax.f32 %v1012_v15, %v1013_v51  ;;  %1929 = vrot.lane.b32.xlu1 %v3402_v8, %s2774_s30  ;;  %v324_v51 = vld [vmem:[%s2836_s23 + $0xc6] sm:$0x3] }
  0xd9   : > { %v982_v33 = vrot.slane %v981_v30, 1  ;;  %v995_v40 = vmax.f32 %v993_v7, %v994_v60  ;;  %v1008_v6 = vrot.slane %v1007_v61, 2  ;;  %v1020_v18 = vrot.slane %v1019_v5, 4 }
  0xda   : > { %v976_v46 = vmax.f32 %v974_v56, %v975_v35  ;;  %v989_v1 = vrot.slane %v988_v11, 1  ;;  %v1002_v43 = vmax.f32 %v1000_v57, %v1001_v4  ;;  %v1015_v63 = vrot.slane %v1014_v9, 2 }
  0xdb   : > { %v983_v19 = vmax.f32 %v981_v30, %v982_v33  ;;  %v996_v29 = vrot.slane %v995_v40, 1  ;;  %v1009_v47 = vmax.f32 %v1007_v61, %v1008_v6  ;;  %v1021_v24 = vmax.f32 %v1019_v5, %v1020_v18  ;;  %v323_v61 = vld [vmem:[%s2836_s23 + $0xc4] sm:$0x3] }
  0xdc   : > { %v990_v52 = vmax.f32 %v988_v11, %v989_v1  ;;  %v1003_v23 = vrot.slane %v1002_v43, 1  ;;  %v1371_v10 = vsel %vm1250_vm0, %v3376_v59, -inf  ;;  %v1016_v28 = vmax.f32 %v1014_v9, %v1015_v63  ;;  %1897 = vrot.lane.b32.xlu2 %v3411_v25, %s2773_s29 }
  0xdd   : > { %v997_v27 = vmax.f32 %v995_v40, %v996_v29  ;;  %v1010_v49 = vrot.slane %v1009_v47, 1  ;;  %v1372_v21 = vsel %vm1250_vm0, %v976_v46, -inf  ;;  %v969_v3 = vmax.f32 %v967_v20, %v968_v53  ;;  %v326_v40 = vld [vmem:[%s2836_s23 + $0xca] sm:$0x3] }
  0xde   : > { %v1004_v39 = vmax.f32 %v1002_v43, %v1003_v23  ;;  %v1022_v14 = vrot.slane %v1021_v24, 2  ;;  %v1374_v59 = vsel %vm1250_vm0, %v3378_v55, -inf  ;;  %v1017_v62 = vrot.slane %v1016_v28, 1 }
  0xdf   : > { %v1011_v36 = vmax.f32 %v1009_v47, %v1010_v49  ;;  %v1375_v58 = vsel %vm1250_vm0, %v983_v19, -inf  ;;  %v1377_v41 = vsel %vm1250_vm0, %v3384_v22, -inf  ;;  %v1373_v44 = vmax.f32 %v1371_v10, %v1372_v21 }
  0xe0   : > { %v1023_v42 = vmax.f32 %v1021_v24, %v1022_v14  ;;  %v1378_v45 = vsel %vm1250_vm0, %v990_v52, -inf  ;;  %v1380_v20 = vsel %vm1250_vm0, %v3390_v12, -inf  ;;  %v1018_v13 = vmax.f32 %v1016_v28, %v1017_v62  ;;  %1739 = vrot.lane.b32.xlu1 %v3301_v2, %s2769_s25  ;;  %v327_v52 = vld [vmem:[%s2836_s23 + $0xcc] sm:$0x3] }
  0xe1   : > { %v1376_v48 = vmax.f32 %v1374_v59, %v1375_v58  ;;  %v1381_v17 = vsel %vm1250_vm0, %v997_v27, -inf  ;;  %v1383_v55 = vsel %vm1250_vm0, %v3392_v31, -inf  ;;  %v1379_v54 = vmax.f32 %v1377_v41, %v1378_v45 }
  0xe2   : > { %v1024_v53 = vrot.slane %v1023_v42, 1  ;;  %v1384_v22 = vsel %vm1250_vm0, %v1004_v39, -inf  ;;  %v1386_v7 = vsel %vm1250_vm0, %v3394_v34, -inf  ;;  %v1382_v12 = vmax.f32 %v1380_v20, %v1381_v17  ;;  %v328_v39 = vld [vmem:[%s2836_s23 + $0xce] sm:$0x3] }
  0xe3   : > { %v1387_v56 = vsel %vm1250_vm0, %v1011_v36, -inf  ;;  %v1389_v37 = vsel %vm1250_vm0, %v3398_v26, -inf  ;;  %v1390_v57 = vsel %vm1250_vm0, %v1018_v13, -inf  ;;  %v1385_v15 = vmax.f32 %v1383_v55, %v1384_v22  ;;  %v325_v26 = vld [vmem:[%s2836_s23 + $0xc8] sm:$0x3] }
  0xe4   : > { %v1025_v31 = vmax.f32 %v1023_v42, %v1024_v53  ;;  %v1388_v30 = vmax.f32 %v1386_v7, %v1387_v56  ;;  %v1392_v60 = vsel %vm1250_vm0, %v969_v3, -inf  ;;  %v1391_v35 = vmax.f32 %v1389_v37, %v1390_v57  ;;  %1707 = vrot.lane.b32.xlu2 %v3283_v38, %s2768_s24  ;;  %v329_v22 = vld [vmem:[%s2836_s23 + $0xd0] sm:$0x3]  ;;  %v330_v7 = vld [vmem:[%s2836_s23 + $0xd2] sm:$0x3] }
  0xe5   : > { %v1580_v34 = vsel %vm1538_vm3, %v1376_v48, %v1373_v44  ;;  %v1026_v11 = vsel %vm353_vm1, %v321_v50, -inf  ;;  %v1033_v4 = vsel %vm353_vm1, %v322_v32, -inf  ;;  %v1040_v43 = vsel %vm353_vm1, %v323_v61, -inf  ;;  %v1618_v44 = vld [vmem:[#allocation2 + $0x7] sm:$0xff] }
  0xe6   : > { %v1393_v5 = vsel %vm1250_vm0, %v1025_v31, -inf  ;;  %v1581_v33 = vsel %vm1540_vm4, %v1379_v54, %v1580_v34  ;;  %v1027_v6 = vrot.slane %v1026_v11, 4  ;;  %v1034_v9 = vrot.slane %v1033_v4, 4  ;;  %v1700_v54 = vpop.permute.xlu0 %1699 }
  0xe7   : > { %v1394_v46 = vmax.f32 %v1392_v60, %v1393_v5  ;;  %v1582_v1 = vsel %vm1542_vm5, %v1382_v12, %v1581_v33  ;;  %v1047_v2 = vsel %vm353_vm1, %v324_v51, -inf  ;;  %v1041_v47 = vrot.slane %v1040_v43, 4  ;;  %v332_v33 = vld [vmem:[%s2836_s23 + $0xd6] sm:$0x3] }
  0xe8   : > { %v1583_v18 = vsel %vm1544_vm6, %v1385_v15, %v1582_v1  ;;  %v1028_v19 = vmax.f32 %v1026_v11, %v1027_v6  ;;  %v1035_v29 = vmax.f32 %v1033_v4, %v1034_v9  ;;  %v1048_v23 = vrot.slane %v1047_v2, 4  ;;  %v333_v1 = vld [vmem:[%s2836_s23 + $0xd8] sm:$0x3] }
  0xe9   : > { %v1584_v63 = vsel %vm1546_vm7, %v1388_v30, %v1583_v18  ;;  %v1054_v24 = vsel %vm353_vm1, %v325_v26, -inf  ;;  %v1061_v10 = vsel %vm353_vm1, %v326_v40, -inf  ;;  %v1042_v21 = vmax.f32 %v1040_v43, %v1041_v47  ;;  %v331_v30 = vld [vmem:[%s2836_s23 + $0xd4] sm:$0x3] }
  0xea   : > { %v1585_v27 = vsel %vm1548_vm8, %v1391_v35, %v1584_v63  ;;  %v1029_v49 = vrot.slane %v1028_v19, 2  ;;  %v1036_v28 = vrot.slane %v1035_v29, 2  ;;  %v1049_v14 = vmax.f32 %v1047_v2, %v1048_v23 }
  0xeb   : > { %v1586_v3 = vsel %vm4151_vm9, %v1394_v46, %v1585_v27  ;;  %v1055_v59 = vrot.slane %v1054_v24, 4  ;;  %v1062_v36 = vrot.slane %v1061_v10, 4  ;;  %v1043_v41 = vrot.slane %v1042_v21, 2 }
  0xec   : > { %1615 = vst.msk [vmem:[#allocation2 + $0x98] sm:$0xff] %vm1250_vm0, %v1586_v3  ;;  %v1030_v62 = vmax.f32 %v1028_v19, %v1029_v49  ;;  %v1037_v58 = vmax.f32 %v1035_v29, %v1036_v28  ;;  %v1068_v42 = vsel %vm353_vm1, %v327_v52, -inf  ;;  %v1050_v45 = vrot.slane %v1049_v14, 2  ;;  %v3489_v29 = vpop.permute.xlu2 %1827 }
  0xed   : > { %v1056_v20 = vmax.f32 %v1054_v24, %v1055_v59  ;;  %v1063_v13 = vmax.f32 %v1061_v10, %v1062_v36  ;;  %v1069_v48 = vrot.slane %v1068_v42, 4  ;;  %v1044_v50 = vmax.f32 %v1042_v21, %v1043_v41  ;;  %v334_v24 = vld [vmem:[%s2836_s23 + $0xda] sm:$0x3]  ;;  %v335_v10 = vld [vmem:[%s2836_s23 + $0xdc] sm:$0x3] }
  0xee   : > { %v1031_v17 = vrot.slane %v1030_v62, 1  ;;  %v1038_v55 = vrot.slane %v1037_v58, 1  ;;  %v1075_v53 = vsel %vm353_vm1, %v328_v39, -inf  ;;  %v1051_v32 = vmax.f32 %v1049_v14, %v1050_v45  ;;  %v336_v45 = vld [vmem:[%s2836_s23 + $0xde] sm:$0x3] }
  0xef   : > { %v1057_v12 = vrot.slane %v1056_v20, 2  ;;  %v1064_v56 = vrot.slane %v1063_v13, 2  ;;  %v1070_v37 = vmax.f32 %v1068_v42, %v1069_v48  ;;  %v3471_v38 = vsel %vm1250_vm0, %v1618_v44, %v1700_v54 }
  0xf0   : > { %v3473_v57 = vmax.f32 %v1030_v62, %v1031_v17  ;;  %v1045_v31 = vrot.slane %v1044_v50, 1  ;;  %v1076_v15 = vrot.slane %v1075_v53, 4  ;;  %v1052_v60 = vrot.slane %v1051_v32, 1 }
  0xf1   : > { %v1058_v61 = vmax.f32 %v1056_v20, %v1057_v12  ;;  %v1065_v51 = vmax.f32 %v1063_v13, %v1064_v56  ;;  %v1071_v35 = vrot.slane %v1070_v37, 2  ;;  %v3476_v34 = vmax.f32 %v1037_v58, %v1038_v55 }
  0xf2   : > { %v1077_v26 = vmax.f32 %v1075_v53, %v1076_v15  ;;  %v1082_v11 = vsel %vm353_vm1, %v329_v22, -inf  ;;  %v1089_v4 = vsel %vm353_vm1, %v330_v7, -inf  ;;  %v3483_v40 = vmax.f32 %v1044_v50, %v1045_v31 }
  0xf3   : > { %v3480_v5 = vld [vmem:[#allocation2 + $0x97] sm:$0xff]  ;;  %v1059_v6 = vrot.slane %v1058_v61, 1  ;;  %v1066_v9 = vrot.slane %v1065_v51, 1  ;;  %v1072_v46 = vmax.f32 %v1070_v37, %v1071_v35  ;;  %v1083_v2 = vrot.slane %v1082_v11, 4 }
  0xf4   : > { %1773 = vrot.lane.b32.xlu0 %v3480_v5, %s2770_s26  ;;  %v1078_v43 = vrot.slane %v1077_v26, 2  ;;  %v1090_v18 = vrot.slane %v1089_v4, 4  ;;  %v1096_v19 = vsel %vm353_vm1, %v331_v30, -inf  ;;  %v3491_v47 = vmax.f32 %v1051_v32, %v1052_v60  ;;  %v3503_v42 = vld [vmem:[#allocation2 + $0x99] sm:$0xff]  ;;  %v3515_v30 = vpop.permute.xlu0 %1731 }
  0xf5   : > { %v3493_v63 = vmax.f32 %v1058_v61, %v1059_v6  ;;  %v1073_v52 = vrot.slane %v1072_v46, 1  ;;  %v1097_v23 = vrot.slane %v1096_v19, 4  ;;  %v1084_v49 = vmax.f32 %v1082_v11, %v1083_v2  ;;  %v3505_v44 = vld [vmem:[#allocation2 + $0x98] sm:$0xff]  ;;  %1837 = vrot.lane.b32.xlu2 %v3503_v42, %s2771_s27 }
  0xf6   : > { %v1079_v27 = vmax.f32 %v1077_v26, %v1078_v43  ;;  %v1091_v28 = vmax.f32 %v1089_v4, %v1090_v18  ;;  %v1103_v21 = vsel %vm353_vm1, %v332_v33, -inf  ;;  %v3498_v3 = vmax.f32 %v1065_v51, %v1066_v9  ;;  %v3517_v43 = vpop.permute.xlu2 %1859 }
  0xf7   : > { %v1098_v39 = vmax.f32 %v1096_v19, %v1097_v23  ;;  %v1104_v14 = vrot.slane %v1103_v21, 4  ;;  %v1110_v59 = vsel %vm353_vm1, %v333_v1, -inf  ;;  %v3501_v36 = vmax.f32 %v1072_v46, %v1073_v52  ;;  %v1764_v23 = vpop.permute.xlu1 %1763 }
  0xf8   : > { %v1085_v62 = vrot.slane %v1084_v49, 2  ;;  %v1092_v58 = vrot.slane %v1091_v28, 2  ;;  %v1111_v41 = vrot.slane %v1110_v59, 4  ;;  %v1117_v48 = vsel %vm353_vm1, %v334_v24, -inf }
  0xf9   : > { %v1099_v20 = vrot.slane %v1098_v39, 2  ;;  %v1105_v13 = vmax.f32 %v1103_v21, %v1104_v14  ;;  %v1124_v17 = vsel %vm353_vm1, %v335_v10, -inf  ;;  %v1080_v55 = vrot.slane %v1079_v27, 1 }
  0xfa   : > { %v1086_v50 = vmax.f32 %v1084_v49, %v1085_v62  ;;  %v1093_v53 = vmax.f32 %v1091_v28, %v1092_v58  ;;  %v1112_v54 = vmax.f32 %v1110_v59, %v1111_v41  ;;  %v1118_v32 = vrot.slane %v1117_v48, 4 }
  0xfb   : > { %v1100_v22 = vmax.f32 %v1098_v39, %v1099_v20  ;;  %v1106_v7 = vrot.slane %v1105_v13, 2  ;;  %v1125_v12 = vrot.slane %v1124_v17, 4  ;;  %v1131_v15 = vsel %vm353_vm1, %v336_v45, -inf }
  0xfc   : > { %1805 = vrot.lane.b32.xlu0 %v3505_v44, %s2772_s28  ;;  %v1087_v56 = vrot.slane %v1086_v50, 1  ;;  %v1094_v37 = vrot.slane %v1093_v53, 1  ;;  %v1113_v31 = vrot.slane %v1112_v54, 2  ;;  %v1119_v51 = vmax.f32 %v1117_v48, %v1118_v32 }
  0xfd   : > { %v1101_v60 = vrot.slane %v1100_v22, 1  ;;  %v1107_v61 = vmax.f32 %v1105_v13, %v1106_v7  ;;  %v1126_v35 = vmax.f32 %v1124_v17, %v1125_v12  ;;  %v1132_v33 = vrot.slane %v1131_v15, 4  ;;  %1803 = vrot.lane.b32.xlu2 %v3411_v25, %s2772_s28 }
  0xfe   : > { %v1088_v26 = vmax.f32 %v1086_v50, %v1087_v56  ;;  %v1095_v11 = vmax.f32 %v1093_v53, %v1094_v37  ;;  %v1114_v4 = vmax.f32 %v1112_v54, %v1113_v31  ;;  %v1120_v46 = vrot.slane %v1119_v51, 2  ;;  %v3540_v53 = vpop.permute.xlu0 %1891 }
  0xff   : > { %v1102_v6 = vmax.f32 %v1100_v22, %v1101_v60  ;;  %v1108_v9 = vrot.slane %v1107_v61, 1  ;;  %v1127_v1 = vrot.slane %v1126_v35, 2  ;;  %v1133_v18 = vmax.f32 %v1131_v15, %v1132_v33  ;;  %v1796_v37 = vpop.permute.xlu1 %1795  ;;  %v1702_v15 = vpop.permute.xlu2 %1701  ;;  %v1619_v33 = vld [vmem:[#allocation2 + $0x1f] sm:$0xff] }
 0x100   : > { %v1115_v2 = vrot.slane %v1114_v4, 1  ;;  %v1395_v19 = vsel %vm1250_vm0, %v3473_v57, -inf  ;;  %v1396_v52 = vsel %vm1250_vm0, %v1088_v26, -inf  ;;  %v1081_v24 = vmax.f32 %v1079_v27, %v1080_v55 }
 0x101   : > { %v1109_v10 = vmax.f32 %v1107_v61, %v1108_v9  ;;  %v1121_v49 = vmax.f32 %v1119_v51, %v1120_v46  ;;  %v1128_v28 = vmax.f32 %v1126_v35, %v1127_v1  ;;  %v1134_v39 = vrot.slane %v1133_v18, 2  ;;  %v2022_v51 = vld [vmem:[%s4146_s1 + $0x20] sm:$0xf]  ;;  %v2021_v9 = vld [vmem:[%s4146_s1 + $0x18] sm:$0xff]  ;;  %v339_v46 = vld [vmem:[%s2836_s23 + $0xe4] sm:$0x3] }
 0x102   : > { %v1116_v21 = vmax.f32 %v1114_v4, %v1115_v2  ;;  %v1398_v14 = vsel %vm1250_vm0, %v3476_v34, -inf  ;;  %v1399_v59 = vsel %vm1250_vm0, %v1095_v11, -inf  ;;  %v1397_v57 = vmax.f32 %v1395_v19, %v1396_v52  ;;  %v341_v19 = vld [vmem:[%s2836_s23 + $0xe8] sm:$0x3] }
 0x103   : > { %v1122_v62 = vrot.slane %v1121_v49, 1  ;;  %v1129_v58 = vrot.slane %v1128_v28, 1  ;;  %v1401_v41 = vsel %vm1250_vm0, %v3483_v40, -inf  ;;  %v1135_v27 = vmax.f32 %v1133_v18, %v1134_v39  ;;  %v340_v18 = vld [vmem:[%s2836_s23 + $0xe6] sm:$0x3] }
 0x104   : > { %1771 = vrot.lane.b32.xlu0 %v3374_v16, %s2770_s26  ;;  %v1402_v45 = vsel %vm1250_vm0, %v1102_v6, -inf  ;;  %v1404_v25 = vsel %vm1250_vm0, %v3491_v47, -inf  ;;  %v1405_v20 = vsel %vm1250_vm0, %v1109_v10, -inf  ;;  %v1400_v48 = vmax.f32 %v1398_v14, %v1399_v59  ;;  %v343_v39 = vld [vmem:[%s2836_s23 + $0xec] sm:$0x3] }
 0x105   : > { %v1123_v34 = vmax.f32 %v1121_v49, %v1122_v62  ;;  %v1130_v13 = vmax.f32 %v1128_v28, %v1129_v58  ;;  %v1403_v17 = vmax.f32 %v1401_v41, %v1402_v45  ;;  %v1136_v55 = vrot.slane %v1135_v27, 1  ;;  %v2019_v62 = vld [vmem:[%s4146_s1 + $0x8] sm:$0xff] }
 0x106   : > { %v1407_v50 = vsel %vm1250_vm0, %v3493_v63, -inf  ;;  %v1408_v40 = vsel %vm1250_vm0, %v1116_v21, -inf  ;;  %v1410_v16 = vsel %vm1250_vm0, %v3498_v3, -inf  ;;  %v1406_v54 = vmax.f32 %v1404_v25, %v1405_v20  ;;  %v344_v45 = vld [vmem:[%s2836_s23 + $0xee] sm:$0x3] }
 0x107   : > { %v1411_v47 = vsel %vm1250_vm0, %v1123_v34, -inf  ;;  %v1413_v22 = vsel %vm1250_vm0, %v3501_v36, -inf  ;;  %v1414_v7 = vsel %vm1250_vm0, %v1130_v13, -inf  ;;  %v1137_v32 = vmax.f32 %v1135_v27, %v1136_v55  ;;  %v1924_v58 = vpop.permute.xlu1 %1923  ;;  %v2018_v13 = vld [vmem:[%s4146_s1] sm:$0xff] }
 0x108   : > { %v1409_v12 = vmax.f32 %v1407_v50, %v1408_v40  ;;  %v1412_v56 = vmax.f32 %v1410_v16, %v1411_v47  ;;  %v1416_v63 = vsel %vm1250_vm0, %v1081_v24, -inf  ;;  %v1415_v31 = vmax.f32 %v1413_v22, %v1414_v7  ;;  %v1798_v40 = vpop.permute.xlu2 %1797 }
 0x109   : > { %v1587_v3 = vsel %vm1538_vm3, %v1400_v48, %v1397_v57  ;;  %v1417_v60 = vsel %vm1250_vm0, %v1137_v32, -inf  ;;  %v1956_v61 = vsel %vm1955_vm10, %v3471_v38, %v3515_v30  ;;  %vm1973_vm12 = vcmask 130048   ;;  %v337_v38 = vld [vmem:[%s2836_s23 + $0xe0] sm:$0x3]  ;;  %v338_v30 = vld [vmem:[%s2836_s23 + $0xe2] sm:$0x3] }
 0x10a   : > { %v1588_v36 = vsel %vm1540_vm4, %v1403_v17, %v1587_v3  ;;  %v1418_v35 = vmax.f32 %v1416_v63, %v1417_v60  ;;  %v1965_v11 = vsel %vm1964_vm11, %v1956_v61, %v1764_v23  ;;  %vm1982_vm13 = vcmask 162816   ;;  %v2020_v23 = vld [vmem:[%s4146_s1 + $0x10] sm:$0xff] }
 0x10b   : > { %v1589_v26 = vsel %vm1542_vm5, %v1406_v54, %v1588_v36  ;;  %v1974_v6 = vsel %vm1973_vm12, %v1965_v11, %v1796_v37  ;;  %vm2052_vm14 = vcmask 1043456   ;;  %vm1991_vm15 = vcmask 195584   ;;  %v345_v3 = vld [vmem:[%s2836_s23 + $0xf0] sm:$0x3] }
 0x10c   : > { %v1590_v4 = vsel %vm1544_vm6, %v1409_v12, %v1589_v26  ;;  %v1983_v2 = vsel %vm1982_vm13, %v1974_v6, %v3489_v29  ;;  %2701 = vmatpush.msk.msra.mxu0 %vm2052_vm14, %v2022_v51  ;;  %vm2000_vm2 = vcmask 228352   ;;  %2722 = vmatpush.msk.msra.mxu3 %vm2052_vm14, %v2022_v51  ;;  %v342_v29 = vld [vmem:[%s2836_s23 + $0xea] sm:$0x3]  ;;  %v1138_v10 = vsel %vm353_vm1, %v337_v38, -inf }
 0x10d   : > { %v1591_v1 = vsel %vm1546_vm7, %v1412_v56, %v1590_v4  ;;  %v1992_v24 = vsel %vm1991_vm15, %v1983_v2, %v3517_v43  ;;  %v1145_v49 = vsel %vm353_vm1, %v338_v30, -inf  ;;  %v1948_v21 = vsel %vm1250_vm0, %v1619_v33, %v1702_v15  ;;  %v1734_v43 = vpop.permute.xlu0 %1733 }
 0x10e   : > { %v1592_v52 = vsel %vm1548_vm8, %v1415_v31, %v1591_v1  ;;  %2068 = vmatpush.msra.mxu0 %v2021_v9  ;;  %v1139_v14 = vrot.slane %v1138_v10, 4  ;;  %v1146_v59 = vrot.slane %v1145_v49, 4  ;;  %2723 = vmatpush.msra.mxu3 %v2021_v9  ;;  %v2001_v57 = vsel %vm2000_vm2, %v1992_v24, %v3540_v53 }
 0x10f   : > { %v1593_v28 = vsel %vm4151_vm9, %v1418_v35, %v1592_v52  ;;  %vm2009_vm14 = vcmask 261120   ;;  %vm2027_vm9 = vcmask 293888   ;;  %v1152_v41 = vsel %vm353_vm1, %v339_v46, -inf  ;;  %v1766_v33 = vpop.permute.xlu1 %1765 }
 0x110   : > { %1616 = vst.msk [vmem:[#allocation2 + $0xb0] sm:$0xff] %vm1250_vm0, %v1593_v28  ;;  %2069 = vmatpush.msra.mxu0 %v2020_v23  ;;  %v2010_v27 = vsel %vm2009_vm14, %v2001_v57, %v1924_v58  ;;  %v1140_v25 = vmax.f32 %v1138_v10, %v1139_v14  ;;  %v1147_v20 = vmax.f32 %v1145_v49, %v1146_v59  ;;  %v1153_v34 = vrot.slane %v1152_v41, 4  ;;  %v347_v10 = vld [vmem:[%s2836_s23 + $0xf4] sm:$0x3]  ;;  %v349_v14 = vld [vmem:[%s2836_s23 + $0xf8] sm:$0x3] }
 0x111   : > { %v1159_v48 = vsel %vm353_vm1, %v340_v18, -inf  ;;  %v1166_v17 = vsel %vm353_vm1, %v341_v19, -inf  ;;  %v1173_v55 = vsel %vm353_vm1, %v342_v29, -inf  ;;  %v1180_v50 = vsel %vm353_vm1, %v343_v39, -inf  ;;  %2724 = vmatpush.msra.mxu3 %v2020_v23  ;;  %v346_v29 = vld [vmem:[%s2836_s23 + $0xf2] sm:$0x3] }
 0x112   : > { %2070 = vmatpush.msra.mxu0 %v2019_v62  ;;  %v1141_v16 = vrot.slane %v1140_v25, 2  ;;  %v1148_v53 = vrot.slane %v1147_v20, 2  ;;  %v1154_v54 = vmax.f32 %v1152_v41, %v1153_v34  ;;  %v1160_v47 = vrot.slane %v1159_v48, 4  ;;  %v348_v39 = vld [vmem:[%s2836_s23 + $0xf6] sm:$0x3] }
 0x113   : > { %v1167_v22 = vrot.slane %v1166_v17, 4  ;;  %v1174_v7 = vrot.slane %v1173_v55, 4  ;;  %v1181_v32 = vrot.slane %v1180_v50, 4  ;;  %v1187_v12 = vsel %vm353_vm1, %v344_v45, -inf  ;;  %2725 = vmatpush.msra.mxu3 %v2019_v62  ;;  %v350_v59 = vld [vmem:[%s2836_s23 + $0xfa] sm:$0x3] }
 0x114   : > { %2071 = vmatpush.msra.mxu0 %v2018_v13  ;;  %v1142_v56 = vmax.f32 %v1140_v25, %v1141_v16  ;;  %v1149_v63 = vmax.f32 %v1147_v20, %v1148_v53  ;;  %v1155_v37 = vrot.slane %v1154_v54, 2  ;;  %v1161_v31 = vmax.f32 %v1159_v48, %v1160_v47  ;;  %v3671_v20 = vpop.permute.xlu2 %1893  ;;  %v351_v53 = vld [vmem:[%s2836_s23 + $0xfc] sm:$0x3] }
 0x115   : > { %2702 = vmatmul.msk.f32.vlgmr.msra.gmra.mxu0 %vm2027_vm9, %v2010_v27  ;;  %v1168_v15 = vmax.f32 %v1166_v17, %v1167_v22  ;;  %v1175_v60 = vmax.f32 %v1173_v55, %v1174_v7  ;;  %v1182_v36 = vmax.f32 %v1180_v50, %v1181_v32  ;;  %v1188_v61 = vrot.slane %v1187_v12, 4  ;;  %2726 = vmatpush.msra.mxu3 %v2018_v13  ;;  %v3652_v23 = vpop.permute.xlu0 %1829 }
 0x116   : > { %v1957_v26 = vsel %vm1955_vm10, %v1948_v21, %v1734_v43  ;;  %v1143_v38 = vrot.slane %v1142_v56, 1  ;;  %v1150_v30 = vrot.slane %v1149_v63, 1  ;;  %v1156_v4 = vmax.f32 %v1154_v54, %v1155_v37 }
 0x117   : > { %v3626_v51 = vld [vmem:[#allocation2 + $0xaf] sm:$0xff]  ;;  %v1162_v6 = vrot.slane %v1161_v31, 2  ;;  %v1169_v9 = vrot.slane %v1168_v15, 2  ;;  %v1176_v46 = vrot.slane %v1175_v60, 2  ;;  %v1183_v1 = vrot.slane %v1182_v36, 2 }
 0x118   : > { %v3628_v35 = vld [vmem:[#allocation2 + $0xb0] sm:$0xff]  ;;  %1869 = vrot.lane.b32.xlu1 %v3626_v51, %s2775_s6  ;;  %v1966_v2 = vsel %vm1964_vm11, %v1957_v26, %v1766_v33  ;;  %v3646_v18 = vmax.f32 %v1142_v56, %v1143_v38  ;;  %v3648_v19 = vmax.f32 %v1149_v63, %v1150_v30  ;;  %v1157_v52 = vrot.slane %v1156_v4, 1  ;;  %v3697_v38 = vpop.permute.xlu1 %1861 }
 0x119   : > { %v3633_v11 = vld [vmem:[#allocation2 + $0xb1] sm:$0xff]  ;;  %1901 = vrot.lane.b32.xlu0 %v3628_v35, %s2773_s29  ;;  %v3655_v24 = vsel %vm1973_vm12, %v1966_v2, %v1798_v40  ;;  %v1163_v49 = vmax.f32 %v1161_v31, %v1162_v6  ;;  %v1170_v28 = vmax.f32 %v1168_v15, %v1169_v9  ;;  %v1177_v21 = vmax.f32 %v1175_v60, %v1176_v46  ;;  %v352_v60 = vld [vmem:[%s2836_s23 + $0xfe] sm:$0x3]  ;;  %s2778_s23 = smov 56  }
 0x11a   : > { %1933 = vrot.lane.b32.xlu2 %v3633_v11, %s2774_s30  ;;  %v3664_v43 = vmax.f32 %v1156_v4, %v1157_v52  ;;  %v1184_v62 = vmax.f32 %v1182_v36, %v1183_v1  ;;  %v1189_v58 = vmax.f32 %v1187_v12, %v1188_v61  ;;  %v1194_v57 = vsel %vm353_vm1, %v345_v3, -inf }
 0x11b   : > { %v1164_v41 = vrot.slane %v1163_v49, 1  ;;  %v1171_v27 = vrot.slane %v1170_v28, 1  ;;  %v1178_v45 = vrot.slane %v1177_v21, 1  ;;  %v1195_v25 = vrot.slane %v1194_v57, 4 }
 0x11c   : > { %v1185_v34 = vrot.slane %v1184_v62, 1  ;;  %v1190_v13 = vrot.slane %v1189_v58, 2  ;;  %v1201_v48 = vsel %vm353_vm1, %v346_v29, -inf  ;;  %v1208_v17 = vsel %vm353_vm1, %v347_v10, -inf }
 0x11d   : > { %v3677_v55 = vmax.f32 %v1163_v49, %v1164_v41  ;;  %v3679_v50 = vmax.f32 %v1170_v28, %v1171_v27  ;;  %v3681_v40 = vmax.f32 %v1177_v21, %v1178_v45  ;;  %v1196_v16 = vmax.f32 %v1194_v57, %v1195_v25  ;;  %v3701_v52 = vpop.permute.xlu0 %1925  ;;  %v1736_v27 = vpop.permute.xlu2 %1735 }
 0x11e   : > { %v3684_v54 = vmax.f32 %v1184_v62, %v1185_v34  ;;  %v1191_v47 = vmax.f32 %v1189_v58, %v1190_v13  ;;  %v1202_v22 = vrot.slane %v1201_v48, 4  ;;  %v1209_v7 = vrot.slane %v1208_v17, 4 }
 0x11f   : > { %v1197_v32 = vrot.slane %v1196_v16, 2  ;;  %v1215_v12 = vsel %vm353_vm1, %v348_v39, -inf  ;;  %v1222_v56 = vsel %vm353_vm1, %v349_v14, -inf  ;;  %v1229_v63 = vsel %vm353_vm1, %v350_v59, -inf }
 0x120   : > { %1835 = vrot.lane.b32.xlu1 %v3402_v8, %s2771_s27  ;;  %v1192_v37 = vrot.slane %v1191_v47, 1  ;;  %v1203_v31 = vmax.f32 %v1201_v48, %v1202_v22  ;;  %v1210_v3 = vmax.f32 %v1208_v17, %v1209_v7  ;;  %v1216_v15 = vrot.slane %v1215_v12, 4 }
 0x121   : > { %1711 = vrot.lane.b32.xlu0 %v3505_v44, %s2768_s24  ;;  %v1198_v36 = vmax.f32 %v1196_v16, %v1197_v32  ;;  %v1223_v8 = vrot.slane %v1222_v56, 4  ;;  %v1230_v61 = vrot.slane %v1229_v63, 4  ;;  %v1236_v26 = vsel %vm353_vm1, %v351_v53, -inf  ;;  %v1704_v32 = vpop.permute.xlu1 %1703 }
 0x122   : > { %1743 = vrot.lane.b32.xlu2 %v3503_v42, %s2769_s25  ;;  %v3699_v30 = vmax.f32 %v1191_v47, %v1192_v37  ;;  %v1204_v4 = vrot.slane %v1203_v31, 2  ;;  %v1211_v33 = vrot.slane %v1210_v3, 2  ;;  %v1217_v6 = vmax.f32 %v1215_v12, %v1216_v15 }
 0x123   : > { %v1199_v9 = vrot.slane %v1198_v36, 1  ;;  %v1224_v46 = vmax.f32 %v1222_v56, %v1223_v8  ;;  %v1231_v1 = vmax.f32 %v1229_v63, %v1230_v61  ;;  %v1237_v2 = vrot.slane %v1236_v26, 4 }
 0x124   : > { %v1205_v29 = vmax.f32 %v1203_v31, %v1204_v4  ;;  %v1212_v10 = vmax.f32 %v1210_v3, %v1211_v33  ;;  %v1218_v49 = vrot.slane %v1217_v6, 2  ;;  %v1243_v28 = vsel %vm353_vm1, %v352_v60, -inf }
 0x125   : > { %v1200_v21 = vmax.f32 %v1198_v36, %v1199_v9  ;;  %v1225_v39 = vrot.slane %v1224_v46, 2  ;;  %v1232_v14 = vrot.slane %v1231_v1, 2  ;;  %v1238_v59 = vmax.f32 %v1236_v26, %v1237_v2 }
 0x126   : > { %v1206_v62 = vrot.slane %v1205_v29, 1  ;;  %v1213_v58 = vrot.slane %v1212_v10, 1  ;;  %v1219_v57 = vmax.f32 %v1217_v6, %v1218_v49  ;;  %v1244_v41 = vrot.slane %v1243_v28, 4 }
 0x127   : > { %v1226_v45 = vmax.f32 %v1224_v46, %v1225_v39  ;;  %v1233_v25 = vmax.f32 %v1231_v1, %v1232_v14  ;;  %v1239_v34 = vrot.slane %v1238_v59, 2  ;;  %v1419_v13 = vsel %vm1250_vm0, %v3646_v18, -inf  ;;  %v1620_v1 = vld [vmem:[#allocation2 + $0x37] sm:$0xff] }
 0x128   : > { %1867 = vrot.lane.b32.xlu1 %v3480_v5, %s2775_s6  ;;  %v1207_v48 = vmax.f32 %v1205_v29, %v1206_v62  ;;  %v1214_v17 = vmax.f32 %v1212_v10, %v1213_v58  ;;  %v1220_v16 = vrot.slane %v1219_v57, 1  ;;  %v1245_v53 = vmax.f32 %v1243_v28, %v1244_v41 }
 0x129   : > { %1899 = vrot.lane.b32.xlu0 %v3505_v44, %s2773_s29  ;;  %v1227_v47 = vrot.slane %v1226_v45, 1  ;;  %v1234_v22 = vrot.slane %v1233_v25, 1  ;;  %v1240_v7 = vmax.f32 %v1238_v59, %v1239_v34  ;;  %v1420_v5 = vsel %vm1250_vm0, %v1200_v21, -inf  ;;  %v1832_v21 = vpop.permute.xlu2 %1831  ;;  %v1800_v62 = vpop.permute.xlu1 %1799 }
 0x12a   : > { %1931 = vrot.lane.b32.xlu2 %v3503_v42, %s2774_s30  ;;  %v1221_v44 = vmax.f32 %v1219_v57, %v1220_v16  ;;  %v1246_v12 = vrot.slane %v1245_v53, 2  ;;  %v1421_v56 = vmax.f32 %v1419_v13, %v1420_v5  ;;  %v1422_v63 = vsel %vm1250_vm0, %v3648_v19, -inf  ;;  %v1768_v19 = vpop.permute.xlu0 %1767 }
 0x12b   : > { %v1228_v18 = vmax.f32 %v1226_v45, %v1227_v47  ;;  %v1235_v37 = vmax.f32 %v1233_v25, %v1234_v22  ;;  %v1241_v31 = vrot.slane %v1240_v7, 1  ;;  %v1423_v3 = vsel %vm1250_vm0, %v1207_v48, -inf }
 0x12c   : > { %v1247_v15 = vmax.f32 %v1245_v53, %v1246_v12  ;;  %v1424_v60 = vmax.f32 %v1422_v63, %v1423_v3  ;;  %v1425_v42 = vsel %vm1250_vm0, %v3664_v43, -inf  ;;  %v1426_v36 = vsel %vm1250_vm0, %v1214_v17, -inf  ;;  %v1621_v63 = vld [vmem:[#allocation2 + $0x4f] sm:$0xff] }
 0x12d   : > { %v1242_v8 = vmax.f32 %v1240_v7, %v1241_v31  ;;  %v1427_v61 = vmax.f32 %v1425_v42, %v1426_v36  ;;  %v1428_v26 = vsel %vm1250_vm0, %v3677_v55, -inf  ;;  %v1429_v4 = vsel %vm1250_vm0, %v1221_v44, -inf }
 0x12e   : > { %v1248_v33 = vrot.slane %v1247_v15, 1  ;;  %v1430_v6 = vmax.f32 %v1428_v26, %v1429_v4  ;;  %v1431_v9 = vsel %vm1250_vm0, %v3679_v50, -inf  ;;  %v1432_v46 = vsel %vm1250_vm0, %v1228_v18, -inf  ;;  %v1682_v4 = vld [vmem:[#allocation2 + $0xe0] sm:$0xff] }
 0x12f   : > { %v1433_v43 = vmax.f32 %v1431_v9, %v1432_v46  ;;  %v1434_v55 = vsel %vm1250_vm0, %v3681_v40, -inf  ;;  %v1435_v2 = vsel %vm1250_vm0, %v1235_v37, -inf  ;;  %v1437_v29 = vsel %vm1250_vm0, %v3684_v54, -inf }
 0x130   : > { %1775 = vrot.lane.b32.xlu1 %v3626_v51, %s2770_s26  ;;  %v1249_v10 = vmax.f32 %v1247_v15, %v1248_v33  ;;  %v1436_v50 = vmax.f32 %v1434_v55, %v1435_v2  ;;  %v1438_v49 = vsel %vm1250_vm0, %v1242_v8, -inf  ;;  %v1440_v28 = vsel %vm1250_vm0, %v3699_v30, -inf  ;;  %v1674_v15 = vld [vmem:[#allocation2 + $0xdf] sm:$0xff] }
 0x131   : > { %1807 = vrot.lane.b32.xlu0 %v3628_v35, %s2772_s28  ;;  %v1439_v39 = vmax.f32 %v1437_v29, %v1438_v49  ;;  %v1594_v14 = vsel %vm1538_vm3, %v1424_v60, %v1421_v56  ;;  %v1984_v40 = vsel %vm1982_vm13, %v3655_v24, %v3652_v23  ;;  %v1949_v59 = vsel %vm1250_vm0, %v1620_v1, %v1704_v32  ;;  %v1896_v16 = vpop.permute.xlu1 %1895  ;;  %v1928_v53 = vpop.permute.xlu2 %1927  ;;  %v1623_v29 = vld [vmem:[#allocation2 + $0x7f] sm:$0xff] }
 0x132   : > { %v1441_v54 = vsel %vm1250_vm0, %v1249_v10, -inf  ;;  %v1595_v58 = vsel %vm1540_vm4, %v1427_v61, %v1594_v14  ;;  %v1993_v57 = vsel %vm1991_vm15, %v1984_v40, %v3697_v38  ;;  %v1958_v30 = vsel %vm1955_vm10, %v1949_v59, %v1736_v27  ;;  %v1864_v17 = vpop.permute.xlu0 %1863 }
 0x133   : > { %v1442_v41 = vmax.f32 %v1440_v28, %v1441_v54  ;;  %v1596_v45 = vsel %vm1542_vm5, %v1430_v6, %v1595_v58  ;;  %v2002_v25 = vsel %vm2000_vm2, %v1993_v57, %v3671_v20  ;;  %v1967_v23 = vsel %vm1964_vm11, %v1958_v30, %v1768_v19  ;;  %v1622_v30 = vld [vmem:[#allocation2 + $0x67] sm:$0xff] }
 0x134   : > { %v1597_v24 = vsel %vm1544_vm6, %v1433_v43, %v1596_v45  ;;  %v2011_v34 = vsel %vm2009_vm14, %v2002_v25, %v3701_v52  ;;  %v1976_v13 = vsel %vm1973_vm12, %v1967_v23, %v1800_v62  ;;  %vm4152_vm1 = vcmask 1047559  }
 0x135   : > { %v1598_v48 = vsel %vm1546_vm7, %v1436_v50, %v1597_v24  ;;  %2703 = vmatmul.msk.f32.gmra.mxu0 %vm2027_vm9, %v2011_v34  ;;  %v1985_v27 = vsel %vm1982_vm13, %v1976_v13, %v1832_v21  ;;  %v3803_v34 = vld [vmem:[%s4147_s2] ss:$0 sm:$0xff]  ;;  %vm2107_vm3 = vcmask 57344   ;;  %vm2515_vm4 = vcmask 392192  }
 0x136   : > { %v1599_v38 = vsel %vm1548_vm8, %v1439_v39, %v1598_v48  ;;  %v1994_v52 = vsel %vm1991_vm15, %v1985_v27, %v1864_v17  ;;  %2108 = vst.msk [vmem:[#allocation3 + $0x10] sm:$0x1] %vm2107_vm3, %v2767_v0  ;;  %v2153_v27 = vld [vmem:[#allocation3 + $0x8] sm:$0xff]  ;;  %vm2524_vm5 = vcmask 457728   ;;  %vm2533_vm6 = vcmask 523264  }
 0x137   : > { %v1600_v20 = vsel %vm4152_vm1, %v1442_v41, %v1599_v38  ;;  %v2003_v47 = vsel %vm2000_vm2, %v1994_v52, %v1896_v16  ;;  %2111 = vst.msk [vmem:[#allocation3 + $0x28] sm:$0x1] %vm2107_vm3, %v2767_v0  ;;  %vm2555_vm7 = vcmask 588800  }
 0x138   : > { %1839 = vrot.lane.b32.xlu1 %v3633_v11, %s2771_s27  ;;  %1617 = vst.msk [vmem:[#allocation2 + $0xc8] sm:$0xff] %vm1250_vm0, %v1600_v20  ;;  %v2012_v22 = vsel %vm2009_vm14, %v2003_v47, %v1928_v53 }
 0x139   : > { %v1738_v12 = vpop.permute.xlu1 %1737  ;;  %v1770_v56 = vpop.permute.xlu2 %1769  ;;  %2114 = vst.msk [vmem:[#allocation3 + $0x40] sm:$0x1] %vm2107_vm3, %v2767_v0 }
 0x13a   : > { %v1706_v44 = vpop.permute.xlu0 %1705  ;;  %2117 = vst.msk [vmem:[#allocation3 + $0x58] sm:$0x1] %vm2107_vm3, %v2767_v0 }
 0x13b   : > { %v1950_v18 = vsel %vm1250_vm0, %v1621_v63, %v1706_v44  ;;  %2120 = vst.msk [vmem:[#allocation3 + $0x70] sm:$0x1] %vm2107_vm3, %v2767_v0 }
 0x13c   : > { %v1959_v3 = vsel %vm1955_vm10, %v1950_v18, %v1738_v12  ;;  %2123 = vst.msk [vmem:[#allocation3 + $0x88] sm:$0x1] %vm2107_vm3, %v2767_v0  ;;  %v1624_v18 = vld [vmem:[#allocation2 + $0x97] sm:$0xff] }
 0x13d   : > { %2704 = vmatmul.msk.f32.gmra.mxu0 %vm2027_vm9, %v2012_v22  ;;  %v1968_v42 = vsel %vm1964_vm11, %v1959_v3, %v1770_v56  ;;  %2126 = vst.msk [vmem:[#allocation3 + $0xa0] sm:$0x1] %vm2107_vm3, %v2767_v0 }
 0x13e   : > { %2129 = vst.msk [vmem:[#allocation3 + $0xb8] sm:$0x1] %vm2107_vm3, %v2767_v0 }
 0x13f   : > { %v1681_v7 = vld [vmem:[#allocation2 + $0xc8] sm:$0xff]  ;;  %2132 = vst.msk [vmem:[#allocation3 + $0xd0] sm:$0x1] %vm2107_vm3, %v2767_v0 }
 0x140   : > { %v1689_v5 = vld [vmem:[#allocation2 + $0xc9] sm:$0xff]  ;;  %1903 = vrot.lane.b32.xlu0 %v1681_v7, %s2773_s29  ;;  %2135 = vst.msk [vmem:[#allocation3 + $0xe8] sm:$0x1] %vm2107_vm3, %v2767_v0 }
 0x141   : > { %v1673_v32 = vld [vmem:[#allocation2 + $0xc7] sm:$0xff]  ;;  %1935 = vrot.lane.b32.xlu1 %v1689_v5, %s2774_s30  ;;  %v1834_v37 = vpop.permute.xlu1 %1833  ;;  %v1710_v60 = vpop.permute.xlu2 %1709 }
 0x142   : > { %1871 = vrot.lane.b32.xlu2 %v1673_v32, %s2775_s6  ;;  %v1802_v31 = vpop.permute.xlu0 %1801  ;;  %v1952_v10 = vsel %vm1250_vm0, %v1623_v29, %v1710_v60 }
 0x143   : > { %v1977_v36 = vsel %vm1973_vm12, %v1968_v42, %v1802_v31 }
 0x144   : > { %v1986_v8 = vsel %vm1982_vm13, %v1977_v36, %v1834_v37 }
 0x148   : > { %1745 = vrot.lane.b32.xlu0 %v3633_v11, %s2769_s25 }
 0x149   : > { %1777 = vrot.lane.b32.xlu1 %v1673_v32, %s2770_s26  ;;  %v1742_v11 = vpop.permute.xlu1 %1741  ;;  %v1898_v19 = vpop.permute.xlu2 %1897 }
 0x14a   : > { %1713 = vrot.lane.b32.xlu2 %v3628_v35, %s2768_s24  ;;  %v1690_v35 = vld [vmem:[#allocation2 + $0xe1] sm:$0xff]  ;;  %v1866_v61 = vpop.permute.xlu0 %1865  ;;  %v1961_v28 = vsel %vm1955_vm10, %v1952_v10, %v1742_v11  ;;  %s2779_s24 = smov 48  }
 0x14b   : > { %v1995_v26 = vsel %vm1991_vm15, %v1986_v8, %v1866_v61 }
 0x14c   : > { %v2004_v6 = vsel %vm2000_vm2, %v1995_v26, %v1898_v19 }
 0x150   : > { %1841 = vrot.lane.b32.xlu0 %v1689_v5, %s2771_s27  ;;  %v2161_v5 = vld [vmem:[#allocation3 + $0x9] sm:$0xff] }
 0x151   : > { %1873 = vrot.lane.b32.xlu1 %v1674_v15, %s2775_s6  ;;  %v1930_v33 = vpop.permute.xlu1 %1929  ;;  %v1708_v46 = vpop.permute.xlu2 %1707 }
 0x152   : > { %1809 = vrot.lane.b32.xlu2 %v1681_v7, %s2772_s28  ;;  %v2013_v9 = vsel %vm2009_vm14, %v2004_v6, %v1930_v33  ;;  %v1951_v45 = vsel %vm1250_vm0, %v1622_v30, %v1708_v46 }
 0x153   : > { %2705 = vmatmul.msk.f32.gmra.mxu0 %vm2027_vm9, %v2013_v9 }
 0x158   : > { %1937 = vrot.lane.b32.xlu0 %v1690_v35, %s2774_s30 }
 0x159   : > { %v1838_v43 = vpop.permute.xlu2 %1837  ;;  %v1740_v50 = vpop.permute.xlu1 %1739  ;;  %2226 = vrot.lane.b32.xlu1 %v2153_v27, %s2769_s25 }
 0x15a   : > { %1905 = vrot.lane.b32.xlu2 %v1682_v4, %s2773_s29  ;;  %v1960_v24 = vsel %vm1955_vm10, %v1951_v45, %v1740_v50 }
 0x160   : > { %2258 = vrot.lane.b32.xlu0 %v2161_v5, %s2772_s28 }
 0x161   : > { %v1804_v2 = vpop.permute.xlu2 %1803 }
 0x166   : > { %v1774_v1 = vpop.permute.xlu0 %1773 }
 0x167   : > { %v1970_v21 = vsel %vm1964_vm11, %v1961_v28, %v1774_v1 }
 0x16e   : > { %v1806_v55 = vpop.permute.xlu0 %1805 }
 0x16f   : > { %v1979_v14 = vsel %vm1973_vm12, %v1970_v21, %v1806_v55 }
 0x170   : > { %v1988_v40 = vsel %vm1982_vm13, %v1979_v14, %v1838_v43 }
 0x174   : > { %v1934_v39 = vpop.permute.xlu2 %1933 }
 0x176   : > { %v1772_v49 = vpop.permute.xlu0 %1771 }
 0x177   : > { %v1969_v48 = vsel %vm1964_vm11, %v1960_v24, %v1772_v49 }
 0x178   : > { %v1978_v17 = vsel %vm1973_vm12, %v1969_v48, %v1804_v2 }
 0x17c   : > { %v1744_v41 = vpop.permute.xlu2 %1743 }
 0x184   : > { %v1932_v16 = vpop.permute.xlu2 %1931 }
 0x18a   : > { %v1870_v59 = vpop.permute.xlu1 %1869 }
 0x18b   : > { %v1902_v62 = vpop.permute.xlu0 %1901  ;;  %v1997_v54 = vsel %vm1991_vm15, %v1988_v40, %v1870_v59 }
 0x18c   : > { %v2006_v58 = vsel %vm2000_vm2, %v1997_v54, %v1902_v62 }
 0x18d   : > { %v2015_v57 = vsel %vm2009_vm14, %v2006_v58, %v1934_v39 }
 0x18e   : > { %2707 = vmatmul.msk.f32.vlgmr.msra.gmra.mxu3 %vm2027_vm9, %v2015_v57 }
 0x192   : > { %v1836_v25 = vpop.permute.xlu1 %1835  ;;  %v2073_v13 = vpop.f32.mrf.mxu0 }
 0x193   : > { %v1712_v23 = vpop.permute.xlu0 %1711  ;;  %v2074_v38 = vadd.f32 %v3803_v34, %v2073_v13  ;;  %v1987_v52 = vsel %vm1982_vm13, %v1978_v17, %v1836_v25 }
 0x194   : > { %v1953_v37 = vsel %vm1250_vm0, %v1624_v18, %v1712_v23 }
 0x195   : > { %v2097_v20 = vmax.f32 %v2074_v38, 0.0  ;;  %v1962_v31 = vsel %vm1955_vm10, %v1953_v37, %v1744_v41 }
 0x197   : > { %2137 = vst.msk [vmem:[#allocation3 + $0x20] sm:$0xff] %vm1955_vm10, %v2097_v20 }
 0x19a   : > { %v1868_v53 = vpop.permute.xlu1 %1867 }
 0x19b   : > { %v1900_v47 = vpop.permute.xlu0 %1899  ;;  %v1996_v22 = vsel %vm1991_vm15, %v1987_v52, %v1868_v53 }
 0x19c   : > { %v2005_v7 = vsel %vm2000_vm2, %v1996_v22, %v1900_v47  ;;  %v1872_v60 = vpop.permute.xlu2 %1871 }
 0x19d   : > { %v2014_v32 = vsel %vm2009_vm14, %v2005_v7, %v1932_v16 }
 0x19e   : > { %2706 = vmatmul.msk.f32.gmra.mxu0 %vm2027_vm9, %v2014_v32  ;;  %v2185_v44 = vld [vmem:[#allocation3 + $0x21] sm:$0xff] }
 0x19f   : > { %v2177_v12 = vld [vmem:[#allocation3 + $0x20] sm:$0xff]  ;;  %2354 = vrot.lane.b32.xlu1 %v2185_v44, %s2776_s21 }
 0x1a0   : > { %v3837_v63 = vld [vmem:[#allocation3 + $0x1f] sm:$0xff]  ;;  %2322 = vrot.lane.b32.xlu2 %v2177_v12, %s2774_s30 }
 0x1a1   : > { %2290 = vrot.lane.b32.xlu0 %v3837_v63, %s2775_s6 }
 0x1a2   : > { %v1776_v56 = vpop.permute.xlu1 %1775 }
 0x1a3   : > { %v1808_v3 = vpop.permute.xlu0 %1807  ;;  %v1971_v0 = vsel %vm1964_vm11, %v1962_v31, %v1776_v56 }
 0x1a4   : > { %v1980_v42 = vsel %vm1973_vm12, %v1971_v0, %v1808_v3  ;;  %v1714_v8 = vpop.permute.xlu2 %1713 }
 0x1a5   : > { %v1954_v9 = vsel %vm1250_vm0, %v3626_v51, %v1714_v8  ;;  %vm2506_vm0 = vcmask 326656  }
 0x1a7   : > { %2260 = vrot.lane.b32.xlu1 %v2185_v44, %s2772_s28 }
 0x1a8   : > { %2228 = vrot.lane.b32.xlu2 %v2177_v12, %s2769_s25 }
 0x1aa   : > { %v1840_v15 = vpop.permute.xlu1 %1839 }
 0x1ab   : > { %v1989_v11 = vsel %vm1982_vm13, %v1980_v42, %v1840_v15  ;;  %v2550_v15 = vld [vmem:[%s4148_s3 + $0x40] sm:$0xff] }
 0x1ac   : > { %v1998_v36 = vsel %vm1991_vm15, %v1989_v11, %v1872_v60  ;;  %v1810_v55 = vpop.permute.xlu2 %1809  ;;  %2587 = vmatpush.msra.mxu1 %v2550_v15  ;;  %2727 = vmatpush.msra.mxu2 %v2550_v15  ;;  %v2549_v11 = vld [vmem:[%s4148_s3 + $0x38] sm:$0xff] }
 0x1ae   : > { %2588 = vmatpush.msra.mxu1 %v2549_v11  ;;  %2728 = vmatpush.msra.mxu2 %v2549_v11 }
 0x1b2   : > { %v1904_v35 = vpop.permute.xlu0 %1903  ;;  %v2076_v4 = vpop.f32.mrf.mxu0 }
 0x1b3   : > { %v1936_v61 = vpop.permute.xlu1 %1935  ;;  %v2007_v26 = vsel %vm2000_vm2, %v1998_v36, %v1904_v35  ;;  %v2077_v33 = vadd.f32 %v3803_v34, %v2076_v4  ;;  %v2548_v36 = vld [vmem:[%s4148_s3 + $0x30] sm:$0xff]  ;;  %v2547_v35 = vld [vmem:[%s4148_s3 + $0x28] sm:$0xff] }
 0x1b4   : > { %v2016_v19 = vsel %vm2009_vm14, %v2007_v26, %v1936_v61  ;;  %v1906_v14 = vpop.permute.xlu2 %1905  ;;  %2589 = vmatpush.msra.mxu1 %v2548_v36  ;;  %v2546_v61 = vld [vmem:[%s4148_s3 + $0x20] sm:$0xff]  ;;  %2729 = vmatpush.msra.mxu2 %v2548_v36 }
 0x1b5   : > { %2708 = vmatmul.msk.f32.gmra.mxu3 %vm2027_vm9, %v2016_v19  ;;  %v2098_v6 = vmax.f32 %v2077_v33, 0.0  ;;  %v2545_v33 = vld [vmem:[%s4148_s3 + $0x18] sm:$0xff] }
 0x1b6   : > { %2590 = vmatpush.msra.mxu1 %v2547_v35  ;;  %2730 = vmatpush.msra.mxu2 %v2547_v35 }
 0x1b7   : > { %2138 = vst.msk [vmem:[#allocation3 + $0x38] sm:$0xff] %vm1955_vm10, %v2098_v6 }
 0x1b8   : > { %2591 = vmatpush.msra.mxu1 %v2546_v61  ;;  %2731 = vmatpush.msra.mxu2 %v2546_v61 }
 0x1ba   : > { %v1746_v46 = vpop.permute.xlu0 %1745  ;;  %v2079_v2 = vpop.f32.mrf.mxu0  ;;  %2592 = vmatpush.msra.mxu1 %v2545_v33  ;;  %2732 = vmatpush.msra.mxu2 %v2545_v33 }
 0x1bb   : > { %v1778_v1 = vpop.permute.xlu1 %1777  ;;  %v1963_v43 = vsel %vm1955_vm10, %v1954_v9, %v1746_v46  ;;  %v2080_v29 = vadd.f32 %v3803_v34, %v2079_v2  ;;  %v2544_v9 = vld [vmem:[%s4148_s3 + $0x10] sm:$0xff] }
 0x1bc   : > { %v1972_v10 = vsel %vm1964_vm11, %v1963_v43, %v1778_v1  ;;  %2593 = vmatpush.msra.mxu1 %v2544_v9  ;;  %v2543_v1 = vld [vmem:[%s4148_s3 + $0x8] sm:$0xff]  ;;  %v2542_v43 = vld [vmem:[%s4148_s3] sm:$0xff]  ;;  %2733 = vmatpush.msra.mxu2 %v2544_v9 }
 0x1bd   : > { %v2099_v50 = vmax.f32 %v2080_v29, 0.0  ;;  %v1981_v49 = vsel %vm1973_vm12, %v1972_v10, %v1810_v55 }
 0x1be   : > { %v2210_v27 = vld [vmem:[#allocation3 + $0x39] sm:$0xff]  ;;  %2594 = vmatpush.msra.mxu1 %v2543_v1  ;;  %2734 = vmatpush.msra.mxu2 %v2543_v1 }
 0x1bf   : > { %2139 = vst.msk [vmem:[#allocation3 + $0x50] sm:$0xff] %vm1955_vm10, %v2099_v50  ;;  %v2202_v20 = vld [vmem:[#allocation3 + $0x38] sm:$0xff] }
 0x1c0   : > { %v3885_v17 = vld [vmem:[#allocation3 + $0x37] sm:$0xff]  ;;  %2595 = vmatpush.msra.mxu1 %v2542_v43  ;;  %2735 = vmatpush.msra.mxu2 %v2542_v43 }
 0x1c2   : > { %v1842_v28 = vpop.permute.xlu0 %1841 }
 0x1c3   : > { %v1874_v21 = vpop.permute.xlu1 %1873  ;;  %v1990_v51 = vsel %vm1982_vm13, %v1981_v49, %v1842_v28 }
 0x1c4   : > { %v1999_v39 = vsel %vm1991_vm15, %v1990_v51, %v1874_v21 }
 0x1c5   : > { %v2008_v40 = vsel %vm2000_vm2, %v1999_v39, %v1906_v14  ;;  %v2145_v39 = vld [vmem:[#allocation3 + $0x7] sm:$0xff]  ;;  %v2201_v14 = vld [vmem:[#allocation3 + $0xdf] sm:$0xff] }
 0x1c6   : > { %v3903_v22 = vld [vmem:[#allocation3 + $0x4f] sm:$0xff] }
 0x1c7   : > { %v3915_v56 = vld [vmem:[#allocation3 + $0x50] sm:$0xff] }
 0x1c8   : > { %v3917_v18 = vld [vmem:[#allocation3 + $0x51] sm:$0xff] }
 0x1ca   : > { %v1938_v59 = vpop.permute.xlu0 %1937 }
 0x1cb   : > { %v2017_v62 = vsel %vm2009_vm14, %v2008_v40, %v1938_v59  ;;  %v2227_v60 = vpop.permute.xlu1 %2226 }
 0x1cc   : > { %2709 = vmatmul.msk.f32.gmra.mxu3 %vm2027_vm9, %v2017_v62  ;;  %v2474_v40 = vsel %vm1955_vm10, %v2145_v39, %v2227_v60 }
 0x1d0   : > { %v2082_v54 = vpop.f32.mrf.mxu0 }
 0x1d1   : > { %v2083_v58 = vadd.f32 %v3803_v34, %v2082_v54 }
 0x1d2   : > { %v2259_v6 = vpop.permute.xlu0 %2258 }
 0x1d3   : > { %v2100_v57 = vmax.f32 %v2083_v58, 0.0  ;;  %v2482_v59 = vsel %vm1973_vm12, %v2474_v40, %v2259_v6 }
 0x1d5   : > { %2140 = vst.msk [vmem:[#allocation3 + $0x68] sm:$0xff] %vm1955_vm10, %v2100_v57 }
 0x1dc   : > { %v3934_v3 = vld [vmem:[#allocation3 + $0x69] sm:$0xff] }
 0x1dd   : > { %v3963_v26 = vld [vmem:[#allocation3 + $0x67] sm:$0xff] }
 0x1fa   : > { %v3926_v37 = vpop.permute.xlu2 %2322 }
 0x202   : > { %v3940_v0 = vpop.permute.xlu2 %2228 }
 0x203   : > { %v2475_v35 = vsel %vm1955_vm10, %v3837_v63, %v3940_v0 }
 0x211   : > { %v2088_v30 = vpop.f32.mrf.mxu3  ;;  %v2355_v4 = vpop.permute.xlu1 %2354 }
 0x212   : > { %v2089_v41 = vadd.f32 %v3803_v34, %v2088_v30  ;;  %v2209_v30 = vld [vmem:[#allocation3 + $0xe0] sm:$0xff] }
 0x213   : > { %v2291_v50 = vpop.permute.xlu0 %2290 }
 0x214   : > { %v2102_v45 = vmax.f32 %v2089_v41, 0.0  ;;  %v2490_v57 = vsel %vm1991_vm15, %v2482_v59, %v2291_v50 }
 0x215   : > { %v2498_v41 = vsel %vm2009_vm14, %v2490_v57, %v3926_v37 }
 0x216   : > { %2142 = vst.msk [vmem:[#allocation3 + $0x98] sm:$0xff] %vm1955_vm10, %v2102_v45  ;;  %v2507_v45 = vsel %vm2506_vm0, %v2498_v41, %v2355_v4 }
 0x219   : > { %v3990_v29 = vpop.permute.xlu1 %2260 }
 0x21b   : > { %v2085_v25 = vpop.f32.mrf.mxu0 }
 0x21c   : > { %v2086_v23 = vadd.f32 %v3803_v34, %v2085_v25 }
 0x21d   : > { %v2214_v24 = vld [vmem:[#allocation3 + $0x99] sm:$0xff] }
 0x21e   : > { %v2206_v13 = vld [vmem:[#allocation3 + $0x98] sm:$0xff]  ;;  %v2101_v38 = vmax.f32 %v2086_v23, 0.0  ;;  %2458 = vrot.lane.b32.xlu1 %v2214_v24, %s2777_s22 }
 0x21f   : > { %v3872_v48 = vld [vmem:[#allocation3 + $0x97] sm:$0xff]  ;;  %2426 = vrot.lane.b32.xlu2 %v2206_v13, %s2778_s23 }
 0x220   : > { %2394 = vrot.lane.b32.xlu0 %v3872_v48, %s2779_s24  ;;  %2141 = vst.msk [vmem:[#allocation3 + $0x80] sm:$0xff] %vm1955_vm10, %v2101_v38 }
 0x226   : > { %2364 = vrot.lane.b32.xlu1 %v2214_v24, %s2776_s21 }
 0x227   : > { %2332 = vrot.lane.b32.xlu2 %v2206_v13, %s2774_s30  ;;  %v2189_v55 = vld [vmem:[#allocation3 + $0x81] sm:$0xff] }
 0x228   : > { %2300 = vrot.lane.b32.xlu0 %v3872_v48, %s2775_s6  ;;  %v3986_v2 = vld [vmem:[#allocation3 + $0x7f] sm:$0xff] }
 0x229   : > { %v2181_v49 = vld [vmem:[#allocation3 + $0x80] sm:$0xff] }
 0x22e   : > { %2450 = vrot.lane.b32.xlu1 %v2210_v27, %s2777_s22 }
 0x22f   : > { %2418 = vrot.lane.b32.xlu2 %v2202_v20, %s2778_s23 }
 0x230   : > { %2386 = vrot.lane.b32.xlu0 %v3885_v17, %s2779_s24 }
 0x236   : > { %2292 = vrot.lane.b32.xlu1 %v3885_v17, %s2775_s6 }
 0x237   : > { %2270 = vrot.lane.b32.xlu2 %v2214_v24, %s2772_s28 }
 0x238   : > { %2238 = vrot.lane.b32.xlu0 %v2206_v13, %s2769_s25  ;;  %v2091_v16 = vpop.f32.mrf.mxu3 }
 0x239   : > { %v2092_v52 = vadd.f32 %v3803_v34, %v2091_v16 }
 0x23b   : > { %v2103_v53 = vmax.f32 %v2092_v52, 0.0 }
 0x23d   : > { %2143 = vst.msk [vmem:[#allocation3 + $0xb0] sm:$0xff] %vm1955_vm10, %v2103_v53 }
 0x23f   : > { %2356 = vrot.lane.b32.xlu2 %v2210_v27, %s2776_s21 }
 0x240   : > { %2324 = vrot.lane.b32.xlu0 %v2202_v20, %s2774_s30 }
 0x244   : > { %v3897_v47 = vld [vmem:[#allocation3 + $0xaf] sm:$0xff] }
 0x245   : > { %2302 = vrot.lane.b32.xlu1 %v3897_v47, %s2775_s6  ;;  %v2215_v7 = vld [vmem:[#allocation3 + $0xb1] sm:$0xff] }
 0x246   : > { %v2160_v12 = vld [vmem:[#allocation3 + $0xb0] sm:$0xff] }
 0x247   : > { %2262 = vrot.lane.b32.xlu2 %v2210_v27, %s2772_s28  ;;  %v2217_v27 = vld [vmem:[#allocation3 + $0xe1] sm:$0xff] }
 0x248   : > { %2230 = vrot.lane.b32.xlu0 %v2202_v20, %s2769_s25 }
 0x24d   : > { %2388 = vrot.lane.b32.xlu1 %v3903_v22, %s2779_s24 }
 0x24f   : > { %2460 = vrot.lane.b32.xlu2 %v2215_v7, %s2777_s22  ;;  %v2094_v5 = vpop.f32.mrf.mxu3 }
 0x250   : > { %2396 = vrot.lane.b32.xlu0 %v3897_v47, %s2779_s24  ;;  %v2095_v32 = vadd.f32 %v3803_v34, %v2094_v5  ;;  %v3924_v34 = vld [vmem:[#allocation3 + $0x68] sm:$0xff] }
 0x252   : > { %v2104_v44 = vmax.f32 %v2095_v32, 0.0 }
 0x254   : > { %2144 = vst.msk [vmem:[#allocation3 + $0xc8] sm:$0xff] %vm1955_vm10, %v2104_v44 }
 0x255   : > { %2240 = vrot.lane.b32.xlu1 %v2160_v12, %s2769_s25 }
 0x257   : > { %2366 = vrot.lane.b32.xlu2 %v2215_v7, %s2776_s21 }
 0x258   : > { %2428 = vrot.lane.b32.xlu0 %v2160_v12, %s2778_s23 }
 0x25b   : > { %v2200_v31 = vld [vmem:[#allocation3 + $0xc7] sm:$0xff] }
 0x25c   : > { %v2208_v42 = vld [vmem:[#allocation3 + $0xc8] sm:$0xff] }
 0x25d   : > { %2326 = vrot.lane.b32.xlu1 %v3915_v56, %s2774_s30  ;;  %v2216_v19 = vld [vmem:[#allocation3 + $0xc9] sm:$0xff] }
 0x25f   : > { %2452 = vrot.lane.b32.xlu2 %v3917_v18, %s2777_s22 }
 0x260   : > { %2334 = vrot.lane.b32.xlu0 %v2160_v12, %s2774_s30 }
 0x265   : > { %2234 = vrot.lane.b32.xlu1 %v3924_v34, %s2769_s25 }
 0x267   : > { %2294 = vrot.lane.b32.xlu2 %v3903_v22, %s2775_s6 }
 0x268   : > { %2420 = vrot.lane.b32.xlu0 %v3915_v56, %s2778_s23 }
 0x26d   : > { %2398 = vrot.lane.b32.xlu1 %v2200_v31, %s2779_s24 }
 0x26f   : > { %2266 = vrot.lane.b32.xlu2 %v3934_v3, %s2772_s28 }
 0x270   : > { %2272 = vrot.lane.b32.xlu0 %v2215_v7, %s2772_s28 }
 0x275   : > { %2430 = vrot.lane.b32.xlu1 %v2208_v42, %s2778_s23 }
 0x277   : > { %2304 = vrot.lane.b32.xlu2 %v2200_v31, %s2775_s6 }
 0x278   : > { %2358 = vrot.lane.b32.xlu0 %v3917_v18, %s2776_s21 }
 0x279   : > { %v3955_v8 = vpop.permute.xlu2 %2426 }
 0x27d   : > { %2336 = vrot.lane.b32.xlu1 %v2208_v42, %s2774_s30 }
 0x27f   : > { %2390 = vrot.lane.b32.xlu2 %v3963_v26, %s2779_s24 }
 0x280   : > { %2462 = vrot.lane.b32.xlu0 %v2216_v19, %s2777_s22 }
 0x281   : > { %v3975_v46 = vpop.permute.xlu2 %2332 }
 0x285   : > { %2422 = vrot.lane.b32.xlu1 %v3924_v34, %s2778_s23 }
 0x287   : > { %2362 = vrot.lane.b32.xlu2 %v2189_v55, %s2776_s21 }
 0x288   : > { %2298 = vrot.lane.b32.xlu0 %v3986_v2, %s2775_s6 }
 0x289   : > { %v2419_v10 = vpop.permute.xlu2 %2418 }
 0x28d   : > { %2330 = vrot.lane.b32.xlu1 %v2181_v49, %s2774_s30 }
 0x28f   : > { %2236 = vrot.lane.b32.xlu2 %v2181_v49, %s2769_s25 }
 0x290   : > { %2368 = vrot.lane.b32.xlu0 %v2216_v19, %s2776_s21  ;;  %v3995_v28 = vpop.permute.xlu1 %2458 }
 0x291   : > { %v2271_v21 = vpop.permute.xlu2 %2270 }
 0x292   : > { %v3997_v51 = vpop.permute.xlu0 %2394 }
 0x295   : > { %2268 = vrot.lane.b32.xlu1 %v2189_v55, %s2772_s28 }
 0x297   : > { %2400 = vrot.lane.b32.xlu2 %v2201_v14, %s2779_s24 }
 0x298   : > { %2454 = vrot.lane.b32.xlu0 %v3934_v3, %s2777_s22  ;;  %v4005_v54 = vpop.permute.xlu1 %2364 }
 0x299   : > { %v2357_v62 = vpop.permute.xlu2 %2356 }
 0x29a   : > { %v4007_v58 = vpop.permute.xlu0 %2300 }
 0x29d   : > { %2232 = vrot.lane.b32.xlu1 %v3915_v56, %s2769_s25 }
 0x29f   : > { %2432 = vrot.lane.b32.xlu2 %v2209_v30, %s2778_s23 }
 0x2a0   : > { %2264 = vrot.lane.b32.xlu0 %v3917_v18, %s2772_s28  ;;  %v2451_v13 = vpop.permute.xlu1 %2450 }
 0x2a1   : > { %v2263_v24 = vpop.permute.xlu2 %2262 }
 0x2a2   : > { %v2387_v25 = vpop.permute.xlu0 %2386 }
 0x2a3   : > { %v2516_v23 = vsel %vm2515_vm4, %v2507_v45, %v2387_v25 }
 0x2a4   : > { %v2525_v38 = vsel %vm2524_vm5, %v2516_v23, %v2419_v10 }
 0x2a5   : > { %v2534_v20 = vsel %vm2533_vm6, %v2525_v38, %v2451_v13  ;;  %2464 = vrot.lane.b32.xlu1 %v2217_v27, %s2777_s22 }
 0x2a6   : > { %2710 = vmatmul.msk.f32.vlgmr.msra.gmra.mxu1 %vm2555_vm7, %v2534_v20 }
 0x2a7   : > { %2296 = vrot.lane.b32.xlu2 %v3963_v26, %s2775_s6 }
 0x2a8   : > { %2328 = vrot.lane.b32.xlu0 %v3924_v34, %s2774_s30  ;;  %v2293_v5 = vpop.permute.xlu1 %2292  ;;  %s2721_s30 = sshll.u32 %s4154_s19, 6 }
 0x2a9   : > { %v4030_v7 = vpop.permute.xlu2 %2460 }
 0x2aa   : > { %v2239_v16 = vpop.permute.xlu0 %2238 }
 0x2ab   : > { %v2480_v52 = vsel %vm1955_vm10, %v3872_v48, %v2239_v16 }
 0x2ac   : > { %v2488_v53 = vsel %vm1973_vm12, %v2480_v52, %v2271_v21 }
 0x2ad   : > { %2360 = vrot.lane.b32.xlu1 %v3934_v3, %s2776_s21 }
 0x2af   : > { %2392 = vrot.lane.b32.xlu2 %v3986_v2, %s2779_s24 }
 0x2b0   : > { %2424 = vrot.lane.b32.xlu0 %v2181_v49, %s2778_s23 }
 0x2b1   : > { %v2367_v44 = vpop.permute.xlu2 %2366 }
 0x2b2   : > { %v2325_v32 = vpop.permute.xlu0 %2324 }
 0x2b5   : > { %2456 = vrot.lane.b32.xlu1 %v2189_v55, %s2777_s22  ;;  %s4120_s22 = scalar_lea.vmem %s4150_s5, %s2721_s30 }
 0x2b7   : > { %v2303_v12 = vpop.permute.xlu1 %2302 }
 0x2b8   : > { %v2496_v48 = vsel %vm1991_vm15, %v2488_v53, %v2303_v12 }
 0x2b9   : > { %v2453_v37 = vpop.permute.xlu2 %2452 }
 0x2ba   : > { %v2231_v56 = vpop.permute.xlu0 %2230 }
 0x2bb   : > { %v2476_v18 = vsel %vm1955_vm10, %v3885_v17, %v2231_v56  ;;  %v2483_v17 = vsel %vm1973_vm12, %v2475_v35, %v3990_v29 }
 0x2bc   : > { %v2484_v34 = vsel %vm1973_vm12, %v2476_v18, %v2263_v24  ;;  %v2491_v19 = vsel %vm1991_vm15, %v2483_v17, %v2293_v5 }
 0x2bd   : > { %v2499_v6 = vsel %vm2009_vm14, %v2491_v19, %v2325_v32 }
 0x2be   : > { %v2508_v9 = vsel %vm2506_vm0, %v2499_v6, %v2357_v62 }
 0x2bf   : > { %v2389_v31 = vpop.permute.xlu1 %2388 }
 0x2c0   : > { %v2517_v43 = vsel %vm2515_vm4, %v2508_v9, %v2389_v31 }
 0x2c1   : > { %v2295_v42 = vpop.permute.xlu2 %2294 }
 0x2c2   : > { %v2397_v3 = vpop.permute.xlu0 %2396  ;;  %v2492_v27 = vsel %vm1991_vm15, %v2484_v34, %v2295_v42 }
 0x2c7   : > { %v4042_v15 = vpop.permute.xlu1 %2240 }
 0x2c9   : > { %v2267_v33 = vpop.permute.xlu2 %2266 }
 0x2ca   : > { %v2429_v60 = vpop.permute.xlu0 %2428 }
 0x2cf   : > { %v2327_v11 = vpop.permute.xlu1 %2326 }
 0x2d0   : > { %v2500_v16 = vsel %vm2009_vm14, %v2492_v27, %v2327_v11 }
 0x2d1   : > { %v2305_v29 = vpop.permute.xlu2 %2304 }
 0x2d2   : > { %v2335_v36 = vpop.permute.xlu0 %2334 }
 0x2d3   : > { %v2504_v61 = vsel %vm2009_vm14, %v2496_v48, %v2335_v36 }
 0x2d4   : > { %v2513_v4 = vsel %vm2506_vm0, %v2504_v61, %v2367_v44 }
 0x2d7   : > { %v2235_v1 = vpop.permute.xlu1 %2234 }
 0x2d8   : > { %v2478_v30 = vsel %vm1955_vm10, %v3963_v26, %v2235_v1  ;;  %v2758_v1 = vld [vmem:[%s4149_s4] ss:$0 sm:$0xff] }
 0x2d9   : > { %v2391_v49 = vpop.permute.xlu2 %2390  ;;  %v2486_v45 = vsel %vm1973_vm12, %v2478_v30, %v2267_v33 }
 0x2da   : > { %v2421_v55 = vpop.permute.xlu0 %2420 }
 0x2db   : > { %v2526_v63 = vsel %vm2524_vm5, %v2517_v43, %v2421_v55 }
 0x2dc   : > { %v2535_v0 = vsel %vm2533_vm6, %v2526_v63, %v2453_v37 }
 0x2dd   : > { %2711 = vmatmul.msk.f32.gmra.mxu1 %vm2555_vm7, %v2535_v0 }
 0x2df   : > { %v2399_v10 = vpop.permute.xlu1 %2398 }
 0x2e1   : > { %v2363_v59 = vpop.permute.xlu2 %2362 }
 0x2e2   : > { %v2273_v50 = vpop.permute.xlu0 %2272 }
 0x2e7   : > { %v2431_v21 = vpop.permute.xlu1 %2430 }
 0x2e9   : > { %v2237_v41 = vpop.permute.xlu2 %2236 }
 0x2ea   : > { %v2359_v39 = vpop.permute.xlu0 %2358  ;;  %v2479_v32 = vsel %vm1955_vm10, %v3986_v2, %v2237_v41 }
 0x2eb   : > { %v2509_v52 = vsel %vm2506_vm0, %v2500_v16, %v2359_v39 }
 0x2ec   : > { %v2518_v44 = vsel %vm2515_vm4, %v2509_v52, %v2391_v49 }
 0x2ef   : > { %v2337_v14 = vpop.permute.xlu1 %2336 }
 0x2f1   : > { %v2401_v5 = vpop.permute.xlu2 %2400 }
 0x2f2   : > { %v2463_v40 = vpop.permute.xlu0 %2462 }
 0x2f7   : > { %v2423_v62 = vpop.permute.xlu1 %2422 }
 0x2f9   : > { %v2433_v42 = vpop.permute.xlu2 %2432 }
 0x2fa   : > { %v2299_v57 = vpop.permute.xlu0 %2298 }
 0x2fb   : > { %v2494_v25 = vsel %vm1991_vm15, %v2486_v45, %v2299_v57 }
 0x2ff   : > { %v2331_v23 = vpop.permute.xlu1 %2330 }
 0x300   : > { %v2502_v24 = vsel %vm2009_vm14, %v2494_v25, %v2331_v23 }
 0x301   : > { %v2511_v38 = vsel %vm2506_vm0, %v2502_v24, %v2363_v59  ;;  %v2297_v19 = vpop.permute.xlu2 %2296 }
 0x302   : > { %v2369_v13 = vpop.permute.xlu0 %2368  ;;  %v2520_v20 = vsel %vm2515_vm4, %v2511_v38, %v3997_v51  ;;  %v2527_v51 = vsel %vm2524_vm5, %v2518_v44, %v2423_v62 }
 0x303   : > { %v2529_v26 = vsel %vm2524_vm5, %v2520_v20, %v3955_v8 }
 0x304   : > { %v2538_v53 = vsel %vm2533_vm6, %v2529_v26, %v3995_v28 }
 0x305   : > { %2714 = vmatmul.msk.f32.vlgmr.msra.gmra.mxu2 %vm2555_vm7, %v2538_v53 }
 0x307   : > { %v2269_v12 = vpop.permute.xlu1 %2268 }
 0x308   : > { %v2487_v48 = vsel %vm1973_vm12, %v2479_v32, %v2269_v12 }
 0x309   : > { %v2495_v8 = vsel %vm1991_vm15, %v2487_v48, %v4007_v58 }
 0x30a   : > { %v2455_v56 = vpop.permute.xlu0 %2454  ;;  %v2503_v28 = vsel %vm2009_vm14, %v2495_v8, %v3975_v46  ;;  %v2481_v46 = vsel %vm1955_vm10, %v3897_v47, %v4042_v15 }
 0x30b   : > { %v2536_v18 = vsel %vm2533_vm6, %v2527_v51, %v2455_v56  ;;  %v2512_v2 = vsel %vm2506_vm0, %v2503_v28, %v4005_v54  ;;  %v2489_v36 = vsel %vm1973_vm12, %v2481_v46, %v2273_v50  ;;  %v2522_v54 = vsel %vm2515_vm4, %v2513_v4, %v2399_v10  ;;  %v2393_v10 = vpop.permute.xlu2 %2392 }
 0x30c   : > { %2712 = vmatmul.msk.f32.gmra.mxu1 %vm2555_vm7, %v2536_v18  ;;  %v2521_v34 = vsel %vm2515_vm4, %v2512_v2, %v2397_v3  ;;  %v2531_v3 = vsel %vm2524_vm5, %v2522_v54, %v2431_v21 }
 0x30d   : > { %v2530_v37 = vsel %vm2524_vm5, %v2521_v34, %v2429_v60  ;;  %v2497_v60 = vsel %vm1991_vm15, %v2489_v36, %v2305_v29 }
 0x30e   : > { %v2539_v31 = vsel %vm2533_vm6, %v2530_v37, %v4030_v7  ;;  %v2505_v35 = vsel %vm2009_vm14, %v2497_v60, %v2337_v14  ;;  %v2540_v7 = vsel %vm2533_vm6, %v2531_v3, %v2463_v40 }
 0x30f   : > { %v2233_v11 = vpop.permute.xlu1 %2232  ;;  %2715 = vmatmul.msk.f32.gmra.mxu2 %vm2555_vm7, %v2539_v31  ;;  %v2514_v61 = vsel %vm2506_vm0, %v2505_v35, %v2369_v13 }
 0x310   : > { %v2477_v47 = vsel %vm1955_vm10, %v3903_v22, %v2233_v11  ;;  %v2523_v15 = vsel %vm2515_vm4, %v2514_v61, %v2401_v5 }
 0x311   : > { %v2532_v6 = vsel %vm2524_vm5, %v2523_v15, %v2433_v42 }
 0x312   : > { %v2265_v58 = vpop.permute.xlu0 %2264 }
 0x313   : > { %v2485_v33 = vsel %vm1973_vm12, %v2477_v47, %v2265_v58 }
 0x314   : > { %v2493_v43 = vsel %vm1991_vm15, %v2485_v33, %v2297_v19 }
 0x317   : > { %v2465_v17 = vpop.permute.xlu1 %2464  ;;  %2716 = vmatmul.msk.f32.gmra.mxu2 %vm2555_vm7, %v2540_v7 }
 0x318   : > { %v2541_v9 = vsel %vm2533_vm6, %v2532_v6, %v2465_v17 }
 0x31a   : > { %v2329_v4 = vpop.permute.xlu0 %2328 }
 0x31b   : > { %v2501_v22 = vsel %vm2009_vm14, %v2493_v43, %v2329_v4 }
 0x31f   : > { %v2361_v55 = vpop.permute.xlu1 %2360  ;;  %2717 = vmatmul.msk.f32.gmra.mxu2 %vm2555_vm7, %v2541_v9 }
 0x320   : > { %v2510_v63 = vsel %vm2506_vm0, %v2501_v22, %v2361_v55 }
 0x321   : > { %v2519_v50 = vsel %vm2515_vm4, %v2510_v63, %v2393_v10 }
 0x322   : > { %v2425_v49 = vpop.permute.xlu0 %2424 }
 0x323   : > { %v2597_v0 = vpop.f32.mrf.mxu1  ;;  %v2528_v39 = vsel %vm2524_vm5, %v2519_v50, %v2425_v49 }
 0x324   : > { %v2598_v29 = vadd.f32 %v2758_v1, %v2597_v0 }
 0x326   : > { %v2621_v21 = vmax.f32 %v2598_v29, 0.0 }
 0x327   : > { %v2457_v14 = vpop.permute.xlu1 %2456 }
 0x328   : > { %2629 = vst.msk [vmem:[%s4120_s22] sm:$0xff] %vm1955_vm10, %v2621_v21  ;;  %v2537_v40 = vsel %vm2533_vm6, %v2528_v39, %v2457_v14 }
 0x329   : > { %2713 = vmatmul.msk.f32.gmra.mxu1 %vm2555_vm7, %v2537_v40 }
 0x35a   : > { %v2600_v59 = vpop.f32.mrf.mxu1 }
 0x35b   : > { %v2601_v62 = vadd.f32 %v2758_v1, %v2600_v59 }
 0x35d   : > { %v2622_v57 = vmax.f32 %v2601_v62, 0.0 }
 0x35f   : > { %2630 = vst.msk [vmem:[%s4120_s22 + $0x8] sm:$0xff] %vm1955_vm10, %v2622_v57 }
 0x388   : > { %v2609_v45 = vpop.f32.mrf.mxu2 }
 0x389   : > { %v2603_v30 = vpop.f32.mrf.mxu1  ;;  %v2610_v25 = vadd.f32 %v2758_v1, %v2609_v45 }
 0x38a   : > { %v2604_v41 = vadd.f32 %v2758_v1, %v2603_v30 }
 0x38b   : > { %v2625_v24 = vmax.f32 %v2610_v25, 0.0 }
 0x38c   : > { %v2623_v23 = vmax.f32 %v2604_v41, 0.0 }
 0x38d   : > { %2633 = vst.msk [vmem:[%s4120_s22 + $0x20] sm:$0xff] %vm1955_vm10, %v2625_v24 }
 0x38e   : > { %2631 = vst.msk [vmem:[%s4120_s22 + $0x10] sm:$0xff] %vm1955_vm10, %v2623_v23 }
 0x392   : > { %v2612_v13 = vpop.f32.mrf.mxu2 }
 0x393   : > { %v2613_v38 = vadd.f32 %v2758_v1, %v2612_v13 }
 0x395   : > { %v2626_v27 = vmax.f32 %v2613_v38, 0.0 }
 0x397   : > { %2634 = vst.msk [vmem:[%s4120_s22 + $0x28] sm:$0xff] %vm1955_vm10, %v2626_v27 }
 0x39a   : > { %v2615_v20 = vpop.f32.mrf.mxu2 }
 0x39b   : > { %v2616_v16 = vadd.f32 %v2758_v1, %v2615_v20 }
 0x39d   : > { %v2627_v26 = vmax.f32 %v2616_v16, 0.0 }
 0x39f   : > { %2635 = vst.msk [vmem:[%s4120_s22 + $0x30] sm:$0xff] %vm1955_vm10, %v2627_v26 }
 0x3a2   : > { %v2618_v52 = vpop.f32.mrf.mxu2 }
 0x3a3   : > { %v2619_v53 = vadd.f32 %v2758_v1, %v2618_v52 }
 0x3a5   : > { %v2628_v5 = vmax.f32 %v2619_v53, 0.0 }
 0x3a6   : > { %v2606_v32 = vpop.f32.mrf.mxu1 }
 0x3a7   : > { %2636 = vst.msk [vmem:[%s4120_s22 + $0x38] sm:$0xff] %vm1955_vm10, %v2628_v5  ;;  %v2607_v44 = vadd.f32 %v2758_v1, %v2606_v32 }
 0x3a9   : > { %v2624_v12 = vmax.f32 %v2607_v44, 0.0 }
 0x3ab   : > { %2632 = vst.msk [vmem:[%s4120_s22 + $0x18] sm:$0xff] %vm1955_vm10, %v2624_v12 }
 0x3ac PF: > { %s15_s18 = sadd.s32 1, %s2765_s18  }
 0x3ad   : > { %p12_p4 = scmp.ge.s32.totalorder %s15_s18, 4  }
 0x3af   :  { %14 = sbr.rel (!%p12_p4) target bundleno = 1 (0x1), region = 74 }

// kernel: tpu_custom_call.1
= control target key start
LH: loop header
LB: loop body
LE: loop exit
PB: predicated region body
PF: predicated region fallthrough
CT: control target
= control target key end

     0   :  { %s3486_s18 = smov 0   ;;  %s4839_s0 = inlined_call_operand.vmem [shape: f32[2,16,8,2,4], index: 0, kind: input, shape index: {}]   ;;  %s4840_s1 = inlined_call_operand.vmem [shape: f32[9,4,8], index: 1, kind: input, shape index: {}]   ;;  %s4841_s2 = inlined_call_operand.vmem [shape: f32[1,8], index: 2, kind: input, shape index: {}]   ;;  %s4842_s3 = inlined_call_operand.vmem [shape: f32[9,8,8], index: 3, kind: input, shape index: {}]   ;;  %s4843_s4 = inlined_call_operand.vmem [shape: f32[1,8], index: 4, kind: input, shape index: {}]   ;;  %s4844_s5 = inlined_call_operand.vmem [shape: f32[2,64,8], index: 5, kind: output, shape index: {}]  }
   0x1 LB: > { %s3252_s19 = sadd.s32 4294967295, %s3453_s18   ;;  %p3256_p0 = scmp.ge.s32.totalorder %s3453_s18, 1  ;;  %s3453_s18 = sphi %s3486_s18, %s15_s18  }
   0x2   : > { %p187_p1 = scmp.lt.s32.totalorder %s3453_s18, 3 }
   0x4   : > { %p188_p2 = pnand %p3256_p0, %p187_p1 }
   0x5   : > { %p215_p3 = scmp.lt.s32.totalorder (!%p188_p2), %s3252_s19, 1 }
   0x6   : > { %191 = sbr.rel (%p188_p2) target bundleno = 801 (0x321), region = 40 }
   0xb   : > { %v3261_v0 = vld [vmem:[%s4840_s1 + $0x4] sm:$0xf]  ;;  %vm1661_vm0 = vcmask 1043456   ;;  %v1626_v1 = vld [vmem:[%s4840_s1] sm:$0xf]  ;;  %s4846_s19 = smov (!%p215_p3, %s3252_s19), 1 }
   0xc   : > { %3434 = vmatpush.msk.msra.mxu2 %vm1661_vm0, %v3261_v0  ;;  %3435 = vmatpush.msk.msra.mxu3 %vm1661_vm0, %v1626_v1  ;;  %s3432_s24 = sshll.u32 %s4846_s19, 8  ;;  %vm353_vm1 = vcmask 25600   ;;  %vm1250_vm2 = vcmask 31744   ;;  %vm1538_vm3 = vcmask 1041409   ;;  %vm1540_vm4 = vcmask 1042434   ;;  %s3433_s16 = sshll.u32 %s4846_s19, 6 }
   0xd   : > { %3262 = vmatpush.msk.msra.mxu0 %vm1661_vm0, %v3261_v0  ;;  %3271 = vmatpush.msk.msra.mxu1 %vm1661_vm0, %v1626_v1  ;;  %s3510_s27 = scalar_lea.vmem %s4839_s0, %s3432_s24  ;;  %vm1542_vm5 = vcmask 1043459   ;;  %vm1544_vm6 = vcmask 1044484   ;;  %vm1546_vm7 = vcmask 1045509   ;;  %vm1548_vm8 = vcmask 1046534   ;;  %s4790_s21 = scalar_lea.vmem %s4844_s5, %s3433_s16 }
   0xe   : > { %v273_v2 = vld [vmem:[%s3510_s27 + $0x60] sm:$0x3]  ;;  %v274_v3 = vld [vmem:[%s3510_s27 + $0x62] sm:$0x3]  ;;  %v275_v4 = vld [vmem:[%s3510_s27 + $0x64] sm:$0x3] }
   0xf   : > { %v276_v5 = vld [vmem:[%s3510_s27 + $0x66] sm:$0x3]  ;;  %v277_v6 = vld [vmem:[%s3510_s27 + $0x68] sm:$0x3]  ;;  %v278_v7 = vld [vmem:[%s3510_s27 + $0x6a] sm:$0x3] }
  0x10   : > { %v279_v8 = vld [vmem:[%s3510_s27 + $0x6c] sm:$0x3]  ;;  %v280_v9 = vld [vmem:[%s3510_s27 + $0x6e] sm:$0x3]  ;;  %v690_v10 = vsel %vm353_vm1, %v273_v2, -inf  ;;  %v697_v11 = vsel %vm353_vm1, %v274_v3, -inf }
  0x11   : > { %v704_v12 = vsel %vm353_vm1, %v275_v4, -inf  ;;  %v711_v13 = vsel %vm353_vm1, %v276_v5, -inf  ;;  %v691_v14 = vrot.slane %v690_v10, 4  ;;  %v698_v15 = vrot.slane %v697_v11, 4  ;;  %v281_v46 = vld [vmem:[%s3510_s27 + $0x70] sm:$0x3] }
  0x12   : > { %v705_v16 = vrot.slane %v704_v12, 4  ;;  %v712_v17 = vrot.slane %v711_v13, 4  ;;  %v718_v18 = vsel %vm353_vm1, %v277_v6, -inf  ;;  %v725_v19 = vsel %vm353_vm1, %v278_v7, -inf  ;;  %v282_v51 = vld [vmem:[%s3510_s27 + $0x72] sm:$0x3] }
  0x13   : > { %v732_v20 = vsel %vm353_vm1, %v279_v8, -inf  ;;  %v739_v21 = vsel %vm353_vm1, %v280_v9, -inf  ;;  %v692_v22 = vmax.f32 %v690_v10, %v691_v14  ;;  %v699_v23 = vmax.f32 %v697_v11, %v698_v15  ;;  %v283_v52 = vld [vmem:[%s3510_s27 + $0x74] sm:$0x3]  ;;  %v284_v53 = vld [vmem:[%s3510_s27 + $0x76] sm:$0x3] }
  0x14   : > { %v706_v24 = vmax.f32 %v704_v12, %v705_v16  ;;  %v713_v25 = vmax.f32 %v711_v13, %v712_v17  ;;  %v719_v26 = vrot.slane %v718_v18, 4  ;;  %v726_v27 = vrot.slane %v725_v19, 4  ;;  %v285_v58 = vld [vmem:[%s3510_s27 + $0x78] sm:$0x3]  ;;  %v286_v59 = vld [vmem:[%s3510_s27 + $0x7a] sm:$0x3] }
  0x15   : > { %v733_v28 = vrot.slane %v732_v20, 4  ;;  %v740_v29 = vrot.slane %v739_v21, 4  ;;  %v693_v30 = vrot.slane %v692_v22, 2  ;;  %v700_v31 = vrot.slane %v699_v23, 2  ;;  %v287_v0 = vld [vmem:[%s3510_s27 + $0x7c] sm:$0x3] }
  0x16   : > { %v707_v32 = vrot.slane %v706_v24, 2  ;;  %v714_v33 = vrot.slane %v713_v25, 2  ;;  %v720_v34 = vmax.f32 %v718_v18, %v719_v26  ;;  %v727_v35 = vmax.f32 %v725_v19, %v726_v27  ;;  %v288_v5 = vld [vmem:[%s3510_s27 + $0x7e] sm:$0x3] }
  0x17   : > { %v734_v36 = vmax.f32 %v732_v20, %v733_v28  ;;  %v741_v37 = vmax.f32 %v739_v21, %v740_v29  ;;  %v694_v38 = vmax.f32 %v692_v22, %v693_v30  ;;  %v701_v39 = vmax.f32 %v699_v23, %v700_v31 }
  0x18   : > { %v708_v40 = vmax.f32 %v706_v24, %v707_v32  ;;  %v715_v41 = vmax.f32 %v713_v25, %v714_v33  ;;  %v721_v42 = vrot.slane %v720_v34, 2  ;;  %v728_v43 = vrot.slane %v727_v35, 2 }
  0x19   : > { %v735_v44 = vrot.slane %v734_v36, 2  ;;  %v742_v45 = vrot.slane %v741_v37, 2  ;;  %v695_v47 = vrot.slane %v694_v38, 1  ;;  %v702_v48 = vrot.slane %v701_v39, 1 }
  0x1a   : > { %v709_v49 = vrot.slane %v708_v40, 1  ;;  %v716_v50 = vrot.slane %v715_v41, 1  ;;  %v722_v54 = vmax.f32 %v720_v34, %v721_v42  ;;  %v729_v55 = vmax.f32 %v727_v35, %v728_v43 }
  0x1b   : > { %v736_v56 = vmax.f32 %v734_v36, %v735_v44  ;;  %v743_v57 = vmax.f32 %v741_v37, %v742_v45  ;;  %v3534_v60 = vmax.f32 %v694_v38, %v695_v47  ;;  %v3536_v61 = vmax.f32 %v701_v39, %v702_v48 }
  0x1c   : > { %v3538_v62 = vmax.f32 %v708_v40, %v709_v49  ;;  %v3540_v63 = vmax.f32 %v715_v41, %v716_v50  ;;  %v723_v1 = vrot.slane %v722_v54, 1  ;;  %v730_v2 = vrot.slane %v729_v55, 1 }
  0x1d   : > { %v737_v3 = vrot.slane %v736_v56, 1  ;;  %v744_v4 = vrot.slane %v743_v57, 1  ;;  %v746_v6 = vsel %vm353_vm1, %v281_v46, -inf  ;;  %v753_v7 = vsel %vm353_vm1, %v282_v51, -inf  ;;  %v3280_v46 = vld [vmem:[%s4840_s1 + $0x8] sm:$0xf] }
  0x1e   : > { %v760_v8 = vsel %vm353_vm1, %v283_v52, -inf  ;;  %v767_v9 = vsel %vm353_vm1, %v284_v53, -inf  ;;  %v3548_v10 = vmax.f32 %v722_v54, %v723_v1  ;;  %v3550_v11 = vmax.f32 %v729_v55, %v730_v2  ;;  %3281 = vmatpush.msk.msrb.mxu2 %vm1661_vm0, %v3280_v46  ;;  %v3290_v51 = vld [vmem:[%s4840_s1 + $0xc] sm:$0xf] }
  0x1f   : > { %v3552_v12 = vmax.f32 %v736_v56, %v737_v3  ;;  %v3554_v13 = vmax.f32 %v743_v57, %v744_v4  ;;  %v747_v14 = vrot.slane %v746_v6, 4  ;;  %v754_v15 = vrot.slane %v753_v7, 4  ;;  %3291 = vmatpush.msk.msrb.mxu3 %vm1661_vm0, %v3290_v51 }
  0x20   : > { %v761_v16 = vrot.slane %v760_v8, 4  ;;  %v768_v17 = vrot.slane %v767_v9, 4  ;;  %v774_v18 = vsel %vm353_vm1, %v285_v58, -inf  ;;  %v781_v19 = vsel %vm353_vm1, %v286_v59, -inf }
  0x21   : > { %v788_v20 = vsel %vm353_vm1, %v287_v0, -inf  ;;  %v795_v21 = vsel %vm353_vm1, %v288_v5, -inf  ;;  %v748_v22 = vmax.f32 %v746_v6, %v747_v14  ;;  %v755_v23 = vmax.f32 %v753_v7, %v754_v15 }
  0x22   : > { %v762_v24 = vmax.f32 %v760_v8, %v761_v16  ;;  %v769_v25 = vmax.f32 %v767_v9, %v768_v17  ;;  %v775_v26 = vrot.slane %v774_v18, 4  ;;  %v782_v27 = vrot.slane %v781_v19, 4 }
  0x23   : > { %v789_v28 = vrot.slane %v788_v20, 4  ;;  %v796_v29 = vrot.slane %v795_v21, 4  ;;  %v749_v30 = vrot.slane %v748_v22, 2  ;;  %v756_v31 = vrot.slane %v755_v23, 2 }
  0x24   : > { %v763_v32 = vrot.slane %v762_v24, 2  ;;  %v770_v33 = vrot.slane %v769_v25, 2  ;;  %v776_v34 = vmax.f32 %v774_v18, %v775_v26  ;;  %v783_v35 = vmax.f32 %v781_v19, %v782_v27 }
  0x25   : > { %v790_v36 = vmax.f32 %v788_v20, %v789_v28  ;;  %v797_v37 = vmax.f32 %v795_v21, %v796_v29  ;;  %v750_v38 = vmax.f32 %v748_v22, %v749_v30  ;;  %v757_v39 = vmax.f32 %v755_v23, %v756_v31  ;;  %v290_v29 = vld [vmem:[%s3510_s27 + $0x82] sm:$0x3] }
  0x26   : > { %v764_v40 = vmax.f32 %v762_v24, %v763_v32  ;;  %v771_v41 = vmax.f32 %v769_v25, %v770_v33  ;;  %v777_v42 = vrot.slane %v776_v34, 2  ;;  %v784_v43 = vrot.slane %v783_v35, 2  ;;  %v289_v25 = vld [vmem:[%s3510_s27 + $0x80] sm:$0x3]  ;;  %v293_v33 = vld [vmem:[%s3510_s27 + $0x88] sm:$0x3] }
  0x27   : > { %v791_v44 = vrot.slane %v790_v36, 2  ;;  %v798_v45 = vrot.slane %v797_v37, 2  ;;  %v751_v47 = vrot.slane %v750_v38, 1  ;;  %v758_v48 = vrot.slane %v757_v39, 1 }
  0x28   : > { %v765_v49 = vrot.slane %v764_v40, 1  ;;  %v772_v50 = vrot.slane %v771_v41, 1  ;;  %v778_v52 = vmax.f32 %v776_v34, %v777_v42  ;;  %v785_v53 = vmax.f32 %v783_v35, %v784_v43 }
  0x29   : > { %v792_v54 = vmax.f32 %v790_v36, %v791_v44  ;;  %v799_v55 = vmax.f32 %v797_v37, %v798_v45  ;;  %v752_v56 = vmax.f32 %v750_v38, %v751_v47  ;;  %v759_v57 = vmax.f32 %v757_v39, %v758_v48 }
  0x2a   : > { %v766_v58 = vmax.f32 %v764_v40, %v765_v49  ;;  %v773_v59 = vmax.f32 %v771_v41, %v772_v50  ;;  %v779_v0 = vrot.slane %v778_v52, 1  ;;  %v786_v1 = vrot.slane %v785_v53, 1 }
  0x2b   : > { %v793_v2 = vrot.slane %v792_v54, 1  ;;  %v800_v3 = vrot.slane %v799_v55, 1  ;;  %v1323_v4 = vsel %vm1250_vm2, %v3534_v60, -inf  ;;  %v1324_v5 = vsel %vm1250_vm2, %v752_v56, -inf }
  0x2c   : > { %v1326_v6 = vsel %vm1250_vm2, %v3536_v61, -inf  ;;  %v1327_v7 = vsel %vm1250_vm2, %v759_v57, -inf  ;;  %v780_v8 = vmax.f32 %v778_v52, %v779_v0  ;;  %v787_v9 = vmax.f32 %v785_v53, %v786_v1  ;;  %v295_v52 = vld [vmem:[%s3510_s27 + $0x8c] sm:$0x3]  ;;  %v296_v1 = vld [vmem:[%s3510_s27 + $0x8e] sm:$0x3] }
  0x2d   : > { %v794_v14 = vmax.f32 %v792_v54, %v793_v2  ;;  %v801_v15 = vmax.f32 %v799_v55, %v800_v3  ;;  %v1325_v16 = vmax.f32 %v1323_v4, %v1324_v5  ;;  %v1328_v17 = vmax.f32 %v1326_v6, %v1327_v7 }
  0x2e   : > { %v1329_v18 = vsel %vm1250_vm2, %v3538_v62, -inf  ;;  %v1330_v60 = vsel %vm1250_vm2, %v766_v58, -inf  ;;  %v1332_v61 = vsel %vm1250_vm2, %v3540_v63, -inf  ;;  %v1333_v20 = vsel %vm1250_vm2, %v773_v59, -inf }
  0x2f   : > { %v1331_v19 = vmax.f32 %v1329_v18, %v1330_v60  ;;  %v1335_v21 = vsel %vm1250_vm2, %v3548_v10, -inf  ;;  %v1334_v22 = vmax.f32 %v1332_v61, %v1333_v20  ;;  %v1336_v23 = vsel %vm1250_vm2, %v780_v8, -inf  ;;  %v291_v10 = vld [vmem:[%s3510_s27 + $0x84] sm:$0x3]  ;;  %v298_v20 = vld [vmem:[%s3510_s27 + $0x92] sm:$0x3] }
  0x30   : > { %v1338_v62 = vsel %vm1250_vm2, %v3550_v11, -inf  ;;  %v1339_v24 = vsel %vm1250_vm2, %v787_v9, -inf  ;;  %v1337_v26 = vmax.f32 %v1335_v21, %v1336_v23  ;;  %v1341_v63 = vsel %vm1250_vm2, %v3552_v12, -inf  ;;  %v292_v11 = vld [vmem:[%s3510_s27 + $0x86] sm:$0x3] }
  0x31   : > { %v1340_v27 = vmax.f32 %v1338_v62, %v1339_v24  ;;  %v1342_v28 = vsel %vm1250_vm2, %v794_v14, -inf  ;;  %v1344_v31 = vsel %vm1250_vm2, %v3554_v13, -inf  ;;  %v1345_v32 = vsel %vm1250_vm2, %v801_v15, -inf  ;;  %v294_v12 = vld [vmem:[%s3510_s27 + $0x8a] sm:$0x3] }
  0x32   : > { %v1343_v30 = vmax.f32 %v1341_v63, %v1342_v28  ;;  %v1346_v34 = vmax.f32 %v1344_v31, %v1345_v32  ;;  %v3455_v35 = vmov 0.0   ;;  %vm1550_vm9 = vcmask 1047559   ;;  %v297_v9 = vld [vmem:[%s3510_s27 + $0x90] sm:$0x3]  ;;  %v299_v21 = vld [vmem:[%s3510_s27 + $0x94] sm:$0x3] }
  0x33   : > { %1457 = vst.msk [vmem:[#allocation2 + $0x68] sm:$0xff] %vm1250_vm2, %v3455_v35  ;;  %v1566_v13 = vsel %vm1538_vm3, %v1328_v17, %v1325_v16  ;;  %v802_v36 = vsel %vm353_vm1, %v289_v25, -inf  ;;  %v809_v37 = vsel %vm353_vm1, %v290_v29, -inf  ;;  %v816_v38 = vsel %vm353_vm1, %v291_v10, -inf  ;;  %v300_v25 = vld [vmem:[%s3510_s27 + $0x96] sm:$0x3] }
  0x34   : > { %1443 = vst.msk [vmem:[#allocation2] sm:$0xff] %vm1250_vm2, %v3455_v35  ;;  %v1567_v39 = vsel %vm1540_vm4, %v1331_v19, %v1566_v13  ;;  %v803_v40 = vrot.slane %v802_v36, 4  ;;  %v810_v41 = vrot.slane %v809_v37, 4  ;;  %v817_v42 = vrot.slane %v816_v38, 4 }
  0x35   : > { %1444 = vst.msk [vmem:[#allocation2 + $0x8] sm:$0xff] %vm1250_vm2, %v3455_v35  ;;  %v1568_v43 = vsel %vm1542_vm5, %v1334_v22, %v1567_v39  ;;  %v823_v44 = vsel %vm353_vm1, %v292_v11, -inf  ;;  %v830_v45 = vsel %vm353_vm1, %v293_v33, -inf  ;;  %v837_v46 = vsel %vm353_vm1, %v294_v12, -inf  ;;  %v302_v11 = vld [vmem:[%s3510_s27 + $0x9a] sm:$0x3] }
  0x36   : > { %1447 = vst.msk [vmem:[#allocation2 + $0x18] sm:$0xff] %vm1250_vm2, %v3455_v35  ;;  %v1569_v47 = vsel %vm1544_vm6, %v1337_v26, %v1568_v43  ;;  %v804_v48 = vmax.f32 %v802_v36, %v803_v40  ;;  %v811_v49 = vmax.f32 %v809_v37, %v810_v41  ;;  %v818_v50 = vmax.f32 %v816_v38, %v817_v42  ;;  %v301_v26 = vld [vmem:[%s3510_s27 + $0x98] sm:$0x3]  ;;  %v303_v42 = vld [vmem:[%s3510_s27 + $0x9c] sm:$0x3] }
  0x37   : > { %1448 = vst.msk [vmem:[#allocation2 + $0x20] sm:$0xff] %vm1250_vm2, %v3455_v35  ;;  %v1570_v51 = vsel %vm1546_vm7, %v1340_v27, %v1569_v47  ;;  %v824_v53 = vrot.slane %v823_v44, 4  ;;  %v831_v54 = vrot.slane %v830_v45, 4  ;;  %v838_v55 = vrot.slane %v837_v46, 4 }
  0x38   : > { %1450 = vst.msk [vmem:[#allocation2 + $0x30] sm:$0xff] %vm1250_vm2, %v3455_v35  ;;  %v1571_v56 = vsel %vm1548_vm8, %v1343_v30, %v1570_v51  ;;  %v805_v57 = vrot.slane %v804_v48, 2  ;;  %v812_v58 = vrot.slane %v811_v49, 2  ;;  %v819_v59 = vrot.slane %v818_v50, 2 }
  0x39   : > { %1451 = vst.msk [vmem:[#allocation2 + $0x38] sm:$0xff] %vm1250_vm2, %v3455_v35  ;;  %v1572_v0 = vsel %vm1550_vm9, %v1346_v34, %v1571_v56  ;;  %v825_v2 = vmax.f32 %v823_v44, %v824_v53  ;;  %v832_v3 = vmax.f32 %v830_v45, %v831_v54  ;;  %v839_v4 = vmax.f32 %v837_v46, %v838_v55 }
  0x3a   : > { %1453 = vst.msk [vmem:[#allocation2 + $0x48] sm:$0xff] %vm1250_vm2, %v3455_v35  ;;  %v806_v5 = vmax.f32 %v804_v48, %v805_v57  ;;  %v813_v6 = vmax.f32 %v811_v49, %v812_v58  ;;  %v820_v7 = vmax.f32 %v818_v50, %v819_v59  ;;  %v844_v8 = vsel %vm353_vm1, %v295_v52, -inf  ;;  %v3300_v57 = vld [vmem:[%s4840_s1 + $0x10] sm:$0xf] }
  0x3b   : > { %1454 = vst.msk [vmem:[#allocation2 + $0x50] sm:$0xff] %vm1250_vm2, %v3455_v35  ;;  %v826_v14 = vrot.slane %v825_v2, 2  ;;  %v833_v15 = vrot.slane %v832_v3, 2  ;;  %v840_v16 = vrot.slane %v839_v4, 2  ;;  %v845_v17 = vrot.slane %v844_v8, 4  ;;  %3301 = vmatpush.msk.msrb.mxu0 %vm1661_vm0, %v3300_v57 }
  0x3c   : > { %1613 = vst.msk [vmem:[#allocation2 + $0x68] sm:$0xff] %vm1250_vm2, %v1572_v0  ;;  %v807_v18 = vrot.slane %v806_v5, 1  ;;  %v814_v60 = vrot.slane %v813_v6, 1  ;;  %v821_v19 = vrot.slane %v820_v7, 1  ;;  %v851_v61 = vsel %vm353_vm1, %v296_v1, -inf  ;;  %v1627_v55 = vld [vmem:[#allocation2 + $0x8] sm:$0xff] }
  0x3d   : > { %1456 = vst.msk [vmem:[#allocation2 + $0x60] sm:$0xff] %vm1250_vm2, %v3455_v35  ;;  %v827_v22 = vmax.f32 %v825_v2, %v826_v14  ;;  %v834_v23 = vmax.f32 %v832_v3, %v833_v15  ;;  %v841_v62 = vmax.f32 %v839_v4, %v840_v16  ;;  %v846_v24 = vmax.f32 %v844_v8, %v845_v17  ;;  %v1618_v56 = vld [vmem:[#allocation2 + $0x7] sm:$0xff] }
  0x3e   : > { %1459 = vst.msk [vmem:[#allocation2 + $0x78] sm:$0xff] %vm1250_vm2, %v3455_v35  ;;  %v3647_v27 = vmax.f32 %v806_v5, %v807_v18  ;;  %v3649_v63 = vmax.f32 %v813_v6, %v814_v60  ;;  %v3651_v28 = vmax.f32 %v820_v7, %v821_v19  ;;  %v852_v29 = vrot.slane %v851_v61, 4  ;;  %3263 = vmatmul.msk.f32.vlgmr.msra.gmra.mxu0 %vm1250_vm2, %v1627_v55  ;;  %v304_v6 = vld [vmem:[%s3510_s27 + $0x9e] sm:$0x3] }
  0x3f   : > { %1460 = vst.msk [vmem:[#allocation2 + $0x80] sm:$0xff] %vm1250_vm2, %v3455_v35  ;;  %v828_v10 = vrot.slane %v827_v22, 1  ;;  %v835_v30 = vrot.slane %v834_v23, 1  ;;  %v842_v31 = vrot.slane %v841_v62, 1  ;;  %v847_v32 = vrot.slane %v846_v24, 2  ;;  %3272 = vmatmul.msk.f32.vlgmr.msra.gmra.mxu1 %vm1250_vm2, %v1618_v56 }
  0x40   : > { %1462 = vst.msk [vmem:[#allocation2 + $0x90] sm:$0xff] %vm1250_vm2, %v3455_v35  ;;  %v853_v33 = vmax.f32 %v851_v61, %v852_v29  ;;  %v858_v34 = vsel %vm353_vm1, %v297_v9, -inf  ;;  %v865_v12 = vsel %vm353_vm1, %v298_v20, -inf  ;;  %v872_v13 = vsel %vm353_vm1, %v299_v21, -inf }
  0x41   : > { %1463 = vst.msk [vmem:[#allocation2 + $0x98] sm:$0xff] %vm1250_vm2, %v3455_v35  ;;  %v3663_v37 = vmax.f32 %v827_v22, %v828_v10  ;;  %v3665_v38 = vmax.f32 %v834_v23, %v835_v30  ;;  %v3667_v39 = vmax.f32 %v841_v62, %v842_v31  ;;  %v848_v40 = vmax.f32 %v846_v24, %v847_v32 }
  0x42   : > { %1465 = vst.msk [vmem:[#allocation2 + $0xa8] sm:$0xff] %vm1250_vm2, %v3455_v35  ;;  %v854_v43 = vrot.slane %v853_v33, 2  ;;  %v859_v44 = vrot.slane %v858_v34, 4  ;;  %v866_v45 = vrot.slane %v865_v12, 4  ;;  %v873_v46 = vrot.slane %v872_v13, 4 }
  0x43   : > { %v1631_v36 = vld [vmem:[#allocation2 + $0x68] sm:$0xff]  ;;  %1466 = vst.msk [vmem:[#allocation2 + $0xb0] sm:$0xff] %vm1250_vm2, %v3455_v35  ;;  %v849_v47 = vrot.slane %v848_v40, 1  ;;  %v879_v48 = vsel %vm353_vm1, %v300_v25, -inf  ;;  %v886_v49 = vsel %vm353_vm1, %v301_v26, -inf  ;;  %v893_v50 = vsel %vm353_vm1, %v302_v11, -inf }
  0x44   : > { %3267 = vmatmul.msk.f32.vlgmr.msra.gmra.mxu2 %vm1250_vm2, %v1631_v36  ;;  %1468 = vst.msk [vmem:[#allocation2 + $0xc0] sm:$0xff] %vm1250_vm2, %v3455_v35  ;;  %v1622_v41 = vld [vmem:[#allocation2 + $0x67] sm:$0xff]  ;;  %v855_v51 = vmax.f32 %v853_v33, %v854_v43  ;;  %v860_v52 = vmax.f32 %v858_v34, %v859_v44  ;;  %v867_v53 = vmax.f32 %v865_v12, %v866_v45  ;;  %v880_v59 = vrot.slane %v879_v48, 4 }
  0x45   : > { %1469 = vst.msk [vmem:[#allocation2 + $0xc8] sm:$0xff] %vm1250_vm2, %v3455_v35  ;;  %3276 = vmatmul.msk.f32.vlgmr.msra.gmra.mxu3 %vm1250_vm2, %v1622_v41  ;;  %v874_v54 = vmax.f32 %v872_v13, %v873_v46  ;;  %v3686_v58 = vmax.f32 %v848_v40, %v849_v47  ;;  %v887_v0 = vrot.slane %v886_v49, 4  ;;  %v894_v1 = vrot.slane %v893_v50, 4 }
  0x46   : > { %1471 = vst.msk [vmem:[#allocation2 + $0xd8] sm:$0xff] %vm1250_vm2, %v3455_v35  ;;  %v856_v2 = vrot.slane %v855_v51, 1  ;;  %v861_v3 = vrot.slane %v860_v52, 2  ;;  %v868_v4 = vrot.slane %v867_v53, 2  ;;  %v881_v7 = vmax.f32 %v879_v48, %v880_v59 }
  0x47   : > { %1472 = vst.msk [vmem:[#allocation2 + $0xe0] sm:$0xff] %vm1250_vm2, %v3455_v35  ;;  %v875_v5 = vrot.slane %v874_v54, 2  ;;  %v888_v8 = vmax.f32 %v886_v49, %v887_v0  ;;  %v895_v9 = vmax.f32 %v893_v50, %v894_v1  ;;  %v900_v14 = vsel %vm353_vm1, %v303_v42, -inf  ;;  %v305_v0 = vld [vmem:[%s3510_s27 + $0xa0] sm:$0x3] }
  0x48   : > { %v857_v15 = vmax.f32 %v855_v51, %v856_v2  ;;  %v862_v16 = vmax.f32 %v860_v52, %v861_v3  ;;  %v869_v17 = vmax.f32 %v867_v53, %v868_v4  ;;  %v882_v60 = vrot.slane %v881_v7, 2  ;;  %v306_v1 = vld [vmem:[%s3510_s27 + $0xa2] sm:$0x3] }
  0x49   : > { %v876_v18 = vmax.f32 %v874_v54, %v875_v5  ;;  %v889_v19 = vrot.slane %v888_v8, 2  ;;  %v896_v61 = vrot.slane %v895_v9, 2  ;;  %v901_v20 = vrot.slane %v900_v14, 4  ;;  %v307_v5 = vld [vmem:[%s3510_s27 + $0xa4] sm:$0x3] }
  0x4a   : > { %v863_v21 = vrot.slane %v862_v16, 1  ;;  %v870_v22 = vrot.slane %v869_v17, 1  ;;  %v907_v62 = vsel %vm353_vm1, %v304_v6, -inf  ;;  %v883_v24 = vmax.f32 %v881_v7, %v882_v60 }
  0x4b   : > { %v877_v23 = vrot.slane %v876_v18, 1  ;;  %v890_v25 = vmax.f32 %v888_v8, %v889_v19  ;;  %v897_v26 = vmax.f32 %v895_v9, %v896_v61  ;;  %v902_v29 = vmax.f32 %v900_v14, %v901_v20 }
  0x4c   : > { %v864_v10 = vmax.f32 %v862_v16, %v863_v21  ;;  %v871_v30 = vmax.f32 %v869_v17, %v870_v22  ;;  %v908_v32 = vrot.slane %v907_v62, 4  ;;  %v884_v11 = vrot.slane %v883_v24, 1  ;;  %v308_v16 = vld [vmem:[%s3510_s27 + $0xa6] sm:$0x3]  ;;  %v310_v21 = vld [vmem:[%s3510_s27 + $0xaa] sm:$0x3] }
  0x4d   : > { %v878_v31 = vmax.f32 %v876_v18, %v877_v23  ;;  %v891_v33 = vrot.slane %v890_v25, 1  ;;  %v898_v34 = vrot.slane %v897_v26, 1  ;;  %v903_v12 = vrot.slane %v902_v29, 2 }
  0x4e   : > { %v909_v13 = vmax.f32 %v907_v62, %v908_v32  ;;  %v1347_v36 = vsel %vm1250_vm2, %v3647_v27, -inf  ;;  %v1348_v40 = vsel %vm1250_vm2, %v864_v10, -inf  ;;  %v1350_v41 = vsel %vm1250_vm2, %v3649_v63, -inf  ;;  %v311_v10 = vld [vmem:[%s3510_s27 + $0xac] sm:$0x3] }
  0x4f   : > { %v885_v42 = vmax.f32 %v883_v24, %v884_v11  ;;  %v892_v43 = vmax.f32 %v890_v25, %v891_v33  ;;  %v899_v44 = vmax.f32 %v897_v26, %v898_v34  ;;  %v904_v45 = vmax.f32 %v902_v29, %v903_v12 }
  0x50   : > { %v910_v46 = vrot.slane %v909_v13, 2  ;;  %v1349_v47 = vmax.f32 %v1347_v36, %v1348_v40  ;;  %v1351_v48 = vsel %vm1250_vm2, %v871_v30, -inf  ;;  %v1353_v49 = vsel %vm1250_vm2, %v3651_v28, -inf  ;;  %v312_v30 = vld [vmem:[%s3510_s27 + $0xae] sm:$0x3] }
  0x51   : > { %v905_v50 = vrot.slane %v904_v45, 1  ;;  %v1352_v27 = vmax.f32 %v1350_v41, %v1351_v48  ;;  %v1354_v51 = vsel %vm1250_vm2, %v878_v31, -inf  ;;  %v1356_v63 = vsel %vm1250_vm2, %v3663_v37, -inf }
  0x52   : > { %v911_v52 = vmax.f32 %v909_v13, %v910_v46  ;;  %v1355_v53 = vmax.f32 %v1353_v49, %v1354_v51  ;;  %v1357_v54 = vsel %vm1250_vm2, %v885_v42, -inf  ;;  %v1359_v55 = vsel %vm1250_vm2, %v3665_v38, -inf }
  0x53   : > { %v906_v56 = vmax.f32 %v904_v45, %v905_v50  ;;  %v1358_v57 = vmax.f32 %v1356_v63, %v1357_v54  ;;  %v1360_v59 = vsel %vm1250_vm2, %v892_v43, -inf  ;;  %v1362_v28 = vsel %vm1250_vm2, %v3667_v39, -inf }
  0x54   : > { %v912_v2 = vrot.slane %v911_v52, 1  ;;  %v1361_v37 = vmax.f32 %v1359_v55, %v1360_v59  ;;  %v1363_v3 = vsel %vm1250_vm2, %v899_v44, -inf  ;;  %v1365_v4 = vsel %vm1250_vm2, %v3686_v58, -inf  ;;  %v309_v58 = vld [vmem:[%s3510_s27 + $0xa8] sm:$0x3] }
  0x55   : > { %v1364_v38 = vmax.f32 %v1362_v28, %v1363_v3  ;;  %v1366_v6 = vsel %vm1250_vm2, %v906_v56, -inf  ;;  %v1368_v7 = vsel %vm1250_vm2, %v857_v15, -inf  ;;  %v1573_v8 = vsel %vm1538_vm3, %v1352_v27, %v1349_v47  ;;  %v314_v59 = vld [vmem:[%s3510_s27 + $0xb2] sm:$0x3]  ;;  %v316_v3 = vld [vmem:[%s3510_s27 + $0xb6] sm:$0x3] }
  0x56   : > { %v913_v39 = vmax.f32 %v911_v52, %v912_v2  ;;  %v1367_v9 = vmax.f32 %v1365_v4, %v1366_v6  ;;  %v1574_v14 = vsel %vm1540_vm4, %v1355_v53, %v1573_v8  ;;  %v914_v17 = vsel %vm353_vm1, %v305_v0, -inf  ;;  %v313_v53 = vld [vmem:[%s3510_s27 + $0xb0] sm:$0x3] }
  0x57   : > { %v1575_v18 = vsel %vm1542_vm5, %v1358_v57, %v1574_v14  ;;  %v915_v60 = vrot.slane %v914_v17, 4  ;;  %v921_v19 = vsel %vm353_vm1, %v306_v1, -inf  ;;  %v928_v61 = vsel %vm353_vm1, %v307_v5, -inf }
  0x58   : > { %v1369_v15 = vsel %vm1250_vm2, %v913_v39, -inf  ;;  %v1576_v20 = vsel %vm1544_vm6, %v1361_v37, %v1575_v18  ;;  %v922_v22 = vrot.slane %v921_v19, 4  ;;  %v929_v23 = vrot.slane %v928_v61, 4  ;;  %v315_v37 = vld [vmem:[%s3510_s27 + $0xb4] sm:$0x3] }
  0x59   : > { %v1370_v62 = vmax.f32 %v1368_v7, %v1369_v15  ;;  %v1577_v24 = vsel %vm1546_vm7, %v1364_v38, %v1576_v20  ;;  %v916_v25 = vmax.f32 %v914_v17, %v915_v60  ;;  %v935_v26 = vsel %vm353_vm1, %v308_v16, -inf }
  0x5a   : > { %v1578_v29 = vsel %vm1548_vm8, %v1367_v9, %v1577_v24  ;;  %v923_v31 = vmax.f32 %v921_v19, %v922_v22  ;;  %v930_v32 = vmax.f32 %v928_v61, %v929_v23  ;;  %v936_v11 = vrot.slane %v935_v26, 4  ;;  %v317_v19 = vld [vmem:[%s3510_s27 + $0xb8] sm:$0x3] }
  0x5b   : > { %v1579_v33 = vsel %vm1550_vm9, %v1370_v62, %v1578_v29  ;;  %v917_v34 = vrot.slane %v916_v25, 2  ;;  %v942_v12 = vsel %vm353_vm1, %v309_v58, -inf  ;;  %v949_v13 = vsel %vm353_vm1, %v310_v21, -inf }
  0x5c   : > { %1614 = vst.msk [vmem:[#allocation2 + $0x80] sm:$0xff] %vm1250_vm2, %v1579_v33  ;;  %v924_v36 = vrot.slane %v923_v31, 2  ;;  %v931_v40 = vrot.slane %v930_v32, 2  ;;  %v937_v41 = vmax.f32 %v935_v26, %v936_v11  ;;  %v943_v42 = vrot.slane %v942_v12, 4 }
  0x5d   : > { %v918_v43 = vmax.f32 %v916_v25, %v917_v34  ;;  %v950_v44 = vrot.slane %v949_v13, 4  ;;  %v956_v45 = vsel %vm353_vm1, %v311_v10, -inf  ;;  %v963_v46 = vsel %vm353_vm1, %v312_v30, -inf  ;;  %v318_v25 = vld [vmem:[%s3510_s27 + $0xba] sm:$0x3] }
  0x5e   : > { %v925_v47 = vmax.f32 %v923_v31, %v924_v36  ;;  %v932_v48 = vmax.f32 %v930_v32, %v931_v40  ;;  %v938_v49 = vrot.slane %v937_v41, 2  ;;  %v944_v50 = vmax.f32 %v942_v12, %v943_v42  ;;  %v319_v31 = vld [vmem:[%s3510_s27 + $0xbc] sm:$0x3] }
  0x5f   : > { %v919_v27 = vrot.slane %v918_v43, 1  ;;  %v951_v51 = vmax.f32 %v949_v13, %v950_v44  ;;  %v957_v63 = vrot.slane %v956_v45, 4  ;;  %v964_v52 = vrot.slane %v963_v46, 4 }
  0x60   : > { %v926_v54 = vrot.slane %v925_v47, 1  ;;  %v933_v55 = vrot.slane %v932_v48, 1  ;;  %v939_v56 = vmax.f32 %v937_v41, %v938_v49  ;;  %v945_v57 = vrot.slane %v944_v50, 2  ;;  %v320_v41 = vld [vmem:[%s3510_s27 + $0xbe] sm:$0x3] }
  0x61   : > { %v3743_v28 = vmax.f32 %v918_v43, %v919_v27  ;;  %v952_v0 = vrot.slane %v951_v51, 2  ;;  %v958_v1 = vmax.f32 %v956_v45, %v957_v63  ;;  %v965_v2 = vmax.f32 %v963_v46, %v964_v52 }
  0x62   : > { %v3747_v4 = vmax.f32 %v925_v47, %v926_v54  ;;  %v3749_v5 = vmax.f32 %v932_v48, %v933_v55  ;;  %v940_v38 = vrot.slane %v939_v56, 1  ;;  %v946_v6 = vmax.f32 %v944_v50, %v945_v57 }
  0x63   : > { %v1632_v7 = vld [vmem:[#allocation2 + $0x80] sm:$0xff]  ;;  %v953_v39 = vmax.f32 %v951_v51, %v952_v0  ;;  %v959_v9 = vrot.slane %v958_v1, 2  ;;  %v966_v14 = vrot.slane %v965_v2, 2  ;;  %v970_v16 = vsel %vm353_vm1, %v313_v53, -inf }
  0x64   : > { %v1623_v8 = vld [vmem:[#allocation2 + $0x7f] sm:$0xff]  ;;  %3268 = vmatmul.msk.f32.gmra.mxu2 %vm1250_vm2, %v1632_v7  ;;  %v3754_v17 = vmax.f32 %v939_v56, %v940_v38  ;;  %v947_v18 = vrot.slane %v946_v6, 1  ;;  %v971_v58 = vrot.slane %v970_v16, 4  ;;  %v977_v60 = vsel %vm353_vm1, %v314_v59, -inf }
  0x65   : > { %3277 = vmatmul.msk.f32.gmra.mxu3 %vm1250_vm2, %v1623_v8  ;;  %v954_v61 = vrot.slane %v953_v39, 1  ;;  %v960_v15 = vmax.f32 %v958_v1, %v959_v9  ;;  %v967_v20 = vmax.f32 %v965_v2, %v966_v14  ;;  %v978_v21 = vrot.slane %v977_v60, 4 }
  0x66   : > { %v3758_v22 = vmax.f32 %v946_v6, %v947_v18  ;;  %v972_v23 = vmax.f32 %v970_v16, %v971_v58  ;;  %v984_v62 = vsel %vm353_vm1, %v315_v37, -inf  ;;  %v991_v24 = vsel %vm353_vm1, %v316_v3, -inf }
  0x67   : > { %v3763_v26 = vmax.f32 %v953_v39, %v954_v61  ;;  %v961_v29 = vrot.slane %v960_v15, 1  ;;  %v968_v10 = vrot.slane %v967_v20, 1  ;;  %v979_v30 = vmax.f32 %v977_v60, %v978_v21 }
  0x68   : > { %v973_v32 = vrot.slane %v972_v23, 2  ;;  %v985_v11 = vrot.slane %v984_v62, 4  ;;  %v992_v33 = vrot.slane %v991_v24, 4  ;;  %v998_v34 = vsel %vm353_vm1, %v317_v19, -inf }
  0x69   : > { %v3767_v12 = vmax.f32 %v960_v15, %v961_v29  ;;  %v3769_v13 = vmax.f32 %v967_v20, %v968_v10  ;;  %v980_v36 = vrot.slane %v979_v30, 2  ;;  %v999_v40 = vrot.slane %v998_v34, 4 }
  0x6a   : > { %v974_v42 = vmax.f32 %v972_v23, %v973_v32  ;;  %v986_v43 = vmax.f32 %v984_v62, %v985_v11  ;;  %v993_v44 = vmax.f32 %v991_v24, %v992_v33  ;;  %v1005_v45 = vsel %vm353_vm1, %v318_v25, -inf }
  0x6b   : > { %v981_v46 = vmax.f32 %v979_v30, %v980_v36  ;;  %v1000_v47 = vmax.f32 %v998_v34, %v999_v40  ;;  %v1006_v48 = vrot.slane %v1005_v45, 4  ;;  %v1012_v49 = vsel %vm353_vm1, %v319_v31, -inf  ;;  %v225_v31 = vld [vmem:[%s3510_s27] sm:$0x3]  ;;  %v226_v34 = vld [vmem:[%s3510_s27 + $0x2] sm:$0x3] }
  0x6c   : > { %v975_v50 = vrot.slane %v974_v42, 1  ;;  %v987_v27 = vrot.slane %v986_v43, 2  ;;  %v994_v51 = vrot.slane %v993_v44, 2  ;;  %v1013_v63 = vrot.slane %v1012_v49, 4 }
  0x6d   : > { %v982_v52 = vrot.slane %v981_v46, 1  ;;  %v1001_v53 = vrot.slane %v1000_v47, 2  ;;  %v1007_v54 = vmax.f32 %v1005_v45, %v1006_v48  ;;  %v1019_v55 = vsel %vm353_vm1, %v320_v41, -inf }
  0x6e   : > { %v976_v56 = vmax.f32 %v974_v42, %v975_v50  ;;  %v988_v57 = vmax.f32 %v986_v43, %v987_v27  ;;  %v995_v59 = vmax.f32 %v993_v44, %v994_v51  ;;  %v1014_v0 = vmax.f32 %v1012_v49, %v1013_v63  ;;  %v227_v42 = vld [vmem:[%s3510_s27 + $0x4] sm:$0x3]  ;;  %v228_v49 = vld [vmem:[%s3510_s27 + $0x6] sm:$0x3] }
  0x6f   : > { %v983_v1 = vmax.f32 %v981_v46, %v982_v52  ;;  %v1002_v2 = vmax.f32 %v1000_v47, %v1001_v53  ;;  %v1008_v37 = vrot.slane %v1007_v54, 2  ;;  %v1020_v3 = vrot.slane %v1019_v55, 4  ;;  %v230_v53 = vld [vmem:[%s3510_s27 + $0xa] sm:$0x3] }
  0x70   : > { %v989_v38 = vrot.slane %v988_v57, 1  ;;  %v996_v6 = vrot.slane %v995_v59, 1  ;;  %v1015_v7 = vrot.slane %v1014_v0, 2  ;;  %v1371_v8 = vsel %vm1250_vm2, %v3743_v28, -inf }
  0x71   : > { %v1003_v39 = vrot.slane %v1002_v2, 1  ;;  %v1009_v9 = vmax.f32 %v1007_v54, %v1008_v37  ;;  %v1021_v14 = vmax.f32 %v1019_v55, %v1020_v3  ;;  %v1372_v16 = vsel %vm1250_vm2, %v976_v56, -inf }
  0x72   : > { %v990_v18 = vmax.f32 %v988_v57, %v989_v38  ;;  %v997_v58 = vmax.f32 %v995_v59, %v996_v6  ;;  %v1016_v60 = vmax.f32 %v1014_v0, %v1015_v7  ;;  %v1373_v19 = vmax.f32 %v1371_v8, %v1372_v16  ;;  %v231_v38 = vld [vmem:[%s3510_s27 + $0xc] sm:$0x3] }
  0x73   : > { %v1004_v61 = vmax.f32 %v1002_v2, %v1003_v39  ;;  %v1010_v15 = vrot.slane %v1009_v9, 1  ;;  %v1022_v20 = vrot.slane %v1021_v14, 2  ;;  %v1374_v21 = vsel %vm1250_vm2, %v3747_v4, -inf }
  0x74   : > { %v1017_v23 = vrot.slane %v1016_v60, 1  ;;  %v1375_v28 = vsel %vm1250_vm2, %v983_v1, -inf  ;;  %v1377_v62 = vsel %vm1250_vm2, %v3749_v5, -inf  ;;  %v1378_v24 = vsel %vm1250_vm2, %v990_v18, -inf }
  0x75   : > { %v1011_v25 = vmax.f32 %v1009_v9, %v1010_v15  ;;  %v1023_v29 = vmax.f32 %v1021_v14, %v1022_v20  ;;  %v1376_v10 = vmax.f32 %v1374_v21, %v1375_v28  ;;  %v1379_v30 = vmax.f32 %v1377_v62, %v1378_v24 }
  0x76   : > { %v1018_v32 = vmax.f32 %v1016_v60, %v1017_v23  ;;  %v1380_v11 = vsel %vm1250_vm2, %v3754_v17, -inf  ;;  %v1381_v4 = vsel %vm1250_vm2, %v997_v58, -inf  ;;  %v1383_v33 = vsel %vm1250_vm2, %v3758_v22, -inf  ;;  %v232_v58 = vld [vmem:[%s3510_s27 + $0xe] sm:$0x3] }
  0x77   : > { %v1024_v5 = vrot.slane %v1023_v29, 1  ;;  %v1382_v36 = vmax.f32 %v1380_v11, %v1381_v4  ;;  %v1384_v40 = vsel %vm1250_vm2, %v1004_v61, -inf  ;;  %v1386_v41 = vsel %vm1250_vm2, %v3763_v26, -inf  ;;  %v229_v26 = vld [vmem:[%s3510_s27 + $0x8] sm:$0x3] }
  0x78   : > { %v1385_v43 = vmax.f32 %v1383_v33, %v1384_v40  ;;  %v1387_v17 = vsel %vm1250_vm2, %v1011_v25, -inf  ;;  %v1389_v44 = vsel %vm1250_vm2, %v3767_v12, -inf  ;;  %v1390_v45 = vsel %vm1250_vm2, %v1018_v32, -inf  ;;  %v234_v11 = vld [vmem:[%s3510_s27 + $0x12] sm:$0x3] }
  0x79   : > { %v1025_v22 = vmax.f32 %v1023_v29, %v1024_v5  ;;  %v1388_v46 = vmax.f32 %v1386_v41, %v1387_v17  ;;  %v1391_v47 = vmax.f32 %v1389_v44, %v1390_v45  ;;  %v1392_v48 = vsel %vm1250_vm2, %v3769_v13, -inf  ;;  %v233_v29 = vld [vmem:[%s3510_s27 + $0x10] sm:$0x3]  ;;  %v236_v17 = vld [vmem:[%s3510_s27 + $0x16] sm:$0x3] }
  0x7a   : > { %v1580_v50 = vsel %vm1538_vm3, %v1376_v10, %v1373_v19  ;;  %v354_v27 = vsel %vm353_vm1, %v225_v31, -inf  ;;  %v361_v51 = vsel %vm353_vm1, %v226_v34, -inf  ;;  %v368_v63 = vsel %vm353_vm1, %v227_v42, -inf }
  0x7b   : > { %v1393_v12 = vsel %vm1250_vm2, %v1025_v22, -inf  ;;  %v1581_v52 = vsel %vm1540_vm4, %v1379_v30, %v1580_v50  ;;  %v355_v54 = vrot.slane %v354_v27, 4  ;;  %v362_v55 = vrot.slane %v361_v51, 4 }
  0x7c   : > { %v1394_v56 = vmax.f32 %v1392_v48, %v1393_v12  ;;  %v1582_v13 = vsel %vm1542_vm5, %v1382_v36, %v1581_v52  ;;  %v369_v57 = vrot.slane %v368_v63, 4  ;;  %v375_v59 = vsel %vm353_vm1, %v228_v49, -inf }
  0x7d   : > { %v1583_v0 = vsel %vm1544_vm6, %v1385_v43, %v1582_v13  ;;  %v356_v1 = vmax.f32 %v354_v27, %v355_v54  ;;  %v363_v2 = vmax.f32 %v361_v51, %v362_v55  ;;  %v376_v37 = vrot.slane %v375_v59, 4  ;;  %v235_v43 = vld [vmem:[%s3510_s27 + $0x14] sm:$0x3]  ;;  %v238_v54 = vld [vmem:[%s3510_s27 + $0x1a] sm:$0x3] }
  0x7e   : > { %v1584_v3 = vsel %vm1546_vm7, %v1388_v46, %v1583_v0  ;;  %v370_v6 = vmax.f32 %v368_v63, %v369_v57  ;;  %v382_v7 = vsel %vm353_vm1, %v229_v26, -inf  ;;  %v389_v8 = vsel %vm353_vm1, %v230_v53, -inf }
  0x7f   : > { %v1585_v39 = vsel %vm1548_vm8, %v1391_v47, %v1584_v3  ;;  %v357_v9 = vrot.slane %v356_v1, 2  ;;  %v364_v14 = vrot.slane %v363_v2, 2  ;;  %v377_v16 = vmax.f32 %v375_v59, %v376_v37  ;;  %v237_v47 = vld [vmem:[%s3510_s27 + $0x18] sm:$0x3]  ;;  %v239_v37 = vld [vmem:[%s3510_s27 + $0x1c] sm:$0x3] }
  0x80   : > { %v1586_v18 = vsel %vm1550_vm9, %v1394_v56, %v1585_v39  ;;  %v371_v60 = vrot.slane %v370_v6, 2  ;;  %v383_v19 = vrot.slane %v382_v7, 4  ;;  %v390_v61 = vrot.slane %v389_v8, 4 }
  0x81   : > { %1615 = vst.msk [vmem:[#allocation2 + $0x98] sm:$0xff] %vm1250_vm2, %v1586_v18  ;;  %v358_v15 = vmax.f32 %v356_v1, %v357_v9  ;;  %v365_v20 = vmax.f32 %v363_v2, %v364_v14  ;;  %v378_v21 = vrot.slane %v377_v16, 2  ;;  %v396_v23 = vsel %vm353_vm1, %v231_v38, -inf }
  0x82   : > { %v372_v28 = vmax.f32 %v370_v6, %v371_v60  ;;  %v384_v62 = vmax.f32 %v382_v7, %v383_v19  ;;  %v391_v24 = vmax.f32 %v389_v8, %v390_v61  ;;  %v397_v25 = vrot.slane %v396_v23, 4  ;;  %v240_v19 = vld [vmem:[%s3510_s27 + $0x1e] sm:$0x3] }
  0x83   : > { %v359_v10 = vrot.slane %v358_v15, 1  ;;  %v366_v30 = vrot.slane %v365_v20, 1  ;;  %v379_v31 = vmax.f32 %v377_v16, %v378_v21  ;;  %v403_v32 = vsel %vm353_vm1, %v232_v58, -inf }
  0x84   : > { %v373_v4 = vrot.slane %v372_v28, 1  ;;  %v385_v33 = vrot.slane %v384_v62, 2  ;;  %v392_v34 = vrot.slane %v391_v24, 2  ;;  %v398_v5 = vmax.f32 %v396_v23, %v397_v25 }
  0x85   : > { %v3825_v36 = vmax.f32 %v358_v15, %v359_v10  ;;  %v3827_v40 = vmax.f32 %v365_v20, %v366_v30  ;;  %v380_v41 = vrot.slane %v379_v31, 1  ;;  %v404_v42 = vrot.slane %v403_v32, 4 }
  0x86   : > { %v3831_v44 = vmax.f32 %v372_v28, %v373_v4  ;;  %v386_v45 = vmax.f32 %v384_v62, %v385_v33  ;;  %v393_v22 = vmax.f32 %v391_v24, %v392_v34  ;;  %v399_v46 = vrot.slane %v398_v5, 2 }
  0x87   : > { %v3834_v48 = vmax.f32 %v379_v31, %v380_v41  ;;  %v405_v49 = vmax.f32 %v403_v32, %v404_v42  ;;  %v410_v50 = vsel %vm353_vm1, %v233_v29, -inf  ;;  %v417_v26 = vsel %vm353_vm1, %v234_v11, -inf }
  0x88   : > { %v1633_v27 = vld [vmem:[#allocation2 + $0x98] sm:$0xff]  ;;  %v387_v63 = vrot.slane %v386_v45, 1  ;;  %v394_v12 = vrot.slane %v393_v22, 1  ;;  %v400_v52 = vmax.f32 %v398_v5, %v399_v46  ;;  %v411_v53 = vrot.slane %v410_v50, 4 }
  0x89   : > { %v1624_v51 = vld [vmem:[#allocation2 + $0x97] sm:$0xff]  ;;  %3269 = vmatmul.msk.f32.gmra.mxu2 %vm1250_vm2, %v1633_v27  ;;  %v406_v55 = vrot.slane %v405_v49, 2  ;;  %v418_v56 = vrot.slane %v417_v26, 4  ;;  %v424_v13 = vsel %vm353_vm1, %v235_v43, -inf  ;;  %v431_v57 = vsel %vm353_vm1, %v236_v17, -inf }
  0x8a   : > { %3278 = vmatmul.msk.f32.gmra.mxu3 %vm1250_vm2, %v1624_v51  ;;  %v3843_v59 = vmax.f32 %v386_v45, %v387_v63  ;;  %v3845_v0 = vmax.f32 %v393_v22, %v394_v12  ;;  %v401_v1 = vrot.slane %v400_v52, 1  ;;  %v412_v2 = vmax.f32 %v410_v50, %v411_v53 }
  0x8b   : > { %v407_v3 = vmax.f32 %v405_v49, %v406_v55  ;;  %v419_v38 = vmax.f32 %v417_v26, %v418_v56  ;;  %v425_v6 = vrot.slane %v424_v13, 4  ;;  %v432_v7 = vrot.slane %v431_v57, 4 }
  0x8c   : > { %v3848_v8 = vmax.f32 %v400_v52, %v401_v1  ;;  %v413_v39 = vrot.slane %v412_v2, 2  ;;  %v438_v9 = vsel %vm353_vm1, %v237_v47, -inf  ;;  %v445_v14 = vsel %vm353_vm1, %v238_v54, -inf }
  0x8d   : > { %v408_v16 = vrot.slane %v407_v3, 1  ;;  %v420_v18 = vrot.slane %v419_v38, 2  ;;  %v426_v58 = vmax.f32 %v424_v13, %v425_v6  ;;  %v433_v60 = vmax.f32 %v431_v57, %v432_v7 }
  0x8e   : > { %v414_v61 = vmax.f32 %v412_v2, %v413_v39  ;;  %v439_v15 = vrot.slane %v438_v9, 4  ;;  %v446_v20 = vrot.slane %v445_v14, 4  ;;  %v452_v21 = vsel %vm353_vm1, %v239_v37, -inf }
  0x8f   : > { %v409_v23 = vmax.f32 %v407_v3, %v408_v16  ;;  %v421_v28 = vmax.f32 %v419_v38, %v420_v18  ;;  %v427_v62 = vrot.slane %v426_v58, 2  ;;  %v434_v24 = vrot.slane %v433_v60, 2 }
  0x90   : > { %v415_v25 = vrot.slane %v414_v61, 1  ;;  %v440_v29 = vmax.f32 %v438_v9, %v439_v15  ;;  %v447_v10 = vmax.f32 %v445_v14, %v446_v20  ;;  %v453_v30 = vrot.slane %v452_v21, 4  ;;  %v322_v14 = vld [vmem:[%s3510_s27 + $0xc2] sm:$0x3] }
  0x91   : > { %v422_v31 = vrot.slane %v421_v28, 1  ;;  %v428_v32 = vmax.f32 %v426_v58, %v427_v62  ;;  %v435_v11 = vmax.f32 %v433_v60, %v434_v24  ;;  %v459_v4 = vsel %vm353_vm1, %v240_v19, -inf  ;;  %v323_v60 = vld [vmem:[%s3510_s27 + $0xc4] sm:$0x3]  ;;  %v324_v24 = vld [vmem:[%s3510_s27 + $0xc6] sm:$0x3] }
  0x92   : > { %v416_v33 = vmax.f32 %v414_v61, %v415_v25  ;;  %v441_v34 = vrot.slane %v440_v29, 2  ;;  %v448_v5 = vrot.slane %v447_v10, 2  ;;  %v454_v41 = vmax.f32 %v452_v21, %v453_v30  ;;  %v325_v25 = vld [vmem:[%s3510_s27 + $0xc8] sm:$0x3] }
  0x93   : > { %v423_v42 = vmax.f32 %v421_v28, %v422_v31  ;;  %v429_v43 = vrot.slane %v428_v32, 1  ;;  %v436_v17 = vrot.slane %v435_v11, 1  ;;  %v460_v45 = vrot.slane %v459_v4, 4 }
  0x94   : > { %v442_v22 = vmax.f32 %v440_v29, %v441_v34  ;;  %v449_v46 = vmax.f32 %v447_v10, %v448_v5  ;;  %v455_v47 = vrot.slane %v454_v41, 2  ;;  %v1251_v49 = vsel %vm1250_vm2, %v3825_v36, -inf }
  0x95   : > { %v430_v50 = vmax.f32 %v428_v32, %v429_v43  ;;  %v437_v26 = vmax.f32 %v435_v11, %v436_v17  ;;  %v461_v27 = vmax.f32 %v459_v4, %v460_v45  ;;  %v1252_v51 = vsel %vm1250_vm2, %v416_v33, -inf  ;;  %v326_v32 = vld [vmem:[%s3510_s27 + $0xca] sm:$0x3] }
  0x96   : > { %v443_v63 = vrot.slane %v442_v22, 1  ;;  %v450_v12 = vrot.slane %v449_v46, 1  ;;  %v456_v52 = vmax.f32 %v454_v41, %v455_v47  ;;  %v1253_v53 = vmax.f32 %v1251_v49, %v1252_v51 }
  0x97   : > { %v462_v54 = vrot.slane %v461_v27, 2  ;;  %v1254_v55 = vsel %vm1250_vm2, %v3827_v40, -inf  ;;  %v1255_v56 = vsel %vm1250_vm2, %v423_v42, -inf  ;;  %v1257_v36 = vsel %vm1250_vm2, %v3831_v44, -inf  ;;  %v321_v44 = vld [vmem:[%s3510_s27 + $0xc0] sm:$0x3] }
  0x98   : > { %v444_v13 = vmax.f32 %v442_v22, %v443_v63  ;;  %v451_v57 = vmax.f32 %v449_v46, %v450_v12  ;;  %v457_v1 = vrot.slane %v456_v52, 1  ;;  %v1256_v2 = vmax.f32 %v1254_v55, %v1255_v56  ;;  %v327_v42 = vld [vmem:[%s3510_s27 + $0xcc] sm:$0x3] }
  0x99   : > { %v463_v37 = vmax.f32 %v461_v27, %v462_v54  ;;  %v1258_v3 = vsel %vm1250_vm2, %v430_v50, -inf  ;;  %v1260_v38 = vsel %vm1250_vm2, %v3834_v48, -inf  ;;  %v1261_v6 = vsel %vm1250_vm2, %v437_v26, -inf  ;;  %v328_v26 = vld [vmem:[%s3510_s27 + $0xce] sm:$0x3] }
  0x9a   : > { %v458_v40 = vmax.f32 %v456_v52, %v457_v1  ;;  %v1259_v7 = vmax.f32 %v1257_v36, %v1258_v3  ;;  %v1262_v39 = vmax.f32 %v1260_v38, %v1261_v6  ;;  %v1263_v9 = vsel %vm1250_vm2, %v3843_v59, -inf  ;;  %v329_v3 = vld [vmem:[%s3510_s27 + $0xd0] sm:$0x3] }
  0x9b   : > { %v464_v16 = vrot.slane %v463_v37, 1  ;;  %v1264_v18 = vsel %vm1250_vm2, %v444_v13, -inf  ;;  %v1266_v58 = vsel %vm1250_vm2, %v3845_v0, -inf  ;;  %v1267_v48 = vsel %vm1250_vm2, %v451_v57, -inf }
  0x9c   : > { %v1265_v19 = vmax.f32 %v1263_v9, %v1264_v18  ;;  %v1268_v61 = vmax.f32 %v1266_v58, %v1267_v48  ;;  %v1269_v15 = vsel %vm1250_vm2, %v3848_v8, -inf  ;;  %v1270_v59 = vsel %vm1250_vm2, %v458_v40, -inf }
  0x9d   : > { %v465_v20 = vmax.f32 %v463_v37, %v464_v16  ;;  %v1271_v21 = vmax.f32 %v1269_v15, %v1270_v59  ;;  %v1272_v28 = vsel %vm1250_vm2, %v409_v23, -inf  ;;  %v1539_v62 = vsel %vm1538_vm3, %v1256_v2, %v1253_v53 }
  0x9e   : > { %v1541_v0 = vsel %vm1540_vm4, %v1259_v7, %v1539_v62  ;;  %v1026_v29 = vsel %vm353_vm1, %v321_v44, -inf  ;;  %v1033_v10 = vsel %vm353_vm1, %v322_v14, -inf  ;;  %v1040_v30 = vsel %vm353_vm1, %v323_v60, -inf }
  0x9f   : > { %v1273_v8 = vsel %vm1250_vm2, %v465_v20, -inf  ;;  %v1543_v31 = vsel %vm1542_vm5, %v1262_v39, %v1541_v0  ;;  %v1027_v11 = vrot.slane %v1026_v29, 4  ;;  %v1034_v23 = vrot.slane %v1033_v10, 4  ;;  %v330_v39 = vld [vmem:[%s3510_s27 + $0xd2] sm:$0x3] }
  0xa0   : > { %v1274_v4 = vmax.f32 %v1272_v28, %v1273_v8  ;;  %v1545_v33 = vsel %vm1544_vm6, %v1265_v19, %v1543_v31  ;;  %v1041_v34 = vrot.slane %v1040_v30, 4  ;;  %v1047_v5 = vsel %vm353_vm1, %v324_v24, -inf  ;;  %v331_v19 = vld [vmem:[%s3510_s27 + $0xd4] sm:$0x3] }
  0xa1   : > { %v1547_v41 = vsel %vm1546_vm7, %v1268_v61, %v1545_v33  ;;  %v1028_v43 = vmax.f32 %v1026_v29, %v1027_v11  ;;  %v1035_v17 = vmax.f32 %v1033_v10, %v1034_v23  ;;  %v1048_v45 = vrot.slane %v1047_v5, 4  ;;  %v332_v61 = vld [vmem:[%s3510_s27 + $0xd6] sm:$0x3]  ;;  %v333_v10 = vld [vmem:[%s3510_s27 + $0xd8] sm:$0x3] }
  0xa2   : > { %v1549_v22 = vsel %vm1548_vm8, %v1271_v21, %v1547_v41  ;;  %v1042_v46 = vmax.f32 %v1040_v30, %v1041_v34  ;;  %v1054_v47 = vsel %vm353_vm1, %v325_v25, -inf  ;;  %v1061_v49 = vsel %vm353_vm1, %v326_v32, -inf  ;;  %v334_v11 = vld [vmem:[%s3510_s27 + $0xda] sm:$0x3] }
  0xa3   : > { %v1551_v50 = vsel %vm1550_vm9, %v1274_v4, %v1549_v22  ;;  %v1029_v27 = vrot.slane %v1028_v43, 2  ;;  %v1036_v51 = vrot.slane %v1035_v17, 2  ;;  %v1049_v63 = vmax.f32 %v1047_v5, %v1048_v45 }
  0xa4   : > { %1610 = vst.msk [vmem:[#allocation2 + $0x20] sm:$0xff] %vm1250_vm2, %v1551_v50  ;;  %v1043_v12 = vrot.slane %v1042_v46, 2  ;;  %v1055_v52 = vrot.slane %v1054_v47, 4  ;;  %v1062_v53 = vrot.slane %v1061_v49, 4  ;;  %v1068_v54 = vsel %vm353_vm1, %v327_v42, -inf }
  0xa5   : > { %v1030_v55 = vmax.f32 %v1028_v43, %v1029_v27  ;;  %v1037_v56 = vmax.f32 %v1035_v17, %v1036_v51  ;;  %v1050_v36 = vrot.slane %v1049_v63, 2  ;;  %v1069_v13 = vrot.slane %v1068_v54, 4  ;;  %v335_v17 = vld [vmem:[%s3510_s27 + $0xdc] sm:$0x3]  ;;  %v336_v51 = vld [vmem:[%s3510_s27 + $0xde] sm:$0x3] }
  0xa6   : > { %v1044_v57 = vmax.f32 %v1042_v46, %v1043_v12  ;;  %v1056_v1 = vmax.f32 %v1054_v47, %v1055_v52  ;;  %v1063_v2 = vmax.f32 %v1061_v49, %v1062_v53  ;;  %v1075_v37 = vsel %vm353_vm1, %v328_v26, -inf }
  0xa7   : > { %v1031_v38 = vrot.slane %v1030_v55, 1  ;;  %v1038_v6 = vrot.slane %v1037_v56, 1  ;;  %v1051_v40 = vmax.f32 %v1049_v63, %v1050_v36  ;;  %v1070_v7 = vmax.f32 %v1068_v54, %v1069_v13 }
  0xa8   : > { %v1045_v9 = vrot.slane %v1044_v57, 1  ;;  %v1057_v44 = vrot.slane %v1056_v1, 2  ;;  %v1064_v14 = vrot.slane %v1063_v2, 2  ;;  %v1076_v16 = vrot.slane %v1075_v37, 4 }
  0xa9   : > { %v3904_v18 = vmax.f32 %v1030_v55, %v1031_v38  ;;  %v3906_v58 = vmax.f32 %v1037_v56, %v1038_v6  ;;  %v1052_v48 = vrot.slane %v1051_v40, 1  ;;  %v1071_v60 = vrot.slane %v1070_v7, 2 }
  0xaa   : > { %v3910_v15 = vmax.f32 %v1044_v57, %v1045_v9  ;;  %v1058_v59 = vmax.f32 %v1056_v1, %v1057_v44  ;;  %v1065_v20 = vmax.f32 %v1063_v2, %v1064_v14  ;;  %v1077_v21 = vmax.f32 %v1075_v37, %v1076_v16 }
  0xab   : > { %v1628_v28 = vld [vmem:[#allocation2 + $0x20] sm:$0xff]  ;;  %v3914_v24 = vmax.f32 %v1051_v40, %v1052_v48  ;;  %v1072_v0 = vmax.f32 %v1070_v7, %v1071_v60  ;;  %v1082_v25 = vsel %vm353_vm1, %v329_v3, -inf  ;;  %v1089_v29 = vsel %vm353_vm1, %v330_v39, -inf }
  0xac   : > { %v3912_v62 = vld [vmem:[#allocation2 + $0x1f] sm:$0xff]  ;;  %3264 = vmatmul.msk.f32.gmra.mxu0 %vm1250_vm2, %v1628_v28  ;;  %v1059_v30 = vrot.slane %v1058_v59, 1  ;;  %v1066_v8 = vrot.slane %v1065_v20, 1  ;;  %v1078_v31 = vrot.slane %v1077_v21, 2  ;;  %v1083_v32 = vrot.slane %v1082_v25, 4 }
  0xad   : > { %3273 = vmatmul.msk.f32.gmra.mxu1 %vm1250_vm2, %v3912_v62  ;;  %v1073_v23 = vrot.slane %v1072_v0, 1  ;;  %v1090_v4 = vrot.slane %v1089_v29, 4  ;;  %v1096_v33 = vsel %vm353_vm1, %v331_v19, -inf  ;;  %v1103_v34 = vsel %vm353_vm1, %v332_v61, -inf }
  0xae   : > { %v3925_v5 = vmax.f32 %v1058_v59, %v1059_v30  ;;  %v3927_v41 = vmax.f32 %v1065_v20, %v1066_v8  ;;  %v1079_v42 = vmax.f32 %v1077_v21, %v1078_v31  ;;  %v1084_v43 = vmax.f32 %v1082_v25, %v1083_v32 }
  0xaf   : > { %v3930_v45 = vmax.f32 %v1072_v0, %v1073_v23  ;;  %v1091_v22 = vmax.f32 %v1089_v29, %v1090_v4  ;;  %v1097_v46 = vrot.slane %v1096_v33, 4  ;;  %v1104_v47 = vrot.slane %v1103_v34, 4 }
  0xb0   : > { %v1080_v49 = vrot.slane %v1079_v42, 1  ;;  %v1085_v50 = vrot.slane %v1084_v43, 2  ;;  %v1110_v26 = vsel %vm353_vm1, %v333_v10, -inf  ;;  %v1117_v27 = vsel %vm353_vm1, %v334_v11, -inf }
  0xb1   : > { %v1092_v63 = vrot.slane %v1091_v22, 2  ;;  %v1098_v12 = vmax.f32 %v1096_v33, %v1097_v46  ;;  %v1105_v52 = vmax.f32 %v1103_v34, %v1104_v47  ;;  %v1111_v53 = vrot.slane %v1110_v26, 4 }
  0xb2   : > { %v3935_v54 = vmax.f32 %v1079_v42, %v1080_v49  ;;  %v1086_v55 = vmax.f32 %v1084_v43, %v1085_v50  ;;  %v1118_v56 = vrot.slane %v1117_v27, 4  ;;  %v1124_v36 = vsel %vm353_vm1, %v335_v17, -inf }
  0xb3   : > { %v1093_v13 = vmax.f32 %v1091_v22, %v1092_v63  ;;  %v1099_v57 = vrot.slane %v1098_v12, 2  ;;  %v1106_v1 = vrot.slane %v1105_v52, 2  ;;  %v1112_v2 = vmax.f32 %v1110_v26, %v1111_v53 }
  0xb4   : > { %v1087_v37 = vrot.slane %v1086_v55, 1  ;;  %v1119_v3 = vmax.f32 %v1117_v27, %v1118_v56  ;;  %v1125_v38 = vrot.slane %v1124_v36, 4  ;;  %v1131_v6 = vsel %vm353_vm1, %v336_v51, -inf  ;;  %v241_v27 = vld [vmem:[%s3510_s27 + $0x20] sm:$0x3] }
  0xb5   : > { %v1094_v40 = vrot.slane %v1093_v13, 1  ;;  %v1100_v7 = vmax.f32 %v1098_v12, %v1099_v57  ;;  %v1107_v39 = vmax.f32 %v1105_v52, %v1106_v1  ;;  %v1113_v9 = vrot.slane %v1112_v2, 2  ;;  %v242_v52 = vld [vmem:[%s3510_s27 + $0x22] sm:$0x3]  ;;  %v244_v1 = vld [vmem:[%s3510_s27 + $0x26] sm:$0x3] }
  0xb6   : > { %v1088_v44 = vmax.f32 %v1086_v55, %v1087_v37  ;;  %v1120_v14 = vrot.slane %v1119_v3, 2  ;;  %v1126_v16 = vmax.f32 %v1124_v36, %v1125_v38  ;;  %v1132_v48 = vrot.slane %v1131_v6, 4  ;;  %v243_v36 = vld [vmem:[%s3510_s27 + $0x24] sm:$0x3] }
  0xb7   : > { %v1095_v60 = vmax.f32 %v1093_v13, %v1094_v40  ;;  %v1101_v19 = vrot.slane %v1100_v7, 1  ;;  %v1108_v61 = vrot.slane %v1107_v39, 1  ;;  %v1114_v59 = vmax.f32 %v1112_v2, %v1113_v9 }
  0xb8   : > { %v1121_v20 = vmax.f32 %v1119_v3, %v1120_v14  ;;  %v1127_v21 = vrot.slane %v1126_v16, 2  ;;  %v1133_v28 = vmax.f32 %v1131_v6, %v1132_v48  ;;  %v1395_v0 = vsel %vm1250_vm2, %v3904_v18, -inf  ;;  %v245_v3 = vld [vmem:[%s3510_s27 + $0x28] sm:$0x3] }
  0xb9   : > { %v1102_v25 = vmax.f32 %v1100_v7, %v1101_v19  ;;  %v1109_v29 = vmax.f32 %v1107_v39, %v1108_v61  ;;  %v1115_v10 = vrot.slane %v1114_v59, 1  ;;  %v1396_v30 = vsel %vm1250_vm2, %v1088_v44, -inf  ;;  %v246_v44 = vld [vmem:[%s3510_s27 + $0x2a] sm:$0x3] }
  0xba   : > { %v1122_v8 = vrot.slane %v1121_v20, 1  ;;  %v1128_v31 = vmax.f32 %v1126_v16, %v1127_v21  ;;  %v1134_v32 = vrot.slane %v1133_v28, 2  ;;  %v1397_v11 = vmax.f32 %v1395_v0, %v1396_v30  ;;  %v247_v21 = vld [vmem:[%s3510_s27 + $0x2c] sm:$0x3] }
  0xbb   : > { %v1116_v23 = vmax.f32 %v1114_v59, %v1115_v10  ;;  %v1398_v4 = vsel %vm1250_vm2, %v3906_v58, -inf  ;;  %v1399_v33 = vsel %vm1250_vm2, %v1095_v60, -inf  ;;  %v1401_v34 = vsel %vm1250_vm2, %v3910_v15, -inf }
  0xbc   : > { %v1123_v18 = vmax.f32 %v1121_v20, %v1122_v8  ;;  %v1129_v42 = vrot.slane %v1128_v31, 1  ;;  %v1135_v43 = vmax.f32 %v1133_v28, %v1134_v32  ;;  %v1400_v17 = vmax.f32 %v1398_v4, %v1399_v33  ;;  %v248_v28 = vld [vmem:[%s3510_s27 + $0x2e] sm:$0x3] }
  0xbd   : > { %v1402_v22 = vsel %vm1250_vm2, %v1102_v25, -inf  ;;  %v1404_v46 = vsel %vm1250_vm2, %v3914_v24, -inf  ;;  %v1405_v47 = vsel %vm1250_vm2, %v1109_v29, -inf  ;;  %v1407_v58 = vsel %vm1250_vm2, %v3925_v5, -inf }
  0xbe   : > { %v1130_v49 = vmax.f32 %v1128_v31, %v1129_v42  ;;  %v1136_v50 = vrot.slane %v1135_v43, 1  ;;  %v1403_v26 = vmax.f32 %v1401_v34, %v1402_v22  ;;  %v1406_v15 = vmax.f32 %v1404_v46, %v1405_v47  ;;  %v249_v47 = vld [vmem:[%s3510_s27 + $0x30] sm:$0x3] }
  0xbf   : > { %v1408_v51 = vsel %vm1250_vm2, %v1116_v23, -inf  ;;  %v1410_v63 = vsel %vm1250_vm2, %v3927_v41, -inf  ;;  %v1411_v24 = vsel %vm1250_vm2, %v1123_v18, -inf  ;;  %v1413_v12 = vsel %vm1250_vm2, %v3930_v45, -inf }
  0xc0   : > { %v1137_v53 = vmax.f32 %v1135_v43, %v1136_v50  ;;  %v1409_v5 = vmax.f32 %v1407_v58, %v1408_v51  ;;  %v1412_v55 = vmax.f32 %v1410_v63, %v1411_v24  ;;  %v1414_v56 = vsel %vm1250_vm2, %v1130_v49, -inf  ;;  %v250_v24 = vld [vmem:[%s3510_s27 + $0x32] sm:$0x3] }
  0xc1   : > { %v1415_v13 = vmax.f32 %v1413_v12, %v1414_v56  ;;  %v1416_v57 = vsel %vm1250_vm2, %v3935_v54, -inf  ;;  %v1587_v41 = vsel %vm1538_vm3, %v1400_v17, %v1397_v11  ;;  %v466_v2 = vsel %vm353_vm1, %v241_v27, -inf  ;;  %v251_v12 = vld [vmem:[%s3510_s27 + $0x34] sm:$0x3]  ;;  %v252_v56 = vld [vmem:[%s3510_s27 + $0x36] sm:$0x3] }
  0xc2   : > { %v1417_v37 = vsel %vm1250_vm2, %v1137_v53, -inf  ;;  %v1588_v45 = vsel %vm1540_vm4, %v1403_v26, %v1587_v41  ;;  %v467_v38 = vrot.slane %v466_v2, 4  ;;  %v473_v6 = vsel %vm353_vm1, %v242_v52, -inf }
  0xc3   : > { %v1418_v40 = vmax.f32 %v1416_v57, %v1417_v37  ;;  %v1589_v7 = vsel %vm1542_vm5, %v1406_v15, %v1588_v45  ;;  %v474_v39 = vrot.slane %v473_v6, 4  ;;  %v480_v54 = vsel %vm353_vm1, %v243_v36, -inf  ;;  %v253_v36 = vld [vmem:[%s3510_s27 + $0x38] sm:$0x3] }
  0xc4   : > { %v1590_v9 = vsel %vm1544_vm6, %v1409_v5, %v1589_v7  ;;  %v468_v14 = vmax.f32 %v466_v2, %v467_v38  ;;  %v481_v16 = vrot.slane %v480_v54, 4  ;;  %v487_v48 = vsel %vm353_vm1, %v244_v1, -inf }
  0xc5   : > { %v1591_v60 = vsel %vm1546_vm7, %v1412_v55, %v1590_v9  ;;  %v475_v19 = vmax.f32 %v473_v6, %v474_v39  ;;  %v488_v61 = vrot.slane %v487_v48, 4  ;;  %v494_v59 = vsel %vm353_vm1, %v245_v3, -inf  ;;  %v254_v9 = vld [vmem:[%s3510_s27 + $0x3a] sm:$0x3] }
  0xc6   : > { %v1592_v20 = vsel %vm1548_vm8, %v1415_v13, %v1591_v60  ;;  %v469_v0 = vrot.slane %v468_v14, 2  ;;  %v482_v25 = vmax.f32 %v480_v54, %v481_v16  ;;  %v495_v29 = vrot.slane %v494_v59, 4  ;;  %v255_v60 = vld [vmem:[%s3510_s27 + $0x3c] sm:$0x3] }
  0xc7   : > { %v1593_v10 = vsel %vm1550_vm9, %v1418_v40, %v1592_v20  ;;  %v476_v30 = vrot.slane %v475_v19, 2  ;;  %v489_v8 = vmax.f32 %v487_v48, %v488_v61  ;;  %v501_v31 = vsel %vm353_vm1, %v246_v44, -inf }
  0xc8   : > { %1616 = vst.msk [vmem:[#allocation2 + $0xb0] sm:$0xff] %vm1250_vm2, %v1593_v10  ;;  %v470_v32 = vmax.f32 %v468_v14, %v469_v0  ;;  %v483_v11 = vrot.slane %v482_v25, 2  ;;  %v496_v23 = vmax.f32 %v494_v59, %v495_v29  ;;  %v502_v4 = vrot.slane %v501_v31, 4  ;;  %v3320_v29 = vld [vmem:[%s4840_s1 + $0x18] sm:$0xf] }
  0xc9   : > { %v477_v33 = vmax.f32 %v475_v19, %v476_v30  ;;  %v490_v34 = vrot.slane %v489_v8, 2  ;;  %v508_v18 = vsel %vm353_vm1, %v247_v21, -inf  ;;  %v515_v42 = vsel %vm353_vm1, %v248_v28, -inf  ;;  %v256_v10 = vld [vmem:[%s3510_s27 + $0x3e] sm:$0x3]  ;;  %3321 = vmatpush.msk.msra.mxu2 %vm1661_vm0, %v3320_v29 }
  0xca   : > { %v471_v43 = vrot.slane %v470_v32, 1  ;;  %v484_v17 = vmax.f32 %v482_v25, %v483_v11  ;;  %v497_v22 = vrot.slane %v496_v23, 2  ;;  %v503_v46 = vmax.f32 %v501_v31, %v502_v4 }
  0xcb   : > { %v478_v58 = vrot.slane %v477_v33, 1  ;;  %v491_v49 = vmax.f32 %v489_v8, %v490_v34  ;;  %v509_v50 = vrot.slane %v508_v18, 4  ;;  %v516_v26 = vrot.slane %v515_v42, 4 }
  0xcc   : > { %v3988_v15 = vmax.f32 %v470_v32, %v471_v43  ;;  %v485_v27 = vrot.slane %v484_v17, 1  ;;  %v498_v51 = vmax.f32 %v496_v23, %v497_v22  ;;  %v504_v63 = vrot.slane %v503_v46, 2 }
  0xcd   : > { %v3992_v52 = vmax.f32 %v477_v33, %v478_v58  ;;  %v492_v53 = vrot.slane %v491_v49, 1  ;;  %v510_v5 = vmax.f32 %v508_v18, %v509_v50  ;;  %v517_v55 = vmax.f32 %v515_v42, %v516_v26 }
  0xce   : > { %v3996_v13 = vmax.f32 %v484_v17, %v485_v27  ;;  %v499_v57 = vrot.slane %v498_v51, 1  ;;  %v505_v41 = vmax.f32 %v503_v46, %v504_v63  ;;  %v522_v1 = vsel %vm353_vm1, %v249_v47, -inf }
  0xcf   : > { %v1634_v2 = vld [vmem:[#allocation2 + $0xb0] sm:$0xff]  ;;  %v4001_v45 = vmax.f32 %v491_v49, %v492_v53  ;;  %v511_v3 = vrot.slane %v510_v5, 2  ;;  %v518_v38 = vrot.slane %v517_v55, 2  ;;  %v523_v6 = vrot.slane %v522_v1, 4 }
  0xd0   : > { %v3999_v37 = vld [vmem:[#allocation2 + $0xaf] sm:$0xff]  ;;  %3270 = vmatmul.msk.f32.gmra.mxu2 %vm1250_vm2, %v1634_v2  ;;  %v4006_v40 = vmax.f32 %v498_v51, %v499_v57  ;;  %v506_v7 = vrot.slane %v505_v41, 1  ;;  %v529_v39 = vsel %vm353_vm1, %v250_v24, -inf  ;;  %v536_v54 = vsel %vm353_vm1, %v251_v12, -inf }
  0xd1   : > { %3279 = vmatmul.msk.f32.gmra.mxu3 %vm1250_vm2, %v3999_v37  ;;  %v512_v44 = vmax.f32 %v510_v5, %v511_v3  ;;  %v519_v14 = vmax.f32 %v517_v55, %v518_v38  ;;  %v524_v16 = vmax.f32 %v522_v1, %v523_v6  ;;  %v530_v48 = vrot.slane %v529_v39, 4 }
  0xd2   : > { %v4012_v19 = vmax.f32 %v505_v41, %v506_v7  ;;  %v537_v61 = vrot.slane %v536_v54, 4  ;;  %v543_v59 = vsel %vm353_vm1, %v252_v56, -inf  ;;  %v550_v20 = vsel %vm353_vm1, %v253_v36, -inf }
  0xd3   : > { %v513_v21 = vrot.slane %v512_v44, 1  ;;  %v520_v28 = vrot.slane %v519_v14, 1  ;;  %v525_v0 = vrot.slane %v524_v16, 2  ;;  %v531_v25 = vmax.f32 %v529_v39, %v530_v48 }
  0xd4   : > { %v538_v30 = vmax.f32 %v536_v54, %v537_v61  ;;  %v544_v8 = vrot.slane %v543_v59, 4  ;;  %v551_v31 = vrot.slane %v550_v20, 4  ;;  %v557_v32 = vsel %vm353_vm1, %v254_v9, -inf }
  0xd5   : > { %v4022_v11 = vmax.f32 %v512_v44, %v513_v21  ;;  %v4024_v23 = vmax.f32 %v519_v14, %v520_v28  ;;  %v526_v4 = vmax.f32 %v524_v16, %v525_v0  ;;  %v532_v33 = vrot.slane %v531_v25, 2 }
  0xd6   : > { %v539_v34 = vrot.slane %v538_v30, 2  ;;  %v545_v18 = vmax.f32 %v543_v59, %v544_v8  ;;  %v552_v42 = vmax.f32 %v550_v20, %v551_v31  ;;  %v558_v43 = vrot.slane %v557_v32, 4 }
  0xd7   : > { %v527_v17 = vrot.slane %v526_v4, 1  ;;  %v533_v22 = vmax.f32 %v531_v25, %v532_v33  ;;  %v564_v46 = vsel %vm353_vm1, %v255_v60, -inf  ;;  %v571_v47 = vsel %vm353_vm1, %v256_v10, -inf  ;;  %v258_v33 = vld [vmem:[%s3510_s27 + $0x42] sm:$0x3] }
  0xd8   : > { %v540_v58 = vmax.f32 %v538_v30, %v539_v34  ;;  %v546_v49 = vrot.slane %v545_v18, 2  ;;  %v553_v50 = vrot.slane %v552_v42, 2  ;;  %v559_v26 = vmax.f32 %v557_v32, %v558_v43  ;;  %v260_v43 = vld [vmem:[%s3510_s27 + $0x46] sm:$0x3] }
  0xd9   : > { %3292 = vmatmul.msk.f32.vlgmr.msrb.gmra.mxu3 %vm1250_vm2, %v3912_v62  ;;  %v528_v27 = vmax.f32 %v526_v4, %v527_v17  ;;  %v534_v51 = vrot.slane %v533_v22, 1  ;;  %v565_v63 = vrot.slane %v564_v46, 4  ;;  %v572_v24 = vrot.slane %v571_v47, 4  ;;  %v257_v4 = vld [vmem:[%s3510_s27 + $0x40] sm:$0x3] }
  0xda   : > { %v541_v12 = vrot.slane %v540_v58, 1  ;;  %v547_v53 = vmax.f32 %v545_v18, %v546_v49  ;;  %v554_v5 = vmax.f32 %v552_v42, %v553_v50  ;;  %v560_v55 = vrot.slane %v559_v26, 2 }
  0xdb   : > { %v535_v56 = vmax.f32 %v533_v22, %v534_v51  ;;  %v566_v36 = vmax.f32 %v564_v46, %v565_v63  ;;  %v573_v57 = vmax.f32 %v571_v47, %v572_v24  ;;  %v1275_v41 = vsel %vm1250_vm2, %v3988_v15, -inf  ;;  %v261_v47 = vld [vmem:[%s3510_s27 + $0x48] sm:$0x3] }
  0xdc   : > { %v542_v1 = vmax.f32 %v540_v58, %v541_v12  ;;  %v548_v2 = vrot.slane %v547_v53, 1  ;;  %v555_v3 = vrot.slane %v554_v5, 1  ;;  %v561_v38 = vmax.f32 %v559_v26, %v560_v55 }
  0xdd   : > { %v567_v6 = vrot.slane %v566_v36, 2  ;;  %v574_v62 = vrot.slane %v573_v57, 2  ;;  %v1276_v7 = vsel %vm1250_vm2, %v528_v27, -inf  ;;  %v1278_v39 = vsel %vm1250_vm2, %v3992_v52, -inf }
  0xde   : > { %v549_v54 = vmax.f32 %v547_v53, %v548_v2  ;;  %v556_v9 = vmax.f32 %v554_v5, %v555_v3  ;;  %v562_v44 = vrot.slane %v561_v38, 1  ;;  %v1277_v14 = vmax.f32 %v1275_v41, %v1276_v7  ;;  %v264_v2 = vld [vmem:[%s3510_s27 + $0x4e] sm:$0x3] }
  0xdf   : > { %v568_v16 = vmax.f32 %v566_v36, %v567_v6  ;;  %v575_v48 = vmax.f32 %v573_v57, %v574_v62  ;;  %v1279_v60 = vsel %vm1250_vm2, %v535_v56, -inf  ;;  %v1281_v15 = vsel %vm1250_vm2, %v3996_v13, -inf }
  0xe0   : > { %v563_v61 = vmax.f32 %v561_v38, %v562_v44  ;;  %v1280_v59 = vmax.f32 %v1278_v39, %v1279_v60  ;;  %v1282_v20 = vsel %vm1250_vm2, %v542_v1, -inf  ;;  %v1284_v52 = vsel %vm1250_vm2, %v4001_v45, -inf }
  0xe1   : > { %v569_v21 = vrot.slane %v568_v16, 1  ;;  %v576_v28 = vrot.slane %v575_v48, 1  ;;  %v1283_v0 = vmax.f32 %v1281_v15, %v1282_v20  ;;  %v1285_v25 = vsel %vm1250_vm2, %v549_v54, -inf }
  0xe2   : > { %v1286_v29 = vmax.f32 %v1284_v52, %v1285_v25  ;;  %v1287_v13 = vsel %vm1250_vm2, %v4006_v40, -inf  ;;  %v1288_v10 = vsel %vm1250_vm2, %v556_v9, -inf  ;;  %v1290_v30 = vsel %vm1250_vm2, %v4012_v19, -inf  ;;  %v259_v19 = vld [vmem:[%s3510_s27 + $0x44] sm:$0x3] }
  0xe3   : > { %v570_v8 = vmax.f32 %v568_v16, %v569_v21  ;;  %v577_v31 = vmax.f32 %v575_v48, %v576_v28  ;;  %v1289_v45 = vmax.f32 %v1287_v13, %v1288_v10  ;;  %v1291_v32 = vsel %vm1250_vm2, %v563_v61, -inf }
  0xe4   : > { %v1292_v34 = vmax.f32 %v1290_v30, %v1291_v32  ;;  %v1293_v18 = vsel %vm1250_vm2, %v4022_v11, -inf  ;;  %v1296_v40 = vsel %vm1250_vm2, %v4024_v23, -inf  ;;  %v1552_v42 = vsel %vm1538_vm3, %v1280_v59, %v1277_v14  ;;  %v262_v11 = vld [vmem:[%s3510_s27 + $0x4a] sm:$0x3]  ;;  %v263_v23 = vld [vmem:[%s3510_s27 + $0x4c] sm:$0x3] }
  0xe5   : > { %v1294_v17 = vsel %vm1250_vm2, %v570_v8, -inf  ;;  %v1297_v22 = vsel %vm1250_vm2, %v577_v31, -inf  ;;  %v1553_v46 = vsel %vm1540_vm4, %v1283_v0, %v1552_v42  ;;  %vm1445_vm10 = vcmask 24576   ;;  %v265_v0 = vld [vmem:[%s3510_s27 + $0x50] sm:$0x3] }
  0xe6   : > { %v1295_v58 = vmax.f32 %v1293_v18, %v1294_v17  ;;  %v1298_v49 = vmax.f32 %v1296_v40, %v1297_v22  ;;  %v1554_v50 = vsel %vm1542_vm5, %v1286_v29, %v1553_v46  ;;  %1446 = vst.msk [vmem:[#allocation2 + $0x10] sm:$0x1] %vm1445_vm10, %v3455_v35  ;;  %v578_v26 = vsel %vm353_vm1, %v257_v4, -inf  ;;  %v266_v32 = vld [vmem:[%s3510_s27 + $0x52] sm:$0x3] }
  0xe7   : > { %v1555_v27 = vsel %vm1544_vm6, %v1289_v45, %v1554_v50  ;;  %1449 = vst.msk [vmem:[#allocation2 + $0x28] sm:$0x1] %vm1445_vm10, %v3455_v35  ;;  %v579_v51 = vrot.slane %v578_v26, 4  ;;  %v585_v63 = vsel %vm353_vm1, %v258_v33, -inf  ;;  %v592_v24 = vsel %vm353_vm1, %v259_v19, -inf }
  0xe8   : > { %v1556_v12 = vsel %vm1546_vm7, %v1292_v34, %v1555_v27  ;;  %1452 = vst.msk [vmem:[#allocation2 + $0x40] sm:$0x1] %vm1445_vm10, %v3455_v35  ;;  %v586_v53 = vrot.slane %v585_v63, 4  ;;  %v593_v5 = vrot.slane %v592_v24, 4  ;;  %v599_v55 = vsel %vm353_vm1, %v260_v43, -inf }
  0xe9   : > { %v1557_v56 = vsel %vm1548_vm8, %v1295_v58, %v1556_v12  ;;  %1455 = vst.msk [vmem:[#allocation2 + $0x58] sm:$0x1] %vm1445_vm10, %v3455_v35  ;;  %v580_v36 = vmax.f32 %v578_v26, %v579_v51  ;;  %v600_v57 = vrot.slane %v599_v55, 4  ;;  %v606_v41 = vsel %vm353_vm1, %v261_v47, -inf  ;;  %v267_v42 = vld [vmem:[%s3510_s27 + $0x54] sm:$0x3] }
  0xea   : > { %v1558_v1 = vsel %vm1550_vm9, %v1298_v49, %v1557_v56  ;;  %1458 = vst.msk [vmem:[#allocation2 + $0x70] sm:$0x1] %vm1445_vm10, %v3455_v35  ;;  %v587_v3 = vmax.f32 %v585_v63, %v586_v53  ;;  %v594_v38 = vmax.f32 %v592_v24, %v593_v5  ;;  %v607_v6 = vrot.slane %v606_v41, 4  ;;  %v268_v46 = vld [vmem:[%s3510_s27 + $0x56] sm:$0x3] }
  0xeb   : > { %1611 = vst.msk [vmem:[#allocation2 + $0x38] sm:$0xff] %vm1250_vm2, %v1558_v1  ;;  %v581_v62 = vrot.slane %v580_v36, 2  ;;  %v601_v7 = vmax.f32 %v599_v55, %v600_v57  ;;  %v613_v39 = vsel %vm353_vm1, %v262_v11, -inf  ;;  %v620_v54 = vsel %vm353_vm1, %v263_v23, -inf  ;;  %v269_v11 = vld [vmem:[%s3510_s27 + $0x58] sm:$0x3] }
  0xec   : > { %1461 = vst.msk [vmem:[#allocation2 + $0x88] sm:$0x1] %vm1445_vm10, %v3455_v35  ;;  %v588_v9 = vrot.slane %v587_v3, 2  ;;  %v595_v44 = vrot.slane %v594_v38, 2  ;;  %v608_v14 = vmax.f32 %v606_v41, %v607_v6  ;;  %v614_v16 = vrot.slane %v613_v39, 4 }
  0xed   : > { %v1774_v48 = vld [vmem:[#allocation2 + $0x9] sm:$0xff]  ;;  %1464 = vst.msk [vmem:[#allocation2 + $0xa0] sm:$0x1] %vm1445_vm10, %v3455_v35  ;;  %v582_v60 = vmax.f32 %v580_v36, %v581_v62  ;;  %v602_v15 = vrot.slane %v601_v7, 2  ;;  %v621_v61 = vrot.slane %v620_v54, 4  ;;  %v627_v59 = vsel %vm353_vm1, %v264_v2, -inf }
  0xee   : > { %3282 = vmatmul.msk.f32.vlgmr.msrb.gmra.mxu2 %vm1250_vm2, %v1774_v48  ;;  %1467 = vst.msk [vmem:[#allocation2 + $0xb8] sm:$0x1] %vm1445_vm10, %v3455_v35  ;;  %v589_v20 = vmax.f32 %v587_v3, %v588_v9  ;;  %v596_v52 = vmax.f32 %v594_v38, %v595_v44  ;;  %v609_v21 = vrot.slane %v608_v14, 2  ;;  %v615_v28 = vmax.f32 %v613_v39, %v614_v16  ;;  %v270_v63 = vld [vmem:[%s3510_s27 + $0x5a] sm:$0x3]  ;;  %v4139_v9 = vld [vmem:[#allocation2 + $0x21] sm:$0xff] }
  0xef   : > { %1470 = vst.msk [vmem:[#allocation2 + $0xd0] sm:$0x1] %vm1445_vm10, %v3455_v35  ;;  %v583_v25 = vrot.slane %v582_v60, 1  ;;  %v603_v29 = vmax.f32 %v601_v7, %v602_v15  ;;  %v622_v13 = vmax.f32 %v620_v54, %v621_v61  ;;  %v628_v10 = vrot.slane %v627_v59, 4  ;;  %v271_v41 = vld [vmem:[%s3510_s27 + $0x5c] sm:$0x3] }
  0xf0   : > { %1473 = vst.msk [vmem:[#allocation2 + $0xe8] sm:$0x1] %vm1445_vm10, %v3455_v35  ;;  %v590_v30 = vrot.slane %v589_v20, 1  ;;  %v597_v8 = vrot.slane %v596_v52, 1  ;;  %v610_v31 = vmax.f32 %v608_v14, %v609_v21  ;;  %v616_v45 = vrot.slane %v615_v28, 2 }
  0xf1   : > { %v604_v4 = vrot.slane %v603_v29, 1  ;;  %v623_v33 = vrot.slane %v622_v13, 2  ;;  %v629_v34 = vmax.f32 %v627_v59, %v628_v10  ;;  %v4106_v19 = vmax.f32 %v582_v60, %v583_v25  ;;  %v3330_v54 = vld [vmem:[%s4840_s1 + $0x1c] sm:$0xf] }
  0xf2   : > { %v4101_v18 = vld [vmem:[#allocation2 + $0x38] sm:$0xff]  ;;  %v4108_v43 = vmax.f32 %v589_v20, %v590_v30  ;;  %v611_v17 = vrot.slane %v610_v31, 1  ;;  %v617_v22 = vmax.f32 %v615_v28, %v616_v45  ;;  %v4115_v47 = vmax.f32 %v596_v52, %v597_v8  ;;  %3331 = vmatpush.msk.msra.mxu3 %vm1661_vm0, %v3330_v54 }
  0xf3   : > { %v4103_v40 = vld [vmem:[#allocation2 + $0x37] sm:$0xff]  ;;  %3265 = vmatmul.msk.f32.gmra.mxu0 %vm1250_vm2, %v4101_v18  ;;  %v624_v58 = vmax.f32 %v622_v13, %v623_v33  ;;  %v630_v49 = vrot.slane %v629_v34, 2  ;;  %v634_v50 = vsel %vm353_vm1, %v265_v0, -inf  ;;  %v4119_v23 = vmax.f32 %v603_v29, %v604_v4 }
  0xf4   : > { %3274 = vmatmul.msk.f32.gmra.mxu1 %vm1250_vm2, %v4103_v40  ;;  %v618_v26 = vrot.slane %v617_v22, 1  ;;  %v635_v27 = vrot.slane %v634_v50, 4  ;;  %v641_v51 = vsel %vm353_vm1, %v266_v32, -inf  ;;  %3293 = vmatmul.msk.f32.gmra.mxu3 %vm1250_vm2, %v4103_v40  ;;  %v648_v5 = vsel %vm353_vm1, %v267_v42, -inf  ;;  %v272_v44 = vld [vmem:[%s3510_s27 + $0x5e] sm:$0x3] }
  0xf5   : > { %v625_v24 = vrot.slane %v624_v58, 1  ;;  %v631_v12 = vmax.f32 %v629_v34, %v630_v49  ;;  %v642_v53 = vrot.slane %v641_v51, 4  ;;  %v4126_v55 = vmax.f32 %v610_v31, %v611_v17 }
  0xf6   : > { %v636_v56 = vmax.f32 %v634_v50, %v635_v27  ;;  %v649_v36 = vrot.slane %v648_v5, 4  ;;  %v655_v57 = vsel %vm353_vm1, %v268_v46, -inf  ;;  %v4130_v1 = vmax.f32 %v617_v22, %v618_v26  ;;  %3283 = vmatmul.msk.f32.gmra.mxu2 %vm1250_vm2, %v4139_v9  ;;  %v3340_v26 = vld [vmem:[%s4840_s1 + $0x20] sm:$0xf]  ;;  %v3310_v27 = vld [vmem:[%s4840_s1 + $0x14] sm:$0xf] }
  0xf7   : > { %v4132_v2 = vmax.f32 %v624_v58, %v625_v24  ;;  %v643_v3 = vmax.f32 %v641_v51, %v642_v53  ;;  %v656_v38 = vrot.slane %v655_v57, 4  ;;  %v662_v7 = vsel %vm353_vm1, %v269_v11, -inf  ;;  %v4155_v51 = vld [vmem:[#allocation2 + $0x39] sm:$0xff]  ;;  %3341 = vmatpush.msk.msra.mxu0 %vm1661_vm0, %v3340_v26  ;;  %3311 = vmatpush.msk.msrb.mxu1 %vm1661_vm0, %v3310_v27 }
  0xf8   : > { %v637_v6 = vrot.slane %v636_v56, 2  ;;  %v650_v62 = vmax.f32 %v648_v5, %v649_v36  ;;  %v669_v39 = vsel %vm353_vm1, %v270_v63, -inf  ;;  %v632_v14 = vrot.slane %v631_v12, 1 }
  0xf9   : > { %v644_v16 = vrot.slane %v643_v3, 2  ;;  %v657_v48 = vmax.f32 %v655_v57, %v656_v38  ;;  %v663_v60 = vrot.slane %v662_v7, 4  ;;  %v670_v59 = vrot.slane %v669_v39, 4 }
  0xfa   : > { %v638_v15 = vmax.f32 %v636_v56, %v637_v6  ;;  %v651_v61 = vrot.slane %v650_v62, 2  ;;  %v676_v20 = vsel %vm353_vm1, %v271_v41, -inf  ;;  %v683_v10 = vsel %vm353_vm1, %v272_v44, -inf }
  0xfb   : > { %v645_v52 = vmax.f32 %v643_v3, %v644_v16  ;;  %v658_v21 = vrot.slane %v657_v48, 2  ;;  %v664_v28 = vmax.f32 %v662_v7, %v663_v60  ;;  %v677_v0 = vrot.slane %v676_v20, 4 }
  0xfc   : > { %v639_v25 = vrot.slane %v638_v15, 1  ;;  %v652_v29 = vmax.f32 %v650_v62, %v651_v61  ;;  %v671_v13 = vmax.f32 %v669_v39, %v670_v59  ;;  %v684_v34 = vrot.slane %v683_v10, 4 }
  0xfd   : > { %v646_v30 = vrot.slane %v645_v52, 1  ;;  %v659_v8 = vmax.f32 %v657_v48, %v658_v21  ;;  %v665_v31 = vrot.slane %v664_v28, 2  ;;  %v678_v45 = vmax.f32 %v676_v20, %v677_v0 }
  0xfe   : > { %v640_v32 = vmax.f32 %v638_v15, %v639_v25  ;;  %v653_v4 = vrot.slane %v652_v29, 1  ;;  %v672_v33 = vrot.slane %v671_v13, 2  ;;  %v685_v50 = vmax.f32 %v683_v10, %v684_v34  ;;  %3284 = vmatmul.msk.f32.gmra.mxu2 %vm1250_vm2, %v4155_v51  ;;  %v341_v34 = vld [vmem:[%s3510_s27 + $0xe8] sm:$0x3] }
  0xff   : > { %v647_v42 = vmax.f32 %v645_v52, %v646_v30  ;;  %v660_v17 = vrot.slane %v659_v8, 1  ;;  %v666_v22 = vmax.f32 %v664_v28, %v665_v31  ;;  %v679_v46 = vrot.slane %v678_v45, 2 }
 0x100   : > { %v654_v58 = vmax.f32 %v652_v29, %v653_v4  ;;  %v673_v49 = vmax.f32 %v671_v13, %v672_v33  ;;  %v1299_v11 = vsel %vm1250_vm2, %v4106_v19, -inf  ;;  %v1300_v5 = vsel %vm1250_vm2, %v640_v32, -inf  ;;  %v338_v32 = vld [vmem:[%s3510_s27 + $0xe2] sm:$0x3]  ;;  %v339_v4 = vld [vmem:[%s3510_s27 + $0xe4] sm:$0x3] }
 0x101   : > { %v661_v63 = vmax.f32 %v659_v8, %v660_v17  ;;  %v667_v24 = vrot.slane %v666_v22, 1  ;;  %v680_v53 = vmax.f32 %v678_v45, %v679_v46  ;;  %v633_v19 = vmax.f32 %v631_v12, %v632_v14  ;;  %v337_v45 = vld [vmem:[%s3510_s27 + $0xe0] sm:$0x3]  ;;  %v340_v33 = vld [vmem:[%s3510_s27 + $0xe6] sm:$0x3] }
 0x102   : > { %v674_v56 = vrot.slane %v673_v49, 1  ;;  %v686_v36 = vrot.slane %v685_v50, 2  ;;  %v1302_v57 = vsel %vm1250_vm2, %v4108_v43, -inf  ;;  %v1303_v38 = vsel %vm1250_vm2, %v647_v42, -inf  ;;  %v342_v42 = vld [vmem:[%s3510_s27 + $0xea] sm:$0x3] }
 0x103   : > { %v668_v41 = vmax.f32 %v666_v22, %v667_v24  ;;  %v681_v3 = vrot.slane %v680_v53, 1  ;;  %v1305_v6 = vsel %vm1250_vm2, %v4115_v47, -inf  ;;  %v1301_v39 = vmax.f32 %v1299_v11, %v1300_v5  ;;  %v343_v46 = vld [vmem:[%s3510_s27 + $0xec] sm:$0x3] }
 0x104   : > { %v675_v62 = vmax.f32 %v673_v49, %v674_v56  ;;  %v687_v7 = vmax.f32 %v685_v50, %v686_v36  ;;  %v1306_v12 = vsel %vm1250_vm2, %v654_v58, -inf  ;;  %v1304_v44 = vmax.f32 %v1302_v57, %v1303_v38  ;;  %v344_v58 = vld [vmem:[%s3510_s27 + $0xee] sm:$0x3] }
 0x105   : > { %v682_v54 = vmax.f32 %v680_v53, %v681_v3  ;;  %v1308_v43 = vsel %vm1250_vm2, %v4119_v23, -inf  ;;  %v1309_v14 = vsel %vm1250_vm2, %v661_v63, -inf  ;;  %v1307_v48 = vmax.f32 %v1305_v6, %v1306_v12 }
 0x106   : > { %v688_v16 = vrot.slane %v687_v7, 1  ;;  %v1311_v60 = vsel %vm1250_vm2, %v4126_v55, -inf  ;;  %v1312_v15 = vsel %vm1250_vm2, %v668_v41, -inf  ;;  %v1310_v47 = vmax.f32 %v1308_v43, %v1309_v14 }
 0x107   : > { %v1314_v61 = vsel %vm1250_vm2, %v4130_v1, -inf  ;;  %v1315_v59 = vsel %vm1250_vm2, %v675_v62, -inf  ;;  %v1317_v20 = vsel %vm1250_vm2, %v4132_v2, -inf  ;;  %v1313_v23 = vmax.f32 %v1311_v60, %v1312_v15  ;;  %v1946_v15 = vld [vmem:[#allocation2 + $0x20] sm:$0xff] }
 0x108   : > { %v689_v52 = vmax.f32 %v687_v7, %v688_v16  ;;  %v1318_v21 = vsel %vm1250_vm2, %v682_v54, -inf  ;;  %v1320_v55 = vsel %vm1250_vm2, %v633_v19, -inf  ;;  %v1316_v28 = vmax.f32 %v1314_v61, %v1315_v59 }
 0x109   : > { %v1559_v0 = vsel %vm1538_vm3, %v1304_v44, %v1301_v39  ;;  %v1319_v1 = vmax.f32 %v1317_v20, %v1318_v21  ;;  %v1138_v17 = vsel %vm353_vm1, %v337_v45, -inf  ;;  %v1145_v22 = vsel %vm353_vm1, %v338_v32, -inf  ;;  %v345_v21 = vld [vmem:[%s3510_s27 + $0xf0] sm:$0x3]  ;;  %v347_v45 = vld [vmem:[%s3510_s27 + $0xf4] sm:$0x3] }
 0x10a   : > { %v1321_v25 = vsel %vm1250_vm2, %v689_v52, -inf  ;;  %v1560_v2 = vsel %vm1540_vm4, %v1307_v48, %v1559_v0  ;;  %v1139_v49 = vrot.slane %v1138_v17, 4  ;;  %v1146_v50 = vrot.slane %v1145_v22, 4  ;;  %v4220_v52 = vld [vmem:[#allocation2 + $0x67] sm:$0xff]  ;;  %v348_v32 = vld [vmem:[%s3510_s27 + $0xf6] sm:$0x3] }
 0x10b   : > { %v1322_v29 = vmax.f32 %v1320_v55, %v1321_v25  ;;  %v1561_v13 = vsel %vm1542_vm5, %v1310_v47, %v1560_v2  ;;  %v1152_v63 = vsel %vm353_vm1, %v339_v4, -inf  ;;  %v1159_v24 = vsel %vm353_vm1, %v340_v33, -inf  ;;  %v346_v25 = vld [vmem:[%s3510_s27 + $0xf2] sm:$0x3] }
 0x10c   : > { %v1562_v10 = vsel %vm1544_vm6, %v1313_v23, %v1561_v13  ;;  %v1166_v53 = vsel %vm353_vm1, %v341_v34, -inf  ;;  %v1140_v5 = vmax.f32 %v1138_v17, %v1139_v49  ;;  %v1147_v19 = vmax.f32 %v1145_v22, %v1146_v50  ;;  %v4222_v23 = vld [vmem:[#allocation2 + $0x69] sm:$0xff]  ;;  %v350_v49 = vld [vmem:[%s3510_s27 + $0xfa] sm:$0x3] }
 0x10d   : > { %v1563_v30 = vsel %vm1546_vm7, %v1316_v28, %v1562_v10  ;;  %v1153_v56 = vrot.slane %v1152_v63, 4  ;;  %v1160_v36 = vrot.slane %v1159_v24, 4  ;;  %v1167_v57 = vrot.slane %v1166_v53, 4 }
 0x10e   : > { %v1564_v8 = vsel %vm1548_vm8, %v1319_v1, %v1563_v30  ;;  %v1173_v41 = vsel %vm353_vm1, %v342_v42, -inf  ;;  %v1180_v3 = vsel %vm353_vm1, %v343_v46, -inf  ;;  %v1187_v38 = vsel %vm353_vm1, %v344_v58, -inf  ;;  %v349_v58 = vld [vmem:[%s3510_s27 + $0xf8] sm:$0x3] }
 0x10f   : > { %v1565_v31 = vsel %vm1550_vm9, %v1322_v29, %v1564_v8  ;;  %v1141_v6 = vrot.slane %v1140_v5, 2  ;;  %v1148_v62 = vrot.slane %v1147_v19, 2  ;;  %v1154_v7 = vmax.f32 %v1152_v63, %v1153_v56 }
 0x110   : > { %1612 = vst.msk [vmem:[#allocation2 + $0x50] sm:$0xff] %vm1250_vm2, %v1565_v31  ;;  %v1161_v39 = vmax.f32 %v1159_v24, %v1160_v36  ;;  %v1168_v12 = vmax.f32 %v1166_v53, %v1167_v57  ;;  %v1174_v54 = vrot.slane %v1173_v41, 4  ;;  %v1181_v44 = vrot.slane %v1180_v3, 4 }
 0x111   : > { %v1188_v43 = vrot.slane %v1187_v38, 4  ;;  %v1142_v14 = vmax.f32 %v1140_v5, %v1141_v6  ;;  %v1149_v16 = vmax.f32 %v1147_v19, %v1148_v62  ;;  %v1155_v48 = vrot.slane %v1154_v7, 2  ;;  %v351_v5 = vld [vmem:[%s3510_s27 + $0xfc] sm:$0x3]  ;;  %v4259_v62 = vld [vmem:[#allocation2 + $0x7f] sm:$0xff] }
 0x112   : > { %v1162_v60 = vrot.slane %v1161_v39, 2  ;;  %v1169_v47 = vrot.slane %v1168_v12, 2  ;;  %v1175_v61 = vmax.f32 %v1173_v41, %v1174_v54  ;;  %v1182_v59 = vmax.f32 %v1180_v3, %v1181_v44 }
 0x113   : > { %v1189_v20 = vmax.f32 %v1187_v38, %v1188_v43  ;;  %v1143_v55 = vrot.slane %v1142_v14, 1  ;;  %v1150_v28 = vrot.slane %v1149_v16, 1  ;;  %v1156_v0 = vmax.f32 %v1154_v7, %v1155_v48  ;;  %v4261_v7 = vld [vmem:[#allocation2 + $0x81] sm:$0xff] }
 0x114   : > { %v1163_v1 = vmax.f32 %v1161_v39, %v1162_v60  ;;  %v1170_v2 = vmax.f32 %v1168_v12, %v1169_v47  ;;  %v1176_v29 = vrot.slane %v1175_v61, 2  ;;  %v1183_v13 = vrot.slane %v1182_v59, 2  ;;  %v352_v39 = vld [vmem:[%s3510_s27 + $0xfe] sm:$0x3] }
 0x115   : > { %v1190_v10 = vrot.slane %v1189_v20, 2  ;;  %v4229_v30 = vmax.f32 %v1142_v14, %v1143_v55  ;;  %v1157_v8 = vrot.slane %v1156_v0, 1  ;;  %v1194_v22 = vsel %vm353_vm1, %v345_v21, -inf }
 0x116   : > { %v1164_v31 = vrot.slane %v1163_v1, 1  ;;  %v1171_v4 = vrot.slane %v1170_v2, 1  ;;  %v1177_v33 = vmax.f32 %v1175_v61, %v1176_v29  ;;  %v1184_v34 = vmax.f32 %v1182_v59, %v1183_v13 }
 0x117   : > { %v4200_v11 = vld [vmem:[#allocation2 + $0x50] sm:$0xff]  ;;  %v4237_v42 = vmax.f32 %v1189_v20, %v1190_v10  ;;  %v4241_v17 = vmax.f32 %v1156_v0, %v1157_v8  ;;  %v1201_v46 = vsel %vm353_vm1, %v346_v25, -inf  ;;  %v1195_v19 = vrot.slane %v1194_v22, 4 }
 0x118   : > { %v4202_v26 = vld [vmem:[#allocation2 + $0x4f] sm:$0xff]  ;;  %3266 = vmatmul.msk.f32.gmra.mxu0 %vm1250_vm2, %v4200_v11  ;;  %v4247_v50 = vmax.f32 %v1163_v1, %v1164_v31  ;;  %v4249_v63 = vmax.f32 %v1170_v2, %v1171_v4  ;;  %v1178_v24 = vrot.slane %v1177_v33, 1  ;;  %v1185_v53 = vrot.slane %v1184_v34, 1 }
 0x119   : > { %v4204_v27 = vld [vmem:[#allocation2 + $0x51] sm:$0xff]  ;;  %3275 = vmatmul.msk.f32.gmra.mxu1 %vm1250_vm2, %v4202_v26  ;;  %3294 = vmatmul.msk.f32.gmra.mxu3 %vm1250_vm2, %v4202_v26  ;;  %v1202_v56 = vrot.slane %v1201_v46, 4  ;;  %v1208_v36 = vsel %vm353_vm1, %v347_v45, -inf  ;;  %v1215_v57 = vsel %vm353_vm1, %v348_v32, -inf  ;;  %v1192_v38 = vrot.slane %v4237_v42, 1 }
 0x11a   : > { %3285 = vmatmul.msk.f32.gmra.mxu2 %vm1250_vm2, %v4204_v27  ;;  %v4254_v41 = vmax.f32 %v1177_v33, %v1178_v24  ;;  %v4256_v3 = vmax.f32 %v1184_v34, %v1185_v53  ;;  %v1209_v6 = vrot.slane %v1208_v36, 4  ;;  %v1196_v12 = vmax.f32 %v1194_v22, %v1195_v19 }
 0x11b   : > { %v1203_v54 = vmax.f32 %v1201_v46, %v1202_v56  ;;  %v1216_v44 = vrot.slane %v1215_v57, 4  ;;  %v1222_v43 = vsel %vm353_vm1, %v349_v58, -inf  ;;  %v1229_v48 = vsel %vm353_vm1, %v350_v49, -inf  ;;  %v4276_v58 = vld [vmem:[#allocation2 + $0x97] sm:$0xff] }
 0x11c   : > { %v1210_v14 = vmax.f32 %v1208_v36, %v1209_v6  ;;  %v1236_v60 = vsel %vm353_vm1, %v351_v5, -inf  ;;  %v1230_v59 = vrot.slane %v1229_v48, 4  ;;  %v4278_v49 = vld [vmem:[#allocation2 + $0x99] sm:$0xff]  ;;  %vm2397_vm11 = vcmask 64512  }
 0x11d   : > { %v1204_v47 = vrot.slane %v1203_v54, 2  ;;  %v1217_v61 = vmax.f32 %v1215_v57, %v1216_v44  ;;  %v1237_v55 = vrot.slane %v1236_v60, 4  ;;  %2403 = vst.msk [vmem:[#allocation3 + $0x20] sm:$0xff] %vm2397_vm11, %v3455_v35  ;;  %vm2400_vm12 = vcmask 57344  }
 0x11e   : > { %v1211_v20 = vrot.slane %v1210_v14, 2  ;;  %v1231_v2 = vmax.f32 %v1229_v48, %v1230_v59  ;;  %2398 = vst.msk [vmem:[#allocation3] sm:$0xff] %vm2397_vm11, %v3455_v35 }
 0x11f   : > { %v1205_v1 = vmax.f32 %v1203_v54, %v1204_v47  ;;  %v1218_v25 = vrot.slane %v1217_v61, 2  ;;  %v1238_v10 = vmax.f32 %v1236_v60, %v1237_v55  ;;  %v1419_v54 = vsel %vm1250_vm2, %v4229_v30, -inf  ;;  %2399 = vst.msk [vmem:[#allocation3 + $0x8] sm:$0xff] %vm2397_vm11, %v3455_v35 }
 0x120   : > { %3302 = vmatmul.msk.f32.vlgmr.msrb.gmra.mxu0 %vm1250_vm2, %v1946_v15  ;;  %v1197_v15 = vrot.slane %v1196_v12, 2  ;;  %v1212_v29 = vmax.f32 %v1210_v14, %v1211_v20  ;;  %v1232_v4 = vrot.slane %v1231_v2, 2  ;;  %v1425_v30 = vsel %vm1250_vm2, %v4241_v17, -inf  ;;  %2402 = vst.msk [vmem:[#allocation3 + $0x18] sm:$0xff] %vm2397_vm11, %v3455_v35 }
 0x121   : > { %3312 = vmatmul.msk.f32.vlgmr.msrb.gmra.mxu1 %vm1250_vm2, %v4139_v9  ;;  %3295 = vmatmul.msk.f32.gmra.mxu3 %vm1250_vm2, %v4220_v52  ;;  %v4239_v9 = vmax.f32 %v1149_v16, %v1150_v28  ;;  %v1223_v16 = vrot.slane %v1222_v43, 4  ;;  %v1243_v28 = vsel %vm353_vm1, %v352_v39, -inf  ;;  %v1206_v45 = vrot.slane %v1205_v1, 1  ;;  %2405 = vst.msk [vmem:[#allocation3 + $0x30] sm:$0xff] %vm2397_vm11, %v3455_v35 }
 0x122   : > { %3286 = vmatmul.msk.f32.gmra.mxu2 %vm1250_vm2, %v4222_v23  ;;  %v1198_v0 = vmax.f32 %v1196_v12, %v1197_v15  ;;  %v1244_v8 = vrot.slane %v1243_v28, 4  ;;  %v1219_v32 = vmax.f32 %v1217_v61, %v1218_v25  ;;  %v1213_v33 = vrot.slane %v1212_v29, 1  ;;  %2406 = vst.msk [vmem:[#allocation3 + $0x38] sm:$0xff] %vm2397_vm11, %v3455_v35 }
 0x123   : > { %v1224_v21 = vmax.f32 %v1222_v43, %v1223_v16  ;;  %v1239_v22 = vrot.slane %v1238_v10, 2  ;;  %v1207_v53 = vmax.f32 %v1205_v1, %v1206_v45  ;;  %v1233_v19 = vmax.f32 %v1231_v2, %v1232_v4  ;;  %v4306_v2 = vld [vmem:[#allocation2 + $0xb1] sm:$0xff]  ;;  %2408 = vst.msk [vmem:[#allocation3 + $0x48] sm:$0xff] %vm2397_vm11, %v3455_v35 }
 0x124   : > { %v1199_v31 = vrot.slane %v1198_v0, 1  ;;  %v1245_v46 = vmax.f32 %v1243_v28, %v1244_v8  ;;  %v1220_v5 = vrot.slane %v1219_v32, 1  ;;  %v1214_v56 = vmax.f32 %v1212_v29, %v1213_v33  ;;  %2409 = vst.msk [vmem:[#allocation3 + $0x50] sm:$0xff] %vm2397_vm11, %v3455_v35 }
 0x125   : > { %v1225_v13 = vrot.slane %v1224_v21, 2  ;;  %v1240_v57 = vmax.f32 %v1238_v10, %v1239_v22  ;;  %v1234_v12 = vrot.slane %v1233_v19, 1  ;;  %v1193_v43 = vmax.f32 %v4237_v42, %v1192_v38  ;;  %2411 = vst.msk [vmem:[#allocation3 + $0x60] sm:$0xff] %vm2397_vm11, %v3455_v35 }
 0x126   : > { %v1200_v24 = vmax.f32 %v1198_v0, %v1199_v31  ;;  %v1246_v6 = vrot.slane %v1245_v46, 2  ;;  %v1221_v39 = vmax.f32 %v1219_v32, %v1220_v5  ;;  %v1422_v15 = vsel %vm1250_vm2, %v4239_v9, -inf  ;;  %v1949_v9 = vld [vmem:[#allocation2 + $0x68] sm:$0xff]  ;;  %2412 = vst.msk [vmem:[#allocation3 + $0x68] sm:$0xff] %vm2397_vm11, %v3455_v35 }
 0x127   : > { %v1226_v34 = vmax.f32 %v1224_v21, %v1225_v13  ;;  %v1241_v16 = vrot.slane %v1240_v57, 1  ;;  %v1235_v60 = vmax.f32 %v1233_v19, %v1234_v12  ;;  %v1423_v47 = vsel %vm1250_vm2, %v1207_v53, -inf  ;;  %v1952_v19 = vld [vmem:[#allocation2 + $0xb0] sm:$0xff]  ;;  %2414 = vst.msk [vmem:[#allocation3 + $0x78] sm:$0xff] %vm2397_vm11, %v3455_v35 }
 0x128   : > { %3303 = vmatmul.msk.f32.gmra.mxu0 %vm1250_vm2, %v4101_v18  ;;  %v1420_v44 = vsel %vm1250_vm2, %v1200_v24, -inf  ;;  %v1247_v48 = vmax.f32 %v1245_v46, %v1246_v6  ;;  %v1426_v21 = vsel %vm1250_vm2, %v1214_v56, -inf  ;;  %v1424_v55 = vmax.f32 %v1422_v15, %v1423_v47  ;;  %v1950_v46 = vld [vmem:[#allocation2 + $0x80] sm:$0xff]  ;;  %v4380_v6 = vpop.f32.mrf.mxu0  ;;  %v1750_v47 = vpop.f32.mrf.mxu1  ;;  %2415 = vst.msk [vmem:[#allocation3 + $0x80] sm:$0xff] %vm2397_vm11, %v3455_v35 }
 0x129   : > { %3313 = vmatmul.msk.f32.gmra.mxu1 %vm1250_vm2, %v4155_v51  ;;  %3296 = vmatmul.msk.f32.gmra.mxu3 %vm1250_vm2, %v4259_v62  ;;  %v1227_v36 = vrot.slane %v1226_v34, 1  ;;  %v1242_v61 = vmax.f32 %v1240_v57, %v1241_v16  ;;  %v1421_v20 = vmax.f32 %v1419_v54, %v1420_v44  ;;  %v1428_v42 = vsel %vm1250_vm2, %v4247_v50, -inf  ;;  %v2126_v57 = vld [vmem:[#allocation2 + $0xdf] sm:$0xff]  ;;  %2417 = vst.msk [vmem:[#allocation3 + $0x90] sm:$0xff] %vm2397_vm11, %v3455_v35 }
 0x12a   : > { %3287 = vmatmul.msk.f32.gmra.mxu2 %vm1250_vm2, %v4261_v7  ;;  %v1248_v59 = vrot.slane %v1247_v48, 1  ;;  %v1429_v38 = vsel %vm1250_vm2, %v1221_v39, -inf  ;;  %v1431_v28 = vsel %vm1250_vm2, %v4249_v63, -inf  ;;  %v1427_v1 = vmax.f32 %v1425_v30, %v1426_v21  ;;  %v3350_v39 = vld [vmem:[%s4842_s3 + $0x8] sm:$0xff]  ;;  %v2212_v54 = vld [vmem:[#allocation2 + $0xe0] sm:$0xff]  ;;  %2418 = vst.msk [vmem:[#allocation3 + $0x98] sm:$0xff] %vm2397_vm11, %v3455_v35 }
 0x12b   : > { %v1228_v14 = vmax.f32 %v1226_v34, %v1227_v36  ;;  %v1434_v17 = vsel %vm1250_vm2, %v4254_v41, -inf  ;;  %v1430_v29 = vmax.f32 %v1428_v42, %v1429_v38  ;;  %v1435_v13 = vsel %vm1250_vm2, %v1235_v60, -inf  ;;  %2496 = vmatpush.msra.mxu1 %v3350_v39  ;;  %2420 = vst.msk [vmem:[#allocation3 + $0xa8] sm:$0xff] %vm2397_vm11, %v3455_v35 }
 0x12c   : > { %v1249_v0 = vmax.f32 %v1247_v48, %v1248_v59  ;;  %v1437_v50 = vsel %vm1250_vm2, %v4256_v3, -inf  ;;  %v1438_v10 = vsel %vm1250_vm2, %v1242_v61, -inf  ;;  %v1440_v63 = vsel %vm1250_vm2, %v1193_v43, -inf  ;;  %v2298_v48 = vld [vmem:[#allocation2 + $0xe1] sm:$0xff]  ;;  %2421 = vst.msk [vmem:[#allocation3 + $0xb0] sm:$0xff] %vm2397_vm11, %v3455_v35 }
 0x12d   : > { %v1432_v25 = vsel %vm1250_vm2, %v1228_v14, -inf  ;;  %v1436_v41 = vmax.f32 %v1434_v17, %v1435_v13  ;;  %v1594_v45 = vsel %vm1538_vm3, %v1424_v55, %v1421_v20  ;;  %v1439_v3 = vmax.f32 %v1437_v50, %v1438_v10  ;;  %v3367_v17 = vld [vmem:[%s4842_s3 + $0x10] sm:$0xff]  ;;  %2423 = vst.msk [vmem:[#allocation3 + $0xc0] sm:$0xff] %vm2397_vm11, %v3455_v35 }
 0x12e   : > { %v1433_v8 = vmax.f32 %v1431_v28, %v1432_v25  ;;  %v1441_v31 = vsel %vm1250_vm2, %v1249_v0, -inf  ;;  %v1595_v32 = vsel %vm1540_vm4, %v1427_v1, %v1594_v45  ;;  %v2446_v25 = vld [vmem:[%s4842_s3] sm:$0xff]  ;;  %2636 = vmatpush.msrb.mxu3 %v3367_v17  ;;  %v2438_v50 = vld [vmem:[#allocation3 + $0x7] sm:$0xff]  ;;  %2424 = vst.msk [vmem:[#allocation3 + $0xc8] sm:$0xff] %vm2397_vm11, %v3455_v35 }
 0x12f   : > { %v1442_v4 = vmax.f32 %v1440_v63, %v1441_v31  ;;  %v1596_v33 = vsel %vm1542_vm5, %v1430_v29, %v1595_v32  ;;  %2561 = vmatpush.msrb.mxu2 %v2446_v25  ;;  %v2447_v63 = vld [vmem:[#allocation3 + $0x8] sm:$0xff]  ;;  %v1751_v32 = vadd.f32 %v1750_v47, %v4380_v6  ;;  %2426 = vst.msk [vmem:[#allocation3 + $0xd8] sm:$0xff] %vm2397_vm11, %v3455_v35 }
 0x130   : > { %3304 = vmatmul.msk.f32.gmra.mxu0 %vm1250_vm2, %v4200_v11  ;;  %v1597_v34 = vsel %vm1544_vm6, %v1433_v8, %v1596_v33  ;;  %v4396_v12 = vpop.f32.mrf.mxu0  ;;  %v1753_v21 = vpop.f32.mrf.mxu1  ;;  %v3376_v31 = vld [vmem:[%s4842_s3 + $0x18] sm:$0xff]  ;;  %2427 = vst.msk [vmem:[#allocation3 + $0xe0] sm:$0xff] %vm2397_vm11, %v3455_v35 }
 0x131   : > { %3314 = vmatmul.msk.f32.gmra.mxu1 %vm1250_vm2, %v4204_v27  ;;  %3297 = vmatmul.msk.f32.gmra.mxu3 %vm1250_vm2, %v4276_v58  ;;  %v1598_v22 = vsel %vm1546_vm7, %v1436_v41, %v1597_v34  ;;  %v3385_v41 = vld [vmem:[%s4842_s3 + $0x20] sm:$0xff]  ;;  %2401 = vst.msk [vmem:[#allocation3 + $0x10] sm:$0x1] %vm2400_vm12, %v3455_v35 }
 0x132   : > { %3288 = vmatmul.msk.f32.gmra.mxu2 %vm1250_vm2, %v4278_v49  ;;  %v1599_v24 = vsel %vm1548_vm8, %v1439_v3, %v1598_v22  ;;  %2719 = vmatpush.msrb.mxu0 %v3376_v31  ;;  %2404 = vst.msk [vmem:[#allocation3 + $0x28] sm:$0x1] %vm2400_vm12, %v3455_v35 }
 0x133   : > { %v1600_v53 = vsel %vm1550_vm9, %v1442_v4, %v1599_v24  ;;  %2802 = vmatpush.msrb.mxu1 %v3385_v41  ;;  %2407 = vst.msk [vmem:[#allocation3 + $0x40] sm:$0x1] %vm2400_vm12, %v3455_v35  ;;  %v1754_v24 = vadd.f32 %v1753_v21, %v4396_v12 }
 0x134   : > { %1617 = vst.msk [vmem:[#allocation2 + $0xc8] sm:$0xff] %vm1250_vm2, %v1600_v53 }
 0x135   : > { %2410 = vst.msk [vmem:[#allocation3 + $0x58] sm:$0x1] %vm2400_vm12, %v3455_v35 }
 0x136   : > { %2413 = vst.msk [vmem:[#allocation3 + $0x70] sm:$0x1] %vm2400_vm12, %v3455_v35 }
 0x137   : > { %2416 = vst.msk [vmem:[#allocation3 + $0x88] sm:$0x1] %vm2400_vm12, %v3455_v35 }
 0x138   : > { %3305 = vmatmul.msk.f32.gmra.mxu0 %vm1250_vm2, %v1949_v9  ;;  %2419 = vst.msk [vmem:[#allocation3 + $0xa0] sm:$0x1] %vm2400_vm12, %v3455_v35 }
 0x139   : > { %3315 = vmatmul.msk.f32.gmra.mxu1 %vm1250_vm2, %v4222_v23  ;;  %3298 = vmatmul.msk.f32.gmra.mxu3 %vm1250_vm2, %v3999_v37  ;;  %v1951_v37 = vld [vmem:[#allocation2 + $0x98] sm:$0xff]  ;;  %2422 = vst.msk [vmem:[#allocation3 + $0xb8] sm:$0x1] %vm2400_vm12, %v3455_v35 }
 0x13a   : > { %3289 = vmatmul.msk.f32.gmra.mxu2 %vm1250_vm2, %v4306_v2  ;;  %2425 = vst.msk [vmem:[#allocation3 + $0xd0] sm:$0x1] %vm2400_vm12, %v3455_v35 }
 0x13b   : > { %v1867_v5 = vld [vmem:[#allocation2 + $0xc7] sm:$0xff]  ;;  %2428 = vst.msk [vmem:[#allocation3 + $0xe8] sm:$0x1] %vm2400_vm12, %v3455_v35 }
 0x13c   : > { %v2039_v56 = vld [vmem:[#allocation2 + $0xc9] sm:$0xff] }
 0x140   : > { %3306 = vmatmul.msk.f32.gmra.mxu0 %vm1250_vm2, %v1950_v46 }
 0x141   : > { %3316 = vmatmul.msk.f32.gmra.mxu1 %vm1250_vm2, %v4261_v7  ;;  %3299 = vmatmul.msk.f32.gmra.mxu3 %vm1250_vm2, %v1867_v5 }
 0x142   : > { %3322 = vmatmul.msk.f32.vlgmr.msra.gmra.mxu2 %vm1250_vm2, %v4103_v40  ;;  %v1953_v40 = vld [vmem:[#allocation2 + $0xc8] sm:$0xff] }
 0x148   : > { %3307 = vmatmul.msk.f32.gmra.mxu0 %vm1250_vm2, %v1951_v37 }
 0x149   : > { %3317 = vmatmul.msk.f32.gmra.mxu1 %vm1250_vm2, %v4278_v49  ;;  %3332 = vmatmul.msk.f32.vlgmr.msra.gmra.mxu3 %vm1250_vm2, %v4101_v18 }
 0x14a   : > { %3323 = vmatmul.msk.f32.gmra.mxu2 %vm1250_vm2, %v4202_v26  ;;  %v4351_v26 = vpop.f32.mrf.mxu2 }
 0x150   : > { %3308 = vmatmul.msk.f32.gmra.mxu0 %vm1250_vm2, %v1952_v19 }
 0x151   : > { %3318 = vmatmul.msk.f32.gmra.mxu1 %vm1250_vm2, %v4306_v2  ;;  %3333 = vmatmul.msk.f32.gmra.mxu3 %vm1250_vm2, %v4200_v11  ;;  %v4362_v11 = vpop.f32.mrf.mxu3 }
 0x152   : > { %3324 = vmatmul.msk.f32.gmra.mxu2 %vm1250_vm2, %v4220_v52  ;;  %v4358_v18 = vpop.f32.mrf.mxu2  ;;  %v2124_v52 = vld [vmem:[#allocation2 + $0xaf] sm:$0xff] }
 0x158   : > { %3309 = vmatmul.msk.f32.gmra.mxu0 %vm1250_vm2, %v1953_v40 }
 0x159   : > { %3319 = vmatmul.msk.f32.gmra.mxu1 %vm1250_vm2, %v2039_v56  ;;  %3334 = vmatmul.msk.f32.gmra.mxu3 %vm1250_vm2, %v1949_v9  ;;  %v4370_v36 = vpop.f32.mrf.mxu3 }
 0x15a   : > { %3325 = vmatmul.msk.f32.gmra.mxu2 %vm1250_vm2, %v4259_v62  ;;  %v4368_v62 = vpop.f32.mrf.mxu2 }
 0x160   : > { %3342 = vmatmul.msk.f32.vlgmr.msra.gmra.mxu0 %vm1250_vm2, %v4155_v51 }
 0x161   : > { %3335 = vmatmul.msk.f32.gmra.mxu3 %vm1250_vm2, %v1950_v46  ;;  %3351 = vmatmul.msk.f32.vlgmr.msra.gmra.mxu1 %vm2397_vm11, %v2447_v63 }
 0x162   : > { %3326 = vmatmul.msk.f32.gmra.mxu2 %vm1250_vm2, %v4276_v58  ;;  %v4376_v51 = vpop.f32.mrf.mxu2  ;;  %v4378_v58 = vpop.f32.mrf.mxu3 }
 0x168   : > { %3343 = vmatmul.msk.f32.gmra.mxu0 %vm1250_vm2, %v4204_v27 }
 0x169   : > { %3336 = vmatmul.msk.f32.gmra.mxu3 %vm1250_vm2, %v1951_v37 }
 0x16a   : > { %3327 = vmatmul.msk.f32.gmra.mxu2 %vm1250_vm2, %v2124_v52 }
 0x170   : > { %3344 = vmatmul.msk.f32.gmra.mxu0 %vm1250_vm2, %v4222_v23  ;;  %v4391_v23 = vpop.f32.mrf.mxu3 }
 0x171   : > { %3337 = vmatmul.msk.f32.gmra.mxu3 %vm1250_vm2, %v1952_v19  ;;  %v4386_v27 = vpop.f32.mrf.mxu2  ;;  %v4433_v28 = vpop.f32.mrf.mxu1  ;;  %v2587_v19 = vld [vmem:[#allocation3 + $0x9] sm:$0xff] }
 0x172   : > { %3328 = vmatmul.msk.f32.gmra.mxu2 %vm1250_vm2, %v1867_v5  ;;  %v1852_v4 = vadd.f32 %v4386_v27, %v1751_v32 }
 0x178   : > { %3345 = vmatmul.msk.f32.gmra.mxu0 %vm1250_vm2, %v4261_v7  ;;  %v4401_v7 = vpop.f32.mrf.mxu3 }
 0x179   : > { %3338 = vmatmul.msk.f32.gmra.mxu3 %vm1250_vm2, %v1953_v40  ;;  %v4403_v44 = vpop.f32.mrf.mxu2  ;;  %v1938_v34 = vadd.f32 %v4401_v7, %v1852_v4 }
 0x17a   : > { %3329 = vmatmul.msk.f32.gmra.mxu2 %vm1250_vm2, %v2126_v57  ;;  %v1853_v5 = vadd.f32 %v4403_v44, %v1754_v24 }
 0x180   : > { %3346 = vmatmul.msk.f32.gmra.mxu0 %vm1250_vm2, %v4278_v49  ;;  %v4405_v49 = vpop.f32.mrf.mxu0  ;;  %v4408_v43 = vpop.f32.mrf.mxu3 }
 0x181   : > { %3339 = vmatmul.msk.f32.gmra.mxu3 %vm1250_vm2, %v2212_v54  ;;  %v4410_v14 = vpop.f32.mrf.mxu2  ;;  %v1939_v52 = vadd.f32 %v4408_v43, %v1853_v5  ;;  %v1757_v6 = vadd.f32 %v4433_v28, %v4405_v49  ;;  %v4547_v43 = vld [vmem:[%s4841_s2] ss:$0 sm:$0xff] }
 0x182   : > { %3359 = vmatmul.msk.f32.vlgmr.msrb.gmra.mxu2 %vm2397_vm11, %v2438_v50 }
 0x183   : > { %v1854_v54 = vadd.f32 %v4410_v14, %v1757_v6 }
 0x188   : > { %3347 = vmatmul.msk.f32.gmra.mxu0 %vm1250_vm2, %v4306_v2 }
 0x189   : > { %3368 = vmatmul.msk.f32.vlgmr.msrb.gmra.mxu3 %vm2397_vm11, %v2587_v19 }
 0x190   : > { %3348 = vmatmul.msk.f32.gmra.mxu0 %vm1250_vm2, %v2039_v56 }
 0x195   : > { %v4412_v16 = vpop.f32.mrf.mxu0 }
 0x196   : > { %v4457_v2 = vpop.f32.mrf.mxu1 }
 0x197   : > { %v1760_v49 = vadd.f32 %v4457_v2, %v4412_v16  ;;  %v1763_v16 = vadd.f32 %v4362_v11, %v4351_v26 }
 0x198   : > { %3349 = vmatmul.msk.f32.gmra.mxu0 %vm1250_vm2, %v2298_v48 }
 0x19c   : > { %v4415_v60 = vpop.f32.mrf.mxu3 }
 0x19d   : > { %v4417_v15 = vpop.f32.mrf.mxu2  ;;  %v4419_v30 = vpop.f32.mrf.mxu0  ;;  %v1940_v35 = vadd.f32 %v4415_v60, %v1854_v54 }
 0x19e   : > { %v2086_v8 = vpop.f32.mrf.mxu1  ;;  %v2024_v37 = vadd.f32 %v4419_v30, %v1938_v34  ;;  %v1855_v14 = vadd.f32 %v4417_v15, %v1760_v49 }
 0x1a0   : > { %v2110_v56 = vadd.f32 %v2086_v8, %v2024_v37 }
 0x1a4   : > { %v4421_v61 = vpop.f32.mrf.mxu3 }
 0x1a5   : > { %v4423_v59 = vpop.f32.mrf.mxu2  ;;  %v4425_v20 = vpop.f32.mrf.mxu0  ;;  %v1941_v41 = vadd.f32 %v4421_v61, %v1855_v14 }
 0x1a6   : > { %v2089_v22 = vpop.f32.mrf.mxu1  ;;  %v2025_v12 = vadd.f32 %v4425_v20, %v1939_v52  ;;  %v1856_v32 = vadd.f32 %v4423_v59, %v1763_v16 }
 0x1a8   : > { %v2111_v47 = vadd.f32 %v2089_v22, %v2025_v12 }
 0x1ac   : > { %v4427_v55 = vpop.f32.mrf.mxu3 }
 0x1ad   : > { %v4429_v42 = vpop.f32.mrf.mxu2  ;;  %v4431_v38 = vpop.f32.mrf.mxu0  ;;  %v1942_v26 = vadd.f32 %v4427_v55, %v1856_v32 }
 0x1ae   : > { %v2092_v39 = vpop.f32.mrf.mxu1  ;;  %v2026_v20 = vadd.f32 %v4431_v38, %v1940_v35 }
 0x1b0   : > { %v2112_v31 = vadd.f32 %v2092_v39, %v2026_v20 }
 0x1b4   : > { %v4439_v1 = vpop.f32.mrf.mxu3 }
 0x1b5   : > { %v4435_v9 = vpop.f32.mrf.mxu2  ;;  %v4437_v0 = vpop.f32.mrf.mxu0 }
 0x1b6   : > { %v2095_v17 = vpop.f32.mrf.mxu1  ;;  %v2027_v15 = vadd.f32 %v4437_v0, %v1941_v41  ;;  %v1766_v0 = vadd.f32 %v4370_v36, %v4358_v18 }
 0x1b8   : > { %v2113_v19 = vadd.f32 %v2095_v17, %v2027_v15  ;;  %v1857_v52 = vadd.f32 %v4429_v42, %v1766_v0 }
 0x1ba   : > { %v1943_v18 = vadd.f32 %v4439_v1, %v1857_v52 }
 0x1bc   : > { %v4473_v10 = vpop.f32.mrf.mxu3 }
 0x1bd   : > { %v4461_v29 = vpop.f32.mrf.mxu2  ;;  %v4465_v13 = vpop.f32.mrf.mxu0 }
 0x1be   : > { %v2028_v55 = vadd.f32 %v4465_v13, %v1942_v26  ;;  %v1769_v13 = vadd.f32 %v4378_v58, %v4368_v62  ;;  %v3394_v58 = vld [vmem:[%s4842_s3 + $0x28] sm:$0xff] }
 0x1bf   : > { %2885 = vmatpush.msra.mxu2 %v3394_v58 }
 0x1c0   : > { %v1858_v49 = vadd.f32 %v4435_v9, %v1769_v13  ;;  %v3403_v9 = vld [vmem:[%s4842_s3 + $0x30] sm:$0xff] }
 0x1c1   : > { %2969 = vmatpush.msra.mxu3 %v3403_v9 }
 0x1c2   : > { %v1944_v62 = vadd.f32 %v4473_v10, %v1858_v49 }
 0x1c4   : > { %v4507_v33 = vpop.f32.mrf.mxu3 }
 0x1c5   : > { %v4493_v45 = vpop.f32.mrf.mxu0  ;;  %v2173_v3 = vpop.f32.mrf.mxu2 }
 0x1c6   : > { %v2197_v27 = vadd.f32 %v2173_v3, %v2110_v56 }
 0x1cc   : > { %v2259_v40 = vpop.f32.mrf.mxu3 }
 0x1cd   : > { %v4516_v46 = vpop.f32.mrf.mxu0  ;;  %v2176_v53 = vpop.f32.mrf.mxu2  ;;  %v2283_v44 = vadd.f32 %v2259_v40, %v2197_v27 }
 0x1ce   : > { %v2198_v28 = vadd.f32 %v2176_v53, %v2111_v47  ;;  %v2098_v53 = vpop.f32.mrf.mxu1 }
 0x1d4   : > { %v2262_v48 = vpop.f32.mrf.mxu3 }
 0x1d5   : > { %v4537_v57 = vpop.f32.mrf.mxu0  ;;  %v2179_v7 = vpop.f32.mrf.mxu2  ;;  %v2284_v60 = vadd.f32 %v2262_v48, %v2198_v28  ;;  %v2114_v48 = vadd.f32 %v2098_v53, %v2028_v55 }
 0x1d6   : > { %v2199_v38 = vadd.f32 %v2179_v7, %v2112_v31  ;;  %v2101_v36 = vpop.f32.mrf.mxu1 }
 0x1dc   : > { %v2265_v8 = vpop.f32.mrf.mxu3 }
 0x1dd   : > { %v2345_v30 = vpop.f32.mrf.mxu0  ;;  %v2182_v63 = vpop.f32.mrf.mxu2  ;;  %v2285_v22 = vadd.f32 %v2265_v8, %v2199_v38  ;;  %v1772_v8 = vadd.f32 %v4391_v23, %v4376_v51 }
 0x1de   : > { %v2369_v21 = vadd.f32 %v2345_v30, %v2283_v44  ;;  %v2200_v56 = vadd.f32 %v2182_v63, %v2113_v19  ;;  %v2029_v30 = vadd.f32 %v4493_v45, %v1943_v18  ;;  %v3412_v45 = vld [vmem:[%s4842_s3 + $0x38] sm:$0xff]  ;;  %v2104_v41 = vpop.f32.mrf.mxu1 }
 0x1df   : > { %3052 = vmatpush.msra.mxu0 %v3412_v45  ;;  %v1859_v16 = vadd.f32 %v4461_v29, %v1772_v8 }
 0x1e0   : > { %v2381_v25 = vadd.f32 %v4547_v43, %v2369_v21 }
 0x1e2   : > { %v2389_v50 = vmax.f32 %v2381_v25, 0.0 }
 0x1e4   : > { %2430 = vst.msk [vmem:[#allocation3 + $0x20] sm:$0xff] %vm2397_vm11, %v2389_v50  ;;  %v2268_v24 = vpop.f32.mrf.mxu3 }
 0x1e5   : > { %v2348_v3 = vpop.f32.mrf.mxu0  ;;  %v2185_v59 = vpop.f32.mrf.mxu2  ;;  %v2286_v39 = vadd.f32 %v2268_v24, %v2200_v56 }
 0x1e6   : > { %v2370_v2 = vadd.f32 %v2348_v3, %v2284_v60  ;;  %v2201_v47 = vadd.f32 %v2185_v59, %v2114_v48  ;;  %v2115_v60 = vadd.f32 %v2101_v36, %v2029_v30  ;;  %v2030_v3 = vadd.f32 %v4516_v46, %v1944_v62  ;;  %v2107_v26 = vpop.f32.mrf.mxu1 }
 0x1e8   : > { %v2382_v4 = vadd.f32 %v4547_v43, %v2370_v2  ;;  %v2116_v23 = vadd.f32 %v2104_v41, %v2030_v3 }
 0x1ea   : > { %v2390_v34 = vmax.f32 %v2382_v4, 0.0 }
 0x1eb   : > { %v4561_v37 = vld [vmem:[#allocation3 + $0x20] sm:$0xff] }
 0x1ec   : > { %v2439_v61 = vld [vmem:[#allocation3 + $0x1f] sm:$0xff]  ;;  %2431 = vst.msk [vmem:[#allocation3 + $0x38] sm:$0xff] %vm2397_vm11, %v2390_v34  ;;  %3352 = vmatmul.msk.f32.gmra.mxu1 %vm2397_vm11, %v4561_v37  ;;  %v2271_v12 = vpop.f32.mrf.mxu3 }
 0x1ed   : > { %v4563_v5 = vld [vmem:[#allocation3 + $0x21] sm:$0xff]  ;;  %3360 = vmatmul.msk.f32.gmra.mxu2 %vm2397_vm11, %v2439_v61  ;;  %3377 = vmatmul.msk.f32.vlgmr.msrb.gmra.mxu0 %vm2397_vm11, %v2439_v61  ;;  %v2351_v11 = vpop.f32.mrf.mxu0  ;;  %v2188_v35 = vpop.f32.mrf.mxu2  ;;  %v2287_v20 = vadd.f32 %v2271_v12, %v2201_v47 }
 0x1ee   : > { %3369 = vmatmul.msk.f32.gmra.mxu3 %vm2397_vm11, %v4563_v5  ;;  %v2371_v40 = vadd.f32 %v2351_v11, %v2285_v22  ;;  %v2202_v31 = vadd.f32 %v2188_v35, %v2115_v60  ;;  %v1945_v22 = vadd.f32 %v4507_v33, %v1859_v16  ;;  %v3421_v33 = vld [vmem:[%s4842_s3 + $0x40] sm:$0xff] }
 0x1ef   : > { %3135 = vmatpush.msra.mxu1 %v3421_v33 }
 0x1f0   : > { %v2383_v6 = vadd.f32 %v4547_v43, %v2371_v40  ;;  %v2031_v61 = vadd.f32 %v4537_v57, %v1945_v22 }
 0x1f2   : > { %v2391_v27 = vmax.f32 %v2383_v6, 0.0  ;;  %v2117_v52 = vadd.f32 %v2107_v26, %v2031_v61 }
 0x1f3   : > { %v4578_v54 = vld [vmem:[#allocation3 + $0x38] sm:$0xff] }
 0x1f4   : > { %v4580_v7 = vld [vmem:[#allocation3 + $0x37] sm:$0xff]  ;;  %2432 = vst.msk [vmem:[#allocation3 + $0x50] sm:$0xff] %vm2397_vm11, %v2391_v27  ;;  %3353 = vmatmul.msk.f32.gmra.mxu1 %vm2397_vm11, %v4578_v54  ;;  %v2274_v50 = vpop.f32.mrf.mxu3 }
 0x1f5   : > { %v4582_v44 = vld [vmem:[#allocation3 + $0x39] sm:$0xff]  ;;  %3361 = vmatmul.msk.f32.gmra.mxu2 %vm2397_vm11, %v4580_v7  ;;  %3378 = vmatmul.msk.f32.gmra.mxu0 %vm2397_vm11, %v4580_v7  ;;  %v2354_v42 = vpop.f32.mrf.mxu0  ;;  %v2191_v38 = vpop.f32.mrf.mxu2  ;;  %v2288_v32 = vadd.f32 %v2274_v50, %v2202_v31 }
 0x1f6   : > { %3370 = vmatmul.msk.f32.gmra.mxu3 %vm2397_vm11, %v4582_v44  ;;  %v2372_v1 = vadd.f32 %v2354_v42, %v2286_v39  ;;  %v2203_v53 = vadd.f32 %v2191_v38, %v2116_v23 }
 0x1f8   : > { %v2384_v21 = vadd.f32 %v4547_v43, %v2372_v1 }
 0x1fa   : > { %v2392_v28 = vmax.f32 %v2384_v21, 0.0 }
 0x1fb   : > { %v4599_v14 = vld [vmem:[#allocation3 + $0x50] sm:$0xff] }
 0x1fc   : > { %v4601_v25 = vld [vmem:[#allocation3 + $0x4f] sm:$0xff]  ;;  %2433 = vst.msk [vmem:[#allocation3 + $0x68] sm:$0xff] %vm2397_vm11, %v2392_v28  ;;  %3354 = vmatmul.msk.f32.gmra.mxu1 %vm2397_vm11, %v4599_v14  ;;  %v2277_v46 = vpop.f32.mrf.mxu3 }
 0x1fd   : > { %v4603_v17 = vld [vmem:[#allocation3 + $0x51] sm:$0xff]  ;;  %3362 = vmatmul.msk.f32.gmra.mxu2 %vm2397_vm11, %v4601_v25  ;;  %3379 = vmatmul.msk.f32.gmra.mxu0 %vm2397_vm11, %v4601_v25  ;;  %v2357_v10 = vpop.f32.mrf.mxu0  ;;  %v2289_v59 = vadd.f32 %v2277_v46, %v2203_v53  ;;  %v2194_v55 = vpop.f32.mrf.mxu2 }
 0x1fe   : > { %3371 = vmatmul.msk.f32.gmra.mxu3 %vm2397_vm11, %v4603_v17  ;;  %v2373_v63 = vadd.f32 %v2357_v10, %v2287_v20  ;;  %v2204_v27 = vadd.f32 %v2194_v55, %v2117_v52 }
 0x200   : > { %v2385_v2 = vadd.f32 %v4547_v43, %v2373_v63 }
 0x202   : > { %v2393_v15 = vmax.f32 %v2385_v2, 0.0  ;;  %v3093_v2 = vld [vmem:[#allocation3 + $0xe1] sm:$0xff] }
 0x203   : > { %v4629_v4 = vld [vmem:[#allocation3 + $0x68] sm:$0xff] }
 0x204   : > { %v4631_v34 = vld [vmem:[#allocation3 + $0x67] sm:$0xff]  ;;  %2434 = vst.msk [vmem:[#allocation3 + $0x80] sm:$0xff] %vm2397_vm11, %v2393_v15  ;;  %3355 = vmatmul.msk.f32.gmra.mxu1 %vm2397_vm11, %v4629_v4  ;;  %v2280_v39 = vpop.f32.mrf.mxu3 }
 0x205   : > { %v4633_v51 = vld [vmem:[#allocation3 + $0x69] sm:$0xff]  ;;  %3363 = vmatmul.msk.f32.gmra.mxu2 %vm2397_vm11, %v4631_v34  ;;  %3380 = vmatmul.msk.f32.gmra.mxu0 %vm2397_vm11, %v4631_v34  ;;  %v2360_v29 = vpop.f32.mrf.mxu0  ;;  %v2290_v18 = vadd.f32 %v2280_v39, %v2204_v27  ;;  %v2563_v50 = vpop.f32.mrf.mxu2 }
 0x206   : > { %3372 = vmatmul.msk.f32.gmra.mxu3 %vm2397_vm11, %v4633_v51  ;;  %v2374_v24 = vadd.f32 %v2360_v29, %v2288_v32 }
 0x208   : > { %v2386_v19 = vadd.f32 %v4547_v43, %v2374_v24 }
 0x20a   : > { %v2394_v11 = vmax.f32 %v2386_v19, 0.0 }
 0x20b   : > { %v2452_v0 = vld [vmem:[#allocation3 + $0x80] sm:$0xff] }
 0x20c   : > { %v2443_v40 = vld [vmem:[#allocation3 + $0x7f] sm:$0xff]  ;;  %2435 = vst.msk [vmem:[#allocation3 + $0x98] sm:$0xff] %vm2397_vm11, %v2394_v11  ;;  %3356 = vmatmul.msk.f32.gmra.mxu1 %vm2397_vm11, %v2452_v0  ;;  %v2638_v62 = vpop.f32.mrf.mxu3 }
 0x20d   : > { %v4650_v56 = vld [vmem:[#allocation3 + $0x81] sm:$0xff]  ;;  %3364 = vmatmul.msk.f32.gmra.mxu2 %vm2397_vm11, %v2443_v40  ;;  %3381 = vmatmul.msk.f32.gmra.mxu0 %vm2397_vm11, %v2443_v40  ;;  %v2363_v57 = vpop.f32.mrf.mxu0 }
 0x20e   : > { %3373 = vmatmul.msk.f32.gmra.mxu3 %vm2397_vm11, %v4650_v56  ;;  %v2375_v6 = vadd.f32 %v2363_v57, %v2289_v59 }
 0x210   : > { %v2387_v12 = vadd.f32 %v4547_v43, %v2375_v6 }
 0x212   : > { %v2395_v48 = vmax.f32 %v2387_v12, 0.0 }
 0x213   : > { %v2453_v36 = vld [vmem:[#allocation3 + $0x98] sm:$0xff] }
 0x214   : > { %v2444_v42 = vld [vmem:[#allocation3 + $0x97] sm:$0xff]  ;;  %2436 = vst.msk [vmem:[#allocation3 + $0xb0] sm:$0xff] %vm2397_vm11, %v2395_v48  ;;  %3357 = vmatmul.msk.f32.gmra.mxu1 %vm2397_vm11, %v2453_v36 }
 0x215   : > { %v4659_v13 = vld [vmem:[#allocation3 + $0x99] sm:$0xff]  ;;  %3365 = vmatmul.msk.f32.gmra.mxu2 %vm2397_vm11, %v2444_v42  ;;  %3382 = vmatmul.msk.f32.gmra.mxu0 %vm2397_vm11, %v2444_v42  ;;  %v2366_v1 = vpop.f32.mrf.mxu0 }
 0x216   : > { %3374 = vmatmul.msk.f32.gmra.mxu3 %vm2397_vm11, %v4659_v13  ;;  %v2376_v47 = vadd.f32 %v2366_v1, %v2290_v18 }
 0x218   : > { %v2388_v35 = vadd.f32 %v4547_v43, %v2376_v47  ;;  %v2927_v43 = vld [vmem:[#allocation3 + $0xdf] sm:$0xff] }
 0x21a   : > { %v2396_v30 = vmax.f32 %v2388_v35, 0.0 }
 0x21b   : > { %v2454_v49 = vld [vmem:[#allocation3 + $0xb0] sm:$0xff] }
 0x21c   : > { %v2445_v21 = vld [vmem:[#allocation3 + $0xaf] sm:$0xff]  ;;  %2437 = vst.msk [vmem:[#allocation3 + $0xc8] sm:$0xff] %vm2397_vm11, %v2396_v30  ;;  %3358 = vmatmul.msk.f32.gmra.mxu1 %vm2397_vm11, %v2454_v49 }
 0x21d   : > { %v2594_v28 = vld [vmem:[#allocation3 + $0xb1] sm:$0xff]  ;;  %3366 = vmatmul.msk.f32.gmra.mxu2 %vm2397_vm11, %v2445_v21  ;;  %3383 = vmatmul.msk.f32.gmra.mxu0 %vm2397_vm11, %v2445_v21 }
 0x21e   : > { %3375 = vmatmul.msk.f32.gmra.mxu3 %vm2397_vm11, %v2594_v28 }
 0x223   : > { %v2677_v20 = vld [vmem:[#allocation3 + $0xc7] sm:$0xff] }
 0x224   : > { %3386 = vmatmul.msk.f32.vlgmr.msrb.gmra.mxu1 %vm2397_vm11, %v4561_v37  ;;  %v2760_v37 = vld [vmem:[#allocation3 + $0xc8] sm:$0xff] }
 0x225   : > { %3395 = vmatmul.msk.f32.vlgmr.msra.gmra.mxu2 %vm2397_vm11, %v4563_v5  ;;  %3384 = vmatmul.msk.f32.gmra.mxu0 %vm2397_vm11, %v2677_v20  ;;  %v2843_v5 = vld [vmem:[#allocation3 + $0xc9] sm:$0xff] }
 0x226   : > { %3404 = vmatmul.msk.f32.vlgmr.msra.gmra.mxu3 %vm2397_vm11, %v4580_v7  ;;  %v3010_v7 = vld [vmem:[#allocation3 + $0xe0] sm:$0xff] }
 0x22c   : > { %3387 = vmatmul.msk.f32.gmra.mxu1 %vm2397_vm11, %v4578_v54 }
 0x22d   : > { %3396 = vmatmul.msk.f32.gmra.mxu2 %vm2397_vm11, %v4582_v44  ;;  %3413 = vmatmul.msk.f32.vlgmr.msra.gmra.mxu0 %vm2397_vm11, %v4578_v54  ;;  %v2498_v54 = vpop.f32.mrf.mxu1 }
 0x22e   : > { %3405 = vmatmul.msk.f32.gmra.mxu3 %vm2397_vm11, %v4601_v25  ;;  %v2564_v52 = vadd.f32 %v2563_v50, %v2498_v54 }
 0x230   : > { %v2662_v39 = vadd.f32 %v2638_v62, %v2564_v52 }
 0x234   : > { %3388 = vmatmul.msk.f32.gmra.mxu1 %vm2397_vm11, %v4599_v14 }
 0x235   : > { %3397 = vmatmul.msk.f32.gmra.mxu2 %vm2397_vm11, %v4603_v17  ;;  %3414 = vmatmul.msk.f32.gmra.mxu0 %vm2397_vm11, %v4599_v14 }
 0x236   : > { %3406 = vmatmul.msk.f32.gmra.mxu3 %vm2397_vm11, %v4631_v34 }
 0x23c   : > { %3389 = vmatmul.msk.f32.gmra.mxu1 %vm2397_vm11, %v4629_v4 }
 0x23d   : > { %3398 = vmatmul.msk.f32.gmra.mxu2 %vm2397_vm11, %v4633_v51  ;;  %3415 = vmatmul.msk.f32.gmra.mxu0 %vm2397_vm11, %v4629_v4 }
 0x23e   : > { %3407 = vmatmul.msk.f32.gmra.mxu3 %vm2397_vm11, %v2443_v40 }
 0x244   : > { %3390 = vmatmul.msk.f32.gmra.mxu1 %vm2397_vm11, %v2452_v0 }
 0x245   : > { %3399 = vmatmul.msk.f32.gmra.mxu2 %vm2397_vm11, %v4650_v56  ;;  %3416 = vmatmul.msk.f32.gmra.mxu0 %vm2397_vm11, %v2452_v0 }
 0x246   : > { %3408 = vmatmul.msk.f32.gmra.mxu3 %vm2397_vm11, %v2444_v42 }
 0x24c   : > { %3391 = vmatmul.msk.f32.gmra.mxu1 %vm2397_vm11, %v2453_v36 }
 0x24d   : > { %3400 = vmatmul.msk.f32.gmra.mxu2 %vm2397_vm11, %v4659_v13  ;;  %3417 = vmatmul.msk.f32.gmra.mxu0 %vm2397_vm11, %v2453_v36 }
 0x24e   : > { %3409 = vmatmul.msk.f32.gmra.mxu3 %vm2397_vm11, %v2445_v21 }
 0x254   : > { %3392 = vmatmul.msk.f32.gmra.mxu1 %vm2397_vm11, %v2454_v49 }
 0x255   : > { %3401 = vmatmul.msk.f32.gmra.mxu2 %vm2397_vm11, %v2594_v28  ;;  %3418 = vmatmul.msk.f32.gmra.mxu0 %vm2397_vm11, %v2454_v49 }
 0x256   : > { %3410 = vmatmul.msk.f32.gmra.mxu3 %vm2397_vm11, %v2677_v20 }
 0x25c   : > { %3393 = vmatmul.msk.f32.gmra.mxu1 %vm2397_vm11, %v2760_v37 }
 0x25d   : > { %3402 = vmatmul.msk.f32.gmra.mxu2 %vm2397_vm11, %v2843_v5  ;;  %3419 = vmatmul.msk.f32.gmra.mxu0 %vm2397_vm11, %v2760_v37 }
 0x25e   : > { %3411 = vmatmul.msk.f32.gmra.mxu3 %vm2397_vm11, %v2927_v43 }
 0x264   : > { %3422 = vmatmul.msk.f32.vlgmr.msra.gmra.mxu1 %vm2397_vm11, %v4582_v44 }
 0x265   : > { %3420 = vmatmul.msk.f32.gmra.mxu0 %vm2397_vm11, %v3010_v7 }
 0x269   : > { %v2501_v14 = vpop.f32.mrf.mxu1 }
 0x26a   : > { %v2721_v58 = vpop.f32.mrf.mxu0 }
 0x26b   : > { %v2745_v12 = vadd.f32 %v2721_v58, %v2662_v39 }
 0x26c   : > { %3423 = vmatmul.msk.f32.gmra.mxu1 %vm2397_vm11, %v4603_v17 }
 0x270   : > { %v2566_v9 = vpop.f32.mrf.mxu2 }
 0x271   : > { %v2504_v25 = vpop.f32.mrf.mxu1  ;;  %v2641_v10 = vpop.f32.mrf.mxu3  ;;  %v2567_v48 = vadd.f32 %v2566_v9, %v2501_v14 }
 0x272   : > { %v2724_v45 = vpop.f32.mrf.mxu0 }
 0x273   : > { %v2663_v42 = vadd.f32 %v2641_v10, %v2567_v48 }
 0x274   : > { %3424 = vmatmul.msk.f32.gmra.mxu1 %vm2397_vm11, %v4633_v51 }
 0x275   : > { %v2746_v30 = vadd.f32 %v2724_v45, %v2663_v42 }
 0x278   : > { %v2569_v8 = vpop.f32.mrf.mxu2 }
 0x279   : > { %v4728_v60 = vpop.f32.mrf.mxu1  ;;  %v2644_v63 = vpop.f32.mrf.mxu3  ;;  %v2570_v49 = vadd.f32 %v2569_v8, %v2504_v25 }
 0x27a   : > { %v2727_v41 = vpop.f32.mrf.mxu0 }
 0x27b   : > { %v2664_v20 = vadd.f32 %v2644_v63, %v2570_v49 }
 0x27c   : > { %3425 = vmatmul.msk.f32.gmra.mxu1 %vm2397_vm11, %v4650_v56 }
 0x27d   : > { %v2747_v50 = vadd.f32 %v2727_v41, %v2664_v20 }
 0x280   : > { %v2572_v3 = vpop.f32.mrf.mxu2 }
 0x281   : > { %v4732_v44 = vpop.f32.mrf.mxu1  ;;  %v2647_v38 = vpop.f32.mrf.mxu3  ;;  %v2573_v62 = vadd.f32 %v2572_v3, %v4728_v60 }
 0x282   : > { %v4745_v15 = vpop.f32.mrf.mxu0 }
 0x283   : > { %v2665_v63 = vadd.f32 %v2647_v38, %v2573_v62 }
 0x284   : > { %3426 = vmatmul.msk.f32.gmra.mxu1 %vm2397_vm11, %v4659_v13 }
 0x288   : > { %v4747_v32 = vpop.f32.mrf.mxu2 }
 0x289   : > { %v4736_v17 = vpop.f32.mrf.mxu1  ;;  %v4749_v34 = vpop.f32.mrf.mxu3 }
 0x28a   : > { %v4751_v51 = vpop.f32.mrf.mxu0 }
 0x28c   : > { %3427 = vmatmul.msk.f32.gmra.mxu1 %vm2397_vm11, %v2594_v28 }
 0x290   : > { %v4753_v23 = vpop.f32.mrf.mxu2 }
 0x291   : > { %v4739_v31 = vpop.f32.mrf.mxu1  ;;  %v4755_v29 = vpop.f32.mrf.mxu3 }
 0x292   : > { %v4757_v33 = vpop.f32.mrf.mxu0 }
 0x294   : > { %3428 = vmatmul.msk.f32.gmra.mxu1 %vm2397_vm11, %v2843_v5  ;;  %v4782_v5 = vld [vmem:[%s4843_s4] ss:$0 sm:$0xff] }
 0x298   : > { %v4759_v24 = vpop.f32.mrf.mxu2 }
 0x299   : > { %v4742_v16 = vpop.f32.mrf.mxu1  ;;  %v4761_v53 = vpop.f32.mrf.mxu3 }
 0x29a   : > { %v4763_v19 = vpop.f32.mrf.mxu0 }
 0x29c   : > { %3429 = vmatmul.msk.f32.gmra.mxu1 %vm2397_vm11, %v3093_v2 }
 0x2a0   : > { %v4765_v26 = vpop.f32.mrf.mxu2 }
 0x2a1   : > { %v2804_v4 = vpop.f32.mrf.mxu1  ;;  %v4769_v59 = vpop.f32.mrf.mxu3 }
 0x2a2   : > { %v4771_v0 = vpop.f32.mrf.mxu0  ;;  %v2828_v18 = vadd.f32 %v2804_v4, %v2745_v12 }
 0x2a8   : > { %v2887_v40 = vpop.f32.mrf.mxu2 }
 0x2a9   : > { %v2807_v22 = vpop.f32.mrf.mxu1  ;;  %v2971_v55 = vpop.f32.mrf.mxu3  ;;  %v2911_v13 = vadd.f32 %v2887_v40, %v2828_v18  ;;  %v2576_v40 = vadd.f32 %v4747_v32, %v4732_v44  ;;  %v2579_v44 = vadd.f32 %v4753_v23, %v4736_v17  ;;  %v2582_v23 = vadd.f32 %v4759_v24, %v4739_v31 }
 0x2aa   : > { %v3054_v57 = vpop.f32.mrf.mxu0  ;;  %v2829_v28 = vadd.f32 %v2807_v22, %v2746_v30  ;;  %v2748_v22 = vadd.f32 %v4745_v15, %v2665_v63  ;;  %v2585_v24 = vadd.f32 %v4765_v26, %v4742_v16 }
 0x2ab   : > { %v2995_v21 = vadd.f32 %v2971_v55, %v2911_v13  ;;  %v2666_v39 = vadd.f32 %v4749_v34, %v2576_v40  ;;  %v2667_v34 = vadd.f32 %v4755_v29, %v2579_v44 }
 0x2ad   : > { %v3078_v43 = vadd.f32 %v3054_v57, %v2995_v21  ;;  %v2749_v15 = vadd.f32 %v4751_v51, %v2666_v39  ;;  %v2750_v17 = vadd.f32 %v4757_v33, %v2667_v34 }
 0x2b0   : > { %v2890_v6 = vpop.f32.mrf.mxu2 }
 0x2b1   : > { %v2810_v46 = vpop.f32.mrf.mxu1  ;;  %v2974_v36 = vpop.f32.mrf.mxu3  ;;  %v2912_v37 = vadd.f32 %v2890_v6, %v2829_v28 }
 0x2b2   : > { %v3057_v47 = vpop.f32.mrf.mxu0  ;;  %v2830_v45 = vadd.f32 %v2810_v46, %v2747_v50 }
 0x2b3   : > { %v2996_v58 = vadd.f32 %v2974_v36, %v2912_v37 }
 0x2b5   : > { %v3079_v2 = vadd.f32 %v3057_v47, %v2996_v58 }
 0x2b8   : > { %v2893_v35 = vpop.f32.mrf.mxu2 }
 0x2b9   : > { %v2813_v61 = vpop.f32.mrf.mxu1  ;;  %v2977_v54 = vpop.f32.mrf.mxu3  ;;  %v2913_v4 = vadd.f32 %v2893_v35, %v2830_v45 }
 0x2ba   : > { %v3060_v9 = vpop.f32.mrf.mxu0  ;;  %v2831_v57 = vadd.f32 %v2813_v61, %v2748_v22 }
 0x2bb   : > { %v2997_v55 = vadd.f32 %v2977_v54, %v2913_v4  ;;  %v2668_v54 = vadd.f32 %v4761_v53, %v2582_v23 }
 0x2bd   : > { %v3080_v12 = vadd.f32 %v3060_v9, %v2997_v55  ;;  %v2751_v31 = vadd.f32 %v4763_v19, %v2668_v54 }
 0x2c0   : > { %v2896_v10 = vpop.f32.mrf.mxu2 }
 0x2c1   : > { %v4767_v11 = vpop.f32.mrf.mxu1  ;;  %v2980_v3 = vpop.f32.mrf.mxu3  ;;  %v2914_v48 = vadd.f32 %v2896_v10, %v2831_v57  ;;  %v2669_v10 = vadd.f32 %v4769_v59, %v2585_v24 }
 0x2c2   : > { %v3063_v46 = vpop.f32.mrf.mxu0  ;;  %v2832_v13 = vadd.f32 %v4767_v11, %v2749_v15 }
 0x2c3   : > { %v2998_v32 = vadd.f32 %v2980_v3, %v2914_v48  ;;  %v2752_v19 = vadd.f32 %v4771_v0, %v2669_v10 }
 0x2c5   : > { %v3081_v35 = vadd.f32 %v3063_v46, %v2998_v32 }
 0x2c8   : > { %v2899_v38 = vpop.f32.mrf.mxu2 }
 0x2c9   : > { %v4773_v56 = vpop.f32.mrf.mxu1  ;;  %v2983_v42 = vpop.f32.mrf.mxu3  ;;  %v2915_v30 = vadd.f32 %v2899_v38, %v2832_v13 }
 0x2ca   : > { %v3066_v49 = vpop.f32.mrf.mxu0 }
 0x2cb   : > { %v2999_v20 = vadd.f32 %v2983_v42, %v2915_v30 }
 0x2d0   : > { %v2902_v21 = vpop.f32.mrf.mxu2 }
 0x2d1   : > { %v4775_v27 = vpop.f32.mrf.mxu1  ;;  %v2986_v37 = vpop.f32.mrf.mxu3 }
 0x2d2   : > { %v3069_v33 = vpop.f32.mrf.mxu0 }
 0x2d8   : > { %v2905_v58 = vpop.f32.mrf.mxu2 }
 0x2d9   : > { %v4777_v1 = vpop.f32.mrf.mxu1  ;;  %v2989_v63 = vpop.f32.mrf.mxu3 }
 0x2da   : > { %v3072_v26 = vpop.f32.mrf.mxu0 }
 0x2e1   : > { %v3137_v7 = vpop.f32.mrf.mxu1  ;;  %v2992_v40 = vpop.f32.mrf.mxu3 }
 0x2e2   : > { %v3161_v14 = vadd.f32 %v3137_v7, %v3078_v43  ;;  %v2833_v43 = vadd.f32 %v4773_v56, %v2750_v17  ;;  %v3082_v7 = vadd.f32 %v3066_v49, %v2999_v20  ;;  %v3075_v46 = vpop.f32.mrf.mxu0 }
 0x2e4   : > { %v3173_v25 = vadd.f32 %v4782_v5, %v3161_v14  ;;  %v2916_v14 = vadd.f32 %v2902_v21, %v2833_v43 }
 0x2e6   : > { %v3181_v8 = vmax.f32 %v3173_v25, 0.0  ;;  %v3000_v9 = vadd.f32 %v2986_v37, %v2916_v14  ;;  %v2834_v25 = vadd.f32 %v4775_v27, %v2751_v31  ;;  %v2835_v27 = vadd.f32 %v4777_v1, %v2752_v19 }
 0x2e8   : > { %3189 = vst.msk [vmem:[%s4790_s21] sm:$0xff] %vm2397_vm11, %v3181_v8  ;;  %v3083_v45 = vadd.f32 %v3069_v33, %v3000_v9  ;;  %v2917_v8 = vadd.f32 %v2905_v58, %v2834_v25 }
 0x2e9   : > { %v3140_v60 = vpop.f32.mrf.mxu1 }
 0x2ea   : > { %v3162_v41 = vadd.f32 %v3140_v60, %v3079_v2  ;;  %v3001_v60 = vadd.f32 %v2989_v63, %v2917_v8 }
 0x2ec   : > { %v3174_v52 = vadd.f32 %v4782_v5, %v3162_v41  ;;  %v2908_v41 = vpop.f32.mrf.mxu2  ;;  %v3084_v59 = vadd.f32 %v3072_v26, %v3001_v60 }
 0x2ed   : > { %v2918_v22 = vadd.f32 %v2908_v41, %v2835_v27 }
 0x2ee   : > { %v3182_v6 = vmax.f32 %v3174_v52, 0.0 }
 0x2ef   : > { %v3002_v57 = vadd.f32 %v2992_v40, %v2918_v22 }
 0x2f0   : > { %3190 = vst.msk [vmem:[%s4790_s21 + $0x8] sm:$0xff] %vm2397_vm11, %v3182_v6 }
 0x2f1   : > { %v3143_v18 = vpop.f32.mrf.mxu1  ;;  %v3085_v38 = vadd.f32 %v3075_v46, %v3002_v57 }
 0x2f2   : > { %v3163_v36 = vadd.f32 %v3143_v18, %v3080_v12 }
 0x2f4   : > { %v3175_v61 = vadd.f32 %v4782_v5, %v3163_v36 }
 0x2f6   : > { %v3183_v47 = vmax.f32 %v3175_v61, 0.0 }
 0x2f8   : > { %3191 = vst.msk [vmem:[%s4790_s21 + $0x10] sm:$0xff] %vm2397_vm11, %v3183_v47 }
 0x2f9   : > { %v3146_v51 = vpop.f32.mrf.mxu1 }
 0x2fa   : > { %v3164_v28 = vadd.f32 %v3146_v51, %v3081_v35 }
 0x2fc   : > { %v3176_v11 = vadd.f32 %v4782_v5, %v3164_v28 }
 0x2fe   : > { %v3184_v29 = vmax.f32 %v3176_v11, 0.0 }
 0x300   : > { %3192 = vst.msk [vmem:[%s4790_s21 + $0x18] sm:$0xff] %vm2397_vm11, %v3184_v29 }
 0x301   : > { %v3149_v50 = vpop.f32.mrf.mxu1 }
 0x302   : > { %v3165_v62 = vadd.f32 %v3149_v50, %v3082_v7 }
 0x304   : > { %v3177_v56 = vadd.f32 %v4782_v5, %v3165_v62 }
 0x306   : > { %v3185_v53 = vmax.f32 %v3177_v56, 0.0 }
 0x308   : > { %3193 = vst.msk [vmem:[%s4790_s21 + $0x20] sm:$0xff] %vm2397_vm11, %v3185_v53 }
 0x309   : > { %v3152_v2 = vpop.f32.mrf.mxu1 }
 0x30a   : > { %v3166_v4 = vadd.f32 %v3152_v2, %v3083_v45 }
 0x30c   : > { %v3178_v16 = vadd.f32 %v4782_v5, %v3166_v4 }
 0x30e   : > { %v3186_v3 = vmax.f32 %v3178_v16, 0.0 }
 0x310   : > { %3194 = vst.msk [vmem:[%s4790_s21 + $0x28] sm:$0xff] %vm2397_vm11, %v3186_v3 }
 0x311   : > { %v3155_v55 = vpop.f32.mrf.mxu1 }
 0x312   : > { %v3167_v52 = vadd.f32 %v3155_v55, %v3084_v59 }
 0x314   : > { %v3179_v0 = vadd.f32 %v4782_v5, %v3167_v52 }
 0x316   : > { %v3187_v6 = vmax.f32 %v3179_v0, 0.0 }
 0x318   : > { %3195 = vst.msk [vmem:[%s4790_s21 + $0x30] sm:$0xff] %vm2397_vm11, %v3187_v6 }
 0x319   : > { %v3158_v39 = vpop.f32.mrf.mxu1 }
 0x31a   : > { %v3168_v12 = vadd.f32 %v3158_v39, %v3085_v38 }
 0x31c   : > { %v3180_v1 = vadd.f32 %v4782_v5, %v3168_v12 }
 0x31e   : > { %v3188_v48 = vmax.f32 %v3180_v1, 0.0 }
 0x320   : > { %3196 = vst.msk [vmem:[%s4790_s21 + $0x38] sm:$0xff] %vm2397_vm11, %v3188_v48 }
 0x321 PF: > { %s15_s18 = sadd.s32 1, %s3453_s18  }
 0x322   : > { %p12_p4 = scmp.ge.s32.totalorder %s15_s18, 4  }
 0x324   :  { %14 = sbr.rel (!%p12_p4) target bundleno = 1 (0x1), region = 90 }

</bundles_post_ra>
